<compile_context>
chip_gen: v7x
topology: tpu7x:2x2x1
jax: 0.10.0
libtpu: 0.0.40
codegen_flags: <defaults>
</compile_context>

<pallas_src>
import numpy as np
import jax
import jax.numpy as jnp
from jax import lax
from jax.experimental import pallas as pl
from jax.experimental.pallas import tpu as pltpu


# ------------------------- fused Pallas kernel -------------------------

def _packed_deconv_layer(a, wbig, bias2d):
    """One ConvTranspose2d(k=3, s=2, p=0) layer in column-packed layout.

    a       : (Hin, Wp, P*Cin)      packed input  (real column = P*wp + p)
    wbig    : (P*Cin, 12*P*Cout)    folded weights, lanes ordered (kh, main/carry, p', co)
    bias2d  : (Wp+1, 2*P*Cout)      bias, zeroed on phantom (out-of-range) columns
    returns : (2*Hin+1, Wp+1, 2*P*Cout)  packed output with P' = 2*P
    """
    Hin, Wp, K = a.shape
    Wp_out, L = bias2d.shape                      # L = 2*P*Cout
    assert K == wbig.shape[0] and wbig.shape[1] == 6 * L and Wp_out == Wp + 1

    # Single MXU matmul covering all 9 taps of this layer.
    y = jnp.dot(a.reshape(Hin * Wp, K), wbig, preferred_element_type=jnp.float32)
    y = y.reshape(Hin, Wp, 6 * L)

    # Column scatter: per row-tap kh, the "main" block lands on packed column wp,
    # the single carry term (p = P-1, kw = 2) lands on packed column wp+1.
    zc = jnp.zeros((Hin, 1, L), jnp.float32)
    bands = []
    for kh in range(3):
        main = y[:, :, (2 * kh) * L:(2 * kh + 1) * L]
        carry = y[:, :, (2 * kh + 1) * L:(2 * kh + 2) * L]
        bands.append(jnp.concatenate([main, zc], axis=1)
                     + jnp.concatenate([zc, carry], axis=1))   # (Hin, Wp+1, L)

    # Row scatter: output row = 2*ih + kh.
    zr = jnp.zeros((1, Wp_out, L), jnp.float32)
    erows = (jnp.concatenate([bands[0], zr], axis=0)
             + jnp.concatenate([zr, bands[2]], axis=0) + bias2d[None])   # even rows
    orows = jnp.concatenate([bands[1] + bias2d[None], zr], axis=0)       # odd rows (padded)

    # Row interleave: leading-dim stack + reshape + slice (no relayout of tiled dims).
    inter = jnp.stack([erows, orows], axis=1).reshape(2 * (Hin + 1), Wp_out, L)
    return inter[: 2 * Hin + 1]


def _fused_decoder_kernel(x_ref, w1_ref, b1_ref, w2_ref, b2_ref, w3_ref, b3_ref,
                          out_ref):
    a = x_ref[0]                                   # (H0, W0, Cin): packed with P = 1
    for w_ref, b_ref in ((w1_ref, b1_ref), (w2_ref, b2_ref), (w3_ref, b3_ref)):
        a = _packed_deconv_layer(a, w_ref[...], b_ref[...])
    out_ref[0] = a                                 # (H3, Wp3, 8*Cout)


# ------------------------- wrapper / preprocessing -------------------------

def preprocess_decoder_params(params, W0):
    """One-time folding of PyTorch ConvTranspose2d params into packed matmul weights.

    params: list of (weight (Cin, Cout, 3, 3), bias (Cout,)) in PyTorch layout.
    Returns per layer: (wbig (P*Cin, 12*P*Cout), bias2d (Wp+1, 2*P*Cout)).
    """
    packed = []
    P, Wp, Win = 1, W0, W0
    for w_t, b_t in params:
        w = np.asarray(w_t, dtype=np.float32)
        bias = np.asarray(b_t, dtype=np.float32)
        Cin, Cout = w.shape[0], w.shape[1]
        Pp, Wout, Wp_out = 2 * P, 2 * Win + 1, Wp + 1

        wbig = np.zeros((P * Cin, 3 * 2 * Pp * Cout), dtype=np.float32)
        for kh in range(3):
            for p in range(P):
                for kw in range(3):
                    s = 2 * p + kw                           # lane offset within packed col
                    grp, pp = (0, s) if s < Pp else (1, 0)   # s == 2P -> carry to wp+1
                    col = ((2 * kh + grp) * Pp + pp) * Cout
                    wbig[p * Cin:(p + 1) * Cin, col:col + Cout] += w[:, :, kh, kw]

        bias2d = np.zeros((Wp_out, Pp * Cout), dtype=np.float32)
        for wp in range(Wp_out):
            for pp in range(Pp):
                if Pp * wp + pp < Wout:                      # mask phantom columns
                    bias2d[wp, pp * Cout:(pp + 1) * Cout] = bias

        packed.append((jnp.asarray(wbig), jnp.asarray(bias2d)))
        P, Wp, Win = Pp, Wp_out, Wout
    return tuple(packed)


def decoder_forward(x_nchw, packed_params):
    """x_nchw: (N, Cin, H, W).  packed_params: output of preprocess_decoder_params."""
    N, C0, H0, W0 = x_nchw.shape
    (w1, b1), (w2, b2), (w3, b3) = packed_params

    x_nhwc = jnp.transpose(x_nchw, (0, 2, 3, 1))
    H3, W3 = 8 * H0 + 7, 8 * W0 + 7
    Wp3, L3 = b3.shape
    P3 = 8
    C3 = L3 // P3

    out_packed = pl.pallas_call(
        _fused_decoder_kernel,
        out_shape=jax.ShapeDtypeStruct((N, H3, Wp3, L3), jnp.float32),
        grid=(N,),
        in_specs=[
            pl.BlockSpec((1, H0, W0, C0), lambda n: (n, 0, 0, 0)),
            pl.BlockSpec(w1.shape, lambda n: (0, 0)),
            pl.BlockSpec(b1.shape, lambda n: (0, 0)),
            pl.BlockSpec(w2.shape, lambda n: (0, 0)),
            pl.BlockSpec(b2.shape, lambda n: (0, 0)),
            pl.BlockSpec(w3.shape, lambda n: (0, 0)),
            pl.BlockSpec(b3.shape, lambda n: (0, 0)),
        ],
        out_specs=pl.BlockSpec((1, H3, Wp3, L3), lambda n: (n, 0, 0, 0)),
        compiler_params=pltpu.CompilerParams(dimension_semantics=("parallel",)),
    )(x_nhwc, w1, b1, w2, b2, w3, b3)

    # Unpack (N, H3, Wp3, P3*C3) -> NCHW (N, C3, H3, W3): one-time XLA glue on the output.
    out = out_packed.reshape(N, H3, Wp3, P3, C3)
    out = jnp.transpose(out, (0, 4, 1, 2, 3)).reshape(N, C3, H3, Wp3 * P3)
    return out[:, :, :, :W3]


# ------------------------- parameters -------------------------

def init_decoder_params(key, channels_in, channels_out):
    """Deterministic synthetic parameters matching Decoder.__init__ shapes (PyTorch layout)."""
    dims = [(channels_in, 16), (16, 8), (8, channels_out)]
    params = []
    for i, (ci, co) in enumerate(dims):
        kw_key, kb_key = jax.random.split(jax.random.fold_in(key, i))
        fan_in = ci * 9
        w = jax.random.normal(kw_key, (ci, co, 3, 3), jnp.float32) / jnp.sqrt(fan_in)
        b = jax.random.normal(kb_key, (co,), jnp.float32) * 0.05
        params.append((w, b))
    return params


# ---------- pure-JAX reference (for verification only) ----------

def _conv_transpose_ref(x_nchw, w_torch, b, stride=2):
    N, Ci, H, W = x_nchw.shape
    _, Co, KH, KW = w_torch.shape
    Ho, Wo = (H - 1) * stride + KH, (W - 1) * stride + KW
    out = jnp.broadcast_to(b.reshape(1, Co, 1, 1), (N, Co, Ho, Wo)).astype(jnp.float32)
    for kh in range(KH):
        for kw in range(KW):
            contrib = jnp.einsum('nchw,cd->ndhw', x_nchw, w_torch[:, :, kh, kw],
                                 precision=lax.Precision.HIGHEST)
            out = out.at[:, :, kh:kh + stride * H:stride, kw:kw + stride * W:stride].add(contrib)
    return out


def decoder_ref(x, params):
    for w_torch, b in params:
        x = _conv_transpose_ref(x, w_torch, b)
    return x


if __name__ == "__main__":
    key = jax.random.PRNGKey(0)
    channels_in, channels_out = 4, 4
    N, H, W = 2, 8, 8

    x = jax.random.normal(jax.random.fold_in(key, 100), (N, channels_in, H, W), jnp.float32)
    params = init_decoder_params(key, channels_in, channels_out)
    packed = preprocess_decoder_params(params, W)          # one-time weight folding

    fwd = jax.jit(decoder_forward)
    out = jax.block_until_ready(fwd(x, packed))
    assert out.shape == (N, channels_out, 71, 71), out.shape   # 8 -> 17 -> 35 -> 71

    ref = decoder_ref(x, params)
    max_err = float(jnp.max(jnp.abs(out - ref)))
    if not jnp.allclose(out, ref, rtol=1e-3, atol=1e-3):
        raise AssertionError(f"Pallas decoder mismatch vs reference, max abs err = {max_err}")

    print("KERNEL_OK")
</pallas_src>

<mosaic_0001>
module attributes {stable_mosaic.version = 11 : i64} {
  func.func @_fused_decoder_kernel(%arg0: i32, %arg1: memref<1x8x8x4xf32, #tpu.memory_space<vmem>>, %arg2: memref<4x192xf32, #tpu.memory_space<vmem>>, %arg3: memref<9x32xf32, #tpu.memory_space<vmem>>, %arg4: memref<32x192xf32, #tpu.memory_space<vmem>>, %arg5: memref<10x32xf32, #tpu.memory_space<vmem>>, %arg6: memref<32x192xf32, #tpu.memory_space<vmem>>, %arg7: memref<11x32xf32, #tpu.memory_space<vmem>>, %arg8: memref<1x71x11x32xf32, #tpu.memory_space<vmem>>) attributes {dimension_semantics = [#tpu.dimension_semantics<parallel>], iteration_bounds = array<i64: 2>, scalar_prefetch = 0 : i64, scratch_operands = 0 : i64, tpu.core_type = #tpu.core_type<tc>, window_params = [{transform_indices = @transform_0, window_bounds = array<i64: 1, 8, 8, 4>}, {pipeline_mode = #tpu.pipeline_mode<synchronous>, transform_indices = @transform_1, window_bounds = array<i64: 4, 192>}, {pipeline_mode = #tpu.pipeline_mode<synchronous>, transform_indices = @transform_2, window_bounds = array<i64: 9, 32>}, {pipeline_mode = #tpu.pipeline_mode<synchronous>, transform_indices = @transform_3, window_bounds = array<i64: 32, 192>}, {pipeline_mode = #tpu.pipeline_mode<synchronous>, transform_indices = @transform_4, window_bounds = array<i64: 10, 32>}, {pipeline_mode = #tpu.pipeline_mode<synchronous>, transform_indices = @transform_5, window_bounds = array<i64: 32, 192>}, {pipeline_mode = #tpu.pipeline_mode<synchronous>, transform_indices = @transform_6, window_bounds = array<i64: 11, 32>}, {transform_indices = @transform_7, window_bounds = array<i64: 1, 71, 11, 32>}]} {
    %c0 = arith.constant 0 : index
    %c0_0 = arith.constant 0 : index
    %c0_1 = arith.constant 0 : index
    %c0_2 = arith.constant 0 : index
    %0 = vector.load %arg1[%c0, %c0_0, %c0_1, %c0_2] : memref<1x8x8x4xf32, #tpu.memory_space<vmem>>, vector<1x8x8x4xf32>
    %1 = vector.shape_cast %0 : vector<1x8x8x4xf32> to vector<8x8x4xf32>
    %c0_3 = arith.constant 0 : index
    %c0_4 = arith.constant 0 : index
    %2 = vector.load %arg2[%c0_3, %c0_4] : memref<4x192xf32, #tpu.memory_space<vmem>>, vector<4x192xf32>
    %c0_5 = arith.constant 0 : index
    %c0_6 = arith.constant 0 : index
    %3 = vector.load %arg3[%c0_5, %c0_6] : memref<9x32xf32, #tpu.memory_space<vmem>>, vector<9x32xf32>
    %4 = vector.shape_cast %1 : vector<8x8x4xf32> to vector<64x4xf32>
    %cst = arith.constant dense<0.000000e+00> : vector<64x192xf32>
    %5 = tpu.matmul %4, %2, %cst {dimension_numbers = #tpu.dot_dimension_numbers<[1], [0], [0], [1], [0, 0, 1, 1], [], []>} : vector<64x4xf32>, vector<4x192xf32>, vector<64x192xf32> -> vector<64x192xf32>
    %6 = vector.shape_cast %5 : vector<64x192xf32> to vector<8x8x192xf32>
    %cst_7 = arith.constant 0.000000e+00 : f32
    %7 = vector.broadcast %cst_7 : f32 to vector<8x1x32xf32>
    %8 = vector.extract_strided_slice %6 {offsets = [0, 0, 0], sizes = [8, 8, 32], strides = [1, 1, 1]} : vector<8x8x192xf32> to vector<8x8x32xf32>
    %9 = vector.extract_strided_slice %6 {offsets = [0, 0, 32], sizes = [8, 8, 32], strides = [1, 1, 1]} : vector<8x8x192xf32> to vector<8x8x32xf32>
    %10 = tpu.concatenate %8, %7 in 1 : vector<8x8x32xf32>, vector<8x1x32xf32> -> vector<8x9x32xf32>
    %11 = tpu.concatenate %7, %9 in 1 : vector<8x1x32xf32>, vector<8x8x32xf32> -> vector<8x9x32xf32>
    %12 = arith.addf %10, %11 : vector<8x9x32xf32>
    %13 = vector.extract_strided_slice %6 {offsets = [0, 0, 64], sizes = [8, 8, 32], strides = [1, 1, 1]} : vector<8x8x192xf32> to vector<8x8x32xf32>
    %14 = vector.extract_strided_slice %6 {offsets = [0, 0, 96], sizes = [8, 8, 32], strides = [1, 1, 1]} : vector<8x8x192xf32> to vector<8x8x32xf32>
    %15 = tpu.concatenate %13, %7 in 1 : vector<8x8x32xf32>, vector<8x1x32xf32> -> vector<8x9x32xf32>
    %16 = tpu.concatenate %7, %14 in 1 : vector<8x1x32xf32>, vector<8x8x32xf32> -> vector<8x9x32xf32>
    %17 = arith.addf %15, %16 : vector<8x9x32xf32>
    %18 = vector.extract_strided_slice %6 {offsets = [0, 0, 128], sizes = [8, 8, 32], strides = [1, 1, 1]} : vector<8x8x192xf32> to vector<8x8x32xf32>
    %19 = vector.extract_strided_slice %6 {offsets = [0, 0, 160], sizes = [8, 8, 32], strides = [1, 1, 1]} : vector<8x8x192xf32> to vector<8x8x32xf32>
    %20 = tpu.concatenate %18, %7 in 1 : vector<8x8x32xf32>, vector<8x1x32xf32> -> vector<8x9x32xf32>
    %21 = tpu.concatenate %7, %19 in 1 : vector<8x1x32xf32>, vector<8x8x32xf32> -> vector<8x9x32xf32>
    %22 = arith.addf %20, %21 : vector<8x9x32xf32>
    %cst_8 = arith.constant 0.000000e+00 : f32
    %23 = vector.broadcast %cst_8 : f32 to vector<1x9x32xf32>
    %24 = tpu.concatenate %12, %23 in 0 : vector<8x9x32xf32>, vector<1x9x32xf32> -> vector<9x9x32xf32>
    %25 = tpu.concatenate %23, %22 in 0 : vector<1x9x32xf32>, vector<8x9x32xf32> -> vector<9x9x32xf32>
    %26 = arith.addf %24, %25 : vector<9x9x32xf32>
    %27 = vector.shape_cast %3 : vector<9x32xf32> to vector<1x9x32xf32>
    %28 = vector.broadcast %27 : vector<1x9x32xf32> to vector<9x9x32xf32>
    %29 = arith.addf %26, %28 : vector<9x9x32xf32>
    %30 = vector.shape_cast %3 : vector<9x32xf32> to vector<1x9x32xf32>
    %31 = vector.broadcast %30 : vector<1x9x32xf32> to vector<8x9x32xf32>
    %32 = arith.addf %17, %31 : vector<8x9x32xf32>
    %33 = tpu.concatenate %32, %23 in 0 : vector<8x9x32xf32>, vector<1x9x32xf32> -> vector<9x9x32xf32>
    %34 = vector.shape_cast %29 : vector<9x9x32xf32> to vector<9x1x9x32xf32>
    %35 = vector.shape_cast %33 : vector<9x9x32xf32> to vector<9x1x9x32xf32>
    %36 = tpu.concatenate %34, %35 in 1 : vector<9x1x9x32xf32>, vector<9x1x9x32xf32> -> vector<9x2x9x32xf32>
    %37 = vector.shape_cast %36 : vector<9x2x9x32xf32> to vector<18x9x32xf32>
    %38 = vector.extract_strided_slice %37 {offsets = [0, 0, 0], sizes = [17, 9, 32], strides = [1, 1, 1]} : vector<18x9x32xf32> to vector<17x9x32xf32>
    %c0_9 = arith.constant 0 : index
    %c0_10 = arith.constant 0 : index
    %39 = vector.load %arg4[%c0_9, %c0_10] : memref<32x192xf32, #tpu.memory_space<vmem>>, vector<32x192xf32>
    %c0_11 = arith.constant 0 : index
    %c0_12 = arith.constant 0 : index
    %40 = vector.load %arg5[%c0_11, %c0_12] : memref<10x32xf32, #tpu.memory_space<vmem>>, vector<10x32xf32>
    %41 = vector.shape_cast %38 : vector<17x9x32xf32> to vector<153x32xf32>
    %cst_13 = arith.constant dense<0.000000e+00> : vector<153x192xf32>
    %42 = tpu.matmul %41, %39, %cst_13 {dimension_numbers = #tpu.dot_dimension_numbers<[1], [0], [0], [1], [0, 0, 1, 1], [], []>} : vector<153x32xf32>, vector<32x192xf32>, vector<153x192xf32> -> vector<153x192xf32>
    %43 = vector.shape_cast %42 : vector<153x192xf32> to vector<17x9x192xf32>
    %cst_14 = arith.constant 0.000000e+00 : f32
    %44 = vector.broadcast %cst_14 : f32 to vector<17x1x32xf32>
    %45 = vector.extract_strided_slice %43 {offsets = [0, 0, 0], sizes = [17, 9, 32], strides = [1, 1, 1]} : vector<17x9x192xf32> to vector<17x9x32xf32>
    %46 = vector.extract_strided_slice %43 {offsets = [0, 0, 32], sizes = [17, 9, 32], strides = [1, 1, 1]} : vector<17x9x192xf32> to vector<17x9x32xf32>
    %47 = tpu.concatenate %45, %44 in 1 : vector<17x9x32xf32>, vector<17x1x32xf32> -> vector<17x10x32xf32>
    %48 = tpu.concatenate %44, %46 in 1 : vector<17x1x32xf32>, vector<17x9x32xf32> -> vector<17x10x32xf32>
    %49 = arith.addf %47, %48 : vector<17x10x32xf32>
    %50 = vector.extract_strided_slice %43 {offsets = [0, 0, 64], sizes = [17, 9, 32], strides = [1, 1, 1]} : vector<17x9x192xf32> to vector<17x9x32xf32>
    %51 = vector.extract_strided_slice %43 {offsets = [0, 0, 96], sizes = [17, 9, 32], strides = [1, 1, 1]} : vector<17x9x192xf32> to vector<17x9x32xf32>
    %52 = tpu.concatenate %50, %44 in 1 : vector<17x9x32xf32>, vector<17x1x32xf32> -> vector<17x10x32xf32>
    %53 = tpu.concatenate %44, %51 in 1 : vector<17x1x32xf32>, vector<17x9x32xf32> -> vector<17x10x32xf32>
    %54 = arith.addf %52, %53 : vector<17x10x32xf32>
    %55 = vector.extract_strided_slice %43 {offsets = [0, 0, 128], sizes = [17, 9, 32], strides = [1, 1, 1]} : vector<17x9x192xf32> to vector<17x9x32xf32>
    %56 = vector.extract_strided_slice %43 {offsets = [0, 0, 160], sizes = [17, 9, 32], strides = [1, 1, 1]} : vector<17x9x192xf32> to vector<17x9x32xf32>
    %57 = tpu.concatenate %55, %44 in 1 : vector<17x9x32xf32>, vector<17x1x32xf32> -> vector<17x10x32xf32>
    %58 = tpu.concatenate %44, %56 in 1 : vector<17x1x32xf32>, vector<17x9x32xf32> -> vector<17x10x32xf32>
    %59 = arith.addf %57, %58 : vector<17x10x32xf32>
    %cst_15 = arith.constant 0.000000e+00 : f32
    %60 = vector.broadcast %cst_15 : f32 to vector<1x10x32xf32>
    %61 = tpu.concatenate %49, %60 in 0 : vector<17x10x32xf32>, vector<1x10x32xf32> -> vector<18x10x32xf32>
    %62 = tpu.concatenate %60, %59 in 0 : vector<1x10x32xf32>, vector<17x10x32xf32> -> vector<18x10x32xf32>
    %63 = arith.addf %61, %62 : vector<18x10x32xf32>
    %64 = vector.shape_cast %40 : vector<10x32xf32> to vector<1x10x32xf32>
    %65 = vector.broadcast %64 : vector<1x10x32xf32> to vector<18x10x32xf32>
    %66 = arith.addf %63, %65 : vector<18x10x32xf32>
    %67 = vector.shape_cast %40 : vector<10x32xf32> to vector<1x10x32xf32>
    %68 = vector.broadcast %67 : vector<1x10x32xf32> to vector<17x10x32xf32>
    %69 = arith.addf %54, %68 : vector<17x10x32xf32>
    %70 = tpu.concatenate %69, %60 in 0 : vector<17x10x32xf32>, vector<1x10x32xf32> -> vector<18x10x32xf32>
    %71 = vector.shape_cast %66 : vector<18x10x32xf32> to vector<18x1x10x32xf32>
    %72 = vector.shape_cast %70 : vector<18x10x32xf32> to vector<18x1x10x32xf32>
    %73 = tpu.concatenate %71, %72 in 1 : vector<18x1x10x32xf32>, vector<18x1x10x32xf32> -> vector<18x2x10x32xf32>
    %74 = vector.shape_cast %73 : vector<18x2x10x32xf32> to vector<36x10x32xf32>
    %75 = vector.extract_strided_slice %74 {offsets = [0, 0, 0], sizes = [35, 10, 32], strides = [1, 1, 1]} : vector<36x10x32xf32> to vector<35x10x32xf32>
    %c0_16 = arith.constant 0 : index
    %c0_17 = arith.constant 0 : index
    %76 = vector.load %arg6[%c0_16, %c0_17] : memref<32x192xf32, #tpu.memory_space<vmem>>, vector<32x192xf32>
    %c0_18 = arith.constant 0 : index
    %c0_19 = arith.constant 0 : index
    %77 = vector.load %arg7[%c0_18, %c0_19] : memref<11x32xf32, #tpu.memory_space<vmem>>, vector<11x32xf32>
    %78 = vector.shape_cast %75 : vector<35x10x32xf32> to vector<350x32xf32>
    %cst_20 = arith.constant dense<0.000000e+00> : vector<350x192xf32>
    %79 = tpu.matmul %78, %76, %cst_20 {dimension_numbers = #tpu.dot_dimension_numbers<[1], [0], [0], [1], [0, 0, 1, 1], [], []>} : vector<350x32xf32>, vector<32x192xf32>, vector<350x192xf32> -> vector<350x192xf32>
    %80 = vector.shape_cast %79 : vector<350x192xf32> to vector<35x10x192xf32>
    %cst_21 = arith.constant 0.000000e+00 : f32
    %81 = vector.broadcast %cst_21 : f32 to vector<35x1x32xf32>
    %82 = vector.extract_strided_slice %80 {offsets = [0, 0, 0], sizes = [35, 10, 32], strides = [1, 1, 1]} : vector<35x10x192xf32> to vector<35x10x32xf32>
    %83 = vector.extract_strided_slice %80 {offsets = [0, 0, 32], sizes = [35, 10, 32], strides = [1, 1, 1]} : vector<35x10x192xf32> to vector<35x10x32xf32>
    %84 = tpu.concatenate %82, %81 in 1 : vector<35x10x32xf32>, vector<35x1x32xf32> -> vector<35x11x32xf32>
    %85 = tpu.concatenate %81, %83 in 1 : vector<35x1x32xf32>, vector<35x10x32xf32> -> vector<35x11x32xf32>
    %86 = arith.addf %84, %85 : vector<35x11x32xf32>
    %87 = vector.extract_strided_slice %80 {offsets = [0, 0, 64], sizes = [35, 10, 32], strides = [1, 1, 1]} : vector<35x10x192xf32> to vector<35x10x32xf32>
    %88 = vector.extract_strided_slice %80 {offsets = [0, 0, 96], sizes = [35, 10, 32], strides = [1, 1, 1]} : vector<35x10x192xf32> to vector<35x10x32xf32>
    %89 = tpu.concatenate %87, %81 in 1 : vector<35x10x32xf32>, vector<35x1x32xf32> -> vector<35x11x32xf32>
    %90 = tpu.concatenate %81, %88 in 1 : vector<35x1x32xf32>, vector<35x10x32xf32> -> vector<35x11x32xf32>
    %91 = arith.addf %89, %90 : vector<35x11x32xf32>
    %92 = vector.extract_strided_slice %80 {offsets = [0, 0, 128], sizes = [35, 10, 32], strides = [1, 1, 1]} : vector<35x10x192xf32> to vector<35x10x32xf32>
    %93 = vector.extract_strided_slice %80 {offsets = [0, 0, 160], sizes = [35, 10, 32], strides = [1, 1, 1]} : vector<35x10x192xf32> to vector<35x10x32xf32>
    %94 = tpu.concatenate %92, %81 in 1 : vector<35x10x32xf32>, vector<35x1x32xf32> -> vector<35x11x32xf32>
    %95 = tpu.concatenate %81, %93 in 1 : vector<35x1x32xf32>, vector<35x10x32xf32> -> vector<35x11x32xf32>
    %96 = arith.addf %94, %95 : vector<35x11x32xf32>
    %cst_22 = arith.constant 0.000000e+00 : f32
    %97 = vector.broadcast %cst_22 : f32 to vector<1x11x32xf32>
    %98 = tpu.concatenate %86, %97 in 0 : vector<35x11x32xf32>, vector<1x11x32xf32> -> vector<36x11x32xf32>
    %99 = tpu.concatenate %97, %96 in 0 : vector<1x11x32xf32>, vector<35x11x32xf32> -> vector<36x11x32xf32>
    %100 = arith.addf %98, %99 : vector<36x11x32xf32>
    %101 = vector.shape_cast %77 : vector<11x32xf32> to vector<1x11x32xf32>
    %102 = vector.broadcast %101 : vector<1x11x32xf32> to vector<36x11x32xf32>
    %103 = arith.addf %100, %102 : vector<36x11x32xf32>
    %104 = vector.shape_cast %77 : vector<11x32xf32> to vector<1x11x32xf32>
    %105 = vector.broadcast %104 : vector<1x11x32xf32> to vector<35x11x32xf32>
    %106 = arith.addf %91, %105 : vector<35x11x32xf32>
    %107 = tpu.concatenate %106, %97 in 0 : vector<35x11x32xf32>, vector<1x11x32xf32> -> vector<36x11x32xf32>
    %108 = vector.shape_cast %103 : vector<36x11x32xf32> to vector<36x1x11x32xf32>
    %109 = vector.shape_cast %107 : vector<36x11x32xf32> to vector<36x1x11x32xf32>
    %110 = tpu.concatenate %108, %109 in 1 : vector<36x1x11x32xf32>, vector<36x1x11x32xf32> -> vector<36x2x11x32xf32>
    %111 = vector.shape_cast %110 : vector<36x2x11x32xf32> to vector<72x11x32xf32>
    %112 = vector.extract_strided_slice %111 {offsets = [0, 0, 0], sizes = [71, 11, 32], strides = [1, 1, 1]} : vector<72x11x32xf32> to vector<71x11x32xf32>
    %c0_23 = arith.constant 0 : index
    %c0_24 = arith.constant 0 : index
    %c0_25 = arith.constant 0 : index
    %c0_26 = arith.constant 0 : index
    %113 = vector.load %arg8[%c0_23, %c0_24, %c0_25, %c0_26] : memref<1x71x11x32xf32, #tpu.memory_space<vmem>>, vector<1x71x11x32xf32>
    %114 = vector.shape_cast %113 : vector<1x71x11x32xf32> to vector<71x11x32xf32>
    %115 = vector.shape_cast %112 : vector<71x11x32xf32> to vector<1x71x11x32xf32>
    tpu.vector_store %arg8[%c0_23, %c0_24, %c0_25, %c0_26], %115 {strides = array<i32>} : memref<1x71x11x32xf32, #tpu.memory_space<vmem>>, vector<1x71x11x32xf32>,
    return
  }
  func.func @transform_0(%arg0: i32) -> (i32, i32, i32, i32) {
    %c0_i32 = arith.constant 0 : i32
    %c0_i32_0 = arith.constant 0 : i32
    %c0_i32_1 = arith.constant 0 : i32
    %c0_i32_2 = arith.constant 0 : i32
    return %arg0, %c0_i32, %c0_i32_0, %c0_i32_1 : i32, i32, i32, i32
  }
  func.func @transform_1(%arg0: i32) -> (i32, i32) {
    %c0_i32 = arith.constant 0 : i32
    %c0_i32_0 = arith.constant 0 : i32
    %c0_i32_1 = arith.constant 0 : i32
    return %c0_i32, %c0_i32_0 : i32, i32
  }
  func.func @transform_2(%arg0: i32) -> (i32, i32) {
    %c0_i32 = arith.constant 0 : i32
    %c0_i32_0 = arith.constant 0 : i32
    %c0_i32_1 = arith.constant 0 : i32
    return %c0_i32, %c0_i32_0 : i32, i32
  }
  func.func @transform_3(%arg0: i32) -> (i32, i32) {
    %c0_i32 = arith.constant 0 : i32
    %c0_i32_0 = arith.constant 0 : i32
    %c0_i32_1 = arith.constant 0 : i32
    return %c0_i32, %c0_i32_0 : i32, i32
  }
  func.func @transform_4(%arg0: i32) -> (i32, i32) {
    %c0_i32 = arith.constant 0 : i32
    %c0_i32_0 = arith.constant 0 : i32
    %c0_i32_1 = arith.constant 0 : i32
    return %c0_i32, %c0_i32_0 : i32, i32
  }
  func.func @transform_5(%arg0: i32) -> (i32, i32) {
    %c0_i32 = arith.constant 0 : i32
    %c0_i32_0 = arith.constant 0 : i32
    %c0_i32_1 = arith.constant 0 : i32
    return %c0_i32, %c0_i32_0 : i32, i32
  }
  func.func @transform_6(%arg0: i32) -> (i32, i32) {
    %c0_i32 = arith.constant 0 : i32
    %c0_i32_0 = arith.constant 0 : i32
    %c0_i32_1 = arith.constant 0 : i32
    return %c0_i32, %c0_i32_0 : i32, i32
  }
  func.func @transform_7(%arg0: i32) -> (i32, i32, i32, i32) {
    %c0_i32 = arith.constant 0 : i32
    %c0_i32_0 = arith.constant 0 : i32
    %c0_i32_1 = arith.constant 0 : i32
    %c0_i32_2 = arith.constant 0 : i32
    return %arg0, %c0_i32, %c0_i32_0, %c0_i32_1 : i32, i32, i32, i32
  }
}

</mosaic_0001>

<bundles_post_ra>
// kernel: decoder_forward.1
= control target key start
LH: loop header
LB: loop body
LE: loop exit
PB: predicated region body
PF: predicated region fallthrough
CT: control target
= control target key end

     0   :  { %12 = vsyncpa [#allocation3], 0  ;;  %s22115_s0 = inlined_call_operand.vmem [shape: f32[2,8,8,4], index: 0, kind: input, shape index: {}]   ;;  %s22116_s1 = inlined_call_operand.hbm [shape: f32[4,192], index: 1, kind: input, shape index: {}]   ;;  %s22117_s2 = inlined_call_operand.hbm [shape: f32[9,32], index: 2, kind: input, shape index: {}]   ;;  %s22118_s3 = inlined_call_operand.hbm [shape: f32[32,192], index: 3, kind: input, shape index: {}]   ;;  %s22119_s4 = inlined_call_operand.hbm [shape: f32[10,32], index: 4, kind: input, shape index: {}]   ;;  %s22120_s5 = inlined_call_operand.hbm [shape: f32[32,192], index: 5, kind: input, shape index: {}]   ;;  %s22121_s6 = inlined_call_operand.hbm [shape: f32[11,32], index: 6, kind: input, shape index: {}]   ;;  %s22122_s7 = inlined_call_operand.vmem [shape: f32[2,71,11,32], index: 7, kind: output, shape index: {}]  }
   0x1   :  { %13 = vsyncpa [#allocation5], 0 }
   0x2   :  { %14 = vsyncpa [#allocation8], 0 }
   0x3   :  { %15 = vsyncpa [#allocation11], 0  ;;  %s14721_s24 = smov 0  }
   0x4 LB: > { %s14665_s25 = smov [#allocation4]   ;;  %s14727_s27 = sadd.s32 4294967295, %s14663_s24   ;;  %s14663_s24 = sphi %s14721_s24, %s21_s24  }
   0x5   : > { %s227_s26 = sshll.u32 %s14665_s25, 4  ;;  %p14202_p0 = scmp.ge.s32.totalorder %s14663_s24, 1  ;;  %s14732_s26 = int_to_ptr.vmem [resolvable:$true] %s227_s26 }
   0x6   : > { %p204_p1 = scmp.lt.s32.totalorder %s14663_s24, 3  ;;  %p22123_p2 = scmp.eq.s32.totalorder %s14727_s27, 0 }
   0x7   : > { %s14666_s29 = smov [#allocation7]   ;;  %s14667_s9 = smov [#allocation2]  }
   0x8   : > { %p14734_p3 = pnand %p14202_p0, %p204_p1  ;;  %s253_s30 = sshll.u32 %s14666_s29, 4  ;;  %s14740_s30 = int_to_ptr.vmem [resolvable:$true] %s253_s30 }
   0x9   : > { %s217_s10 = sshll.u32 %s14667_s9, 4  ;;  %s14668_s11 = smov [#allocation6]   ;;  %s14748_s10 = int_to_ptr.vmem [resolvable:$true] %s217_s10 }
   0xa   : > { %s22503_s28 = scalar_select %p14734_p3, 1, 0 }
   0xb   : > { %p14402_p4 = pneg %p14734_p3  ;;  %s14750_s12 = sshll.u32 %s14668_s11, 4  ;;  %s241_s12 = int_to_ptr.vmem [resolvable:$true] %s14750_s12 }
   0xc   : > { %s14473_s15 = scalar_lea.hbm %s22117_s2, 256 }
   0xd   : > { %p14744_p5 = pnand %p22123_p2, %p14402_p4  ;;  %p14474_p6 = scmp.ne.s32.totalorder %s22117_s2, %s14473_s15 }
   0xe   : > { %p14480_p10 = scmp.lt.u32.totalorder %s14473_s15, %s22117_s2 }
   0xf   : > { %p14760_p7 = pneg %p14744_p5 }
  0x11   : > { %p14476_p8 = pnand %p14760_p7, %p14474_p6 }
  0x13   : > { %p14477_p9 = pneg %p14476_p8 }
  0x15   : > { %p14482_p11 = pnand %p14480_p10, %p14477_p9 }
  0x17   : > { %14485 = shalt.err (!%p14482_p11)
}
  0x18   : > { %s14486_s21 = scalar_lea.vmem %s14732_s26, 256  ;;  %p14494_p1 = scmp.lt.s32.totalorder %s14732_s26, %s14732_s26 }
  0x19   : > { %p14487_p12 = scmp.ne.s32.totalorder %s14732_s26, %s14486_s21  ;;  %p14495_p4 = scmp.lt.s32.totalorder %s14486_s21, %s14486_s21 }
  0x1b   : > { %p14489_p13 = pnand %p14487_p12, %p14760_p7  ;;  %p14496_p6 = por %p14495_p4, %p14494_p1 }
  0x1d   : > { %p14490_p0 = pneg %p14489_p13 }
  0x1f   : > { %p14497_p8 = pnand %p14496_p6, %p14490_p0 }
  0x21   : > { %14500 = shalt.err (!%p14497_p8)
}
  0x22   : > { %s14669_s22 = smov 128   ;;  %s14670_s23 = smov 8  }
  0x23   : > { %14408 = dma.hbm_to_vmem [thread:$0]  (!%p14744_p5), %s22117_s2, 256, %s14732_s26, [#allocation5], %s14669_s22, %s14669_s22, %s14670_s23  }
  0x24   : > { %s14501_s13 = scalar_lea.hbm %s22119_s4, 256 }
  0x25   : > { %p14502_p9 = scmp.ne.s32.totalorder %s22119_s4, %s14501_s13  ;;  %p14508_p12 = scmp.lt.u32.totalorder %s14501_s13, %s22119_s4 }
  0x27   : > { %p14504_p10 = pnand %p14502_p9, %p14760_p7 }
  0x29   : > { %p14505_p11 = pneg %p14504_p10 }
  0x2b   : > { %p14510_p13 = pnand %p14508_p12, %p14505_p11 }
  0x2d   : > { %14513 = shalt.err (!%p14510_p13)
}
  0x2e   : > { %s14514_s26 = scalar_lea.vmem %s14740_s30, 256  ;;  %p14522_p6 = scmp.lt.s32.totalorder %s14740_s30, %s14740_s30 }
  0x2f   : > { %p14515_p0 = scmp.ne.s32.totalorder %s14740_s30, %s14514_s26  ;;  %p14523_p8 = scmp.lt.s32.totalorder %s14514_s26, %s14514_s26 }
  0x31   : > { %p14517_p1 = pnand %p14515_p0, %p14760_p7  ;;  %p14524_p9 = por %p14523_p8, %p14522_p6 }
  0x33   : > { %p14518_p4 = pneg %p14517_p1 }
  0x35   : > { %p14525_p10 = pnand %p14524_p9, %p14518_p4 }
  0x37   : > { %14528 = shalt.err (!%p14525_p10)
}
  0x38   : > { %14414 = dma.hbm_to_vmem [thread:$0]  (!%p14744_p5), %s22119_s4, 256, %s14740_s30, [#allocation8], %s14669_s22, %s14669_s22, %s14670_s23  }
  0x39   : > { %s14529_s29 = scalar_lea.hbm %s22116_s1, 128 }
  0x3a   : > { %p14530_p11 = scmp.ne.s32.totalorder %s22116_s1, %s14529_s29  ;;  %p14536_p0 = scmp.lt.u32.totalorder %s14529_s29, %s22116_s1 }
  0x3c   : > { %p14532_p12 = pnand %p14530_p11, %p14760_p7 }
  0x3e   : > { %p14533_p13 = pneg %p14532_p12 }
  0x40   : > { %p14538_p1 = pnand %p14536_p0, %p14533_p13 }
  0x42   : > { %14541 = shalt.err (!%p14538_p1)
}
  0x43   : > { %s14542_s30 = scalar_lea.vmem %s14748_s10, 128  ;;  %p14550_p9 = scmp.lt.s32.totalorder %s14748_s10, %s14748_s10 }
  0x44   : > { %p14543_p4 = scmp.ne.s32.totalorder %s14748_s10, %s14542_s30  ;;  %p14551_p10 = scmp.lt.s32.totalorder %s14542_s30, %s14542_s30 }
  0x46   : > { %p14545_p6 = pnand %p14543_p4, %p14760_p7  ;;  %p14552_p11 = por %p14551_p10, %p14550_p9 }
  0x48   : > { %p14546_p8 = pneg %p14545_p6 }
  0x4a   : > { %p14553_p12 = pnand %p14552_p11, %p14546_p8 }
  0x4c   : > { %14556 = shalt.err (!%p14553_p12)
}
  0x4d   : > { %14405 = dma.hbm_to_vmem [thread:$0]  (!%p14744_p5), %s22116_s1, 128, %s14748_s10, [#allocation3]  }
  0x4e   : > { %s14557_s19 = scalar_lea.hbm %s22118_s3, 1024 }
  0x4f   : > { %p14558_p13 = scmp.ne.s32.totalorder %s22118_s3, %s14557_s19  ;;  %p14564_p4 = scmp.lt.u32.totalorder %s14557_s19, %s22118_s3 }
  0x51   : > { %p14560_p0 = pnand %p14558_p13, %p14760_p7 }
  0x53   : > { %p14561_p1 = pneg %p14560_p0 }
  0x55   : > { %p14566_p6 = pnand %p14564_p4, %p14561_p1 }
  0x57   : > { %14569 = shalt.err (!%p14566_p6)
}
  0x58   : > { %s14570_s9 = scalar_lea.vmem %s241_s12, 1024  ;;  %p14578_p11 = scmp.lt.s32.totalorder %s241_s12, %s241_s12 }
  0x59   : > { %p14571_p8 = scmp.ne.s32.totalorder %s241_s12, %s14570_s9  ;;  %p14579_p12 = scmp.lt.s32.totalorder %s14570_s9, %s14570_s9 }
  0x5b   : > { %p14573_p9 = pnand %p14571_p8, %p14760_p7  ;;  %p14580_p2 = por %p14579_p12, %p14578_p11 }
  0x5d   : > { %p14574_p10 = pneg %p14573_p9 }
  0x5f   : > { %p14581_p3 = pnand %p14580_p2, %p14574_p10 }
  0x61   : > { %14584 = shalt.err (!%p14581_p3)
}
  0x62   : > { %s14671_s10 = smov 256   ;;  %s14672_s11 = smov 16  }
  0x63   : > { %14411 = dma.hbm_to_vmem [thread:$0]  (!%p14744_p5), %s22118_s3, 1024, %s241_s12, [#allocation5], %s14671_s10, %s14671_s10, %s14672_s11  }
  0x64   : > { %s14673_s30 = smov [#allocation9]   ;;  %s14674_s16 = smov [#allocation10]  }
  0x65   : > { %s266_s15 = sshll.u32 %s14673_s30, 4  ;;  %s279_s17 = sshll.u32 %s14674_s16, 4  ;;  %s267_s15 = int_to_ptr.vmem [resolvable:$true] %s266_s15  ;;  %s280_s17 = int_to_ptr.vmem [resolvable:$true] %s279_s17 }
  0x66   : > { %s14585_s20 = scalar_lea.hbm %s22120_s5, 1024 }
  0x67   : > { %p14586_p2 = scmp.ne.s32.totalorder %s22120_s5, %s14585_s20  ;;  %p14592_p0 = scmp.lt.u32.totalorder %s14585_s20, %s22120_s5 }
  0x69   : > { %p14588_p3 = pnand %p14586_p2, %p14760_p7 }
  0x6b   : > { %p14589_p13 = pneg %p14588_p3 }
  0x6d   : > { %p14594_p1 = pnand %p14592_p0, %p14589_p13 }
  0x6f   : > { %14597 = shalt.err (!%p14594_p1)
}
  0x70   : > { %s14598_s12 = scalar_lea.vmem %s267_s15, 1024  ;;  %p14606_p9 = scmp.lt.s32.totalorder %s267_s15, %s267_s15 }
  0x71   : > { %p14599_p4 = scmp.ne.s32.totalorder %s267_s15, %s14598_s12  ;;  %p14607_p10 = scmp.lt.s32.totalorder %s14598_s12, %s14598_s12 }
  0x73   : > { %p14601_p6 = pnand %p14599_p4, %p14760_p7  ;;  %p14608_p11 = por %p14607_p10, %p14606_p9 }
  0x75   : > { %p14602_p8 = pneg %p14601_p6 }
  0x77   : > { %p14609_p12 = pnand %p14608_p11, %p14602_p8 }
  0x79   : > { %14612 = shalt.err (!%p14609_p12)
}
  0x7a   : > { %14417 = dma.hbm_to_vmem [thread:$0]  (!%p14744_p5), %s22120_s5, 1024, %s267_s15, [#allocation8], %s14671_s10, %s14671_s10, %s14672_s11  }
  0x7b   : > { %s14613_s26 = scalar_lea.hbm %s22121_s6, 256 }
  0x7c   : > { %p14614_p2 = scmp.ne.s32.totalorder %s22121_s6, %s14613_s26  ;;  %p14620_p0 = scmp.lt.u32.totalorder %s14613_s26, %s22121_s6 }
  0x7e   : > { %p14616_p3 = pnand %p14614_p2, %p14760_p7 }
  0x80   : > { %p14617_p13 = pneg %p14616_p3 }
  0x82   : > { %p14622_p1 = pnand %p14620_p0, %p14617_p13 }
  0x84   : > { %14625 = shalt.err (!%p14622_p1)
}
  0x85   : > { %s14626_s29 = scalar_lea.vmem %s280_s17, 256  ;;  %p14634_p9 = scmp.lt.s32.totalorder %s280_s17, %s280_s17 }
  0x86   : > { %p14627_p4 = scmp.ne.s32.totalorder %s280_s17, %s14626_s29  ;;  %p14635_p10 = scmp.lt.s32.totalorder %s14626_s29, %s14626_s29 }
  0x88   : > { %p14629_p6 = pnand %p14627_p4, %p14760_p7  ;;  %p14636_p11 = por %p14635_p10, %p14634_p9 }
  0x8a   : > { %p14630_p8 = pneg %p14629_p6 }
  0x8c   : > { %p14637_p12 = pnand %p14636_p11, %p14630_p8 }
  0x8e   : > { %14640 = shalt.err (!%p14637_p12)
}
  0x8f   : > { %14420 = dma.hbm_to_vmem [thread:$0]  (!%p14744_p5), %s22121_s6, 256, %s280_s17, [#allocation11], %s14669_s22, %s14669_s22, %s14670_s23  }
  0x90   : > { %p22506_p2 = scmp.ne.s32.totalorder %s22503_s28, 0 }
  0x92   : > { %303 = sbr.rel (%p22506_p2) target bundleno = 2521 (0x9d9), region = 48 }
  0x99   : > { %p22507_p7 = scmp.eq.s32.totalorder %s14727_s27, 0 }
  0x9b   : > { %14646 = dma.done.wait (%p22507_p7), [#allocation3], 128   ;;  %p22508_p3 = pmov %p22507_p7 }
  0x9d   : > { %14648 = vsyncadd (%p22508_p3), [#allocation3], 4294967168  ;;  %p22509_p13 = pmov %p22508_p3 }
  0x9e   : > { %p22510_p0 = pmov %p22508_p3 }
  0x9f   : > { %14650 = dma.done.wait (%p22509_p13), [#allocation5], 1280  }
  0xa0   : > { %14652 = vsyncadd (%p22510_p0), [#allocation5], 4294966016  ;;  %p22511_p1 = pmov %p22510_p0 }
  0xa1   : > { %p22512_p5 = pmov %p22510_p0 }
  0xa2   : > { %14654 = dma.done.wait (%p22511_p1), [#allocation8], 1280  }
  0xa3   : > { %14656 = vsyncadd (%p22512_p5), [#allocation8], 4294966016  ;;  %p22513_p4 = pmov %p22510_p0 }
  0xa4   : > { %p22514_p6 = pmov %p22510_p0 }
  0xa5   : > { %14658 = dma.done.wait (%p22513_p4), [#allocation11], 256  }
  0xa6   : > { %14660 = vsyncadd (%p22514_p6), [#allocation11], 4294967040  ;;  %p355_p8 = scmp.lt.s32.totalorder %s14727_s27, 1  ;;  %v22125_v0 = vmov 0.0   ;;  %v373_v1 = vld [vmem:[#allocation2] sm:$0xff]  ;;  %vm403_vm0 = vcmask 1043456  }
  0xa7   : > { %472 = vmatprep.mubr.f32.mxu0 %v22125_v0  ;;  %3011 = vmatprep.mubr.f32.mxu1 %v22125_v0  ;;  %v377_v2 = vcombine.high %v373_v1, %v373_v1  ;;  %vm378_vm1 = vcmask 31744   ;;  %v14922_v4 = vld [vmem:[#allocation4] sm:$0xff]  ;;  %v14924_v5 = vld [vmem:[#allocation4 + $0x8] sm:$0x1]  ;;  %s14676_s23 = smov 64   ;;  %v870_v6 = vld [vmem:[#allocation7] sm:$0xff] }
  0xa8   : > { %s23482_s27 = smov (!%p355_p8, %s14727_s27), 1  ;;  %792 = vrot.lane.b32.xlu0 %v14922_v4, %s14676_s23  ;;  %794 = vrot.lane.b32.xlu1 %v14924_v5, %s14676_s23  ;;  %v871_v8 = vld [vmem:[#allocation7 + $0x8] sm:$0x3]  ;;  %v8033_v9 = vld [vmem:[#allocation10] sm:$0xff]  ;;  %v8034_v16 = vld [vmem:[#allocation10 + $0x8] sm:$0x7] }
  0xa9   : > { %s14356_s28 = sshll.u32 %s23482_s27, 6  ;;  %14220 = vmatprep.subr.msk.mxu0 %vm403_vm0, %v377_v2  ;;  %s14677_s15 = smov 96   ;;  %v863_v20 = vld [vmem:[#allocation6 + $0x8] sm:$0xff]  ;;  %v865_v21 = vld [vmem:[#allocation6 + $0x18] sm:$0xff]  ;;  %v862_v24 = vld [vmem:[#allocation6] sm:$0xff]  ;;  %vm561_vm2 = vcmask 1040384  }
  0xaa   : > { %s14919_s22 = scalar_lea.vmem %s22115_s0, %s14356_s28  ;;  %14221 = vmatpush1.msk.msra.mxu0 %vm403_vm0, %v373_v1  ;;  %v14357_v23 = vpack.c.bf16 %v865_v21, %v863_v20  ;;  %v864_v25 = vld [vmem:[#allocation6 + $0x10] sm:$0xff]  ;;  %s14678_s17 = smov 32   ;;  %v867_v30 = vld [vmem:[#allocation6 + $0x28] sm:$0xff]  ;;  %v869_v31 = vld [vmem:[#allocation6 + $0x38] sm:$0xff]  ;;  %vm2906_vm3 = vcmask 261120   ;;  %vm11864_vm4 = vcmask 1041408  }
  0xab   : > { %v365_v3 = vld [vmem:[%s14919_s22] sm:$0xff]  ;;  %v366_v7 = vld [vmem:[%s14919_s22 + $0x8] sm:$0xff]  ;;  %v367_v10 = vld [vmem:[%s14919_s22 + $0x10] sm:$0xff]  ;;  %v14359_v28 = vpack.c.bf16 %v864_v25, %v862_v24  ;;  %v14361_v33 = vpack.c.bf16 %v869_v31, %v867_v30  ;;  %s14377_s9 = smul.u32 1136, %s23482_s27  ;;  %vm13943_vm5 = vcmask 256000  }
  0xac   : > { %14222 = vmatmul.mubr.msk.f32.vlgmr.msra.gmra.mrb[0].mxu0 %vm378_vm1, %v365_v3  ;;  %7883 = vrot.lane.b32.xlu0 %v870_v6, %s14676_s23  ;;  %v368_v11 = vld [vmem:[%s14919_s22 + $0x18] sm:$0xff]  ;;  %v369_v12 = vld [vmem:[%s14919_s22 + $0x20] sm:$0xff]  ;;  %v370_v13 = vld [vmem:[%s14919_s22 + $0x28] sm:$0xff]  ;;  %v14679_v3 = vmov 1966171168  }
  0xad   : > { %478 = vmatprep.mubr.f32.mxu0 %v22125_v0  ;;  %7885 = vrot.lane.b32.xlu1 %v871_v8, %s14676_s23  ;;  %v371_v14 = vld [vmem:[%s14919_s22 + $0x30] sm:$0xff]  ;;  %v372_v15 = vld [vmem:[%s14919_s22 + $0x38] sm:$0xff]  ;;  %v868_v35 = vld [vmem:[#allocation6 + $0x30] sm:$0xff]  ;;  %v892_v6 = vunpack.c.l.s4 %v14679_v3  ;;  %s18044_s13 = scalar_lea.vmem %s22122_s7, %s14377_s9 }
  0xae   : > { %14358 = vmatprep.subr.bf16.mxu1 %v14357_v23  ;;  %v866_v34 = vld [vmem:[#allocation6 + $0x20] sm:$0xff] }
  0xaf   : > { %14360 = vmatpush1.bf16.msra.mxu1 %v14359_v28  ;;  %v14363_v38 = vpack.c.bf16 %v868_v35, %v866_v34 }
  0xb0   : > { %14223 = vmatmul.mubr.msk.f32.gmra.mrb[2].mxu0 %vm378_vm1, %v366_v7  ;;  %13586 = vrot.lane.b32.xlu0 %v8033_v9, %s14676_s23  ;;  %v894_v7 = vlaneseq  ;;  %v893_v9 = vunpack.c.0.s8 %v892_v6 }
  0xb1   : > { %484 = vmatprep.mubr.f32.mxu0 %v22125_v0  ;;  %13588 = vrot.lane.b32.xlu1 %v8034_v16, %s14676_s23 }
  0xb2   : > { %14362 = vmatprep.subr.bf16.mxu1 %v14361_v33 }
  0xb3   : > { %14364 = vmatpush1.bf16.msra.mxu1 %v14363_v38 }
  0xb4   : > { %14224 = vmatmul.mubr.msk.f32.gmra.mrb[4].mxu0 %vm378_vm1, %v367_v10  ;;  %v15041_v10 = vshrl.u32 %v894_v7, 7 }
  0xb5   : > { %490 = vmatprep.mubr.f32.mxu0 %v22125_v0 }
  0xb6   : > { %22519 = vst [vmem:[#allocation20_spill] sm:$0xff] %v15041_v10 }
  0xb8   : > { %14225 = vmatmul.mubr.msk.f32.gmra.mrb[6].mxu0 %vm378_vm1, %v368_v11 }
  0xb9   : > { %496 = vmatprep.mubr.f32.mxu0 %v22125_v0 }
  0xbc   : > { %14226 = vmatmul.mubr.msk.f32.gmra.mrb[8].mxu0 %vm378_vm1, %v369_v12 }
  0xbd   : > { %502 = vmatprep.mubr.f32.mxu0 %v22125_v0 }
  0xc0   : > { %14227 = vmatmul.mubr.msk.f32.gmra.mrb[10].mxu0 %vm378_vm1, %v370_v13 }
  0xc1   : > { %508 = vmatprep.mubr.f32.mxu0 %v22125_v0 }
  0xc4   : > { %14228 = vmatmul.mubr.msk.f32.gmra.mrb[12].mxu0 %vm378_vm1, %v371_v14  ;;  %v15049_v14 = vsub.s32 %v893_v9, %v15041_v10 }
  0xc5   : > { %514 = vmatprep.mubr.f32.mxu0 %v22125_v0 }
  0xc8   : > { %14229 = vmatmul.mubr.msk.f32.gmra.mrb[14].mxu0 %vm378_vm1, %v372_v15 }
  0xc9   : > { %9810 = vmatprep.mubr.f32.mxu0 %v22125_v0 }
 0x11a   : > { %v15029_v61 = vpop.permute.xlu0 %792  ;;  %v15031_v62 = vpop.permute.xlu1 %794 }
 0x11e   : > { %v15033_v63 = vpop.permute.xlu0 %7883 }
 0x11f   : > { %22515 = vst [vmem:[#allocation16_spill] sm:$0xff] %v15033_v63  ;;  %v15035_v1 = vpop.permute.xlu1 %7885 }
 0x120   : > { %22516 = vst [vmem:[#allocation17_spill] sm:$0xff] %v15035_v1 }
 0x122   : > { %v15037_v2 = vpop.permute.xlu0 %13586 }
 0x123   : > { %22517 = vst [vmem:[#allocation18_spill] sm:$0xff] %v15037_v2  ;;  %v15039_v8 = vpop.permute.xlu1 %13588 }
 0x124   : > { %22518 = vst [vmem:[#allocation19_spill] sm:$0xff] %v15039_v8 }
 0x17f   : > { %v14957_v17 = vpop.f32.mrb[0].mxu0 }
 0x180   : > { %v529_v18 = vrot.slane %v14957_v17, 7  ;;  %v14960_v19 = vpop.f32.mrb[1].mxu0 }
 0x181   : > { %v698_v36 = vrot.slane %v14960_v19, 7 }
 0x182   : > { %537 = vrot.lane.b32.xlu0 %v529_v18, %s14677_s15 }
 0x183   : > { %v14963_v22 = vpop.f32.mrb[2].mxu0 }
 0x184   : > { %v530_v26 = vrot.slane %v14963_v22, 7  ;;  %v14966_v27 = vpop.f32.mrb[3].mxu0 }
 0x185   : > { %v699_v29 = vrot.slane %v14966_v27, 7 }
 0x186   : > { %586 = vrot.lane.b32.xlu0 %v529_v18, %s14678_s17  ;;  %588 = vrot.lane.b32.xlu1 %v530_v26, %s14678_s17 }
 0x187   : > { %v14971_v32 = vpop.f32.mrb[4].mxu0 }
 0x188   : > { %v14974_v37 = vpop.f32.mrb[5].mxu0  ;;  %v531_v39 = vrot.slane %v14971_v32, 7 }
 0x189   : > { %v700_v45 = vrot.slane %v14974_v37, 7 }
 0x18a   : > { %706 = vrot.lane.b32.xlu0 %v698_v36, %s14677_s15  ;;  %708 = vrot.lane.b32.xlu1 %v699_v29, %s14677_s15 }
 0x18b   : > { %v14979_v40 = vpop.f32.mrb[6].mxu0 }
 0x18c   : > { %v14981_v41 = vpop.f32.mrb[7].mxu0  ;;  %v532_v42 = vrot.slane %v14979_v40, 7 }
 0x18d   : > { %v701_v48 = vrot.slane %v14981_v41, 7 }
 0x18e   : > { %539 = vrot.lane.b32.xlu0 %v530_v26, %s14677_s15  ;;  %541 = vrot.lane.b32.xlu1 %v531_v39, %s14677_s15 }
 0x18f   : > { %v14986_v43 = vpop.f32.mrb[8].mxu0 }
 0x190   : > { %v14988_v44 = vpop.f32.mrb[9].mxu0  ;;  %v533_v49 = vrot.slane %v14986_v43, 7 }
 0x191   : > { %v702_v55 = vrot.slane %v14988_v44, 7 }
 0x192   : > { %590 = vrot.lane.b32.xlu0 %v531_v39, %s14678_s17  ;;  %543 = vrot.lane.b32.xlu1 %v532_v42, %s14677_s15 }
 0x193   : > { %v14993_v46 = vpop.f32.mrb[10].mxu0 }
 0x194   : > { %v14995_v47 = vpop.f32.mrb[11].mxu0  ;;  %v534_v52 = vrot.slane %v14993_v46, 7 }
 0x195   : > { %v703_v56 = vrot.slane %v14995_v47, 7 }
 0x196   : > { %710 = vrot.lane.b32.xlu0 %v700_v45, %s14677_s15  ;;  %592 = vrot.lane.b32.xlu1 %v532_v42, %s14678_s17 }
 0x197   : > { %v15001_v50 = vpop.f32.mrb[12].mxu0 }
 0x198   : > { %v15003_v51 = vpop.f32.mrb[13].mxu0  ;;  %v535_v57 = vrot.slane %v15001_v50, 7 }
 0x199   : > { %v704_v59 = vrot.slane %v15003_v51, 7 }
 0x19a   : > { %712 = vrot.lane.b32.xlu1 %v701_v48, %s14677_s15  ;;  %545 = vrot.lane.b32.xlu0 %v533_v49, %s14677_s15 }
 0x19b   : > { %v15008_v53 = vpop.f32.mrb[14].mxu0 }
 0x19c   : > { %v15010_v54 = vpop.f32.mrb[15].mxu0  ;;  %v536_v58 = vrot.slane %v15008_v53, 7 }
 0x19d   : > { %v705_v60 = vrot.slane %v15010_v54, 7 }
 0x19e   : > { %594 = vrot.lane.b32.xlu0 %v533_v49, %s14678_s17  ;;  %547 = vrot.lane.b32.xlu1 %v534_v52, %s14677_s15 }
 0x1a2   : > { %714 = vrot.lane.b32.xlu0 %v702_v55, %s14677_s15  ;;  %596 = vrot.lane.b32.xlu1 %v534_v52, %s14678_s17 }
 0x1a6   : > { %716 = vrot.lane.b32.xlu1 %v703_v56, %s14677_s15  ;;  %549 = vrot.lane.b32.xlu0 %v535_v57, %s14677_s15 }
 0x1aa   : > { %598 = vrot.lane.b32.xlu0 %v535_v57, %s14678_s17  ;;  %551 = vrot.lane.b32.xlu1 %v536_v58, %s14677_s15 }
 0x1ae   : > { %718 = vrot.lane.b32.xlu0 %v704_v59, %s14677_s15  ;;  %600 = vrot.lane.b32.xlu1 %v536_v58, %s14678_s17 }
 0x1b2   : > { %720 = vrot.lane.b32.xlu1 %v705_v60, %s14677_s15 }
 0x1f4   : > { %v15043_v11 = vpop.permute.xlu0 %537 }
 0x1f5   : > { %v562_v12 = vsel %vm561_vm2, 0.0, %v15043_v11 }
 0x1f6   : > { %v570_v13 = vadd.f32 %v562_v12, %v14957_v17 }
 0x1f8   : > { %v772_v15 = vadd.f32 %v570_v13, %v14922_v4  ;;  %v587_v16 = vpop.permute.xlu0 %586  ;;  %v589_v18 = vpop.permute.xlu1 %588 }
 0x1f9   : > { %628 = vrot.lane.b32.xlu1 %v587_v16, %s14676_s23  ;;  %v610_v20 = vsel %vm561_vm2, 0.0, %v587_v16  ;;  %v611_v24 = vsel %vm561_vm2, 0.0, %v589_v18 }
 0x1fa   : > { %v890_v21 = vcombine.high %v772_v15, %v772_v15  ;;  %v897_v23 = vrot.slane %v772_v15, %v15049_v14  ;;  %626 = vrot.lane.b32.xlu0 %v610_v20, %s14676_s23 }
 0x1fc   : > { %v904_v25 = vrot.slane %v890_v21, %v15049_v14  ;;  %v905_v26 = vcombine.high %v897_v23, %v897_v23  ;;  %v15058_v28 = vpop.permute.xlu0 %706  ;;  %v15060_v29 = vpop.permute.xlu1 %708  ;;  %v913_v39 = vrot.slane %v897_v23, %v15049_v14 }
 0x1fd   : > { %632 = vrot.lane.b32.xlu1 %v589_v18, %s14676_s23  ;;  %v730_v33 = vsel %vm561_vm2, 0.0, %v15058_v28  ;;  %v731_v34 = vsel %vm561_vm2, 0.0, %v15060_v29 }
 0x1fe   : > { %v906_v30 = vcombine.high %v904_v25, %v904_v25  ;;  %630 = vrot.lane.b32.xlu0 %v611_v24, %s14676_s23  ;;  %v927_v31 = vrot.slane %v905_v26, %v15049_v14  ;;  %v920_v42 = vrot.slane %v904_v25, %v15049_v14  ;;  %v738_v49 = vadd.f32 %v730_v33, %v14960_v19 }
 0x1ff   : > { %v740_v52 = vadd.f32 %v731_v34, %v14966_v27 }
 0x200   : > { %v934_v35 = vrot.slane %v906_v30, %v15049_v14  ;;  %v15070_v36 = vpop.permute.xlu0 %539  ;;  %v15072_v38 = vpop.permute.xlu1 %541  ;;  %v1961_v57 = vcombine.low %v913_v39, %v927_v31  ;;  %v14230_v58 = vcombine.high %v913_v39, %v927_v31 }
 0x201   : > { %v563_v45 = vsel %vm561_vm2, 0.0, %v15070_v36  ;;  %v564_v48 = vsel %vm561_vm2, 0.0, %v15072_v38 }
 0x202   : > { %v572_v55 = vadd.f32 %v563_v45, %v14963_v22  ;;  %v574_v56 = vadd.f32 %v564_v48, %v14971_v32  ;;  %v1963_v59 = vcombine.low %v920_v42, %v934_v35  ;;  %v14231_v60 = vcombine.high %v920_v42, %v934_v35 }
 0x203   : > { %v1971_v27 = vrot.slane %v1961_v57, %v15049_v14  ;;  %v1978_v12 = vrot.slane %v14230_v58, %v15049_v14 }
 0x204   : > { %v15084_v3 = vadd.f32 %v738_v49, %v572_v55  ;;  %v15086_v6 = vadd.f32 %v740_v52, %v574_v56  ;;  %v591_v7 = vpop.permute.xlu0 %590  ;;  %v15088_v9 = vpop.permute.xlu1 %543  ;;  %v1985_v13 = vrot.slane %v1963_v59, %v15049_v14  ;;  %v1992_v15 = vrot.slane %v14231_v60, %v15049_v14 }
 0x205   : > { %636 = vrot.lane.b32.xlu1 %v591_v7, %s14676_s23  ;;  %v612_v19 = vsel %vm561_vm2, 0.0, %v591_v7  ;;  %v565_v16 = vsel %vm561_vm2, 0.0, %v15088_v9  ;;  %v1993_v26 = vcombine.low %v1971_v27, %v1978_v12 }
 0x206   : > { %634 = vrot.lane.b32.xlu0 %v612_v19, %s14676_s23  ;;  %v576_v24 = vadd.f32 %v565_v16, %v14979_v40  ;;  %v1994_v30 = vcombine.low %v1985_v13, %v1992_v15 }
 0x207   : > { %v2001_v35 = vrot.slane %v1993_v26, %v15049_v14 }
 0x208   : > { %v15099_v18 = vpop.permute.xlu0 %710  ;;  %v593_v20 = vpop.permute.xlu1 %592  ;;  %v2008_v39 = vrot.slane %v1994_v30, %v15049_v14 }
 0x209   : > { %v732_v21 = vsel %vm561_vm2, 0.0, %v15099_v18  ;;  %640 = vrot.lane.b32.xlu1 %v593_v20, %s14676_s23  ;;  %v613_v23 = vsel %vm561_vm2, 0.0, %v593_v20 }
 0x20a   : > { %638 = vrot.lane.b32.xlu0 %v613_v23, %s14676_s23  ;;  %v742_v25 = vadd.f32 %v732_v21, %v14974_v37  ;;  %v2009_v49 = vcombine.low %v2001_v35, %v2008_v39 }
 0x20c   : > { %v15108_v31 = vpop.permute.xlu1 %712  ;;  %v15110_v33 = vpop.permute.xlu0 %545  ;;  %v15112_v34 = vadd.f32 %v742_v25, %v576_v24  ;;  %14248 = vmatmul.mubr.msk.f32.vlgmr.msra.gmra.mrb[0].mxu1 %vm2906_vm3, %v2009_v49 }
 0x20d   : > { %v733_v42 = vsel %vm561_vm2, 0.0, %v15108_v31  ;;  %v566_v45 = vsel %vm561_vm2, 0.0, %v15110_v33  ;;  %3017 = vmatprep.mubr.f32.mxu1 %v22125_v0 }
 0x20e   : > { %v744_v52 = vadd.f32 %v733_v42, %v14981_v41  ;;  %v578_v55 = vadd.f32 %v566_v45, %v14986_v43 }
 0x210   : > { %v595_v37 = vpop.permute.xlu0 %594  ;;  %v15120_v48 = vpop.permute.xlu1 %547  ;;  %v15129_v58 = vadd.f32 %v744_v52, %v578_v55 }
 0x211   : > { %644 = vrot.lane.b32.xlu1 %v595_v37, %s14676_s23  ;;  %v614_v56 = vsel %vm561_vm2, 0.0, %v595_v37  ;;  %v567_v57 = vsel %vm561_vm2, 0.0, %v15120_v48 }
 0x212   : > { %642 = vrot.lane.b32.xlu0 %v614_v56, %s14676_s23  ;;  %v580_v7 = vadd.f32 %v567_v57, %v14993_v46 }
 0x214   : > { %v15132_v59 = vpop.permute.xlu0 %714  ;;  %v597_v60 = vpop.permute.xlu1 %596 }
 0x215   : > { %v734_v41 = vsel %vm561_vm2, 0.0, %v15132_v59  ;;  %648 = vrot.lane.b32.xlu1 %v597_v60, %s14676_s23  ;;  %v615_v27 = vsel %vm561_vm2, 0.0, %v597_v60 }
 0x216   : > { %v746_v19 = vadd.f32 %v734_v41, %v14988_v44  ;;  %646 = vrot.lane.b32.xlu0 %v615_v27, %s14676_s23 }
 0x218   : > { %v15141_v12 = vadd.f32 %v746_v19, %v580_v7  ;;  %v15144_v13 = vpop.permute.xlu1 %716  ;;  %v15146_v15 = vpop.permute.xlu0 %549 }
 0x219   : > { %v735_v16 = vsel %vm561_vm2, 0.0, %v15144_v13  ;;  %v568_v20 = vsel %vm561_vm2, 0.0, %v15146_v15 }
 0x21a   : > { %v748_v21 = vadd.f32 %v735_v16, %v14995_v47  ;;  %v582_v44 = vadd.f32 %v568_v20, %v15001_v50 }
 0x21c   : > { %v599_v23 = vpop.permute.xlu0 %598  ;;  %v15154_v24 = vpop.permute.xlu1 %551  ;;  %v15156_v25 = vadd.f32 %v748_v21, %v582_v44 }
 0x21d   : > { %652 = vrot.lane.b32.xlu1 %v599_v23, %s14676_s23  ;;  %v569_v26 = vsel %vm561_vm2, 0.0, %v15154_v24  ;;  %v616_v30 = vsel %vm561_vm2, 0.0, %v599_v23 }
 0x21e   : > { %650 = vrot.lane.b32.xlu0 %v616_v30, %s14676_s23  ;;  %v584_v42 = vadd.f32 %v569_v26, %v15008_v53 }
 0x220   : > { %v15162_v35 = vpop.permute.xlu0 %718  ;;  %v601_v39 = vpop.permute.xlu1 %600 }
 0x221   : > { %v736_v47 = vsel %vm561_vm2, 0.0, %v15162_v35  ;;  %656 = vrot.lane.b32.xlu1 %v601_v39, %s14676_s23  ;;  %v617_v37 = vsel %vm561_vm2, 0.0, %v601_v39 }
 0x222   : > { %v750_v45 = vadd.f32 %v736_v47, %v15003_v51  ;;  %654 = vrot.lane.b32.xlu0 %v617_v37, %s14676_s23 }
 0x224   : > { %v15171_v49 = vadd.f32 %v750_v45, %v584_v42  ;;  %v15174_v52 = vpop.permute.xlu1 %720 }
 0x225   : > { %22520 = vst [vmem:[#allocation21_spill] sm:$0xff] %v15174_v52 }
 0x26b   : > { %v629_v55 = vpop.permute.xlu1 %628 }
 0x26c   : > { %v799_v56 = vadd.f32 %v15031_v62, %v629_v55  ;;  %v627_v57 = vpop.permute.xlu0 %626 }
 0x26d   : > { %v674_v60 = vadd.f32 %v627_v57, %v14957_v17 }
 0x26e   : > { %832 = vrot.lane.b32.xlu1 %v799_v56, %s14676_s23 }
 0x26f   : > { %v798_v41 = vadd.f32 %v15029_v61, %v674_v60  ;;  %v633_v7 = vpop.permute.xlu1 %632 }
 0x270   : > { %v801_v51 = vadd.f32 %v15031_v62, %v633_v7  ;;  %v631_v19 = vpop.permute.xlu0 %630 }
 0x271   : > { %v676_v27 = vadd.f32 %v631_v19, %v14963_v22  ;;  %830 = vrot.lane.b32.xlu0 %v798_v41, %s14676_s23 }
 0x272   : > { %836 = vrot.lane.b32.xlu1 %v801_v51, %s14676_s23 }
 0x273   : > { %v800_v16 = vadd.f32 %v15029_v61, %v676_v27 }
 0x275   : > { %834 = vrot.lane.b32.xlu0 %v800_v16, %s14676_s23 }
 0x277   : > { %v637_v20 = vpop.permute.xlu1 %636 }
 0x278   : > { %v803_v17 = vadd.f32 %v15031_v62, %v637_v20  ;;  %v635_v21 = vpop.permute.xlu0 %634 }
 0x279   : > { %v678_v44 = vadd.f32 %v635_v21, %v14971_v32 }
 0x27a   : > { %840 = vrot.lane.b32.xlu1 %v803_v17, %s14676_s23 }
 0x27b   : > { %v802_v23 = vadd.f32 %v15029_v61, %v678_v44  ;;  %v641_v26 = vpop.permute.xlu1 %640  ;;  %v774_v44 = vadd.f32 %v15084_v3, %v14922_v4 }
 0x27c   : > { %v805_v22 = vadd.f32 %v15031_v62, %v641_v26  ;;  %v639_v30 = vpop.permute.xlu0 %638 }
 0x27d   : > { %v680_v39 = vadd.f32 %v639_v30, %v14979_v40  ;;  %838 = vrot.lane.b32.xlu0 %v802_v23, %s14676_s23  ;;  %v759_v23 = vadd.f32 %v15060_v29, %v15072_v38  ;;  %v1016_v26 = vcombine.high %v774_v44, %v774_v44 }
 0x27e   : > { %844 = vrot.lane.b32.xlu1 %v805_v22, %s14676_s23  ;;  %v1023_v22 = vrot.slane %v774_v44, %v15049_v14 }
 0x27f   : > { %v804_v47 = vadd.f32 %v15029_v61, %v680_v39  ;;  %v777_v3 = vadd.f32 %v759_v23, %v14924_v5  ;;  %v1030_v29 = vrot.slane %v1016_v26, %v15049_v14 }
 0x280   : > { %v1031_v38 = vcombine.high %v1023_v22, %v1023_v22 }
 0x281   : > { %842 = vrot.lane.b32.xlu0 %v804_v47, %s14676_s23 }
 0x283   : > { %v645_v42 = vpop.permute.xlu1 %644 }
 0x284   : > { %v807_v32 = vadd.f32 %v15031_v62, %v645_v42  ;;  %v643_v45 = vpop.permute.xlu0 %642 }
 0x285   : > { %v682_v37 = vadd.f32 %v643_v45, %v14986_v43 }
 0x286   : > { %848 = vrot.lane.b32.xlu1 %v807_v32, %s14676_s23  ;;  %v1197_v32 = vrot.slane %v777_v3, %v15049_v14 }
 0x287   : > { %v649_v55 = vpop.permute.xlu1 %648  ;;  %v806_v40 = vadd.f32 %v15029_v61, %v682_v37 }
 0x288   : > { %v809_v56 = vadd.f32 %v15031_v62, %v649_v55  ;;  %v647_v57 = vpop.permute.xlu0 %646  ;;  %v1032_v55 = vcombine.high %v1030_v29, %v1030_v29 }
 0x289   : > { %v684_v60 = vadd.f32 %v647_v57, %v14993_v46  ;;  %846 = vrot.lane.b32.xlu0 %v806_v40, %s14676_s23  ;;  %v780_v57 = vadd.f32 %v15129_v58, %v14922_v4 }
 0x28a   : > { %852 = vrot.lane.b32.xlu1 %v809_v56, %s14676_s23 }
 0x28b   : > { %v808_v41 = vadd.f32 %v15029_v61, %v684_v60  ;;  %v1401_v23 = vrot.slane %v780_v57, %v15049_v14 }
 0x28d   : > { %850 = vrot.lane.b32.xlu0 %v808_v41, %s14676_s23  ;;  %v1039_v41 = vrot.slane %v1023_v22, %v15049_v14  ;;  %v765_v22 = vadd.f32 %v15132_v59, %v15120_v48  ;;  %v767_v48 = vadd.f32 %v15144_v13, %v15146_v15 }
 0x28f   : > { %v653_v7 = vpop.permute.xlu1 %652 }
 0x290   : > { %v811_v51 = vadd.f32 %v15031_v62, %v653_v7  ;;  %v651_v43 = vpop.permute.xlu0 %650 }
 0x291   : > { %v686_v27 = vadd.f32 %v651_v43, %v15001_v50  ;;  %v757_v50 = vadd.f32 %v15058_v28, %v15070_v36  ;;  %v778_v28 = vadd.f32 %v15112_v34, %v14922_v4  ;;  %v15260_v43 = vrot.slane %v1197_v32, %v15049_v14 }
 0x292   : > { %856 = vrot.lane.b32.xlu1 %v811_v51, %s14676_s23 }
 0x293   : > { %v657_v19 = vpop.permute.xlu1 %656  ;;  %v810_v20 = vadd.f32 %v15029_v61, %v686_v27  ;;  %v1268_v45 = vcombine.high %v778_v28, %v778_v28  ;;  %v1275_v37 = vrot.slane %v778_v28, %v15049_v14  ;;  %v15269_v27 = vrot.slane %v1032_v55, %v15049_v14 }
 0x294   : > { %v813_v16 = vadd.f32 %v15031_v62, %v657_v19  ;;  %v655_v46 = vpop.permute.xlu0 %654  ;;  %v776_v62 = vadd.f32 %v15086_v6, %v14922_v4  ;;  %v782_v19 = vadd.f32 %v15141_v12, %v14922_v4  ;;  %v786_v55 = vadd.f32 %v15171_v49, %v14922_v4 }
 0x295   : > { %v688_v17 = vadd.f32 %v655_v46, %v15008_v53  ;;  %854 = vrot.lane.b32.xlu0 %v810_v20, %s14676_s23  ;;  %v773_v53 = vadd.f32 %v15043_v11, %v14924_v5  ;;  %v761_v11 = vadd.f32 %v15099_v18, %v15088_v9  ;;  %v763_v9 = vadd.f32 %v15108_v31, %v15110_v33 }
 0x296   : > { %860 = vrot.lane.b32.xlu1 %v813_v16, %s14676_s23  ;;  %v1142_v30 = vcombine.high %v776_v62, %v776_v62  ;;  %v1149_v39 = vrot.slane %v776_v62, %v15049_v14  ;;  %v1053_v18 = vrot.slane %v1031_v38, %v15049_v14  ;;  %v15263_v31 = vrot.slane %v1030_v29, %v15049_v14 }
 0x297   : > { %v812_v21 = vadd.f32 %v15029_v61, %v688_v17  ;;  %v775_v61 = vadd.f32 %v757_v50, %v14924_v5  ;;  %v945_v36 = vrot.slane %v773_v53, %v15049_v14  ;;  %v779_v56 = vadd.f32 %v761_v11, %v14924_v5 }
 0x298   : > { %v1156_v47 = vrot.slane %v1142_v30, %v15049_v14  ;;  %v1157_v42 = vcombine.high %v1149_v39, %v1149_v39  ;;  %v15254_v7 = vrot.slane %v1149_v39, %v15049_v14  ;;  %v1282_v33 = vrot.slane %v1268_v45, %v15049_v14 }
 0x299   : > { %858 = vrot.lane.b32.xlu0 %v812_v21, %s14676_s23  ;;  %v1071_v6 = vrot.slane %v775_v61, %v15049_v14  ;;  %v15241_v34 = vrot.slane %v945_v36, %v15049_v14  ;;  %v1283_v58 = vcombine.high %v1275_v37, %v1275_v37  ;;  %v1323_v20 = vrot.slane %v779_v56, %v15049_v14 }
 0x29a   : > { %v1158_v40 = vcombine.high %v1156_v47, %v1156_v47  ;;  %v15257_v51 = vrot.slane %v1157_v42, %v15049_v14  ;;  %v15272_v16 = vrot.slane %v1156_v47, %v15049_v14  ;;  %v15276_v46 = vadd.f32 %v763_v9, %v14924_v5 }
 0x29b   : > { %v15250_v60 = vrot.slane %v1071_v6, %v15049_v14  ;;  %v2060_v17 = vcombine.low %v1039_v41, %v1053_v18  ;;  %v14232_v21 = vcombine.high %v1039_v41, %v1053_v18  ;;  %v1394_v50 = vcombine.high %v780_v57, %v780_v57 }
 0x29c   : > { %v15279_v44 = vrot.slane %v1158_v40, %v15049_v14  ;;  %v2159_v12 = vcombine.low %v15254_v7, %v15257_v51  ;;  %v14234_v62 = vcombine.high %v15254_v7, %v15257_v51  ;;  %v784_v53 = vadd.f32 %v15156_v25, %v14922_v4 }
 0x29d   : > { %v1284_v26 = vcombine.high %v1282_v33, %v1282_v33  ;;  %v15289_v61 = vrot.slane %v1283_v58, %v15049_v14  ;;  %v1520_v30 = vcombine.high %v782_v19, %v782_v19  ;;  %v15294_v3 = vrot.slane %v1275_v37, %v15049_v14 }
 0x29e   : > { %v1449_v39 = vrot.slane %v15276_v46, %v15049_v14  ;;  %v1527_v28 = vrot.slane %v782_v19, %v15049_v14  ;;  %v15300_v36 = vrot.slane %v1323_v20, %v15049_v14  ;;  %v15303_v25 = vrot.slane %v1282_v33, %v15049_v14 }
 0x29f   : > { %v1408_v29 = vrot.slane %v1394_v50, %v15049_v14  ;;  %v2062_v59 = vcombine.low %v15263_v31, %v15269_v27  ;;  %v1409_v11 = vcombine.high %v1401_v23, %v1401_v23  ;;  %v1646_v38 = vcombine.high %v784_v53, %v784_v53 }
 0x2a0   : > { %v1653_v6 = vrot.slane %v784_v53, %v15049_v14  ;;  %v737_v47 = vsel %vm561_vm2, 0.0, %v15174_v52  ;;  %v15314_v42 = vrot.slane %v1284_v26, %v15049_v14  ;;  %v2258_v32 = vcombine.low %v15294_v3, %v15289_v61 }
 0x2a1   : > { %v783_v45 = vadd.f32 %v765_v22, %v14924_v5  ;;  %v1534_v13 = vrot.slane %v1520_v30, %v15049_v14  ;;  %v14236_v15 = vcombine.high %v15294_v3, %v15289_v61  ;;  %v1535_v37 = vcombine.high %v1527_v28, %v1527_v28 }
 0x2a2   : > { %v15325_v56 = vrot.slane %v2060_v17, %v15049_v14  ;;  %v1410_v9 = vcombine.high %v1408_v29, %v1408_v29  ;;  %v15328_v18 = vadd.f32 %v767_v48, %v14924_v5  ;;  %v769_v40 = vadd.f32 %v15162_v35, %v15154_v24 }
 0x2a3   : > { %v752_v57 = vadd.f32 %v737_v47, %v15010_v54  ;;  %v15334_v41 = vrot.slane %v1409_v11, %v15049_v14  ;;  %v1660_v33 = vrot.slane %v1646_v38, %v15049_v14  ;;  %v1661_v58 = vcombine.high %v1653_v6, %v1653_v6 }
 0x2a4   : > { %v2083_v49 = vrot.slane %v14232_v21, %v15049_v14  ;;  %v15339_v19 = vrot.slane %v1401_v23, %v15049_v14  ;;  %v1536_v20 = vcombine.high %v1534_v13, %v1534_v13  ;;  %v1575_v17 = vrot.slane %v783_v45, %v15049_v14 }
 0x2a5   : > { %v2090_v50 = vrot.slane %v2062_v59, %v15049_v14  ;;  %v1424_v24 = vrot.slane %v1408_v29, %v15049_v14  ;;  %v15345_v54 = vrot.slane %v1535_v37, %v15049_v14  ;;  %v1772_v35 = vcombine.high %v786_v55, %v786_v55 }
 0x2a6   : > { %v1779_v53 = vrot.slane %v786_v55, %v15049_v14  ;;  %v1438_v26 = vrot.slane %v1410_v9, %v15049_v14  ;;  %v1701_v21 = vrot.slane %v15328_v18, %v15049_v14  ;;  %v15352_v23 = vadd.f32 %v769_v40, %v14924_v5 }
 0x2a7   : > { %v788_v22 = vadd.f32 %v752_v57, %v14922_v4  ;;  %v2402_v30 = vcombine.low %v15339_v19, %v15334_v41  ;;  %v15358_v29 = vrot.slane %v1527_v28, %v15049_v14  ;;  %v1662_v48 = vcombine.high %v1660_v33, %v1660_v33 }
 0x2a8   : > { %v15361_v59 = vrot.slane %v1661_v58, %v15049_v14  ;;  %v14238_v11 = vcombine.high %v15339_v19, %v15334_v41  ;;  %v15366_v38 = vrot.slane %v1534_v13, %v15049_v14  ;;  %v15369_v5 = vrot.slane %v1536_v20, %v15049_v14 }
 0x2a9   : > { %v2092_v4 = vcombine.low %v2083_v49, %v2090_v50  ;;  %v2501_v47 = vcombine.low %v15358_v29, %v15345_v54  ;;  %v15374_v28 = vrot.slane %v1653_v6, %v15049_v14  ;;  %v1786_v45 = vrot.slane %v1772_v35, %v15049_v14 }
 0x2aa   : > { %v1787_v37 = vcombine.high %v1779_v53, %v1779_v53  ;;  %v14240_v55 = vcombine.high %v15358_v29, %v15345_v54  ;;  %v15380_v9 = vrot.slane %v1660_v33, %v15049_v14  ;;  %v1827_v13 = vrot.slane %v15352_v23, %v15049_v14 }
 0x2ab   : > { %v1898_v40 = vcombine.high %v788_v22, %v788_v22  ;;  %v15385_v57 = vrot.slane %v1662_v48, %v15049_v14  ;;  %v2600_v6 = vcombine.low %v15374_v28, %v15361_v59  ;;  %v14242_v41 = vcombine.high %v15374_v28, %v15361_v59 }
 0x2ac   : > { %v14233_v58 = vcombine.high %v15263_v31, %v15269_v27  ;;  %v15394_v49 = vrot.slane %v788_v22, %v15049_v14  ;;  %v15397_v33 = vrot.slane %v2092_v4, %v15049_v14  ;;  %v2181_v19 = vrot.slane %v2159_v12, %v15049_v14 }
 0x2ad   : > { %v2188_v20 = vrot.slane %v14234_v62, %v15049_v14  ;;  %v1788_v50 = vcombine.high %v1786_v45, %v1786_v45  ;;  %v15408_v35 = vrot.slane %v1787_v37, %v15049_v14  ;;  %v2206_v31 = vcombine.low %v15272_v16, %v15279_v44 }
 0x2ae   : > { %22521 = vst [vmem:[#allocation22_spill] sm:$0xff] %v15394_v49  ;;  %v14235_v27 = vcombine.high %v15272_v16, %v15279_v44  ;;  %v15415_v23 = vrot.slane %v1898_v40, %v15049_v14  ;;  %v15421_v12 = vrot.slane %v1449_v39, %v15049_v14  ;;  %v15424_v7 = vrot.slane %v1575_v17, %v15049_v14 }
 0x2af   : > { %22522 = vst [vmem:[#allocation23_spill] sm:$0xff] %v15408_v35  ;;  %v2305_v51 = vcombine.low %v15303_v25, %v15314_v42  ;;  %v15429_v62 = vrot.slane %v1779_v53, %v15049_v14  ;;  %v15432_v16 = vrot.slane %v14233_v58, %v15049_v14  ;;  %v2404_v44 = vcombine.low %v1424_v24, %v1438_v26 }
 0x2b0   : > { %22523 = vst [vmem:[#allocation24_spill] sm:$0xff] %v15415_v23  ;;  %v14239_v48 = vcombine.high %v1424_v24, %v1438_v26  ;;  %v15435_v59 = vrot.slane %v1786_v45, %v15049_v14  ;;  %v15441_v39 = vrot.slane %v15394_v49, %v15049_v14  ;;  %v2190_v17 = vcombine.low %v2181_v19, %v2188_v20 }
 0x2b1   : > { %22524 = vst [vmem:[#allocation25_spill] sm:$0xff] %v15429_v62  ;;  %v15444_v53 = vrot.slane %v1788_v50, %v15049_v14  ;;  %v2699_v4 = vcombine.low %v15429_v62, %v15408_v35  ;;  %v2216_v28 = vrot.slane %v2206_v31, %v15049_v14  ;;  %v2223_v24 = vrot.slane %v14235_v27, %v15049_v14 }
 0x2b2   : > { %22525 = vst [vmem:[#allocation26_spill] sm:$0xff] %v15435_v59  ;;  %22526 = vst [vmem:[#allocation27_spill] sm:$0xff] %v15441_v39  ;;  %v2321_v40 = vrot.slane %v2305_v51, %v15049_v14  ;;  %v2412_v58 = vrot.slane %v2402_v30, %v15049_v14  ;;  %v2419_v20 = vrot.slane %v14238_v11, %v15049_v14 }
 0x2b3   : > { %22527 = vst [vmem:[#allocation28_spill] sm:$0xff] %v15444_v53  ;;  %v2426_v50 = vrot.slane %v2404_v44, %v15049_v14  ;;  %v2433_v46 = vrot.slane %v14239_v48, %v15049_v14  ;;  %v2503_v31 = vcombine.low %v15366_v38, %v15369_v5  ;;  %v14237_v26 = vcombine.high %v15303_v25, %v15314_v42 }
 0x2b4   : > { %v2314_v30 = vrot.slane %v14236_v15, %v15049_v14  ;;  %v15467_v11 = vrot.slane %v2190_v17, %v15049_v14  ;;  %v2238_v44 = vcombine.low %v2216_v28, %v2223_v24  ;;  %v15473_v48 = vrot.slane %v1701_v21, %v15049_v14 }
 0x2b5   : > { %v15479_v25 = vrot.slane %v2258_v32, %v15049_v14  ;;  %v15482_v42 = vrot.slane %v1827_v13, %v15049_v14  ;;  %v2435_v17 = vcombine.low %v2426_v50, %v2433_v46  ;;  %v2531_v28 = vrot.slane %v2503_v31, %v15049_v14 }
 0x2b6   : > { %v2336_v15 = vcombine.low %v2314_v30, %v2321_v40  ;;  %v14241_v18 = vcombine.high %v15366_v38, %v15369_v5  ;;  %v15488_v21 = vrot.slane %v14237_v26, %v15049_v14  ;;  %v15491_v24 = vrot.slane %v2600_v6, %v15049_v14 }
 0x2b7   : > { %v15494_v61 = vrot.slane %v14242_v41, %v15049_v14  ;;  %v2647_v3 = vcombine.low %v15380_v9, %v15385_v57  ;;  %v15500_v13 = vrot.slane %v2238_v44, %v15049_v14  ;;  %v15506_v38 = vrot.slane %v2501_v47, %v15049_v14 }
 0x2b8   : > { %v2524_v5 = vrot.slane %v14240_v55, %v15049_v14  ;;  %v15516_v40 = vrot.slane %v2336_v15, %v15049_v14  ;;  %v15522_v47 = vrot.slane %v2435_v17, %v15049_v14  ;;  %v15525_v54 = vrot.slane %v14241_v18, %v15049_v14 }
 0x2b9   : > { %22528 = vst [vmem:[#allocation29_spill] sm:$0xff] %v15494_v61  ;;  %v14243_v50 = vcombine.high %v15380_v9, %v15385_v57  ;;  %v15533_v31 = vrot.slane %v2647_v3, %v15049_v14  ;;  %v15537_v44 = vrot.slane %v2699_v4, %v15049_v14 }
 0x2bb   : > { %22529 = vst [vmem:[#allocation30_spill] sm:$0xff] %v15533_v31  ;;  %22530 = vst [vmem:[#allocation31_spill] sm:$0xff] %v15537_v44 }
 0x2df   : > { %v3013_v45 = vpop.f32.mrb[0].mxu1 }
 0x2e0   : > { %v3015_v19 = vpop.f32.mrb[1].mxu1 }
 0x2e1   : > { %v3172_v27 = vcombine.low %v3013_v45, %v3015_v19  ;;  %v3173_v0 = vcombine.high %v3013_v45, %v3015_v19  ;;  %v833_v45 = vpop.permute.xlu1 %832 }
 0x2e2   : > { %v1008_v17 = vrot.slane %v833_v45, %v15049_v14 }
 0x2e3   : > { %v831_v22 = vpop.permute.xlu0 %830  ;;  %v3180_v6 = vrot.slane %v3172_v27, %v15049_v14  ;;  %v3187_v29 = vrot.slane %v3173_v0, %v15049_v14 }
 0x2e4   : > { %v960_v37 = vrot.slane %v831_v22, %v15049_v14  ;;  %v953_v51 = vcombine.high %v831_v22, %v831_v22  ;;  %v2434_v22 = vcombine.low %v2412_v58, %v2419_v20  ;;  %v2533_v20 = vcombine.low %v2524_v5, %v2531_v28 }
 0x2e5   : > { %v837_v55 = vpop.permute.xlu1 %836  ;;  %v3189_v18 = vcombine.high %v3187_v29, %v3187_v29  ;;  %v15546_v3 = vrot.slane %v3180_v6, %v15049_v14  ;;  %v15549_v4 = vrot.slane %v3187_v29, %v15049_v14  ;;  %v15562_v29 = vrot.slane %v14243_v50, %v15049_v14 }
 0x2e6   : > { %v968_v19 = vcombine.high %v960_v37, %v960_v37  ;;  %v967_v32 = vrot.slane %v953_v51, %v15049_v14  ;;  %v976_v41 = vrot.slane %v960_v37, %v15049_v14  ;;  %v15519_v58 = vrot.slane %v2434_v22, %v15049_v14 }
 0x2e7   : > { %v835_v26 = vpop.permute.xlu0 %834  ;;  %v1134_v57 = vrot.slane %v837_v55, %v15049_v14  ;;  %22531 = vst [vmem:[#allocation32_spill] sm:$0xff] %v15562_v29 }
 0x2e8   : > { %v990_v46 = vrot.slane %v968_v19, %v15049_v14  ;;  %v969_v27 = vcombine.high %v967_v32, %v967_v32  ;;  %v983_v30 = vrot.slane %v967_v32, %v15049_v14  ;;  %v1079_v51 = vcombine.high %v835_v26, %v835_v26 }
 0x2e9   : > { %v3188_v19 = vcombine.high %v3180_v6, %v3180_v6  ;;  %v998_v15 = vcombine.high %v976_v41, %v976_v41  ;;  %v2010_v9 = vcombine.low %v15241_v34, %v976_v41  ;;  %v1086_v28 = vrot.slane %v835_v26, %v15049_v14 }
 0x2ea   : > { %v1000_v0 = vcombine.high %v990_v46, %v990_v46  ;;  %v997_v5 = vrot.slane %v969_v27, %v15049_v14  ;;  %v999_v22 = vcombine.high %v983_v30, %v983_v30  ;;  %v1093_v45 = vrot.slane %v1079_v51, %v15049_v14 }
 0x2eb   : > { %v15556_v41 = vrot.slane %v2533_v20, %v15049_v14  ;;  %v15559_v26 = vrot.slane %v3188_v19, %v15049_v14  ;;  %v2011_v6 = vcombine.low %v990_v46, %v998_v15  ;;  %v1015_v32 = vrot.slane %v1008_v17, %v15049_v14 }
 0x2ec   : > { %v841_v34 = vpop.permute.xlu1 %840  ;;  %v2012_v55 = vcombine.low %v1000_v0, %v983_v30  ;;  %v2020_v27 = vrot.slane %v2010_v9, %v15049_v14  ;;  %v15567_v8 = vrot.slane %v1134_v57, %v15049_v14  ;;  %v1094_v51 = vcombine.high %v1086_v28, %v1086_v28 }
 0x2ed   : > { %v15570_v20 = vrot.slane %v3189_v18, %v15049_v14  ;;  %v3218_v19 = vcombine.high %v15546_v3, %v15546_v3  ;;  %v3219_v46 = vcombine.high %v15549_v4, %v15549_v4  ;;  %v1102_v50 = vrot.slane %v1086_v28, %v15049_v14 }
 0x2ee   : > { %v1001_v30 = vcombine.high %v997_v5, %v997_v5  ;;  %v2013_v15 = vcombine.low %v997_v5, %v999_v22  ;;  %v1095_v0 = vcombine.high %v1093_v45, %v1093_v45  ;;  %v2027_v9 = vrot.slane %v2011_v6, %v15049_v14 }
 0x2ef   : > { %v839_v37 = vpop.permute.xlu0 %838  ;;  %v2034_v57 = vrot.slane %v2012_v55, %v15049_v14  ;;  %v1260_v2 = vrot.slane %v841_v34, %v15049_v14  ;;  %v3220_v18 = vcombine.high %v15559_v26, %v15559_v26  ;;  %v1109_v1 = vrot.slane %v1093_v45, %v15049_v14 }
 0x2f0   : > { %v1205_v17 = vcombine.high %v839_v37, %v839_v37  ;;  %v1116_v63 = vrot.slane %v1094_v51, %v15049_v14  ;;  %v1212_v10 = vrot.slane %v839_v37, %v15049_v14  ;;  %v15585_v28 = vpop.permute.xlu1 %844  ;;  %v5259_v22 = vcombine.low %v15546_v3, %v15546_v3 }
 0x2f1   : > { %v1124_v5 = vcombine.high %v1102_v50, %v1102_v50  ;;  %v5260_v6 = vcombine.low %v15559_v26, %v3218_v19  ;;  %v5261_v55 = vcombine.low %v3220_v18, %v15549_v4  ;;  %v5262_v34 = vcombine.low %v15570_v20, %v3219_v46 }
 0x2f2   : > { %v2059_v52 = vcombine.low %v1001_v30, %v1015_v32  ;;  %v1123_v39 = vrot.slane %v1095_v0, %v15049_v14  ;;  %v2109_v45 = vcombine.low %v15250_v60, %v1102_v50  ;;  %v1219_v51 = vrot.slane %v1205_v17, %v15049_v14 }
 0x2f3   : > { %v5269_v49 = vrot.slane %v5259_v22, %v15049_v14  ;;  %v5276_v44 = vrot.slane %v5260_v6, %v15049_v14  ;;  %v5283_v19 = vrot.slane %v5261_v55, %v15049_v14  ;;  %v1125_v23 = vcombine.high %v1109_v1, %v1109_v1  ;;  %v843_v30 = vpop.permute.xlu0 %842 }
 0x2f4   : > { %v1126_v18 = vcombine.high %v1116_v63, %v1116_v63  ;;  %v15601_v46 = vrot.slane %v1260_v2, %v15049_v14  ;;  %v1220_v32 = vcombine.high %v1212_v10, %v1212_v10  ;;  %v2110_v0 = vcombine.low %v1116_v63, %v1124_v5 }
 0x2f5   : > { %v5290_v60 = vrot.slane %v5262_v34, %v15049_v14  ;;  %v5291_v50 = vcombine.low %v5269_v49, %v5276_v44  ;;  %v2041_v17 = vrot.slane %v2013_v15, %v15049_v14  ;;  %v1127_v37 = vcombine.high %v1123_v39, %v1123_v39 }
 0x2f6   : > { %v2125_v22 = vrot.slane %v2109_v45, %v15049_v14  ;;  %v1221_v62 = vcombine.high %v1219_v51, %v1219_v51  ;;  %v1228_v6 = vrot.slane %v1212_v10, %v15049_v14  ;;  %v1331_v55 = vcombine.high %v843_v30, %v843_v30 }
 0x2f7   : > { %v5292_v35 = vcombine.low %v5283_v19, %v5290_v60  ;;  %v2042_v59 = vcombine.low %v2020_v27, %v2027_v9  ;;  %v2043_v53 = vcombine.low %v2034_v57, %v2041_v17  ;;  %v2111_v2 = vcombine.low %v1126_v18, %v1109_v1 }
 0x2f8   : > { %v15607_v31 = vcombine.low %v1123_v39, %v1125_v23  ;;  %v1242_v63 = vrot.slane %v1220_v32, %v15049_v14  ;;  %v2069_v5 = vrot.slane %v2059_v52, %v15049_v14  ;;  %v5299_v34 = vrot.slane %v5291_v50, %v15049_v14 }
 0x2f9   : > { %v5306_v15 = vrot.slane %v5292_v35, %v15049_v14  ;;  %v2050_v45 = vrot.slane %v2042_v59, %v15049_v14  ;;  %v2057_v29 = vrot.slane %v2043_v53, %v15049_v14  ;;  %v1235_v10 = vrot.slane %v1219_v51, %v15049_v14 }
 0x2fa   : > { %v1250_v61 = vcombine.high %v1228_v6, %v1228_v6  ;;  %v1338_v27 = vrot.slane %v843_v30, %v15049_v14  ;;  %v2091_v1 = vcombine.low %v2069_v5, %v15325_v56  ;;  %v1345_v23 = vrot.slane %v1331_v55, %v15049_v14 }
 0x2fb   : > { %v5307_v39 = vcombine.low %v5299_v34, %v5306_v15  ;;  %v2058_v9 = vcombine.low %v2050_v45, %v2057_v29  ;;  %v847_v52 = vpop.permute.xlu0 %846  ;;  %v7231_v57 = vcombine.high %v5269_v49, %v5276_v44  ;;  %v2132_v18 = vrot.slane %v2110_v0, %v15049_v14  ;;  %v849_v45 = vpop.permute.xlu1 %848 }
 0x2fc   : > { %v2139_v35 = vrot.slane %v2111_v2, %v15049_v14  ;;  %v1249_v59 = vrot.slane %v1221_v62, %v15049_v14  ;;  %v2099_v53 = vrot.slane %v2091_v1, %v15049_v14  ;;  %v1252_v51 = vcombine.high %v1242_v63, %v1242_v63 }
 0x2fd   : > { %v2208_v32 = vcombine.low %v15260_v43, %v1228_v6  ;;  %6347 = vrot.lane.b32.xlu0 %v5307_v39, %s14677_s15  ;;  %14249 = vmatmul.mubr.msk.f32.gmra.mrb[2].mxu1 %vm2906_vm3, %v2058_v9  ;;  %v7232_v56 = vcombine.high %v5283_v19, %v5290_v60  ;;  %v2209_v30 = vcombine.low %v1242_v63, %v1250_v61  ;;  %v22532_v44 = vmov 0.0  }
 0x2fe   : > { %v1346_v29 = vcombine.high %v1338_v27, %v1338_v27  ;;  %v1354_v49 = vrot.slane %v1338_v27, %v15049_v14  ;;  %3023 = vmatprep.mubr.f32.mxu1 %v22532_v44  ;;  %v1457_v0 = vcombine.high %v847_v52, %v847_v52  ;;  %v1347_v50 = vcombine.high %v1345_v23, %v1345_v23 }
 0x2ff   : > { %v2107_v62 = vcombine.low %v2099_v53, %v15397_v33  ;;  %v7239_v17 = vrot.slane %v7231_v57, %v15049_v14  ;;  %v7246_v55 = vrot.slane %v7232_v56, %v15049_v14  ;;  %v2158_v43 = vcombine.low %v1127_v37, %v15567_v8 }
 0x300   : > { %v1251_v6 = vcombine.high %v1235_v10, %v1235_v10  ;;  %v1253_v2 = vcombine.high %v1249_v59, %v1249_v59  ;;  %v2140_v19 = vcombine.low %v15432_v16, %v2125_v22  ;;  %v2230_v61 = vrot.slane %v2208_v32, %v15049_v14 }
 0x301   : > { %6500 = vrot.lane.b32.xlu0 %v5307_v39, %s14678_s17  ;;  %14250 = vmatmul.mubr.msk.f32.gmra.mrb[4].mxu1 %vm2906_vm3, %v2107_v62  ;;  %v1464_v60 = vrot.slane %v847_v52, %v15049_v14  ;;  %v7247_v63 = vcombine.low %v7239_v17, %v7246_v55  ;;  %v2237_v33 = vrot.slane %v2209_v30, %v15049_v14 }
 0x302   : > { %v15638_v5 = vcombine.low %v1252_v51, %v1235_v10  ;;  %v1471_v34 = vrot.slane %v1457_v0, %v15049_v14  ;;  %3029 = vmatprep.mubr.f32.mxu1 %v22532_v44  ;;  %v2141_v8 = vcombine.low %v2132_v18, %v2139_v35  ;;  %v1361_v16 = vrot.slane %v1345_v23, %v15049_v14  ;;  %v851_v51 = vpop.permute.xlu0 %850 }
 0x303   : > { %v1368_v37 = vrot.slane %v1346_v29, %v15049_v14  ;;  %v1375_v22 = vrot.slane %v1347_v50, %v15049_v14  ;;  %v1376_v15 = vcombine.high %v1354_v49, %v1354_v49  ;;  %v2148_v27 = vrot.slane %v2140_v19, %v15049_v14 }
 0x304   : > { %v2155_v1 = vrot.slane %v2141_v8, %v15049_v14  ;;  %v2167_v10 = vrot.slane %v15607_v31, %v15049_v14  ;;  %v2174_v39 = vrot.slane %v2158_v43, %v15049_v14  ;;  %v22533_v9 = vrot.slane %v15585_v28, %v15049_v14  ;;  %v853_v43 = vpop.permute.xlu1 %852 }
 0x305   : > { %v2307_v52 = vcombine.low %v15300_v36, %v1354_v49  ;;  %v1472_v57 = vcombine.high %v1464_v60, %v1464_v60  ;;  %v1480_v18 = vrot.slane %v1464_v60, %v15049_v14  ;;  %7656 = vrot.lane.b32.xlu0 %v7247_v63, %s14677_s15  ;;  %v1473_v35 = vcombine.high %v1471_v34, %v1471_v34 }
 0x306   : > { %v1393_v23 = vrot.slane %v22533_v9, %v15049_v14  ;;  %v2156_v53 = vcombine.low %v2148_v27, %v2155_v1  ;;  %v2189_v32 = vcombine.low %v2167_v10, %v2174_v39  ;;  %v2239_v56 = vcombine.low %v2230_v61, %v2237_v33 }
 0x307   : > { %v2256_v31 = vcombine.low %v1249_v59, %v1251_v6  ;;  %v1377_v30 = vcombine.high %v1361_v16, %v1361_v16  ;;  %v1378_v29 = vcombine.high %v1368_v37, %v1368_v37  ;;  %v15657_v0 = vcombine.low %v1368_v37, %v1376_v15  ;;  %v855_v61 = vpop.permute.xlu0 %854 }
 0x308   : > { %v2257_v28 = vcombine.low %v1253_v2, %v15601_v46  ;;  %v2265_v36 = vrot.slane %v15638_v5, %v15049_v14  ;;  %v1379_v49 = vcombine.high %v1375_v22, %v1375_v22  ;;  %14251 = vmatmul.mubr.msk.f32.gmra.mrb[6].mxu1 %vm2906_vm3, %v2156_v53  ;;  %v2197_v50 = vrot.slane %v2189_v32, %v15049_v14  ;;  %v857_v32 = vpop.permute.xlu1 %856 }
 0x309   : > { %v2335_v62 = vrot.slane %v2307_v52, %v15049_v14  ;;  %v1487_v17 = vrot.slane %v1471_v34, %v15049_v14  ;;  %v1494_v59 = vrot.slane %v1472_v57, %v15049_v14  ;;  %v1502_v55 = vcombine.high %v1480_v18, %v1480_v18  ;;  %3035 = vmatprep.mubr.f32.mxu1 %v22532_v44 }
 0x30a   : > { %v1501_v46 = vrot.slane %v1473_v35, %v15049_v14  ;;  %v1590_v6 = vrot.slane %v851_v51, %v15049_v14  ;;  %v2205_v2 = vcombine.low %v2197_v50, %v15467_v11  ;;  %v2253_v19 = vrot.slane %v2239_v56, %v15049_v14 }
 0x30b   : > { %v2354_v60 = vcombine.low %v1378_v29, %v1361_v16  ;;  %v2355_v63 = vcombine.low %v1375_v22, %v1377_v30  ;;  %v2363_v33 = vrot.slane %v15657_v0, %v15049_v14  ;;  %v1583_v5 = vcombine.high %v851_v51, %v851_v51 }
 0x30c   : > { %v2356_v34 = vcombine.low %v1379_v49, %v1393_v23  ;;  %v1512_v8 = vrot.slane %v849_v45, %v15049_v14  ;;  %v2451_v37 = vcombine.low %v15421_v12, %v1480_v18  ;;  %v1638_v15 = vrot.slane %v853_v43, %v15049_v14  ;;  %14252 = vmatmul.mubr.msk.f32.gmra.mrb[8].mxu1 %vm2906_vm3, %v2205_v2 }
 0x30d   : > { %v1503_v27 = vcombine.high %v1487_v17, %v1487_v17  ;;  %v1504_v11 = vcombine.high %v1494_v59, %v1494_v59  ;;  %3041 = vmatprep.mubr.f32.mxu1 %v22532_v44  ;;  %v1709_v1 = vcombine.high %v855_v61, %v855_v61  ;;  %v2272_v16 = vrot.slane %v2256_v31, %v15049_v14 }
 0x30e   : > { %v1505_v22 = vcombine.high %v1501_v46, %v1501_v46  ;;  %v15680_v10 = vcombine.low %v1494_v59, %v1502_v55  ;;  %v1598_v39 = vcombine.high %v1590_v6, %v1590_v6  ;;  %v2254_v9 = vcombine.low %v15500_v13, %v2253_v19 }
 0x30f   : > { %v2370_v45 = vrot.slane %v2354_v60, %v15049_v14  ;;  %v1597_v12 = vrot.slane %v1583_v5, %v15049_v14  ;;  %v2279_v23 = vrot.slane %v2257_v28, %v15049_v14  ;;  %v2287_v52 = vcombine.low %v2265_v36, %v2272_v16 }
 0x310   : > { %v1519_v57 = vrot.slane %v1512_v8, %v15049_v14  ;;  %v15688_v18 = vrot.slane %v2451_v37, %v15049_v14  ;;  %v15691_v35 = vrot.slane %v1638_v15, %v15049_v14  ;;  %14253 = vmatmul.mubr.msk.f32.gmra.mrb[10].mxu1 %vm2906_vm3, %v2254_v9  ;;  %v1716_v53 = vrot.slane %v855_v61, %v15049_v14 }
 0x311   : > { %v2453_v13 = vcombine.low %v1504_v11, %v1487_v17  ;;  %v2454_v51 = vcombine.low %v1501_v46, %v1503_v27  ;;  %v1723_v56 = vrot.slane %v1709_v1, %v15049_v14  ;;  %3047 = vmatprep.mubr.f32.mxu1 %v22532_v44  ;;  %v2288_v31 = vcombine.low %v2279_v23, %v15479_v25  ;;  %v859_v17 = vpop.permute.xlu0 %858 }
 0x312   : > { %v2468_v30 = vrot.slane %v15680_v10, %v15049_v14  ;;  %v15700_v29 = vcombine.low %v1505_v22, %v1519_v57  ;;  %v1606_v0 = vrot.slane %v1590_v6, %v15049_v14  ;;  %v1620_v28 = vrot.slane %v1598_v39, %v15049_v14 }
 0x313   : > { %v1599_v36 = vcombine.high %v1597_v12, %v1597_v12  ;;  %v2295_v49 = vrot.slane %v2287_v52, %v15049_v14  ;;  %v2302_v50 = vrot.slane %v2288_v31, %v15049_v14  ;;  %v2337_v59 = vcombine.low %v15488_v21, %v2335_v62 }
 0x314   : > { %v1764_v55 = vrot.slane %v857_v32, %v15049_v14  ;;  %v1724_v25 = vcombine.high %v1716_v53, %v1716_v53  ;;  %v1732_v43 = vrot.slane %v1716_v53, %v15049_v14  ;;  %v2384_v46 = vrot.slane %v2356_v34, %v15049_v14 }
 0x315   : > { %v1725_v2 = vcombine.high %v1723_v56, %v1723_v56  ;;  %v2303_v19 = vcombine.low %v2295_v49, %v2302_v50  ;;  %v2351_v6 = vrot.slane %v2337_v59, %v15049_v14  ;;  %v2377_v61 = vrot.slane %v2355_v63, %v15049_v14 }
 0x316   : > { %v1613_v60 = vrot.slane %v1597_v12, %v15049_v14  ;;  %v1628_v5 = vcombine.high %v1606_v0, %v1606_v0  ;;  %v1630_v8 = vcombine.high %v1620_v28, %v1620_v28  ;;  %v1835_v37 = vcombine.high %v859_v17, %v859_v17 }
 0x317   : > { %v1627_v21 = vrot.slane %v1599_v36, %v15049_v14  ;;  %v1739_v62 = vrot.slane %v1723_v56, %v15049_v14  ;;  %14254 = vmatmul.mubr.msk.f32.gmra.mrb[12].mxu1 %vm2906_vm3, %v2303_v19  ;;  %v2385_v15 = vcombine.low %v2363_v33, %v2370_v45  ;;  %v2386_v27 = vcombine.low %v2377_v61, %v2384_v46  ;;  %v15731_v56 = vpop.permute.xlu1 %860 }
 0x318   : > { %v2475_v34 = vrot.slane %v2453_v13, %v15049_v14  ;;  %v1771_v11 = vrot.slane %v1764_v55, %v15049_v14  ;;  %v1746_v1 = vrot.slane %v1724_v25, %v15049_v14  ;;  %v1754_v63 = vcombine.high %v1732_v43, %v1732_v43  ;;  %3053 = vmatprep.mubr.f32.mxu1 %v22532_v44 }
 0x319   : > { %v1753_v16 = vrot.slane %v1725_v2, %v15049_v14  ;;  %v2352_v22 = vcombine.low %v15516_v40, %v2351_v6  ;;  %v2400_v10 = vrot.slane %v2386_v27, %v15049_v14  ;;  %v2482_v39 = vrot.slane %v2454_v51, %v15049_v14 }
 0x31a   : > { %v2550_v33 = vcombine.low %v15424_v7, %v1606_v0  ;;  %v2551_v9 = vcombine.low %v1620_v28, %v1628_v5  ;;  %v2552_v45 = vcombine.low %v1630_v8, %v1613_v60  ;;  %v1849_v12 = vrot.slane %v1835_v37, %v15049_v14  ;;  %v8026_v5 = vld [vmem:[#allocation9 + $0x8] sm:$0xff]  ;;  %v8028_v8 = vld [vmem:[#allocation9 + $0x18] sm:$0xff] }
 0x31b   : > { %v1629_v23 = vcombine.high %v1613_v60, %v1613_v60  ;;  %v1631_v52 = vcombine.high %v1627_v21, %v1627_v21  ;;  %v1755_v57 = vcombine.high %v1739_v62, %v1739_v62  ;;  %14255 = vmatmul.mubr.msk.f32.gmra.mrb[14].mxu1 %vm2906_vm3, %v2352_v22  ;;  %v2393_v53 = vrot.slane %v2385_v15, %v15049_v14 }
 0x31c   : > { %v1756_v13 = vcombine.high %v1746_v1, %v1746_v1  ;;  %v2649_v40 = vcombine.low %v15473_v48, %v1732_v43  ;;  %v15729_v32 = vcombine.low %v1746_v1, %v1754_v63  ;;  %3059 = vmatprep.mubr.f32.mxu1 %v22532_v44  ;;  %v2510_v7 = vrot.slane %v15700_v29, %v15049_v14 }
 0x31d   : > { %v1757_v51 = vcombine.high %v1753_v16, %v1753_v16  ;;  %v15737_v31 = vrot.slane %v859_v17, %v15049_v14  ;;  %v2401_v0 = vcombine.low %v2393_v53, %v2400_v10  ;;  %v2484_v28 = vcombine.low %v2475_v34, %v2482_v39  ;;  %v8025_v34 = vld [vmem:[#allocation9] sm:$0xff] }
 0x31e   : > { %v15740_v36 = vrot.slane %v2550_v33, %v15049_v14  ;;  %v2573_v48 = vrot.slane %v2551_v9, %v15049_v14  ;;  %v2580_v49 = vrot.slane %v2552_v45, %v15049_v14  ;;  %v1851_v50 = vcombine.high %v1849_v12, %v1849_v12  ;;  %v8029_v9 = vld [vmem:[#allocation9 + $0x20] sm:$0xff]  ;;  %v8031_v45 = vld [vmem:[#allocation9 + $0x30] sm:$0xff] }
 0x31f   : > { %v2598_v59 = vcombine.low %v1627_v21, %v1629_v23  ;;  %v2599_v55 = vcombine.low %v1631_v52, %v15691_v35  ;;  %v1890_v29 = vrot.slane %v15731_v56, %v15049_v14  ;;  %14256 = vmatmul.mubr.msk.f32.gmra.mrb[16].mxu1 %vm2906_vm3, %v2401_v0  ;;  %v2483_v17 = vcombine.low %v15688_v18, %v2468_v30 }
 0x320   : > { %v15750_v25 = vrot.slane %v2649_v40, %v15049_v14  ;;  %v2678_v43 = vrot.slane %v15729_v32, %v15049_v14  ;;  %v15754_v46 = vcombine.low %v1753_v16, %v1755_v57  ;;  %3065 = vmatprep.mubr.f32.mxu1 %v22532_v44  ;;  %v2532_v2 = vcombine.low %v2510_v7, %v15506_v38  ;;  %v8032_v16 = vld [vmem:[#allocation9 + $0x38] sm:$0xff] }
 0x321   : > { %v15758_v35 = vcombine.low %v1756_v13, %v1739_v62  ;;  %v15760_v19 = vcombine.low %v1757_v51, %v1771_v11  ;;  %v1850_v6 = vcombine.high %v15737_v31, %v15737_v31  ;;  %v2498_v18 = vrot.slane %v2484_v28, %v15049_v14  ;;  %v8027_v11 = vld [vmem:[#allocation9 + $0x10] sm:$0xff]  ;;  %v22537_v32 = vld [vmem:[#allocation29_spill] sm:$0xff] }
 0x322   : > { %v15767_v30 = vrot.slane %v15737_v31, %v15049_v14  ;;  %v15770_v61 = vrot.slane %v1849_v12, %v15049_v14  ;;  %v15773_v60 = vrot.slane %v1851_v50, %v15049_v14  ;;  %v2582_v38 = vcombine.low %v2573_v48, %v2580_v49 }
 0x323   : > { %v22534_v37 = vcombine.low %v15519_v58, %v15522_v47  ;;  %v2491_v21 = vrot.slane %v2483_v17, %v15049_v14  ;;  %v2581_v62 = vcombine.low %v15525_v54, %v15740_v36  ;;  %v2615_v15 = vrot.slane %v2599_v55, %v15049_v14  ;;  %v8030_v54 = vld [vmem:[#allocation9 + $0x28] sm:$0xff] }
 0x324   : > { %v4137_v27 = vcombine.low %v15546_v3, %v15559_v26  ;;  %v2540_v1 = vrot.slane %v2532_v2, %v15049_v14  ;;  %v2608_v58 = vrot.slane %v2598_v59, %v15049_v14  ;;  %v14268_v47 = vcombine.high %v15546_v3, %v15559_v26 }
 0x325   : > { %14257 = vmatmul.mubr.msk.f32.gmra.mrb[18].mxu1 %vm2906_vm3, %v22534_v37  ;;  %v4139_v63 = vcombine.low %v15549_v4, %v15570_v20  ;;  %v2499_v22 = vcombine.low %v2491_v21, %v2498_v18  ;;  %v14269_v10 = vcombine.high %v15549_v4, %v15570_v20  ;;  %v14365_v33 = vpack.c.bf16 %v8028_v8, %v8026_v5  ;;  %v22540_v5 = vld [vmem:[#allocation30_spill] sm:$0xff]  ;;  %v22541_v37 = vld [vmem:[#allocation28_spill] sm:$0xff] }
 0x326   : > { %3071 = vmatprep.mubr.f32.mxu1 %v22532_v44  ;;  %v4147_v39 = vrot.slane %v4137_v27, %v15049_v14  ;;  %v2596_v12 = vrot.slane %v2582_v38, %v15049_v14  ;;  %v4154_v23 = vrot.slane %v14268_v47, %v15049_v14  ;;  %v14367_v26 = vpack.c.bf16 %v8027_v11, %v8025_v34  ;;  %v22542_v21 = vld [vmem:[#allocation26_spill] sm:$0xff]  ;;  %v22544_v34 = vld [vmem:[#allocation25_spill] sm:$0xff] }
 0x327   : > { %v4161_v3 = vrot.slane %v4139_v63, %v15049_v14  ;;  %v2630_v52 = vcombine.low %v2608_v58, %v2615_v15  ;;  %v4168_v57 = vrot.slane %v14269_v10, %v15049_v14  ;;  %14366 = vmatprep.subr.bf16.mxu0 %v14365_v33  ;;  %v14369_v53 = vpack.c.bf16 %v8032_v16, %v8030_v54 }
 0x328   : > { %v4169_v4 = vcombine.low %v4147_v39, %v4154_v23  ;;  %v6755_v13 = vcombine.high %v4147_v39, %v4154_v23  ;;  %14368 = vmatpush1.bf16.msra.mxu0 %v14367_v26  ;;  %v14371_v40 = vpack.c.bf16 %v8031_v45, %v8029_v9  ;;  %v2548_v7 = vcombine.low %v2540_v1, %v15556_v41  ;;  %v22545_v1 = vld [vmem:[#allocation24_spill] sm:$0xff] }
 0x329   : > { %14258 = vmatmul.mubr.msk.f32.gmra.mrb[20].mxu1 %vm2906_vm3, %v2499_v22  ;;  %v4170_v51 = vcombine.low %v4161_v3, %v4168_v57  ;;  %v6756_v31 = vcombine.high %v4161_v3, %v4168_v57  ;;  %14370 = vmatprep.subr.bf16.mxu0 %v14369_v53  ;;  %v1872_v0 = vrot.slane %v1850_v6, %v15049_v14 }
 0x32a   : > { %3077 = vmatprep.mubr.f32.mxu1 %v22532_v44  ;;  %14373 = vmatprep.subr.bf16.mxu1 %v14365_v33  ;;  %v2748_v28 = vcombine.low %v15482_v42, %v15767_v30  ;;  %v4177_v36 = vrot.slane %v4169_v4, %v15049_v14  ;;  %v15807_v48 = vrot.slane %v6755_v13, %v15049_v14  ;;  %v22548_v33 = vld [vmem:[#allocation22_spill] sm:$0xff] }
 0x32b   : > { %14375 = vmatpush1.bf16.msra.mxu1 %v14367_v26  ;;  %v2589_v49 = vrot.slane %v2581_v62, %v15049_v14  ;;  %v4184_v41 = vrot.slane %v4170_v51, %v15049_v14  ;;  %v15813_v50 = vrot.slane %v6756_v31, %v15049_v14  ;;  %v1883_v59 = vcombine.high %v15773_v60, %v15773_v60 }
 0x32c   : > { %22535 = vst [vmem:[#allocation33_spill] sm:$0xff] %v15807_v48  ;;  %14374 = vmatprep.subr.bf16.mxu1 %v14369_v53  ;;  %v2680_v42 = vcombine.low %v15750_v25, %v2678_v43  ;;  %v2720_v55 = vrot.slane %v15760_v19, %v15049_v14  ;;  %14372 = vmatpush1.bf16.msra.mxu0 %v14371_v40  ;;  %v22539_v19 = vld [vmem:[#allocation32_spill] sm:$0xff] }
 0x32d   : > { %14259 = vmatmul.mubr.msk.f32.gmra.mrb[22].mxu1 %vm2906_vm3, %v2548_v7  ;;  %22536 = vst [vmem:[#allocation34_spill] sm:$0xff] %v15813_v50  ;;  %v2597_v17 = vcombine.low %v2589_v49, %v2596_v12  ;;  %v2638_v2 = vrot.slane %v2630_v52, %v15049_v14  ;;  %v15825_v6 = vcombine.low %v4177_v36, %v4184_v41 }
 0x32e   : > { %3083 = vmatprep.mubr.f32.mxu1 %v22532_v44  ;;  %v1897_v38 = vrot.slane %v1890_v29, %v15049_v14  ;;  %v22538_v25 = vcombine.low %v15491_v24, %v22537_v32  ;;  %v2679_v8 = vcombine.low %v22540_v5, %v22539_v19  ;;  %v14245_v62 = vcombine.high %v22542_v21, %v22541_v37  ;;  %v22543_v29 = vld [vmem:[#allocation23_spill] sm:$0xff] }
 0x32f   : > { %14376 = vmatpush1.bf16.msra.mxu1 %v14371_v40  ;;  %v2706_v15 = vrot.slane %v15758_v35, %v15049_v14  ;;  %v1881_v27 = vcombine.high %v15770_v61, %v15770_v61  ;;  %v1882_v56 = vcombine.high %v1872_v0, %v1872_v0  ;;  %v2713_v24 = vrot.slane %v15754_v46, %v15049_v14  ;;  %v22547_v46 = vld [vmem:[#allocation31_spill] sm:$0xff] }
 0x330   : > { %v2645_v43 = vrot.slane %v22538_v25, %v15049_v14  ;;  %v14244_v11 = vcombine.high %v22544_v34, %v22543_v29  ;;  %v22546_v58 = vcombine.high %v22545_v1, %v22545_v1  ;;  %v1880_v35 = vcombine.high %v15767_v30, %v15767_v30 }
 0x331   : > { %14260 = vmatmul.mubr.msk.f32.gmra.mrb[24].mxu1 %vm2906_vm3, %v2597_v17  ;;  %v2776_v63 = vrot.slane %v2748_v28, %v15049_v14  ;;  %v2797_v54 = vcombine.low %v1883_v59, %v1897_v38  ;;  %v2694_v22 = vrot.slane %v2680_v42, %v15049_v14  ;;  %v2729_v10 = vcombine.low %v2720_v55, %v22547_v46  ;;  %v22551_v28 = vld [vmem:[#allocation27_spill] sm:$0xff]  ;;  %v22552_v55 = vld [vmem:[#allocation21_spill] sm:$0xff] }
 0x332   : > { %v1942_v47 = vrot.slane %v22546_v58, %v15049_v14  ;;  %3089 = vmatprep.mubr.f32.mxu1 %v22532_v44  ;;  %v2646_v16 = vcombine.low %v2638_v2, %v2645_v43  ;;  %v1928_v39 = vrot.slane %v22545_v1, %v15049_v14  ;;  %v22549_v9 = vcombine.high %v22548_v33, %v22548_v33  ;;  %v14458_v42 = vld [vmem:[#allocation4 + $0x8] sm:$0x1] }
 0x333   : > { %v22550_v30 = vcombine.low %v22542_v21, %v22541_v37  ;;  %v2769_v23 = vrot.slane %v14245_v62, %v15049_v14  ;;  %v2795_v3 = vcombine.low %v1882_v56, %v15770_v61  ;;  %v2796_v26 = vcombine.low %v15773_v60, %v1881_v27 }
 0x334   : > { %v1935_v45 = vrot.slane %v22549_v9, %v15049_v14  ;;  %v2687_v52 = vrot.slane %v2679_v8, %v15049_v14  ;;  %v2728_v57 = vcombine.low %v2706_v15, %v2713_v24  ;;  %v2845_v53 = vcombine.low %v1928_v39, %v1942_v47 }
 0x335   : > { %v2762_v12 = vrot.slane %v22550_v30, %v15049_v14  ;;  %14261 = vmatmul.mubr.msk.f32.gmra.mrb[26].mxu1 %vm2906_vm3, %v2646_v16  ;;  %v14247_v4 = vcombine.high %v1928_v39, %v1942_v47  ;;  %v2794_v13 = vcombine.low %v1872_v0, %v1880_v35  ;;  %v2755_v40 = vrot.slane %v14244_v11, %v15049_v14  ;;  %v22553_v39 = vld [vmem:[#allocation20_spill] sm:$0xff] }
 0x336   : > { %3095 = vmatprep.mubr.f32.mxu1 %v22532_v44  ;;  %v2695_v7 = vcombine.low %v2687_v52, %v2694_v22  ;;  %v2743_v51 = vrot.slane %v2729_v10, %v15049_v14  ;;  %v2778_v31 = vcombine.low %v2769_v23, %v2776_v63  ;;  %v2825_v61 = vrot.slane %v2797_v54, %v15049_v14 }
 0x337   : > { %v2843_v60 = vcombine.low %v22551_v28, %v1935_v45  ;;  %v14246_v36 = vcombine.high %v22551_v28, %v1935_v45  ;;  %v2811_v49 = vrot.slane %v2795_v3, %v15049_v14  ;;  %v2736_v0 = vrot.slane %v2728_v57, %v15049_v14  ;;  %v14459_v45 = vld [vmem:[#allocation7] sm:$0xff] }
 0x338   : > { %v2777_v41 = vcombine.low %v2755_v40, %v2762_v12  ;;  %v2818_v59 = vrot.slane %v2796_v26, %v15049_v14  ;;  %v789_v17 = vadd.f32 %v14458_v42, %v22552_v55  ;;  %v2867_v2 = vrot.slane %v2845_v53, %v15049_v14 }
 0x339   : > { %14262 = vmatmul.mubr.msk.f32.gmra.mrb[28].mxu1 %vm2906_vm3, %v2695_v7  ;;  %v2874_v38 = vrot.slane %v14247_v4, %v15049_v14  ;;  %v2804_v32 = vrot.slane %v2794_v13, %v15049_v14  ;;  %v2744_v25 = vcombine.low %v2736_v0, %v2743_v51  ;;  %v2792_v43 = vrot.slane %v2778_v31, %v15049_v14 }
 0x33a   : > { %3101 = vmatprep.mubr.f32.mxu1 %v22532_v44  ;;  %v2827_v19 = vcombine.low %v2818_v59, %v2825_v61  ;;  %v2785_v5 = vrot.slane %v2777_v41, %v15049_v14  ;;  %v2853_v37 = vrot.slane %v2843_v60, %v15049_v14  ;;  %v2860_v21 = vrot.slane %v14246_v36, %v15049_v14 }
 0x33b   : > { %v2826_v8 = vcombine.low %v2804_v32, %v2811_v49  ;;  %v1953_v62 = vrot.slane %v789_v17, %v15049_v14  ;;  %v2876_v56 = vcombine.low %v2867_v2, %v2874_v38  ;;  %v14680_v54 = vmov 1983009808  }
 0x33c   : > { %v2793_v15 = vcombine.low %v2785_v5, %v2792_v43  ;;  %v2841_v27 = vrot.slane %v2827_v19, %v15049_v14  ;;  %v2875_v29 = vcombine.low %v2853_v37, %v2860_v21  ;;  %v8073_v16 = vunpack.c.l.s4 %v14680_v54 }
 0x33d   : > { %14263 = vmatmul.mubr.msk.f32.gmra.mrb[30].mxu1 %vm2906_vm3, %v2744_v25  ;;  %v2834_v24 = vrot.slane %v2826_v8, %v15049_v14  ;;  %v1960_v34 = vrot.slane %v1953_v62, %v15049_v14  ;;  %v2890_v1 = vrot.slane %v2876_v56, %v15049_v14  ;;  %v3221_v38 = vcombine.high %v15570_v20, %v15570_v20 }
 0x33e   : > { %3107 = vmatprep.mubr.f32.mxu1 %v22532_v44  ;;  %v2883_v58 = vrot.slane %v2875_v29, %v15049_v14  ;;  %v8074_v22 = vunpack.c.0.s8 %v8073_v16 }
 0x33f   : > { %v2842_v11 = vcombine.low %v2834_v24, %v2841_v27  ;;  %v2898_v35 = vrot.slane %v1960_v34, %v15049_v14 }
 0x340   : > { %v2891_v47 = vcombine.low %v2883_v58, %v2890_v1  ;;  %v15914_v33 = vsub.s32 %v8074_v22, %v22553_v39 }
 0x341   : > { %14264 = vmatmul.mubr.msk.f32.gmra.mrb[32].mxu1 %vm2906_vm3, %v2793_v15  ;;  %v2905_v63 = vrot.slane %v2898_v35, %v15049_v14 }
 0x342   : > { %3113 = vmatprep.mubr.f32.mxu1 %v22532_v44  ;;  %22554 = vst [vmem:[#allocation29_spill] sm:$0xff] %v15914_v33 }
 0x345   : > { %14265 = vmatmul.mubr.msk.f32.gmra.mrb[34].mxu1 %vm2906_vm3, %v2842_v11 }
 0x346   : > { %3119 = vmatprep.mubr.f32.mxu1 %v22532_v44 }
 0x349   : > { %14266 = vmatmul.mubr.msk.f32.gmra.mrb[36].mxu1 %vm2906_vm3, %v2891_v47 }
 0x34a   : > { %3125 = vmatprep.mubr.f32.mxu1 %v22532_v44 }
 0x34d   : > { %14267 = vmatmul.mubr.msk.f32.gmra.mrb[38].mxu1 %vm2906_vm3, %v2905_v63 }
 0x34e   : > { %9984 = vmatprep.mubr.f32.mxu1 %v22532_v44 }
 0x36f   : > { %v6348_v46 = vpop.permute.xlu0 %6347 }
 0x370   : > { %v6449_v10 = vsel %vm561_vm2, 0.0, %v6348_v46 }
 0x371   : > { %v6466_v9 = vadd.f32 %v6449_v10, %v15825_v6 }
 0x373   : > { %v7845_v30 = vadd.f32 %v14459_v45, %v6466_v9  ;;  %v6501_v12 = vpop.permute.xlu0 %6500 }
 0x374   : > { %v6585_v23 = vsel %vm561_vm2, 0.0, %v6501_v12 }
 0x375   : > { %v8071_v3 = vcombine.high %v7845_v30, %v7845_v30  ;;  %v8078_v26 = vrot.slane %v7845_v30, %v15914_v33  ;;  %6619 = vrot.lane.b32.xlu0 %v6585_v23, %s14676_s23 }
 0x377   : > { %v8085_v52 = vrot.slane %v8071_v3, %v15914_v33  ;;  %v8086_v57 = vcombine.high %v8078_v26, %v8078_v26 }
 0x379   : > { %v8087_v53 = vcombine.high %v8085_v52, %v8085_v52  ;;  %v8911_v4 = vcombine.low %v8078_v26, %v8086_v57 }
 0x37b   : > { %v8912_v13 = vcombine.low %v8085_v52, %v8087_v53  ;;  %v8919_v40 = vrot.slane %v8911_v4, %v15914_v33 }
 0x37d   : > { %v8926_v7 = vrot.slane %v8912_v13, %v15914_v33 }
 0x37f   : > { %v8927_v51 = vcombine.low %v8919_v40, %v8926_v7 }
 0x381   : > { %14310 = vmatmul.mubr.msk.f32.vlgmr.msra.gmra.mrb[16].mxu0 %vm2906_vm3, %v8927_v51 }
 0x382   : > { %9816 = vmatprep.mubr.f32.mxu0 %v22532_v44 }
 0x3d0   : > { %v3019_v31 = vpop.f32.mrb[2].mxu1 }
 0x3d1   : > { %v3021_v61 = vpop.f32.mrb[3].mxu1 }
 0x3d2   : > { %v3222_v28 = vcombine.low %v3019_v31, %v3021_v61  ;;  %v3223_v60 = vcombine.high %v3019_v31, %v3021_v61 }
 0x3d4   : > { %v3230_v36 = vrot.slane %v3222_v28, %v15049_v14  ;;  %v3237_v49 = vrot.slane %v3223_v60, %v15049_v14  ;;  %v3025_v0 = vpop.f32.mrb[4].mxu1 }
 0x3d5   : > { %v3027_v41 = vpop.f32.mrb[5].mxu1 }
 0x3d6   : > { %v3238_v59 = vcombine.high %v3230_v36, %v3230_v36  ;;  %v3239_v42 = vcombine.high %v3237_v49, %v3237_v49  ;;  %v15928_v55 = vrot.slane %v3230_v36, %v15049_v14  ;;  %v3272_v17 = vcombine.low %v3025_v0, %v3027_v41 }
 0x3d7   : > { %v3273_v2 = vcombine.high %v3025_v0, %v3027_v41  ;;  %v15933_v32 = vrot.slane %v3237_v49, %v15049_v14 }
 0x3d8   : > { %v15936_v25 = vrot.slane %v3238_v59, %v15049_v14  ;;  %v15939_v43 = vrot.slane %v3239_v42, %v15049_v14  ;;  %v3280_v19 = vrot.slane %v3272_v17, %v15049_v14  ;;  %v5308_v8 = vcombine.low %v3221_v38, %v15928_v55 }
 0x3d9   : > { %v3287_v5 = vrot.slane %v3273_v2, %v15049_v14 }
 0x3da   : > { %v5323_v37 = vcombine.low %v15936_v25, %v15936_v25  ;;  %v14286_v20 = vcombine.high %v15928_v55, %v15936_v25  ;;  %v5325_v21 = vcombine.low %v15933_v32, %v15939_v43  ;;  %v14287_v62 = vcombine.high %v15933_v32, %v15939_v43 }
 0x3db   : > { %v3288_v15 = vcombine.high %v3280_v19, %v3280_v19  ;;  %v15952_v27 = vpop.f32.mrb[6].mxu1  ;;  %v5315_v24 = vrot.slane %v5308_v8, %v15049_v14  ;;  %v3289_v1 = vcombine.high %v3287_v5, %v3287_v5  ;;  %v15973_v10 = vrot.slane %v3280_v19, %v15049_v14 }
 0x3dc   : > { %v15954_v56 = vpop.f32.mrb[7].mxu1  ;;  %v5333_v29 = vrot.slane %v5323_v37, %v15049_v14  ;;  %v5340_v34 = vrot.slane %v14286_v20, %v15049_v14  ;;  %v5347_v11 = vrot.slane %v5325_v21, %v15049_v14  ;;  %v5354_v54 = vrot.slane %v14287_v62, %v15049_v14 }
 0x3dd   : > { %v15961_v58 = vrot.slane %v3288_v15, %v15049_v14  ;;  %v3322_v47 = vcombine.low %v15952_v27, %v15954_v56  ;;  %v3323_v35 = vcombine.high %v15952_v27, %v15954_v56  ;;  %v5322_v63 = vrot.slane %v5315_v24, %v15049_v14 }
 0x3de   : > { %v5355_v16 = vcombine.low %v5333_v29, %v5340_v34  ;;  %v5356_v9 = vcombine.low %v5347_v11, %v5354_v54  ;;  %v15980_v30 = vrot.slane %v3289_v1, %v15049_v14  ;;  %v7248_v52 = vcombine.high %v5315_v24, %v5315_v24 }
 0x3df   : > { %22555 = vst [vmem:[#allocation32_spill] sm:$0xff] %v15961_v58  ;;  %v3330_v22 = vrot.slane %v3322_v47, %v15049_v14  ;;  %v15970_v46 = vpop.f32.mrb[8].mxu1  ;;  %6349 = vrot.lane.b32.xlu1 %v5322_v63, %s14677_s15  ;;  %v5372_v57 = vcombine.low %v15973_v10, %v15961_v58  ;;  %v15990_v53 = vrot.slane %v3287_v5, %v15049_v14 }
 0x3e0   : > { %v15975_v39 = vpop.f32.mrb[9].mxu1  ;;  %v5363_v45 = vrot.slane %v5355_v16, %v15049_v14  ;;  %v5370_v26 = vrot.slane %v5356_v9, %v15049_v14  ;;  %v3321_v31 = vcombine.high %v15980_v30, %v15980_v30  ;;  %v7256_v28 = vcombine.high %v5333_v29, %v5340_v34 }
 0x3e1   : > { %v3338_v12 = vcombine.high %v3330_v22, %v3330_v22  ;;  %v3372_v23 = vcombine.low %v15970_v46, %v15975_v39  ;;  %v3373_v3 = vcombine.high %v15970_v46, %v15975_v39  ;;  %v15993_v4 = vrot.slane %v3330_v22, %v15049_v14 }
 0x3e2   : > { %v5371_v51 = vcombine.low %v5363_v45, %v5370_v26  ;;  %v7255_v49 = vrot.slane %v7248_v52, %v15049_v14  ;;  %v5379_v0 = vrot.slane %v5372_v57, %v15049_v14  ;;  %v3319_v41 = vcombine.high %v15990_v53, %v15990_v53 }
 0x3e3   : > { %v15996_v13 = vrot.slane %v3338_v12, %v15049_v14  ;;  %v15998_v40 = vpop.f32.mrb[10].mxu1  ;;  %6502 = vrot.lane.b32.xlu1 %v5322_v63, %s14678_s17  ;;  %v7257_v59 = vcombine.high %v5347_v11, %v5354_v54  ;;  %v7264_v42 = vrot.slane %v7256_v28, %v15049_v14  ;;  %v3320_v2 = vcombine.high %v15961_v58, %v15961_v58 }
 0x3e4   : > { %v16000_v7 = vpop.f32.mrb[11].mxu1  ;;  %6351 = vrot.lane.b32.xlu0 %v5371_v51, %s14677_s15  ;;  %v14288_v38 = vcombine.high %v15973_v10, %v15973_v10  ;;  %v5390_v19 = vcombine.low %v3321_v31, %v15993_v4  ;;  %v5386_v8 = vrot.slane %v5379_v0, %v15049_v14  ;;  %v5389_v21 = vcombine.low %v15980_v30, %v3319_v41 }
 0x3e5   : > { %v3422_v60 = vcombine.low %v15998_v40, %v16000_v7  ;;  %v7271_v17 = vrot.slane %v7257_v59, %v15049_v14  ;;  %v5388_v20 = vcombine.low %v3320_v2, %v15990_v53  ;;  %v7273_v63 = vcombine.high %v5379_v0, %v5379_v0 }
 0x3e6   : > { %v5397_v29 = vrot.slane %v14288_v38, %v15049_v14  ;;  %v5411_v1 = vrot.slane %v5389_v21, %v15049_v14  ;;  %v5418_v47 = vrot.slane %v5390_v19, %v15049_v14  ;;  %v16061_v28 = vcombine.high %v15993_v4, %v15993_v4 }
 0x3e7   : > { %7658 = vrot.lane.b32.xlu1 %v7255_v49, %s14677_s15  ;;  %v7272_v62 = vcombine.low %v7264_v42, %v7271_v17  ;;  %v5404_v34 = vrot.slane %v5388_v20, %v15049_v14 }
 0x3e8   : > { %6504 = vrot.lane.b32.xlu0 %v5371_v51, %s14678_s17  ;;  %v5420_v45 = vcombine.low %v5411_v1, %v5418_v47  ;;  %v7280_v51 = vrot.slane %v7273_v63, %v15049_v14  ;;  %22556 = vst [vmem:[#allocation30_spill] sm:$0xff] %v16061_v28  ;;  %v5436_v19 = vcombine.low %v15996_v13, %v16061_v28 }
 0x3e9   : > { %v5419_v16 = vcombine.low %v5397_v29, %v5404_v34 }
 0x3ea   : > { %v16024_v5 = vpop.f32.mrb[12].mxu1  ;;  %v5434_v57 = vrot.slane %v5420_v45, %v15049_v14 }
 0x3eb   : > { %v16028_v37 = vpop.f32.mrb[13].mxu1  ;;  %6353 = vrot.lane.b32.xlu1 %v5386_v8, %s14677_s15  ;;  %v5427_v52 = vrot.slane %v5419_v16, %v15049_v14  ;;  %v5443_v16 = vrot.slane %v5436_v19, %v15049_v14  ;;  %v7282_v19 = vcombine.high %v5411_v1, %v5418_v47 }
 0x3ec   : > { %7660 = vrot.lane.b32.xlu0 %v7272_v62, %s14677_s15 }
 0x3ed   : > { %v5435_v59 = vcombine.low %v5427_v52, %v5434_v57 }
 0x3ee   : > { %v16039_v11 = vpop.f32.mrb[14].mxu1 }
 0x3ef   : > { %v16044_v54 = vpop.f32.mrb[15].mxu1  ;;  %6506 = vrot.lane.b32.xlu1 %v5386_v8, %s14678_s17  ;;  %v7296_v8 = vrot.slane %v7282_v19, %v15049_v14 }
 0x3f0   : > { %v3523_v9 = vcombine.high %v16039_v11, %v16044_v54  ;;  %6355 = vrot.lane.b32.xlu0 %v5435_v59, %s14677_s15 }
 0x3f2   : > { %v3537_v12 = vrot.slane %v3523_v9, %v15049_v14  ;;  %v16052_v26 = vpop.f32.mrb[16].mxu1  ;;  %v16093_v9 = vpop.permute.xlu0 %7656 }
 0x3f3   : > { %v16057_v31 = vpop.f32.mrb[17].mxu1  ;;  %7662 = vrot.lane.b32.xlu1 %v7280_v51, %s14677_s15  ;;  %22559 = vst [vmem:[#allocation23_spill] sm:$0xff] %v16093_v9  ;;  %v5450_v51 = vrot.slane %v5443_v16, %v15049_v14 }
 0x3f4   : > { %v3539_v49 = vcombine.high %v3537_v12, %v3537_v12  ;;  %v16069_v42 = vrot.slane %v3537_v12, %v15049_v14  ;;  %6508 = vrot.lane.b32.xlu0 %v5435_v59, %s14678_s17  ;;  %v7281_v12 = vcombine.high %v5397_v29, %v5404_v34  ;;  %v3337_v59 = vrot.slane %v3323_v35, %v15049_v14 }
 0x3f5   : > { %v3380_v34 = vrot.slane %v3372_v23, %v15049_v14 }
 0x3f6   : > { %22557 = vst [vmem:[#allocation28_spill] sm:$0xff] %v16069_v42  ;;  %v16072_v17 = vrot.slane %v3539_v49, %v15049_v14  ;;  %v6620_v18 = vpop.permute.xlu0 %6619  ;;  %v7289_v29 = vrot.slane %v7281_v12, %v15049_v14  ;;  %v3339_v1 = vcombine.high %v3337_v59, %v3337_v59 }
 0x3f7   : > { %6357 = vrot.lane.b32.xlu1 %v5450_v51, %s14677_s15  ;;  %v6721_v47 = vadd.f32 %v6620_v18, %v15825_v6  ;;  %v3388_v19 = vcombine.high %v3380_v34, %v3380_v34  ;;  %v22560_v6 = vld [vmem:[#allocation16_spill] sm:$0xff] }
 0x3f8   : > { %22558 = vst [vmem:[#allocation26_spill] sm:$0xff] %v16072_v17  ;;  %v16074_v2 = vpop.f32.mrb[18].mxu1  ;;  %v7297_v12 = vcombine.low %v7289_v29, %v7296_v8  ;;  %v16135_v45 = vrot.slane %v3339_v1, %v15049_v14  ;;  %v16139_v8 = vrot.slane %v3337_v59, %v15049_v14  ;;  %v7298_v29 = vcombine.high %v5443_v16, %v5443_v16 }
 0x3f9   : > { %v16077_v38 = vpop.f32.mrb[19].mxu1  ;;  %v7889_v18 = vadd.f32 %v22560_v6, %v6721_v47  ;;  %v16154_v1 = vrot.slane %v3380_v34, %v15049_v14  ;;  %v3387_v16 = vrot.slane %v3373_v3, %v15049_v14 }
 0x3fa   : > { %7664 = vrot.lane.b32.xlu0 %v7297_v12, %s14677_s15  ;;  %v16147_v12 = vcombine.high %v15996_v13, %v15996_v13  ;;  %v7305_v59 = vrot.slane %v7298_v29, %v15049_v14  ;;  %v5452_v47 = vcombine.low %v16139_v8, %v16135_v45  ;;  %v14290_v34 = vcombine.high %v16139_v8, %v16135_v45 }
 0x3fb   : > { %6510 = vrot.lane.b32.xlu1 %v5450_v51, %s14678_s17  ;;  %v16142_v51 = vrot.slane %v3388_v19, %v15049_v14  ;;  %v3430_v19 = vrot.slane %v3422_v60, %v15049_v14  ;;  %v3389_v24 = vcombine.high %v3387_v16, %v3387_v16  ;;  %v16195_v36 = vrot.slane %v3387_v16, %v15049_v14 }
 0x3fc   : > { %v16087_v62 = vpop.f32.mrb[20].mxu1  ;;  %22562 = vst [vmem:[#allocation24_spill] sm:$0xff] %v16147_v12  ;;  %v5461_v29 = vrot.slane %v16147_v12, %v15049_v14  ;;  %v5468_v46 = vrot.slane %v5452_v47, %v15049_v14  ;;  %v5475_v20 = vrot.slane %v14290_v34, %v15049_v14 }
 0x3fd   : > { %v16090_v63 = vpop.f32.mrb[21].mxu1  ;;  %22561 = vst [vmem:[#allocation25_spill] sm:$0xff] %v16142_v51  ;;  %v14291_v60 = vcombine.high %v16154_v1, %v16142_v51  ;;  %22564 = vst [vmem:[#allocation22_spill] sm:$0xff] %v16195_v36  ;;  %v3438_v50 = vcombine.high %v3430_v19, %v3430_v19  ;;  %v3419_v6 = vcombine.high %v16195_v36, %v16195_v36 }
 0x3fe   : > { %7957 = vrot.lane.b32.xlu0 %v7889_v18, %s14676_s23  ;;  %v5454_v18 = vcombine.low %v16154_v1, %v16142_v51  ;;  %v5483_v22 = vcombine.low %v5461_v29, %v5468_v46  ;;  %v7306_v28 = vcombine.high %v5461_v29, %v5468_v46 }
 0x3ff   : > { %7666 = vrot.lane.b32.xlu1 %v7305_v59, %s14677_s15  ;;  %v5507_v39 = vrot.slane %v14291_v60, %v15049_v14  ;;  %v16206_v60 = vrot.slane %v3389_v24, %v15049_v14 }
 0x400   : > { %v16097_v52 = vpop.f32.mrb[22].mxu1  ;;  %v5482_v41 = vrot.slane %v5454_v18, %v15049_v14  ;;  %v16200_v18 = vrot.slane %v3430_v19, %v15049_v14  ;;  %v5491_v0 = vrot.slane %v5483_v22, %v15049_v14  ;;  %v16216_v22 = vrot.slane %v3438_v50, %v15049_v14 }
 0x401   : > { %v16102_v49 = vpop.f32.mrb[23].mxu1  ;;  %v5514_v48 = vrot.slane %v5507_v39, %v15049_v14  ;;  %22567 = vst [vmem:[#allocation20_spill] sm:$0xff] %v16206_v60  ;;  %v7323_v46 = vcombine.high %v5507_v39, %v5507_v39  ;;  %v3421_v50 = vcombine.high %v16206_v60, %v16206_v60  ;;  %v7314_v51 = vrot.slane %v7306_v28, %v15049_v14 }
 0x402   : > { %v5484_v3 = vcombine.low %v5475_v20, %v5482_v41  ;;  %22566 = vst [vmem:[#allocation21_spill] sm:$0xff] %v16200_v18  ;;  %22570 = vst [vmem:[#allocation37_spill] sm:$0xff] %v16216_v22  ;;  %v7307_v24 = vcombine.high %v5475_v20, %v5482_v41  ;;  %v5515_v41 = vcombine.low %v16195_v36, %v16195_v36 }
 0x403   : > { %6361 = vrot.lane.b32.xlu1 %v5514_v48, %s14677_s15  ;;  %v5516_v20 = vcombine.low %v16206_v60, %v3419_v6  ;;  %v5517_v39 = vcombine.low %v3421_v50, %v16200_v18 }
 0x404   : > { %v16119_v56 = vpop.f32.mrb[24].mxu1  ;;  %v5498_v47 = vrot.slane %v5484_v3, %v15049_v14  ;;  %v3468_v3 = vcombine.high %v16200_v18, %v16200_v18  ;;  %v7321_v29 = vrot.slane %v7307_v24, %v15049_v14  ;;  %v5525_v6 = vrot.slane %v5515_v41, %v15049_v14 }
 0x405   : > { %v16121_v35 = vpop.f32.mrb[25].mxu1  ;;  %v5532_v36 = vrot.slane %v5516_v20, %v15049_v14 }
 0x406   : > { %v5499_v9 = vcombine.low %v5491_v0, %v5498_v47  ;;  %v5518_v24 = vcombine.low %v16216_v22, %v3468_v3  ;;  %v22573_v47 = vcombine.high %v15998_v40, %v16000_v7  ;;  %v7322_v12 = vcombine.low %v7314_v51, %v7321_v29 }
 0x407   : > { %6514 = vrot.lane.b32.xlu1 %v5514_v48, %s14678_s17  ;;  %v7330_v48 = vrot.slane %v7323_v46, %v15049_v14  ;;  %v5547_v3 = vcombine.low %v5525_v6, %v5532_v36  ;;  %v22577_v29 = vcombine.low %v16024_v5, %v16028_v37 }
 0x408   : > { %v16130_v27 = vpop.f32.mrb[26].mxu1  ;;  %6359 = vrot.lane.b32.xlu0 %v5499_v9, %s14677_s15  ;;  %v3437_v28 = vrot.slane %v22573_v47, %v15049_v14  ;;  %v5546_v46 = vrot.slane %v5518_v24, %v15049_v14 }
 0x409   : > { %v16132_v61 = vpop.f32.mrb[27].mxu1  ;;  %v3480_v41 = vrot.slane %v22577_v29, %v15049_v14  ;;  %v5555_v51 = vrot.slane %v5547_v3, %v15049_v14  ;;  %v7331_v3 = vcombine.high %v5525_v6, %v5532_v36  ;;  %v22582_v29 = vcombine.high %v16052_v26, %v16057_v31 }
 0x40a   : > { %v16260_v47 = vrot.slane %v3437_v28, %v15049_v14 }
 0x40b   : > { %7670 = vrot.lane.b32.xlu1 %v7330_v48, %s14677_s15  ;;  %v3470_v48 = vcombine.high %v16216_v22, %v16216_v22  ;;  %v3488_v22 = vcombine.high %v3480_v41, %v3480_v41  ;;  %v16303_v6 = vrot.slane %v3480_v41, %v15049_v14 }
 0x40c   : > { %v16149_v23 = vpop.f32.mrb[28].mxu1  ;;  %6512 = vrot.lane.b32.xlu0 %v5499_v9, %s14678_s17  ;;  %v5539_v9 = vrot.slane %v5517_v39, %v15049_v14  ;;  %22576 = vst [vmem:[#allocation42_spill] sm:$0xff] %v16260_v47  ;;  %v22579_v39 = vcombine.low %v16039_v11, %v16044_v54 }
 0x40d   : > { %v16151_v57 = vpop.f32.mrb[29].mxu1  ;;  %v5564_v18 = vcombine.low %v3470_v48, %v16260_v47  ;;  %v16290_v48 = vrot.slane %v3488_v22, %v15049_v14 }
 0x40e   : > { %v5548_v40 = vcombine.low %v5539_v9, %v5546_v46  ;;  %v3530_v24 = vrot.slane %v22579_v39, %v15049_v14 }
 0x410   : > { %v16174_v21 = vpop.f32.mrb[30].mxu1  ;;  %7668 = vrot.lane.b32.xlu0 %v7322_v12, %s14677_s15  ;;  %v22578_v12 = vcombine.high %v16024_v5, %v16028_v37  ;;  %v5562_v7 = vrot.slane %v5548_v40, %v15049_v14  ;;  %v3538_v11 = vcombine.high %v3530_v24, %v3530_v24 }
 0x411   : > { %v16183_v59 = vpop.f32.mrb[31].mxu1 }
 0x412   : > { %v3487_v20 = vrot.slane %v22578_v12, %v15049_v14  ;;  %v5563_v37 = vcombine.low %v5555_v51, %v5562_v7  ;;  %v3439_v12 = vcombine.high %v3437_v28, %v3437_v28  ;;  %v7332_v28 = vcombine.high %v5539_v9, %v5546_v46 }
 0x414   : > { %v16192_v15 = vpop.f32.mrb[32].mxu1  ;;  %6363 = vrot.lane.b32.xlu0 %v5563_v37, %s14677_s15  ;;  %v16287_v40 = vrot.slane %v3439_v12, %v15049_v14  ;;  %v16306_v22 = vrot.slane %v3487_v20, %v15049_v14  ;;  %v7346_v7 = vrot.slane %v7332_v28, %v15049_v14 }
 0x415   : > { %22563 = vst [vmem:[#allocation31_spill] sm:$0xff] %v16192_v15  ;;  %v16197_v34 = vpop.f32.mrb[33].mxu1  ;;  %v5571_v15 = vrot.slane %v5564_v18, %v15049_v14  ;;  %v16297_v18 = vrot.slane %v3538_v11, %v15049_v14 }
 0x416   : > { %22565 = vst [vmem:[#allocation27_spill] sm:$0xff] %v16197_v34  ;;  %v3489_v34 = vcombine.high %v3487_v20, %v3487_v20  ;;  %v5579_v51 = vcombine.low %v16287_v40, %v16287_v40  ;;  %v14292_v41 = vcombine.high %v16260_v47, %v16287_v40  ;;  %v5581_v20 = vcombine.low %v16303_v6, %v16290_v48 }
 0x417   : > { %v5578_v54 = vrot.slane %v5571_v15, %v15049_v14  ;;  %v3570_v12 = vcombine.high %v16297_v18, %v16297_v18 }
 0x418   : > { %v16209_v16 = vpop.f32.mrb[34].mxu1  ;;  %v16293_v39 = vrot.slane %v3489_v34, %v15049_v14  ;;  %6516 = vrot.lane.b32.xlu0 %v5563_v37, %s14678_s17  ;;  %v7339_v34 = vrot.slane %v7331_v3, %v15049_v14  ;;  %v16322_v37 = vrot.slane %v3530_v24, %v15049_v14  ;;  %v14293_v3 = vcombine.high %v16303_v6, %v16290_v48 }
 0x419   : > { %22568 = vst [vmem:[#allocation35_spill] sm:$0xff] %v16209_v16  ;;  %v16213_v19 = vpop.f32.mrb[35].mxu1  ;;  %6365 = vrot.lane.b32.xlu1 %v5578_v54, %s14677_s15  ;;  %v5589_v28 = vrot.slane %v5579_v51, %v15049_v14  ;;  %v5596_v9 = vrot.slane %v14292_v41, %v15049_v14  ;;  %v5603_v5 = vrot.slane %v5581_v20, %v15049_v14 }
 0x41a   : > { %22569 = vst [vmem:[#allocation36_spill] sm:$0xff] %v16213_v19  ;;  %22580 = vst [vmem:[#allocation43_spill] sm:$0xff] %v16293_v39  ;;  %v5628_v46 = vcombine.low %v16306_v22, %v16293_v39  ;;  %v7347_v11 = vcombine.low %v7339_v34, %v7346_v7  ;;  %v3521_v36 = vcombine.high %v16293_v39, %v16293_v39 }
 0x41b   : > { %v5610_v34 = vrot.slane %v14293_v3, %v15049_v14  ;;  %v3568_v7 = vcombine.high %v16322_v37, %v16322_v37  ;;  %v5611_v41 = vcombine.low %v5589_v28, %v5596_v9  ;;  %v3587_v39 = vrot.slane %v22582_v29, %v15049_v14 }
 0x41c   : > { %v16229_v44 = vpop.f32.mrb[36].mxu1  ;;  %7672 = vrot.lane.b32.xlu0 %v7347_v11, %s14677_s15  ;;  %v5646_v11 = vcombine.low %v3570_v12, %v16069_v42 }
 0x41d   : > { %22571 = vst [vmem:[#allocation38_spill] sm:$0xff] %v16229_v44  ;;  %v16235_v0 = vpop.f32.mrb[37].mxu1  ;;  %6518 = vrot.lane.b32.xlu1 %v5578_v54, %s14678_s17  ;;  %v5635_v54 = vrot.slane %v5628_v46, %v15049_v14  ;;  %v22581_v46 = vcombine.low %v16052_v26, %v16057_v31  ;;  %v5612_v20 = vcombine.low %v5603_v5, %v5610_v34 }
 0x41e   : > { %22572 = vst [vmem:[#allocation39_spill] sm:$0xff] %v16235_v0  ;;  %v7348_v0 = vcombine.high %v5571_v15, %v5571_v15  ;;  %v16353_v44 = vcombine.high %v16069_v42, %v16069_v42  ;;  %v5619_v12 = vrot.slane %v5611_v41, %v15049_v14  ;;  %v14294_v26 = vcombine.high %v16306_v22, %v16306_v22 }
 0x41f   : > { %v5642_v24 = vrot.slane %v5635_v54, %v15049_v14  ;;  %v3580_v51 = vrot.slane %v22581_v46, %v15049_v14  ;;  %v5644_v46 = vcombine.low %v3521_v36, %v16322_v37  ;;  %v5626_v19 = vrot.slane %v5612_v20, %v15049_v14 }
 0x420   : > { %v16250_v60 = vpop.f32.mrb[38].mxu1  ;;  %22583 = vst [vmem:[#allocation44_spill] sm:$0xff] %v16353_v44  ;;  %v5645_v29 = vcombine.low %v16297_v18, %v3568_v7  ;;  %v16362_v16 = vrot.slane %v5646_v11, %v15049_v14  ;;  %v3589_v15 = vcombine.high %v3587_v39, %v3587_v39  ;;  %v7355_v36 = vrot.slane %v7348_v0, %v15049_v14 }
 0x421   : > { %22574 = vst [vmem:[#allocation40_spill] sm:$0xff] %v16250_v60  ;;  %v16252_v50 = vpop.f32.mrb[39].mxu1  ;;  %6369 = vrot.lane.b32.xlu1 %v5642_v24, %s14677_s15  ;;  %v3588_v31 = vcombine.high %v3580_v51, %v3580_v51  ;;  %v5627_v3 = vcombine.low %v5619_v12, %v5626_v19  ;;  %v7356_v60 = vcombine.high %v5589_v28, %v5596_v9 }
 0x422   : > { %22575 = vst [vmem:[#allocation41_spill] sm:$0xff] %v16252_v50  ;;  %v7357_v50 = vcombine.high %v5603_v5, %v5610_v34  ;;  %v7373_v41 = vcombine.high %v5635_v54, %v5635_v54  ;;  %v16368_v20 = vrot.slane %v5644_v46, %v15049_v14  ;;  %v5667_v42 = vrot.slane %v5645_v29, %v15049_v14 }
 0x423   : > { %6367 = vrot.lane.b32.xlu0 %v5627_v3, %s14677_s15  ;;  %v5692_v7 = vcombine.low %v16072_v17, %v16353_v44  ;;  %v16374_v11 = vrot.slane %v3588_v31, %v15049_v14  ;;  %v22585_v19 = vcombine.low %v16074_v2, %v16077_v38  ;;  %v16381_v5 = vrot.slane %v3589_v15, %v15049_v14 }
 0x424   : > { %v7371_v9 = vrot.slane %v7357_v50, %v15049_v14  ;;  %v5653_v54 = vrot.slane %v14294_v26, %v15049_v14  ;;  %v5676_v28 = vcombine.low %v5667_v42, %v16362_v16  ;;  %v16391_v34 = vrot.slane %v3587_v39, %v15049_v14 }
 0x425   : > { %6522 = vrot.lane.b32.xlu1 %v5642_v24, %s14678_s17  ;;  %22584 = vst [vmem:[#allocation45_spill] sm:$0xff] %v16374_v11  ;;  %v3630_v0 = vrot.slane %v22585_v19, %v15049_v14  ;;  %22586 = vst [vmem:[#allocation46_spill] sm:$0xff] %v16381_v5  ;;  %v16388_v24 = vrot.slane %v3580_v51, %v15049_v14  ;;  %v7364_v46 = vrot.slane %v7356_v60, %v15049_v14 }
 0x426   : > { %22588 = vst [vmem:[#allocation48_spill] sm:$0xff] %v16391_v34  ;;  %v7380_v12 = vrot.slane %v7373_v41, %v15049_v14  ;;  %v5675_v31 = vcombine.low %v5653_v54, %v16368_v20  ;;  %v5699_v50 = vrot.slane %v5692_v7, %v15049_v14  ;;  %v5710_v39 = vcombine.low %v16391_v34, %v16381_v5 }
 0x427   : > { %22587 = vst [vmem:[#allocation47_spill] sm:$0xff] %v16388_v24  ;;  %6520 = vrot.lane.b32.xlu0 %v5627_v3, %s14678_s17  ;;  %v5708_v26 = vcombine.low %v16388_v24, %v16374_v11  ;;  %v3638_v29 = vcombine.high %v3630_v0, %v3630_v0  ;;  %v14296_v51 = vcombine.high %v16388_v24, %v16374_v11 }
 0x428   : > { %v7372_v15 = vcombine.low %v7364_v46, %v7371_v9  ;;  %v5690_v60 = vrot.slane %v5676_v28, %v15049_v14  ;;  %v22590_v7 = vcombine.low %v16087_v62, %v16090_v63  ;;  %v16420_v46 = vcombine.high %v16072_v17, %v16072_v17 }
 0x429   : > { %7674 = vrot.lane.b32.xlu1 %v7355_v36, %s14677_s15  ;;  %v22589_v36 = vcombine.high %v16074_v2, %v16077_v38  ;;  %v5683_v28 = vrot.slane %v5675_v31, %v15049_v14  ;;  %v16426_v2 = vrot.slane %v3630_v0, %v15049_v14  ;;  %v16429_v38 = vrot.slane %v3638_v29, %v15049_v14 }
 0x42a   : > { %v3680_v19 = vrot.slane %v22590_v7, %v15049_v14  ;;  %22591 = vst [vmem:[#allocation49_spill] sm:$0xff] %v16420_v46  ;;  %v7382_v9 = vcombine.high %v5667_v42, %v16362_v16  ;;  %v16438_v31 = vrot.slane %v5708_v26, %v15049_v14  ;;  %v16444_v0 = vrot.slane %v5710_v39, %v15049_v14 }
 0x42b   : > { %v3637_v41 = vrot.slane %v22589_v36, %v15049_v14  ;;  %7676 = vrot.lane.b32.xlu0 %v7372_v15, %s14677_s15  ;;  %22592 = vst [vmem:[#allocation50_spill] sm:$0xff] %v16426_v2  ;;  %v22593_v36 = vcombine.high %v16087_v62, %v16090_v63  ;;  %v5691_v3 = vcombine.low %v5683_v28, %v5690_v60 }
 0x42c   : > { %v16441_v15 = vrot.slane %v14296_v51, %v15049_v14  ;;  %v3688_v62 = vcombine.high %v3680_v19, %v3680_v19  ;;  %v16451_v42 = vrot.slane %v15928_v55, %v15049_v14  ;;  %v7381_v63 = vcombine.high %v5653_v54, %v16368_v20 }
 0x42d   : > { %7678 = vrot.lane.b32.xlu1 %v7380_v12, %s14677_s15  ;;  %v5706_v12 = vrot.slane %v5699_v50, %v15049_v14  ;;  %v3687_v7 = vrot.slane %v22593_v36, %v15049_v14  ;;  %v3639_v29 = vcombine.high %v3637_v41, %v3637_v41  ;;  %v16447_v44 = vrot.slane %v3637_v41, %v15049_v14 }
 0x42e   : > { %22595 = vst [vmem:[#allocation52_spill] sm:$0xff] %v16451_v42  ;;  %v7398_v16 = vcombine.high %v5699_v50, %v5699_v50  ;;  %v5717_v26 = vrot.slane %v16420_v46, %v15049_v14  ;;  %v14297_v51 = vcombine.high %v16391_v34, %v16381_v5  ;;  %v3668_v41 = vcombine.high %v16426_v2, %v16426_v2 }
 0x42f   : > { %22594 = vst [vmem:[#allocation51_spill] sm:$0xff] %v16447_v44  ;;  %6371 = vrot.lane.b32.xlu0 %v5691_v3, %s14677_s15  ;;  %v3670_v28 = vcombine.high %v16429_v38, %v16429_v38  ;;  %v3689_v20 = vcombine.high %v3687_v7, %v3687_v7  ;;  %v7396_v54 = vrot.slane %v7382_v9, %v15049_v14 }
 0x430   : > { %v5739_v50 = vcombine.low %v5717_v26, %v16438_v31  ;;  %v5740_v36 = vcombine.low %v16441_v15, %v16444_v0  ;;  %v16473_v39 = vrot.slane %v3639_v29, %v15049_v14  ;;  %v3669_v60 = vcombine.high %v16447_v44, %v16447_v44 }
 0x431   : > { %6373 = vrot.lane.b32.xlu1 %v5706_v12, %s14677_s15  ;;  %v16478_v5 = vrot.slane %v3688_v62, %v15049_v14  ;;  %v5771_v9 = vcombine.low %v16426_v2, %v16426_v2  ;;  %v7389_v11 = vrot.slane %v7381_v63, %v15049_v14  ;;  %v7405_v29 = vrot.slane %v7398_v16, %v15049_v14 }
 0x432   : > { %v5763_v34 = vrot.slane %v14297_v51, %v15049_v14  ;;  %v5773_v17 = vcombine.low %v3670_v28, %v16447_v44  ;;  %v16492_v62 = vrot.slane %v3680_v19, %v15049_v14  ;;  %v16495_v24 = vrot.slane %v3687_v7, %v15049_v14 }
 0x433   : > { %6524 = vrot.lane.b32.xlu0 %v5691_v3, %s14678_s17  ;;  %v16502_v3 = vrot.slane %v3689_v20, %v15049_v14  ;;  %v7397_v63 = vcombine.low %v7389_v11, %v7396_v54  ;;  %v5747_v16 = vrot.slane %v5739_v50, %v15049_v14  ;;  %v5754_v51 = vrot.slane %v5740_v36, %v15049_v14 }
 0x434   : > { %v5772_v28 = vcombine.low %v16429_v38, %v3668_v41  ;;  %v5774_v44 = vcombine.low %v16473_v39, %v3669_v60  ;;  %v3270_v11 = vcombine.high %v15936_v25, %v15936_v25  ;;  %v3271_v20 = vcombine.high %v15939_v43, %v15939_v43 }
 0x435   : > { %6526 = vrot.lane.b32.xlu1 %v5706_v12, %s14678_s17  ;;  %v22596_v12 = vcombine.low %v16097_v52, %v16102_v49  ;;  %22598 = vst [vmem:[#allocation53_spill] sm:$0xff] %v16502_v3  ;;  %v7406_v50 = vcombine.high %v5717_v26, %v16438_v31  ;;  %v7407_v41 = vcombine.high %v16441_v15, %v16444_v0 }
 0x436   : > { %v16523_v60 = vrot.slane %v5773_v17, %v15049_v14  ;;  %v5755_v36 = vcombine.low %v5747_v16, %v5754_v51  ;;  %v4203_v19 = vcombine.low %v3271_v20, %v15973_v10  ;;  %v7423_v17 = vcombine.high %v5763_v34, %v5763_v34 }
 0x437   : > { %v3730_v46 = vrot.slane %v22596_v12, %v15049_v14  ;;  %v22597_v12 = vcombine.high %v16097_v52, %v16102_v49  ;;  %7680 = vrot.lane.b32.xlu0 %v7397_v63, %s14677_s15  ;;  %v5770_v52 = vrot.slane %v5763_v34, %v15049_v14  ;;  %v3671_v49 = vcombine.high %v16473_v39, %v16473_v39 }
 0x438   : > { %v4201_v63 = vcombine.low %v3270_v11, %v15933_v32  ;;  %v16539_v0 = vrot.slane %v5772_v28, %v15049_v14  ;;  %v22601_v26 = vcombine.high %v15933_v32, %v15933_v32  ;;  %v5837_v34 = vcombine.low %v16495_v24, %v16502_v3 }
 0x439   : > { %v3737_v2 = vrot.slane %v22597_v12, %v15049_v14  ;;  %7682 = vrot.lane.b32.xlu1 %v7405_v29, %s14677_s15  ;;  %v3738_v7 = vcombine.high %v3730_v46, %v3730_v46  ;;  %v22599_v29 = vcombine.high %v15928_v55, %v15928_v55  ;;  %v16533_v31 = vrot.slane %v3730_v46, %v15049_v14 }
 0x43a   : > { %v16543_v55 = vrot.slane %v5774_v44, %v15049_v14  ;;  %v4202_v46 = vcombine.low %v15939_v43, %v22601_v26  ;;  %v16551_v16 = vrot.slane %v4201_v63, %v15049_v14  ;;  %v7421_v51 = vrot.slane %v7407_v41, %v15049_v14 }
 0x43b   : > { %v3739_v54 = vcombine.high %v3737_v2, %v3737_v2  ;;  %v4200_v12 = vcombine.low %v15936_v25, %v22599_v29  ;;  %v16536_v15 = vrot.slane %v3737_v2, %v15049_v14  ;;  %6375 = vrot.lane.b32.xlu0 %v5755_v36, %s14677_s15  ;;  %v5820_v25 = vcombine.low %v3671_v49, %v16492_v62 }
 0x43c   : > { %22602 = vst [vmem:[#allocation55_spill] sm:$0xff] %v16551_v16  ;;  %v7414_v2 = vrot.slane %v7406_v50, %v15049_v14  ;;  %v16558_v44 = vrot.slane %v5771_v9, %v15049_v14  ;;  %v14299_v28 = vcombine.high %v16495_v24, %v16502_v3  ;;  %v5804_v32 = vcombine.low %v16523_v60, %v16543_v55 }
 0x43d   : > { %6377 = vrot.lane.b32.xlu1 %v5770_v52, %s14677_s15  ;;  %22600 = vst [vmem:[#allocation54_spill] sm:$0xff] %v16536_v15  ;;  %v16568_v49 = vrot.slane %v4200_v12, %v15049_v14  ;;  %v16571_v11 = vrot.slane %v4203_v19, %v15049_v14  ;;  %v16574_v20 = vrot.slane %v3738_v7, %v15049_v14 }
 0x43e   : > { %v22605_v9 = vcombine.low %v16119_v56, %v16121_v35  ;;  %v5803_v29 = vcombine.low %v16558_v44, %v16539_v0  ;;  %v7430_v7 = vrot.slane %v7423_v17, %v15049_v14  ;;  %v5827_v12 = vrot.slane %v5820_v25, %v15049_v14 }
 0x43f   : > { %22603 = vst [vmem:[#allocation56_spill] sm:$0xff] %v16568_v49  ;;  %22604 = vst [vmem:[#allocation57_spill] sm:$0xff] %v16571_v11  ;;  %6528 = vrot.lane.b32.xlu0 %v5755_v36, %s14678_s17  ;;  %v16594_v26 = vrot.slane %v4202_v46, %v15049_v14  ;;  %v5818_v36 = vrot.slane %v5804_v32, %v15049_v14  ;;  %v5835_v17 = vcombine.low %v16478_v5, %v16478_v5 }
 0x440   : > { %v16580_v50 = vrot.slane %v22605_v9, %v15049_v14  ;;  %v6780_v9 = vcombine.high %v16568_v49, %v16551_v16 }
 0x441   : > { %6530 = vrot.lane.b32.xlu1 %v5770_v52, %s14678_s17  ;;  %v22606_v52 = vcombine.high %v16119_v56, %v16121_v35  ;;  %22607 = vst [vmem:[#allocation58_spill] sm:$0xff] %v16594_v26  ;;  %v16599_v56 = vrot.slane %v3739_v54, %v15049_v14  ;;  %v7422_v35 = vcombine.low %v7414_v2, %v7421_v51 }
 0x442   : > { %v16606_v25 = vrot.slane %v6780_v9, %v15049_v14  ;;  %v6781_v46 = vcombine.high %v16594_v26, %v16571_v11  ;;  %v3769_v54 = vcombine.high %v16536_v15, %v16536_v15  ;;  %v16614_v2 = vrot.slane %v16580_v50, %v15049_v14 }
 0x443   : > { %v16586_v41 = vrot.slane %v22606_v52, %v15049_v14  ;;  %7684 = vrot.lane.b32.xlu0 %v7422_v35, %s14677_s15 }
 0x444   : > { %22608 = vst [vmem:[#allocation59_spill] sm:$0xff] %v16606_v25  ;;  %v16626_v26 = vrot.slane %v6781_v46, %v15049_v14  ;;  %v5884_v46 = vcombine.low %v16533_v31, %v16574_v20 }
 0x445   : > { %7686 = vrot.lane.b32.xlu1 %v7430_v7, %s14677_s15  ;;  %v5834_v7 = vrot.slane %v5827_v12, %v15049_v14 }
 0x446   : > { %22610 = vst [vmem:[#allocation61_spill] sm:$0xff] %v16626_v26  ;;  %v5891_v25 = vrot.slane %v5884_v46, %v15049_v14 }
 0x449   : > { %6381 = vrot.lane.b32.xlu1 %v5834_v7, %s14677_s15 }
 0x44d   : > { %6534 = vrot.lane.b32.xlu1 %v5834_v7, %s14678_s17 }
 0x451   : > { %v16565_v43 = vpop.permute.xlu1 %6349 }
 0x454   : > { %v9812_v19 = vpop.f32.mrb[16].mxu0 }
 0x455   : > { %v9814_v63 = vpop.f32.mrb[17].mxu0  ;;  %v16623_v9 = vpop.permute.xlu1 %6502 }
 0x456   : > { %v10163_v52 = vcombine.low %v9812_v19, %v9814_v63  ;;  %v10164_v3 = vcombine.high %v9812_v19, %v9814_v63  ;;  %v5811_v19 = vrot.slane %v5803_v29, %v15049_v14  ;;  %v7432_v63 = vcombine.high %v16523_v60, %v16543_v55  ;;  %22609 = vst [vmem:[#allocation60_spill] sm:$0xff] %v16623_v9  ;;  %v16637_v49 = vpop.permute.xlu0 %6351 }
 0x457   : > { %22612 = vst [vmem:[#allocation62_spill] sm:$0xff] %v16637_v49  ;;  %v16641_v60 = vrot.slane %v5835_v17, %v15049_v14  ;;  %v16644_v55 = vrot.slane %v14299_v28, %v15049_v14  ;;  %v7431_v28 = vcombine.high %v16558_v44, %v16539_v0 }
 0x458   : > { %v10171_v51 = vrot.slane %v10163_v52, %v15914_v33  ;;  %v10178_v32 = vrot.slane %v10164_v3, %v15914_v33  ;;  %v22611_v52 = vcombine.high %v16492_v62, %v16478_v5  ;;  %v16635_v3 = vrot.slane %v5837_v34, %v15049_v14 }
 0x459   : > { %v5819_v16 = vcombine.low %v5811_v19, %v5818_v36  ;;  %v3770_v34 = vcombine.high %v16574_v20, %v16574_v20  ;;  %v22613_v36 = vcombine.low %v16130_v27, %v16132_v61  ;;  %v7448_v19 = vcombine.high %v5827_v12, %v5827_v12  ;;  %v16681_v12 = vpop.permute.xlu1 %7658 }
 0x45a   : > { %v16632_v11 = vrot.slane %v22611_v52, %v15049_v14  ;;  %v10179_v29 = vcombine.high %v10171_v51, %v10171_v51  ;;  %v10180_v35 = vcombine.high %v10178_v32, %v10178_v32  ;;  %v3771_v52 = vcombine.high %v16599_v56, %v16599_v56  ;;  %22614 = vst [vmem:[#allocation63_spill] sm:$0xff] %v16681_v12  ;;  %v16690_v7 = vpop.permute.xlu0 %6504 }
 0x45b   : > { %v16656_v17 = vrot.slane %v22613_v36, %v15049_v14  ;;  %6379 = vrot.lane.b32.xlu0 %v5819_v16, %s14677_s15  ;;  %v7446_v0 = vrot.slane %v7432_v63, %v15049_v14  ;;  %v14271_v63 = vcombine.high %v15990_v53, %v15980_v30  ;;  %v7439_v12 = vrot.slane %v7431_v28, %v15049_v14 }
 0x45c   : > { %v10954_v9 = vcombine.low %v10171_v51, %v10179_v29  ;;  %v10955_v49 = vcombine.low %v10178_v32, %v10180_v35  ;;  %v14270_v32 = vcombine.high %v15973_v10, %v15961_v58  ;;  %v4264_v29 = vcombine.low %v15990_v53, %v15980_v30 }
 0x45d   : > { %v3788_v35 = vcombine.high %v16580_v50, %v16580_v50  ;;  %v5867_v44 = vcombine.low %v16641_v60, %v16632_v11  ;;  %v5900_v10 = vcombine.low %v3770_v34, %v16536_v15  ;;  %v5902_v36 = vcombine.low %v3771_v52, %v16614_v2 }
 0x45e   : > { %v16664_v26 = vrot.slane %v10954_v9, %v15914_v33  ;;  %v16667_v51 = vrot.slane %v10955_v49, %v15914_v33  ;;  %v5868_v49 = vcombine.low %v16635_v3, %v16644_v55  ;;  %v3789_v9 = vcombine.high %v16586_v41, %v16586_v41 }
 0x45f   : > { %6532 = vrot.lane.b32.xlu0 %v5819_v16, %s14678_s17  ;;  %v7455_v34 = vrot.slane %v7448_v19, %v15049_v14  ;;  %v22616_v58 = vcombine.high %v16130_v27, %v16132_v61  ;;  %v3838_v15 = vcombine.high %v16656_v17, %v16656_v17  ;;  %v16706_v30 = vrot.slane %v14270_v32, %v15049_v14 }
 0x460   : > { %v16688_v50 = vcombine.low %v16664_v26, %v16667_v51  ;;  %v16709_v53 = vrot.slane %v4264_v29, %v15049_v14  ;;  %v7447_v16 = vcombine.low %v7439_v12, %v7446_v0  ;;  %v5875_v52 = vrot.slane %v5867_v44, %v15049_v14 }
 0x461   : > { %22617 = vst [vmem:[#allocation65_spill] sm:$0xff] %v16706_v30  ;;  %7690 = vrot.lane.b32.xlu1 %v7455_v34, %s14677_s15  ;;  %v5882_v46 = vrot.slane %v5868_v49, %v15049_v14  ;;  %v14300_v27 = vcombine.high %v16533_v31, %v16533_v31  ;;  %v16723_v28 = vrot.slane %v3788_v35, %v15049_v14  ;;  %v16741_v35 = vpop.permute.xlu1 %6353  ;;  %v16746_v49 = vpop.permute.xlu0 %7660 }
 0x462   : > { %22615 = vst [vmem:[#allocation64_spill] sm:$0xff] %v16688_v50  ;;  %v3837_v50 = vrot.slane %v22616_v58, %v15049_v14  ;;  %22618 = vst [vmem:[#allocation66_spill] sm:$0xff] %v16709_v53  ;;  %v22619_v58 = vcombine.low %v15993_v4, %v15996_v13  ;;  %v5901_v19 = vcombine.low %v16599_v56, %v3769_v54 }
 0x463   : > { %v16727_v32 = vrot.slane %v14271_v63, %v15049_v14  ;;  %v16730_v29 = vrot.slane %v3789_v9, %v15049_v14  ;;  %v16734_v0 = vcombine.high %v16614_v2, %v16614_v2  ;;  %v16737_v4 = vrot.slane %v5902_v36, %v15049_v14  ;;  %7688 = vrot.lane.b32.xlu0 %v7447_v16, %s14677_s15 }
 0x464   : > { %v16718_v61 = vrot.slane %v22619_v58, %v15049_v14  ;;  %v5898_v13 = vrot.slane %v5891_v25, %v15049_v14  ;;  %22624 = vst [vmem:[#allocation71_spill] sm:$0xff] %v16741_v35  ;;  %v3839_v54 = vcombine.high %v3837_v50, %v3837_v50  ;;  %v16744_v44 = vrot.slane %v5900_v10, %v15049_v14 }
 0x465   : > { %22621 = vst [vmem:[#allocation68_spill] sm:$0xff] %v16727_v32  ;;  %22622 = vst [vmem:[#allocation69_spill] sm:$0xff] %v16730_v29  ;;  %v6805_v12 = vcombine.high %v16706_v30, %v16709_v53  ;;  %v16753_v63 = vrot.slane %v3838_v15, %v15049_v14  ;;  %v5883_v36 = vcombine.low %v5875_v52, %v5882_v46 }
 0x466   : > { %22620 = vst [vmem:[#allocation67_spill] sm:$0xff] %v16718_v61  ;;  %22623 = vst [vmem:[#allocation70_spill] sm:$0xff] %v16734_v0  ;;  %v6806_v9 = vcombine.high %v16727_v32, %v16718_v61  ;;  %6385 = vrot.lane.b32.xlu1 %v5898_v13, %s14677_s15  ;;  %v7456_v34 = vcombine.high %v16641_v60, %v16632_v11  ;;  %v7457_v10 = vcombine.high %v16635_v3, %v16644_v55 }
 0x467   : > { %22625 = vst [vmem:[#allocation72_spill] sm:$0xff] %v16746_v49  ;;  %22626 = vst [vmem:[#allocation73_spill] sm:$0xff] %v16753_v63  ;;  %v16761_v16 = vrot.slane %v14300_v27, %v15049_v14  ;;  %v16764_v58 = vrot.slane %v5901_v19, %v15049_v14  ;;  %v16767_v35 = vrot.slane %v6805_v12, %v15049_v14  ;;  %6383 = vrot.lane.b32.xlu0 %v5883_v36, %s14677_s15 }
 0x468   : > { %v16770_v15 = vrot.slane %v6806_v9, %v15049_v14  ;;  %v22629_v52 = vcombine.low %v16149_v23, %v16151_v57  ;;  %v22630_v3 = vcombine.high %v16149_v23, %v16151_v57  ;;  %v7473_v55 = vcombine.high %v5891_v25, %v5891_v25 }
 0x469   : > { %22627 = vst [vmem:[#allocation74_spill] sm:$0xff] %v16767_v35  ;;  %v5948_v46 = vcombine.low %v16723_v28, %v16734_v0  ;;  %v16787_v27 = vrot.slane %v16656_v17, %v15049_v14  ;;  %v5931_v19 = vcombine.low %v16761_v16, %v16744_v44  ;;  %v5932_v12 = vcombine.low %v16764_v58, %v16737_v4 }
 0x46a   : > { %22628 = vst [vmem:[#allocation75_spill] sm:$0xff] %v16770_v15  ;;  %v3880_v11 = vrot.slane %v22629_v52, %v15049_v14  ;;  %v16780_v60 = vrot.slane %v22630_v3, %v15049_v14  ;;  %v16797_v23 = vrot.slane %v16586_v41, %v15049_v14  ;;  %v16800_v25 = vrot.slane %v3837_v50, %v15049_v14  ;;  %v16805_v52 = vpop.permute.xlu1 %6506 }
 0x46b   : > { %22631 = vst [vmem:[#allocation76_spill] sm:$0xff] %v16787_v27  ;;  %6538 = vrot.lane.b32.xlu1 %v5898_v13, %s14678_s17  ;;  %v7464_v17 = vrot.slane %v7456_v34, %v15049_v14  ;;  %v7471_v9 = vrot.slane %v7457_v10, %v15049_v14  ;;  %v16809_v3 = vcombine.high %v16723_v28, %v16723_v28  ;;  %v16818_v13 = vpop.permute.xlu0 %6355 }
 0x46c   : > { %v16812_v57 = vrot.slane %v3839_v54, %v15049_v14  ;;  %v5966_v41 = vcombine.low %v16787_v27, %v16753_v63  ;;  %v4199_v50 = vrot.slane %v16451_v42, %v15049_v14  ;;  %22634 = vst [vmem:[#allocation79_spill] sm:$0xff] %v16818_v13  ;;  %v5964_v34 = vcombine.low %v16797_v23, %v16730_v29 }
 0x46d   : > { %22632 = vst [vmem:[#allocation77_spill] sm:$0xff] %v16809_v3  ;;  %v14302_v10 = vcombine.high %v16797_v23, %v16730_v29  ;;  %6536 = vrot.lane.b32.xlu0 %v5883_v36, %s14678_s17  ;;  %v7480_v15 = vrot.slane %v7473_v55, %v15049_v14  ;;  %v5955_v54 = vrot.slane %v5948_v46, %v15049_v14 }
 0x46e   : > { %22633 = vst [vmem:[#allocation78_spill] sm:$0xff] %v16812_v57  ;;  %v3888_v35 = vcombine.high %v3880_v11, %v3880_v11  ;;  %v3889_v49 = vcombine.high %v16780_v60, %v16780_v60  ;;  %v5939_v42 = vrot.slane %v5931_v19, %v15049_v14  ;;  %v5946_v13 = vrot.slane %v5932_v12, %v15049_v14 }
 0x46f   : > { %v3869_v0 = vcombine.high %v16800_v25, %v16800_v25  ;;  %v16836_v36 = vrot.slane %v3880_v11, %v15049_v14  ;;  %v7472_v55 = vcombine.low %v7464_v17, %v7471_v9  ;;  %7694 = vrot.lane.b32.xlu1 %v7480_v15, %s14677_s15  ;;  %v3871_v46 = vcombine.high %v16812_v57, %v16812_v57  ;;  %v16857_v17 = vpop.permute.xlu1 %7662 }
 0x470   : > { %v22636_v19 = vcombine.low %v16174_v21, %v16183_v59  ;;  %v16848_v53 = vsel %vm561_vm2, %v4199_v50, 0.0  ;;  %v16851_v30 = vrot.slane %v5966_v41, %v15049_v14  ;;  %v5962_v11 = vrot.slane %v5955_v54, %v15049_v14  ;;  %22638 = vst [vmem:[#allocation82_spill] sm:$0xff] %v16857_v17 }
 0x471   : > { %22635 = vst [vmem:[#allocation80_spill] sm:$0xff] %v16836_v36  ;;  %22637 = vst [vmem:[#allocation81_spill] sm:$0xff] %v16848_v53  ;;  %7692 = vrot.lane.b32.xlu0 %v7472_v55, %s14677_s15  ;;  %v7481_v15 = vcombine.high %v16761_v16, %v16744_v44  ;;  %v3371_v9 = vcombine.high %v16135_v45, %v16135_v45  ;;  %v5947_v50 = vcombine.low %v5939_v42, %v5946_v13  ;;  %v16873_v44 = vpop.permute.xlu0 %6508 }
 0x472   : > { %v16845_v12 = vrot.slane %v22636_v19, %v15049_v14  ;;  %v22639_v19 = vld [vmem:[#allocation24_spill] sm:$0xff]  ;;  %v16865_v41 = vrot.slane %v16809_v3, %v15049_v14  ;;  %v16868_v55 = vrot.slane %v5964_v34, %v15049_v14  ;;  %v16871_v61 = vrot.slane %v14302_v10, %v15049_v14  ;;  %v22642_v10 = vld [vmem:[#allocation25_spill] sm:$0xff] }
 0x473   : > { %v4326_v32 = vcombine.low %v22639_v19, %v16139_v8  ;;  %v6467_v16 = vadd.f32 %v16565_v43, %v16848_v53  ;;  %6389 = vrot.lane.b32.xlu1 %v5962_v11, %s14677_s15  ;;  %v7482_v42 = vcombine.high %v16764_v58, %v16737_v4  ;;  %v22640_v13 = vcombine.high %v16139_v8, %v16139_v8 }
 0x474   : > { %v22641_v34 = vcombine.high %v16154_v1, %v16154_v1  ;;  %v16890_v3 = vrot.slane %v16780_v60, %v15049_v14  ;;  %v7498_v43 = vcombine.high %v5955_v54, %v5955_v54  ;;  %v5996_v53 = vcombine.low %v16871_v61, %v16851_v30 }
 0x475   : > { %v4327_v19 = vcombine.low %v16135_v45, %v22640_v13  ;;  %v14303_v4 = vcombine.high %v16787_v27, %v16753_v63  ;;  %v16897_v8 = vrot.slane %v3888_v35, %v15049_v14  ;;  %v3918_v45 = vcombine.high %v16836_v36, %v16836_v36  ;;  %6387 = vrot.lane.b32.xlu0 %v5947_v50, %s14677_s15  ;;  %v14460_v63 = vld [vmem:[#allocation7 + $0x8] sm:$0x3] }
 0x476   : > { %v4329_v17 = vcombine.low %v22642_v10, %v22641_v34  ;;  %v4328_v58 = vcombine.low %v3371_v9, %v16154_v1  ;;  %v16904_v60 = vrot.slane %v4326_v32, %v15049_v14  ;;  %v22645_v54 = vcombine.high %v16174_v21, %v16183_v59  ;;  %v16919_v32 = vpop.permute.xlu1 %6357 }
 0x477   : > { %22643 = vst [vmem:[#allocation24_spill] sm:$0xff] %v16897_v8  ;;  %v3938_v35 = vcombine.high %v16845_v12, %v16845_v12  ;;  %v7489_v34 = vrot.slane %v7481_v15, %v15049_v14  ;;  %v5995_v10 = vcombine.low %v16865_v41, %v16868_v55  ;;  %v7846_v29 = vadd.f32 %v14460_v63, %v6467_v16 }
 0x478   : > { %22644 = vst [vmem:[#allocation83_spill] sm:$0xff] %v16904_v60  ;;  %v16910_v13 = vrot.slane %v22645_v54, %v15049_v14  ;;  %6542 = vrot.lane.b32.xlu1 %v5962_v11, %s14678_s17  ;;  %v7496_v1 = vrot.slane %v7482_v42, %v15049_v14  ;;  %22646 = vst [vmem:[#allocation84_spill] sm:$0xff] %v16919_v32  ;;  %v16922_v21 = vrot.slane %v4327_v19, %v15049_v14  ;;  %v16935_v11 = vpop.permute.xlu0 %7664 }
 0x479   : > { %v16925_v59 = vrot.slane %v4329_v17, %v15049_v14  ;;  %v16928_v9 = vrot.slane %v3889_v49, %v15049_v14  ;;  %v7505_v15 = vrot.slane %v7498_v43, %v15049_v14  ;;  %v6010_v54 = vrot.slane %v5996_v53, %v15049_v14  ;;  %22649 = vst [vmem:[#allocation87_spill] sm:$0xff] %v16935_v11 }
 0x47a   : > { %22647 = vst [vmem:[#allocation85_spill] sm:$0xff] %v16922_v21  ;;  %v16933_v63 = vrot.slane %v14303_v4, %v15049_v14  ;;  %6540 = vrot.lane.b32.xlu0 %v5947_v50, %s14678_s17  ;;  %v6028_v16 = vcombine.low %v16812_v57, %v3869_v0  ;;  %v6030_v42 = vcombine.low %v16897_v8, %v3918_v45  ;;  %v22652_v0 = vld [vmem:[#allocation31_spill] sm:$0xff] }
 0x47b   : > { %22648 = vst [vmem:[#allocation86_spill] sm:$0xff] %v16925_v59  ;;  %v16941_v17 = vrot.slane %v4328_v58, %v15049_v14  ;;  %v6830_v49 = vcombine.high %v16904_v60, %v16922_v21  ;;  %v6029_v19 = vcombine.low %v3871_v46, %v16836_v36  ;;  %v3939_v53 = vcombine.high %v16910_v13, %v16910_v13  ;;  %v22653_v4 = vld [vmem:[#allocation27_spill] sm:$0xff] }
 0x47c   : > { %v16949_v43 = vrot.slane %v3938_v35, %v15049_v14  ;;  %v6003_v50 = vrot.slane %v5995_v10, %v15049_v14  ;;  %v22654_v45 = vcombine.low %v22652_v0, %v22653_v4  ;;  %v8094_v58 = vrot.slane %v7846_v29, %v15914_v33  ;;  %7698 = vrot.lane.b32.xlu1 %v7505_v15, %s14677_s15  ;;  %v7958_v21 = vpop.permute.xlu0 %7957 }
 0x47d   : > { %22650 = vst [vmem:[#allocation88_spill] sm:$0xff] %v16941_v17  ;;  %v7497_v11 = vcombine.low %v7489_v34, %v7496_v1  ;;  %v6831_v46 = vcombine.high %v16941_v17, %v16925_v59  ;;  %v6026_v35 = vrot.slane %v16933_v63, %v15049_v14  ;;  %v7507_v10 = vcombine.high %v16871_v61, %v16851_v30  ;;  %v16975_v1 = vpop.permute.xlu1 %6510  ;;  %v22657_v61 = vld [vmem:[#allocation20_spill] sm:$0xff]  ;;  %v22658_v17 = vld [vmem:[#allocation22_spill] sm:$0xff] }
 0x47e   : > { %22651 = vst [vmem:[#allocation89_spill] sm:$0xff] %v16949_v43  ;;  %v16956_v32 = vrot.slane %v22654_v45, %v15049_v14  ;;  %v6011_v60 = vcombine.low %v6003_v50, %v6010_v54  ;;  %v3920_v45 = vcombine.high %v16897_v8, %v16897_v8  ;;  %v16970_v29 = vrot.slane %v6028_v16, %v15049_v14  ;;  %v22661_v8 = vld [vmem:[#allocation21_spill] sm:$0xff] }
 0x47f   : > { %7696 = vrot.lane.b32.xlu0 %v7497_v11, %s14677_s15  ;;  %v16973_v34 = vrot.slane %v6030_v42, %v15049_v14  ;;  %v8095_v15 = vcombine.high %v7958_v21, %v7958_v21  ;;  %v8102_v54 = vrot.slane %v7958_v21, %v15914_v33  ;;  %v16979_v50 = vrot.slane %v6830_v49, %v15049_v14  ;;  %v22660_v21 = vld [vmem:[#allocation37_spill] sm:$0xff] }
 0x480   : > { %v16982_v30 = vrot.slane %v6831_v46, %v15049_v14  ;;  %v4389_v11 = vcombine.low %v22658_v17, %v22657_v61  ;;  %v14272_v16 = vcombine.high %v22658_v17, %v22657_v61  ;;  %6393 = vrot.lane.b32.xlu1 %v6026_v35, %s14677_s15  ;;  %v4391_v49 = vcombine.low %v22661_v8, %v22660_v21 }
 0x481   : > { %22655 = vst [vmem:[#allocation31_spill] sm:$0xff] %v16979_v50  ;;  %v16990_v42 = vrot.slane %v8095_v15, %v15914_v33  ;;  %v8110_v59 = vcombine.high %v8102_v54, %v8102_v54  ;;  %v8928_v36 = vcombine.low %v8094_v58, %v8102_v54  ;;  %v16995_v57 = vrot.slane %v6029_v19, %v15049_v14 }
 0x482   : > { %22656 = vst [vmem:[#allocation27_spill] sm:$0xff] %v16982_v30  ;;  %v6076_v46 = vcombine.low %v3920_v45, %v16890_v3  ;;  %v14273_v17 = vcombine.high %v22661_v8, %v22660_v21  ;;  %v7506_v15 = vcombine.high %v16865_v41, %v16868_v55  ;;  %v7521_v58 = vrot.slane %v7507_v10, %v15049_v14 }
 0x483   : > { %22659 = vst [vmem:[#allocation20_spill] sm:$0xff] %v16990_v42  ;;  %6391 = vrot.lane.b32.xlu0 %v6011_v60, %s14677_s15  ;;  %v7523_v54 = vcombine.high %v16933_v63, %v16933_v63  ;;  %v8929_v19 = vcombine.low %v8110_v59, %v16990_v42  ;;  %v22662_v45 = vcombine.low %v16800_v25, %v16800_v25  ;;  %v17025_v59 = vpop.permute.xlu1 %7666 }
 0x484   : > { %v6060_v8 = vcombine.low %v16995_v57, %v16973_v34  ;;  %v17018_v21 = vrot.slane %v4389_v11, %v15049_v14  ;;  %v17021_v41 = vrot.slane %v14272_v16, %v15049_v14  ;;  %6546 = vrot.lane.b32.xlu1 %v6026_v35, %s14678_s17  ;;  %v8936_v55 = vrot.slane %v8928_v36, %v15914_v33 }
 0x485   : > { %v17013_v61 = vrot.slane %v22662_v45, %v15049_v14  ;;  %22665 = vst [vmem:[#allocation21_spill] sm:$0xff] %v17025_v59  ;;  %v8943_v63 = vrot.slane %v8929_v19, %v15914_v33  ;;  %v17029_v10 = vrot.slane %v4391_v49, %v15049_v14  ;;  %v17032_v45 = vrot.slane %v14273_v17, %v15049_v14 }
 0x486   : > { %22663 = vst [vmem:[#allocation22_spill] sm:$0xff] %v17018_v21  ;;  %22664 = vst [vmem:[#allocation37_spill] sm:$0xff] %v17021_v41  ;;  %v17036_v11 = vrot.slane %v16845_v12, %v15049_v14  ;;  %v17040_v16 = vrot.slane %v16910_v13, %v15049_v14  ;;  %v17045_v35 = vrot.slane %v6076_v46, %v15049_v14 }
 0x487   : > { %22666 = vst [vmem:[#allocation90_spill] sm:$0xff] %v17029_v10  ;;  %22667 = vst [vmem:[#allocation91_spill] sm:$0xff] %v17032_v45  ;;  %v6059_v36 = vcombine.low %v17013_v61, %v16970_v29  ;;  %v17048_v49 = vrot.slane %v3939_v53, %v15049_v14  ;;  %6544 = vrot.lane.b32.xlu0 %v6011_v60, %s14678_s17  ;;  %v7514_v17 = vrot.slane %v7506_v15, %v15049_v14 }
 0x488   : > { %22668 = vst [vmem:[#allocation92_spill] sm:$0xff] %v17040_v16  ;;  %v7530_v12 = vrot.slane %v7523_v54, %v15049_v14  ;;  %v8944_v19 = vcombine.low %v8936_v55, %v8943_v63  ;;  %v6093_v13 = vcombine.low %v17036_v11, %v16949_v43  ;;  %v14305_v27 = vcombine.high %v17036_v11, %v16949_v43  ;;  %v22724_v43 = vld [vmem:[#allocation46_spill] sm:$0xff] }
 0x489   : > { %22669 = vst [vmem:[#allocation93_spill] sm:$0xff] %v17048_v49  ;;  %v3988_v46 = vcombine.high %v16956_v32, %v16956_v32  ;;  %v6074_v42 = vrot.slane %v6060_v8, %v15049_v14  ;;  %v7522_v53 = vcombine.low %v7514_v17, %v7521_v58  ;;  %v6855_v60 = vcombine.high %v17018_v21, %v17021_v41  ;;  %v17073_v58 = vpop.permute.xlu1 %6361  ;;  %v22679_v21 = vld [vmem:[#allocation35_spill] sm:$0xff]  ;;  %v22680_v41 = vld [vmem:[#allocation36_spill] sm:$0xff] }
 0x48a   : > { %7702 = vrot.lane.b32.xlu1 %v7530_v12, %s14677_s15  ;;  %14311 = vmatmul.mubr.msk.f32.gmra.mrb[18].mxu0 %vm2906_vm3, %v8944_v19  ;;  %v6856_v15 = vcombine.high %v17029_v10, %v17032_v45  ;;  %v14304_v54 = vcombine.high %v16890_v3, %v16928_v9  ;;  %v6067_v55 = vrot.slane %v6059_v36, %v15049_v14  ;;  %v22670_v8 = vmov 0.0  }
 0x48b   : > { %v6090_v63 = vrot.slane %v17045_v35, %v15049_v14  ;;  %9822 = vmatprep.mubr.f32.mxu0 %v22670_v8  ;;  %7700 = vrot.lane.b32.xlu0 %v7522_v53, %s14677_s15  ;;  %22671 = vst [vmem:[#allocation94_spill] sm:$0xff] %v17073_v58  ;;  %v6140_v17 = vcombine.low %v17040_v16, %v17048_v49  ;;  %v17090_v58 = vpop.permute.xlu0 %6359 }
 0x48c   : > { %v6091_v12 = vcombine.low %v16928_v9, %v16928_v9  ;;  %v17080_v19 = vrot.slane %v6855_v60, %v15049_v14  ;;  %v17083_v36 = vrot.slane %v6856_v15, %v15049_v14  ;;  %v3469_v59 = vcombine.high %v16260_v47, %v16260_v47  ;;  %22675 = vst [vmem:[#allocation98_spill] sm:$0xff] %v17090_v58 }
 0x48d   : > { %v17088_v8 = vrot.slane %v3988_v46, %v15049_v14  ;;  %v6075_v53 = vcombine.low %v6067_v55, %v6074_v42  ;;  %v3471_v30 = vcombine.high %v16287_v40, %v16287_v40  ;;  %v7532_v60 = vcombine.high %v16995_v57, %v16973_v34 }
 0x48e   : > { %22672 = vst [vmem:[#allocation95_spill] sm:$0xff] %v17080_v19  ;;  %22673 = vst [vmem:[#allocation96_spill] sm:$0xff] %v17083_v36  ;;  %6397 = vrot.lane.b32.xlu1 %v6090_v63, %s14677_s15  ;;  %v17098_v15 = vrot.slane %v6093_v13, %v15049_v14  ;;  %v17101_v50 = vrot.slane %v14305_v27, %v15049_v14  ;;  %v3518_v42 = vcombine.high %v16303_v6, %v16303_v6 }
 0x48f   : > { %22674 = vst [vmem:[#allocation97_spill] sm:$0xff] %v17088_v8  ;;  %v22676_v55 = vcombine.high %v22652_v0, %v22653_v4  ;;  %v17113_v57 = vrot.slane %v16956_v32, %v15049_v14  ;;  %v7531_v34 = vcombine.high %v17013_v61, %v16970_v29  ;;  %6395 = vrot.lane.b32.xlu0 %v6075_v53, %s14677_s15  ;;  %v17131_v4 = vpop.permute.xlu0 %6512 }
 0x490   : > { %v17119_v27 = vrot.slane %v6140_v17, %v15049_v14  ;;  %v17122_v13 = vrot.slane %v6091_v12, %v15049_v14  ;;  %v17125_v46 = vrot.slane %v14304_v54, %v15049_v14  ;;  %v3520_v0 = vcombine.high %v16290_v48, %v16290_v48  ;;  %v17140_v12 = vpop.permute.xlu1 %6514 }
 0x491   : > { %v3987_v58 = vrot.slane %v22676_v55, %v15049_v14  ;;  %22677 = vst [vmem:[#allocation99_spill] sm:$0xff] %v17113_v57  ;;  %v4020_v32 = vcombine.high %v17088_v8, %v17088_v8  ;;  %v4453_v29 = vcombine.low %v3471_v30, %v16303_v6  ;;  %v3971_v61 = vcombine.high %v17048_v49, %v17048_v49 }
 0x492   : > { %6550 = vrot.lane.b32.xlu1 %v6090_v63, %s14678_s17  ;;  %v7546_v17 = vrot.slane %v7532_v60, %v15049_v14  ;;  %v6124_v54 = vcombine.low %v17098_v15, %v17101_v50  ;;  %v4455_v55 = vcombine.low %v3520_v0, %v16306_v22  ;;  %v4018_v6 = vcombine.high %v17113_v57, %v17113_v57 }
 0x493   : > { %v3989_v36 = vcombine.high %v3987_v58, %v3987_v58  ;;  %v17144_v19 = vrot.slane %v3987_v58, %v15049_v14  ;;  %v4452_v30 = vcombine.low %v16287_v40, %v3469_v59  ;;  %6548 = vrot.lane.b32.xlu0 %v6075_v53, %s14678_s17  ;;  %v7539_v63 = vrot.slane %v7531_v34, %v15049_v14 }
 0x494   : > { %v6154_v60 = vrot.slane %v17119_v27, %v15049_v14  ;;  %v6123_v33 = vcombine.low %v17122_v13, %v17125_v46  ;;  %v4454_v0 = vcombine.low %v16290_v48, %v3518_v42  ;;  %v22681_v10 = vcombine.low %v22679_v21, %v22680_v41  ;;  %v17172_v42 = vpop.permute.xlu0 %7668 }
 0x495   : > { %22678 = vst [vmem:[#allocation100_spill] sm:$0xff] %v17144_v19  ;;  %v6158_v58 = vcombine.low %v4020_v32, %v17144_v19  ;;  %v22682_v40 = vcombine.high %v22679_v21, %v22680_v41  ;;  %v17166_v53 = vrot.slane %v4453_v29, %v15049_v14  ;;  %v14306_v34 = vcombine.high %v17040_v16, %v17040_v16 }
 0x496   : > { %v4030_v45 = vrot.slane %v22681_v10, %v15049_v14  ;;  %v7547_v47 = vcombine.low %v7539_v63, %v7546_v17  ;;  %6401 = vrot.lane.b32.xlu1 %v6154_v60, %s14677_s15  ;;  %v6138_v48 = vrot.slane %v6124_v54, %v15049_v14  ;;  %22684 = vst [vmem:[#allocation36_spill] sm:$0xff] %v17172_v42  ;;  %v22692_v42 = vld [vmem:[#allocation39_spill] sm:$0xff] }
 0x497   : > { %v4037_v59 = vrot.slane %v22682_v40, %v15049_v14  ;;  %22683 = vst [vmem:[#allocation35_spill] sm:$0xff] %v17166_v53  ;;  %v17175_v10 = vrot.slane %v4455_v55, %v15049_v14  ;;  %v17178_v32 = vrot.slane %v3989_v36, %v15049_v14  ;;  %v6156_v21 = vcombine.low %v3971_v61, %v17113_v57  ;;  %v17191_v55 = vpop.permute.xlu1 %7670 }
 0x498   : > { %v6157_v41 = vcombine.low %v17088_v8, %v4018_v6  ;;  %v17183_v29 = vrot.slane %v4452_v30, %v15049_v14  ;;  %v17187_v17 = vcombine.high %v17144_v19, %v17144_v19  ;;  %7704 = vrot.lane.b32.xlu0 %v7547_v47, %s14677_s15  ;;  %v6131_v54 = vrot.slane %v6123_v33, %v15049_v14  ;;  %v22691_v47 = vld [vmem:[#allocation38_spill] sm:$0xff]  ;;  %v22717_v8 = vld [vmem:[#allocation41_spill] sm:$0xff] }
 0x499   : > { %22685 = vst [vmem:[#allocation101_spill] sm:$0xff] %v17175_v10  ;;  %22686 = vst [vmem:[#allocation102_spill] sm:$0xff] %v17178_v32  ;;  %v7548_v36 = vcombine.high %v17045_v35, %v17045_v35  ;;  %v17196_v61 = vrot.slane %v4454_v0, %v15049_v14  ;;  %v17199_v6 = vrot.slane %v6158_v58, %v15049_v14 }
 0x49a   : > { %22687 = vst [vmem:[#allocation103_spill] sm:$0xff] %v17183_v29  ;;  %22688 = vst [vmem:[#allocation104_spill] sm:$0xff] %v17187_v17  ;;  %v4038_v30 = vcombine.high %v4030_v45, %v4030_v45  ;;  %v4039_v63 = vcombine.high %v4037_v59, %v4037_v59  ;;  %v6880_v40 = vcombine.high %v17183_v29, %v17166_v53  ;;  %6554 = vrot.lane.b32.xlu1 %v6154_v60, %s14678_s17  ;;  %v17223_v60 = vpop.permute.xlu0 %6363 }
 0x49b   : > { %22689 = vst [vmem:[#allocation105_spill] sm:$0xff] %v17191_v55  ;;  %22690 = vst [vmem:[#allocation106_spill] sm:$0xff] %v17196_v61  ;;  %v22693_v33 = vcombine.low %v22691_v47, %v22692_v42  ;;  %v6139_v55 = vcombine.low %v6131_v54, %v6138_v48  ;;  %v7557_v35 = vcombine.high %v17098_v15, %v17101_v50 }
 0x49c   : > { %v6881_v0 = vcombine.high %v17196_v61, %v17175_v10  ;;  %v7556_v58 = vcombine.high %v17122_v13, %v17125_v46  ;;  %v7573_v29 = vcombine.high %v17119_v27, %v17119_v27  ;;  %v17217_v53 = vrot.slane %v6156_v21, %v15049_v14  ;;  %22694 = vst [vmem:[#allocation38_spill] sm:$0xff] %v17223_v60 }
 0x49d   : > { %v4080_v57 = vrot.slane %v22693_v33, %v15049_v14  ;;  %v17220_v33 = vrot.slane %v6157_v41, %v15049_v14  ;;  %6399 = vrot.lane.b32.xlu0 %v6139_v55, %s14677_s15  ;;  %v7555_v50 = vrot.slane %v7548_v36, %v15049_v14  ;;  %v6204_v15 = vcombine.low %v17178_v32, %v17187_v17  ;;  %v17247_v36 = vpop.permute.xlu1 %6365  ;;  %v22705_v17 = vld [vmem:[#allocation43_spill] sm:$0xff] }
 0x49e   : > { %v17229_v46 = vrot.slane %v6880_v40, %v15049_v14  ;;  %v17232_v27 = vrot.slane %v6881_v0, %v15049_v14  ;;  %v17235_v13 = vrot.slane %v14306_v34, %v15049_v14  ;;  %v17240_v21 = vrot.slane %v4038_v30, %v15049_v14  ;;  %22699 = vst [vmem:[#allocation110_spill] sm:$0xff] %v17247_v36 }
 0x49f   : > { %v6188_v48 = vcombine.low %v17220_v33, %v17199_v6  ;;  %v17243_v41 = vrot.slane %v4039_v63, %v15049_v14  ;;  %7706 = vrot.lane.b32.xlu1 %v7555_v50, %s14677_s15  ;;  %v7571_v54 = vrot.slane %v7557_v35, %v15049_v14  ;;  %v17252_v34 = vrot.slane %v4030_v45, %v15049_v14 }
 0x4a0   : > { %22695 = vst [vmem:[#allocation39_spill] sm:$0xff] %v17229_v46  ;;  %22696 = vst [vmem:[#allocation107_spill] sm:$0xff] %v17232_v27  ;;  %v17255_v0 = vrot.slane %v4037_v59, %v15049_v14  ;;  %v22702_v30 = vcombine.high %v22691_v47, %v22692_v42  ;;  %v6187_v50 = vcombine.low %v17235_v13, %v17217_v53 }
 0x4a1   : > { %22697 = vst [vmem:[#allocation108_spill] sm:$0xff] %v17240_v21  ;;  %22698 = vst [vmem:[#allocation109_spill] sm:$0xff] %v17243_v41  ;;  %v4088_v35 = vcombine.high %v4080_v57, %v4080_v57  ;;  %6552 = vrot.lane.b32.xlu0 %v6139_v55, %s14678_s17  ;;  %v7564_v36 = vrot.slane %v7556_v58, %v15049_v14  ;;  %v7580_v40 = vrot.slane %v7573_v29, %v15049_v14 }
 0x4a2   : > { %22700 = vst [vmem:[#allocation111_spill] sm:$0xff] %v17252_v34  ;;  %22701 = vst [vmem:[#allocation112_spill] sm:$0xff] %v17255_v0  ;;  %v4087_v63 = vrot.slane %v22702_v30, %v15049_v14  ;;  %v6211_v45 = vrot.slane %v6204_v15, %v15049_v14  ;;  %v6202_v59 = vrot.slane %v6188_v48, %v15049_v14  ;;  %v17278_v30 = vpop.permute.xlu0 %6516  ;;  %v17281_v15 = vpop.permute.xlu1 %6518  ;;  %v22703_v48 = vld [vmem:[#allocation47_spill] sm:$0xff] }
 0x4a3   : > { %v4516_v27 = vcombine.low %v16322_v37, %v16297_v18  ;;  %v14275_v42 = vcombine.high %v16322_v37, %v16297_v18  ;;  %v6220_v47 = vcombine.low %v17252_v34, %v17240_v21  ;;  %v14308_v55 = vcombine.high %v17252_v34, %v17240_v21  ;;  %7710 = vrot.lane.b32.xlu1 %v7580_v40, %s14677_s15 }
 0x4a4   : > { %v6222_v58 = vcombine.low %v17255_v0, %v17243_v41  ;;  %v7572_v29 = vcombine.low %v7564_v36, %v7571_v54  ;;  %v3618_v46 = vcombine.high %v22703_v48, %v22703_v48  ;;  %v17287_v18 = vcombine.high %v17178_v32, %v17178_v32 }
 0x4a5   : > { %v6195_v37 = vrot.slane %v6187_v50, %v15049_v14  ;;  %v14274_v60 = vcombine.high %v16306_v22, %v22705_v17  ;;  %v4089_v61 = vcombine.high %v4087_v63, %v4087_v63  ;;  %v17293_v54 = vrot.slane %v4080_v57, %v15049_v14  ;;  %v22708_v22 = vld [vmem:[#allocation28_spill] sm:$0xff]  ;;  %v22709_v17 = vld [vmem:[#allocation26_spill] sm:$0xff] }
 0x4a6   : > { %22704 = vst [vmem:[#allocation47_spill] sm:$0xff] %v17287_v18  ;;  %v17296_v36 = vrot.slane %v4088_v35, %v15049_v14  ;;  %7708 = vrot.lane.b32.xlu0 %v7572_v29, %s14677_s15  ;;  %v6218_v40 = vrot.slane %v6211_v45, %v15049_v14  ;;  %v17301_v21 = vrot.slane %v4516_v27, %v15049_v14 }
 0x4a7   : > { %v6203_v10 = vcombine.low %v6195_v37, %v6202_v59  ;;  %v17304_v50 = vrot.slane %v14275_v42, %v15049_v14  ;;  %v22710_v34 = vcombine.low %v22708_v22, %v22709_v17  ;;  %v7582_v35 = vcombine.high %v17220_v33, %v17199_v6  ;;  %v22712_v42 = vld [vmem:[#allocation48_spill] sm:$0xff] }
 0x4a8   : > { %22706 = vst [vmem:[#allocation113_spill] sm:$0xff] %v17301_v21  ;;  %6405 = vrot.lane.b32.xlu1 %v6218_v40, %s14677_s15  ;;  %v17316_v29 = vrot.slane %v6220_v47, %v15049_v14  ;;  %v17319_v27 = vrot.slane %v14308_v55, %v15049_v14  ;;  %v17322_v59 = vrot.slane %v6222_v58, %v15049_v14  ;;  %v17337_v47 = vpop.permute.xlu0 %7672  ;;  %v17339_v55 = vpop.permute.xlu1 %6369 }
 0x4a9   : > { %22707 = vst [vmem:[#allocation114_spill] sm:$0xff] %v17304_v50  ;;  %v17310_v57 = vrot.slane %v22710_v34, %v15049_v14  ;;  %v3619_v37 = vcombine.high %v22712_v42, %v22712_v42  ;;  %v17327_v17 = vrot.slane %v4087_v63, %v15049_v14  ;;  %v14309_v34 = vcombine.high %v17255_v0, %v17243_v41 }
 0x4aa   : > { %v17332_v6 = vrot.slane %v14274_v60, %v15049_v14  ;;  %v4118_v33 = vcombine.high %v17293_v54, %v17293_v54  ;;  %6403 = vrot.lane.b32.xlu0 %v6203_v10, %s14677_s15  ;;  %22714 = vst [vmem:[#allocation48_spill] sm:$0xff] %v17337_v47  ;;  %22715 = vst [vmem:[#allocation115_spill] sm:$0xff] %v17339_v55  ;;  %v7581_v58 = vcombine.high %v17235_v13, %v17217_v53  ;;  %v22716_v55 = vld [vmem:[#allocation40_spill] sm:$0xff] }
 0x4ab   : > { %22711 = vst [vmem:[#allocation28_spill] sm:$0xff] %v17310_v57  ;;  %v7598_v63 = vcombine.high %v6211_v45, %v6211_v45  ;;  %v6229_v22 = vrot.slane %v17287_v18, %v15049_v14  ;;  %v17346_v41 = vrot.slane %v4089_v61, %v15049_v14  ;;  %v4120_v60 = vcombine.high %v17296_v36, %v17296_v36 }
 0x4ac   : > { %22713 = vst [vmem:[#allocation26_spill] sm:$0xff] %v17332_v6  ;;  %v6905_v0 = vcombine.high %v17332_v6, %v17301_v21  ;;  %v6906_v47 = vcombine.high %v17304_v50, %v17310_v57  ;;  %v22718_v53 = vcombine.low %v22716_v55, %v22717_v8  ;;  %6558 = vrot.lane.b32.xlu1 %v6218_v40, %s14678_s17  ;;  %v22721_v57 = vld [vmem:[#allocation45_spill] sm:$0xff]  ;;  %v17376_v55 = vpop.permute.xlu1 %6522  ;;  %v17386_v16 = vpop.permute.xlu0 %6367 }
 0x4ad   : > { %v7596_v45 = vrot.slane %v7582_v35, %v15049_v14  ;;  %v6251_v61 = vcombine.low %v6229_v22, %v17316_v29  ;;  %v6252_v18 = vcombine.low %v17319_v27, %v17322_v59  ;;  %v6275_v19 = vrot.slane %v14309_v34, %v15049_v14  ;;  %22723 = vst [vmem:[#allocation45_spill] sm:$0xff] %v17386_v16 }
 0x4ae   : > { %v4129_v13 = vrot.slane %v22718_v53, %v15049_v14  ;;  %v17365_v6 = vrot.slane %v6905_v0, %v15049_v14  ;;  %v17368_v50 = vrot.slane %v6906_v47, %v15049_v14  ;;  %v3620_v8 = vcombine.high %v22721_v57, %v22721_v57  ;;  %6556 = vrot.lane.b32.xlu0 %v6203_v10, %s14678_s17  ;;  %v22722_v0 = vld [vmem:[#allocation49_spill] sm:$0xff] }
 0x4af   : > { %v4119_v40 = vcombine.high %v17327_v17, %v17327_v17  ;;  %v7589_v35 = vrot.slane %v7581_v58, %v15049_v14  ;;  %v7605_v34 = vrot.slane %v7598_v63, %v15049_v14  ;;  %v4578_v53 = vcombine.low %v22722_v0, %v22703_v48 }
 0x4b0   : > { %22719 = vst [vmem:[#allocation40_spill] sm:$0xff] %v17365_v6  ;;  %22720 = vst [vmem:[#allocation41_spill] sm:$0xff] %v17368_v50  ;;  %v6285_v47 = vcombine.low %v4120_v60, %v17327_v17  ;;  %v4579_v32 = vcombine.low %v22721_v57, %v3618_v46  ;;  %v4580_v49 = vcombine.low %v3620_v8, %v22712_v42  ;;  %v17402_v42 = vpop.permute.xlu1 %7674 }
 0x4b1   : > { %v7597_v10 = vcombine.low %v7589_v35, %v7596_v45  ;;  %7714 = vrot.lane.b32.xlu1 %v7605_v34, %s14677_s15  ;;  %v6259_v58 = vrot.slane %v6251_v61, %v15049_v14  ;;  %v6266_v63 = vrot.slane %v6252_v18, %v15049_v14  ;;  %v4581_v48 = vcombine.low %v22724_v43, %v3619_v37  ;;  %v17417_v35 = vpop.permute.xlu0 %6520 }
 0x4b2   : > { %v4121_v60 = vcombine.high %v17346_v41, %v17346_v41  ;;  %v17395_v0 = vrot.slane %v4129_v13, %v15049_v14  ;;  %v6282_v46 = vrot.slane %v6275_v19, %v15049_v14  ;;  %v17399_v57 = vrot.slane %v4579_v32, %v15049_v14  ;;  %22725 = vst [vmem:[#allocation49_spill] sm:$0xff] %v17402_v42 }
 0x4b3   : > { %7712 = vrot.lane.b32.xlu0 %v7597_v10, %s14677_s15  ;;  %v6284_v45 = vcombine.low %v17296_v36, %v4118_v33  ;;  %v6286_v18 = vcombine.low %v17346_v41, %v4119_v40  ;;  %v17407_v37 = vrot.slane %v4578_v53, %v15049_v14  ;;  %v17410_v61 = vrot.slane %v4580_v49, %v15049_v14 }
 0x4b4   : > { %v6283_v13 = vcombine.low %v17293_v54, %v17293_v54  ;;  %v7606_v32 = vcombine.high %v6229_v22, %v17316_v29  ;;  %v7607_v8 = vcombine.high %v17319_v27, %v17322_v59  ;;  %v6267_v34 = vcombine.low %v6259_v58, %v6266_v63  ;;  %v17428_v29 = vpop.permute.xlu1 %7678 }
 0x4b5   : > { %6409 = vrot.lane.b32.xlu1 %v6282_v46, %s14677_s15  ;;  %v6307_v33 = vrot.slane %v6285_v47, %v15049_v14  ;;  %v17422_v40 = vrot.slane %v4581_v48, %v15049_v14  ;;  %v6930_v49 = vcombine.high %v17407_v37, %v17399_v57  ;;  %v6332_v53 = vcombine.low %v4121_v60, %v17395_v0  ;;  %v17436_v63 = vpop.permute.xlu0 %7676 }
 0x4b6   : > { %22726 = vst [vmem:[#allocation46_spill] sm:$0xff] %v17428_v29  ;;  %v7623_v27 = vcombine.high %v6275_v19, %v6275_v19  ;;  %v6300_v59 = vrot.slane %v6284_v45, %v15049_v14  ;;  %v6314_v22 = vrot.slane %v6286_v18, %v15049_v14  ;;  %v7614_v10 = vrot.slane %v7606_v32, %v15049_v14  ;;  %v22730_v18 = vld [vmem:[#allocation50_spill] sm:$0xff] }
 0x4b7   : > { %6407 = vrot.lane.b32.xlu0 %v6267_v34, %s14677_s15  ;;  %v6931_v47 = vcombine.high %v17410_v61, %v17422_v40  ;;  %v7621_v58 = vrot.slane %v7607_v8, %v15049_v14  ;;  %22727 = vst [vmem:[#allocation116_spill] sm:$0xff] %v17436_v63  ;;  %v6293_v48 = vrot.slane %v6283_v13, %v15049_v14 }
 0x4b8   : > { %v6316_v60 = vcombine.low %v6307_v33, %v6314_v22  ;;  %v17441_v19 = vrot.slane %v6930_v49, %v15049_v14  ;;  %v4641_v21 = vcombine.low %v22730_v18, %v16429_v38  ;;  %v14276_v32 = vcombine.high %v22730_v18, %v16429_v38 }
 0x4b9   : > { %6562 = vrot.lane.b32.xlu1 %v6282_v46, %s14678_s17  ;;  %v17444_v45 = vrot.slane %v6931_v47, %v15049_v14  ;;  %v6339_v8 = vrot.slane %v6332_v53, %v15049_v14  ;;  %v17452_v46 = vpop.permute.xlu1 %6373  ;;  %v7630_v13 = vrot.slane %v7623_v27, %v15049_v14  ;;  %v6315_v29 = vcombine.low %v6293_v48, %v6300_v59  ;;  %v22732_v47 = vld [vmem:[#allocation51_spill] sm:$0xff]  ;;  %v17461_v42 = vpop.permute.xlu0 %6371 }
 0x4ba   : > { %22728 = vst [vmem:[#allocation117_spill] sm:$0xff] %v17441_v19  ;;  %22731 = vst [vmem:[#allocation50_spill] sm:$0xff] %v17452_v46  ;;  %v4643_v50 = vcombine.low %v22732_v47, %v16473_v39  ;;  %v14277_v6 = vcombine.high %v22732_v47, %v16473_v39  ;;  %v7622_v38 = vcombine.low %v7614_v10, %v7621_v58 }
 0x4bb   : > { %22729 = vst [vmem:[#allocation118_spill] sm:$0xff] %v17444_v45  ;;  %6560 = vrot.lane.b32.xlu0 %v6267_v34, %s14678_s17  ;;  %22733 = vst [vmem:[#allocation51_spill] sm:$0xff] %v17461_v42  ;;  %v6330_v34 = vrot.slane %v6316_v60, %v15049_v14  ;;  %v17466_v53 = vrot.slane %v4641_v21, %v15049_v14  ;;  %v17469_v27 = vrot.slane %v14276_v32, %v15049_v14  ;;  %v22800_v42 = vld [vmem:[#allocation109_spill] sm:$0xff] }
 0x4bc   : > { %v17472_v18 = vrot.slane %v4643_v50, %v15049_v14  ;;  %v6323_v39 = vrot.slane %v6315_v29, %v15049_v14  ;;  %v6346_v10 = vrot.slane %v6339_v8, %v15049_v14  ;;  %v17480_v58 = vrot.slane %v14277_v6, %v15049_v14 }
 0x4bd   : > { %7718 = vrot.lane.b32.xlu1 %v7630_v13, %s14677_s15  ;;  %v17476_v47 = vpop.permute.xlu1 %6526  ;;  %v6955_v21 = vcombine.high %v17466_v53, %v17469_v27  ;;  %v17484_v60 = vpop.permute.xlu0 %6524  ;;  %v7632_v50 = vcombine.high %v6307_v33, %v6314_v22  ;;  %v3718_v13 = vcombine.high %v16492_v62, %v16492_v62  ;;  %v3719_v29 = vcombine.high %v16495_v24, %v16495_v24  ;;  %v22737_v22 = vld [vmem:[#allocation53_spill] sm:$0xff] }
 0x4be   : > { %v6331_v32 = vcombine.low %v6323_v39, %v6330_v34  ;;  %v7631_v34 = vcombine.high %v6293_v48, %v6300_v59  ;;  %v7648_v39 = vcombine.high %v6339_v8, %v6339_v8  ;;  %v3721_v46 = vcombine.high %v22737_v22, %v22737_v22 }
 0x4bf   : > { %7716 = vrot.lane.b32.xlu0 %v7622_v38, %s14677_s15  ;;  %v6956_v38 = vcombine.high %v17472_v18, %v17480_v58  ;;  %v17494_v6 = vrot.slane %v6955_v21, %v15049_v14  ;;  %v3720_v45 = vcombine.high %v16478_v5, %v16478_v5  ;;  %v7646_v21 = vrot.slane %v7632_v50, %v15049_v14 }
 0x4c0   : > { %v4706_v59 = vcombine.low %v22737_v22, %v3719_v29  ;;  %v4704_v48 = vcombine.low %v16478_v5, %v3718_v13  ;;  %v7639_v8 = vrot.slane %v7631_v34, %v15049_v14  ;;  %v7655_v63 = vrot.slane %v7648_v39, %v15049_v14 }
 0x4c1   : > { %6413 = vrot.lane.b32.xlu1 %v6346_v10, %s14677_s15  ;;  %22734 = vst [vmem:[#allocation119_spill] sm:$0xff] %v17494_v6  ;;  %v17497_v49 = vpop.permute.xlu1 %7682  ;;  %v17500_v33 = vrot.slane %v6956_v38, %v15049_v14  ;;  %v17506_v19 = vpop.permute.xlu0 %7680  ;;  %v17523_v50 = vcombine.high %v16664_v26, %v16667_v51  ;;  %v4770_v34 = vcombine.low %v16614_v2, %v16723_v28  ;;  %v6586_v39 = vsel %vm561_vm2, 0.0, %v16690_v7  ;;  %v22753_v2 = vld [vmem:[#allocation69_spill] sm:$0xff]  ;;  %v22755_v6 = vld [vmem:[#allocation64_spill] sm:$0xff] }
 0x4c2   : > { %22735 = vst [vmem:[#allocation120_spill] sm:$0xff] %v17497_v49  ;;  %22738 = vst [vmem:[#allocation53_spill] sm:$0xff] %v17506_v19  ;;  %v4705_v19 = vcombine.low %v3720_v45, %v16495_v24  ;;  %v7647_v29 = vcombine.low %v7639_v8, %v7646_v21  ;;  %v17529_v5 = vrot.slane %v4704_v48, %v15049_v14  ;;  %v22746_v48 = vld [vmem:[#allocation54_spill] sm:$0xff] }
 0x4c3   : > { %6411 = vrot.lane.b32.xlu0 %v6331_v32, %s14677_s15  ;;  %22736 = vst [vmem:[#allocation121_spill] sm:$0xff] %v17500_v33  ;;  %22740 = vst [vmem:[#allocation123_spill] sm:$0xff] %v17523_v50  ;;  %v17535_v13 = vrot.slane %v4706_v59, %v15049_v14  ;;  %v14278_v59 = vcombine.high %v16533_v31, %v16574_v20  ;;  %v4768_v8 = vcombine.low %v22746_v48, %v16599_v56 }
 0x4c5   : > { %6566 = vrot.lane.b32.xlu1 %v6346_v10, %s14678_s17  ;;  %v17516_v38 = vpop.permute.xlu1 %6377  ;;  %v4707_v10 = vcombine.low %v3721_v46, %v16533_v31  ;;  %v17525_v49 = vpop.permute.xlu0 %6375  ;;  %v17577_v28 = vrot.slane %v14278_v59, %v15049_v14  ;;  %v6587_v31 = vsel %vm561_vm2, 0.0, %v16873_v44 }
 0x4c6   : > { %22739 = vst [vmem:[#allocation122_spill] sm:$0xff] %v17516_v38  ;;  %22741 = vst [vmem:[#allocation124_spill] sm:$0xff] %v17525_v49 }
 0x4c7   : > { %6564 = vrot.lane.b32.xlu0 %v6331_v32, %s14678_s17  ;;  %v17532_v32 = vrot.slane %v4705_v19, %v15049_v14  ;;  %v17538_v24 = vrot.slane %v4707_v10, %v15049_v14  ;;  %v22742_v19 = vld [vmem:[#allocation60_spill] sm:$0xff]  ;;  %v14279_v10 = vcombine.high %v22746_v48, %v16599_v56  ;;  %v6588_v48 = vsel %vm561_vm2, 0.0, %v17131_v4 }
 0x4c9   : > { %7722 = vrot.lane.b32.xlu1 %v7655_v63, %s14677_s15  ;;  %v17541_v26 = vpop.permute.xlu1 %6530  ;;  %v6980_v51 = vcombine.high %v17529_v5, %v17532_v32  ;;  %v6981_v63 = vcombine.high %v17535_v13, %v17538_v24  ;;  %v17547_v45 = vpop.permute.xlu0 %6528 }
 0x4cb   : > { %7720 = vrot.lane.b32.xlu0 %v7647_v29, %s14677_s15  ;;  %v17552_v46 = vrot.slane %v6980_v51, %v15049_v14  ;;  %v17559_v22 = vrot.slane %v6981_v63, %v15049_v14  ;;  %v17580_v29 = vrot.slane %v4768_v8, %v15049_v14  ;;  %v17585_v51 = vrot.slane %v4770_v34, %v15049_v14  ;;  %v22750_v34 = vld [vmem:[#allocation76_spill] sm:$0xff] }
 0x4cc   : > { %v17591_v63 = vrot.slane %v14279_v10, %v15049_v14  ;;  %v3868_v59 = vcombine.high %v22750_v34, %v22750_v34 }
 0x4cd   : > { %6621 = vrot.lane.b32.xlu1 %v22742_v19, %s14676_s23  ;;  %22743 = vst [vmem:[#allocation60_spill] sm:$0xff] %v17552_v46  ;;  %22744 = vst [vmem:[#allocation125_spill] sm:$0xff] %v17559_v22  ;;  %v17562_v21 = vpop.permute.xlu1 %7686  ;;  %v17572_v7 = vpop.permute.xlu0 %7684  ;;  %v3819_v19 = vcombine.high %v16797_v23, %v16797_v23  ;;  %v22754_v22 = vld [vmem:[#allocation77_spill] sm:$0xff] }
 0x4ce   : > { %22745 = vst [vmem:[#allocation126_spill] sm:$0xff] %v17562_v21  ;;  %22747 = vst [vmem:[#allocation54_spill] sm:$0xff] %v17572_v7  ;;  %v7006_v44 = vcombine.high %v17591_v63, %v17585_v51  ;;  %v4830_v46 = vcombine.low %v22754_v22, %v16797_v23  ;;  %v17621_v21 = vrot.slane %v22755_v6, 7  ;;  %v22798_v7 = vld [vmem:[#allocation108_spill] sm:$0xff] }
 0x4cf   : > { %6623 = vrot.lane.b32.xlu0 %v6586_v39, %s14676_s23 }
 0x4d0   : > { %22756 = vst [vmem:[#allocation69_spill] sm:$0xff] %v17621_v21 }
 0x4d1   : > { %6625 = vrot.lane.b32.xlu1 %v16805_v52, %s14676_s23  ;;  %v17588_v56 = vpop.permute.xlu1 %6381  ;;  %v7005_v52 = vcombine.high %v17577_v28, %v17580_v29  ;;  %v17597_v39 = vpop.permute.xlu0 %6379 }
 0x4d2   : > { %22748 = vst [vmem:[#allocation127_spill] sm:$0xff] %v17588_v56  ;;  %22749 = vst [vmem:[#allocation128_spill] sm:$0xff] %v17597_v39  ;;  %v22757_v56 = vld [vmem:[#allocation73_spill] sm:$0xff]  ;;  %v4070_v39 = vcombine.high %v22798_v7, %v22798_v7 }
 0x4d3   : > { %6627 = vrot.lane.b32.xlu0 %v6587_v31, %s14676_s23  ;;  %v17609_v10 = vrot.slane %v7005_v52, %v15049_v14  ;;  %v17612_v31 = vrot.slane %v7006_v44, %v15049_v14  ;;  %v4831_v52 = vcombine.low %v22753_v2, %v3819_v19  ;;  %v4833_v23 = vcombine.low %v22757_v56, %v3868_v59 }
 0x4d5   : > { %6629 = vrot.lane.b32.xlu1 %v16975_v1, %s14676_s23  ;;  %v6535_v8 = vpop.permute.xlu1 %6534  ;;  %22751 = vst [vmem:[#allocation76_spill] sm:$0xff] %v17609_v10  ;;  %22752 = vst [vmem:[#allocation129_spill] sm:$0xff] %v17612_v31  ;;  %v3821_v1 = vcombine.high %v22753_v2, %v22753_v2  ;;  %v17618_v33 = vpop.permute.xlu0 %6532  ;;  %v17638_v38 = vrot.slane %v4831_v52, %v15049_v14  ;;  %v17644_v2 = vrot.slane %v4833_v23, %v15049_v14 }
 0x4d6   : > { %v22285_v23 = vrot.slane %v17523_v50, 7  ;;  %v6589_v10 = vsel %vm561_vm2, 0.0, %v17278_v30 }
 0x4d7   : > { %6631 = vrot.lane.b32.xlu0 %v6588_v48, %s14676_s23  ;;  %v4832_v44 = vcombine.low %v3821_v1, %v22750_v34  ;;  %v17630_v48 = vrot.slane %v4830_v46, %v15049_v14  ;;  %v22761_v1 = vld [vmem:[#allocation78_spill] sm:$0xff] }
 0x4d8   : > { %v4893_v52 = vcombine.low %v16800_v25, %v22761_v1 }
 0x4d9   : > { %6633 = vrot.lane.b32.xlu1 %v17140_v12, %s14676_s23  ;;  %v17635_v22 = vpop.permute.xlu1 %7690  ;;  %v17641_v12 = vrot.slane %v4832_v44, %v15049_v14  ;;  %v17646_v19 = vpop.permute.xlu0 %7688  ;;  %v7030_v46 = vcombine.high %v17630_v48, %v17638_v38 }
 0x4da   : > { %22758 = vst [vmem:[#allocation77_spill] sm:$0xff] %v17635_v22  ;;  %22759 = vst [vmem:[#allocation73_spill] sm:$0xff] %v17646_v19  ;;  %v17679_v22 = vrot.slane %v4893_v52, %v15049_v14 }
 0x4db   : > { %12005 = vrot.lane.b32.xlu0 %v17621_v21, %s14677_s15  ;;  %v7031_v34 = vcombine.high %v17641_v12, %v17644_v2 }
 0x4dd   : > { %6637 = vrot.lane.b32.xlu1 %v17281_v15, %s14676_s23  ;;  %v17656_v59 = vpop.permute.xlu1 %6385  ;;  %v17660_v44 = vpop.permute.xlu0 %6383  ;;  %v17666_v15 = vrot.slane %v7030_v46, %v15049_v14  ;;  %v17669_v4 = vrot.slane %v7031_v34, %v15049_v14  ;;  %v22766_v46 = vld [vmem:[#allocation80_spill] sm:$0xff] }
 0x4de   : > { %22760 = vst [vmem:[#allocation130_spill] sm:$0xff] %v17656_v59  ;;  %22762 = vst [vmem:[#allocation78_spill] sm:$0xff] %v17660_v44 }
 0x4df   : > { %12320 = vrot.lane.b32.xlu0 %v17621_v21, %s14678_s17  ;;  %22763 = vst [vmem:[#allocation131_spill] sm:$0xff] %v17666_v15  ;;  %22764 = vst [vmem:[#allocation132_spill] sm:$0xff] %v17669_v4  ;;  %v14280_v21 = vcombine.high %v16800_v25, %v22761_v1 }
 0x4e1   : > { %6641 = vrot.lane.b32.xlu1 %v17376_v55, %s14676_s23  ;;  %v6539_v31 = vpop.permute.xlu1 %6538  ;;  %v22765_v55 = vld [vmem:[#allocation24_spill] sm:$0xff]  ;;  %v6537_v19 = vpop.permute.xlu0 %6536 }
 0x4e2   : > { %v4895_v59 = vcombine.low %v22766_v46, %v22765_v55  ;;  %v14281_v34 = vcombine.high %v22766_v46, %v22765_v55 }
 0x4e3   : > { %13125 = vrot.lane.b32.xlu0 %v22285_v23, %s14677_s15  ;;  %v17688_v23 = vrot.slane %v14280_v21, %v15049_v14  ;;  %v3919_v21 = vcombine.high %v16890_v3, %v16890_v3 }
 0x4e4   : > { %v17693_v25 = vrot.slane %v4895_v59, %v15049_v14  ;;  %v17696_v1 = vrot.slane %v14281_v34, %v15049_v14  ;;  %v3968_v59 = vcombine.high %v17036_v11, %v17036_v11 }
 0x4e5   : > { %6645 = vrot.lane.b32.xlu1 %v17476_v47, %s14676_s23  ;;  %v17699_v52 = vpop.permute.xlu1 %7694  ;;  %v7055_v55 = vcombine.high %v17679_v22, %v17688_v23  ;;  %v17707_v30 = vpop.permute.xlu0 %7692 }
 0x4e6   : > { %22767 = vst [vmem:[#allocation24_spill] sm:$0xff] %v17699_v52  ;;  %v7056_v47 = vcombine.high %v17693_v25, %v17696_v1  ;;  %22768 = vst [vmem:[#allocation80_spill] sm:$0xff] %v17707_v30  ;;  %v22785_v52 = vld [vmem:[#allocation99_spill] sm:$0xff] }
 0x4e7   : > { %6635 = vrot.lane.b32.xlu0 %v6589_v10, %s14676_s23  ;;  %v6590_v10 = vsel %vm561_vm2, 0.0, %v17417_v35  ;;  %v17716_v46 = vrot.slane %v7055_v55, %v15049_v14  ;;  %v4956_v35 = vcombine.low %v16928_v9, %v3919_v21  ;;  %v22773_v55 = vld [vmem:[#allocation89_spill] sm:$0xff]  ;;  %v6592_v21 = vsel %vm561_vm2, 0.0, %v17547_v45 }
 0x4e8   : > { %v17719_v34 = vrot.slane %v7056_v47, %v15049_v14  ;;  %v3970_v47 = vcombine.high %v22773_v55, %v22773_v55  ;;  %v4958_v30 = vcombine.low %v22773_v55, %v3968_v59  ;;  %v22780_v55 = vld [vmem:[#allocation100_spill] sm:$0xff] }
 0x4e9   : > { %6649 = vrot.lane.b32.xlu1 %v17541_v26, %s14676_s23  ;;  %22769 = vst [vmem:[#allocation133_spill] sm:$0xff] %v17716_v46  ;;  %v17722_v4 = vpop.permute.xlu1 %6389  ;;  %v3921_v26 = vcombine.high %v16928_v9, %v16928_v9  ;;  %v17728_v50 = vpop.permute.xlu0 %6387 }
 0x4ea   : > { %22770 = vst [vmem:[#allocation134_spill] sm:$0xff] %v17719_v34  ;;  %22771 = vst [vmem:[#allocation135_spill] sm:$0xff] %v17722_v4  ;;  %v22774_v34 = vld [vmem:[#allocation92_spill] sm:$0xff] }
 0x4eb   : > { %6639 = vrot.lane.b32.xlu0 %v6590_v10, %s14676_s23  ;;  %22772 = vst [vmem:[#allocation136_spill] sm:$0xff] %v17728_v50  ;;  %v6591_v10 = vsel %vm561_vm2, 0.0, %v17484_v60  ;;  %v4957_v4 = vcombine.low %v3921_v26, %v17036_v11  ;;  %v4959_v46 = vcombine.low %v3970_v47, %v22774_v34  ;;  %v17741_v50 = vrot.slane %v4956_v35, %v15049_v14  ;;  %v22779_v35 = vld [vmem:[#allocation102_spill] sm:$0xff] }
 0x4ec   : > { %v17748_v60 = vrot.slane %v4958_v30, %v15049_v14 }
 0x4ed   : > { %6653 = vrot.lane.b32.xlu1 %v6535_v8, %s14676_s23  ;;  %v6543_v15 = vpop.permute.xlu1 %6542  ;;  %22775 = vst [vmem:[#allocation89_spill] sm:$0xff] %v17741_v50  ;;  %v17744_v9 = vrot.slane %v4957_v4, %v15049_v14  ;;  %v6541_v8 = vpop.permute.xlu0 %6540  ;;  %v17751_v11 = vrot.slane %v4959_v46, %v15049_v14  ;;  %v5022_v46 = vcombine.low %v22780_v55, %v22779_v35 }
 0x4ef   : > { %6643 = vrot.lane.b32.xlu0 %v6591_v10, %s14676_s23  ;;  %22776 = vst [vmem:[#allocation92_spill] sm:$0xff] %v17744_v9  ;;  %v7080_v59 = vcombine.high %v17741_v50, %v17744_v9  ;;  %v7081_v4 = vcombine.high %v17748_v60, %v17751_v11  ;;  %v6593_v10 = vsel %vm561_vm2, 0.0, %v17618_v33 }
 0x4f1   : > { %6657 = vrot.lane.b32.xlu1 %v6539_v31, %s14676_s23  ;;  %v17758_v26 = vpop.permute.xlu1 %7698  ;;  %v22778_v31 = vld [vmem:[#allocation93_spill] sm:$0xff]  ;;  %v17766_v47 = vpop.permute.xlu0 %7696  ;;  %v17770_v45 = vrot.slane %v7081_v4, %v15049_v14 }
 0x4f2   : > { %22777 = vst [vmem:[#allocation137_spill] sm:$0xff] %v17758_v26  ;;  %v14282_v30 = vcombine.high %v22774_v34, %v22778_v31  ;;  %22781 = vst [vmem:[#allocation93_spill] sm:$0xff] %v17766_v47  ;;  %v22784_v26 = vld [vmem:[#allocation97_spill] sm:$0xff] }
 0x4f3   : > { %6647 = vrot.lane.b32.xlu0 %v6592_v21, %s14676_s23  ;;  %22782 = vst [vmem:[#allocation102_spill] sm:$0xff] %v17770_v45  ;;  %v17775_v21 = vrot.slane %v7080_v59, %v15049_v14  ;;  %v5020_v44 = vcombine.low %v22785_v52, %v22784_v26  ;;  %v14283_v34 = vcombine.high %v22785_v52, %v22784_v26  ;;  %v6594_v26 = vsel %vm561_vm2, 0.0, %v6537_v19  ;;  %v22794_v45 = vld [vmem:[#allocation112_spill] sm:$0xff] }
 0x4f4   : > { %v17787_v4 = vrot.slane %v14282_v30, %v15049_v14  ;;  %v17798_v52 = vrot.slane %v5022_v46, %v15049_v14  ;;  %v4069_v19 = vcombine.high %v22794_v45, %v22794_v45 }
 0x4f5   : > { %6661 = vrot.lane.b32.xlu1 %v6543_v15, %s14676_s23  ;;  %22783 = vst [vmem:[#allocation100_spill] sm:$0xff] %v17775_v21  ;;  %v17782_v35 = vpop.permute.xlu1 %6393  ;;  %v17790_v33 = vrot.slane %v5020_v44, %v15049_v14  ;;  %v17793_v59 = vrot.slane %v14283_v34, %v15049_v14  ;;  %v17795_v55 = vpop.permute.xlu0 %6391  ;;  %v22793_v15 = vld [vmem:[#allocation111_spill] sm:$0xff] }
 0x4f6   : > { %22786 = vst [vmem:[#allocation97_spill] sm:$0xff] %v17782_v35  ;;  %22787 = vst [vmem:[#allocation99_spill] sm:$0xff] %v17787_v4  ;;  %v4068_v46 = vcombine.high %v22793_v15, %v22793_v15 }
 0x4f7   : > { %6651 = vrot.lane.b32.xlu0 %v6593_v10, %s14676_s23  ;;  %22788 = vst [vmem:[#allocation138_spill] sm:$0xff] %v17790_v33  ;;  %22789 = vst [vmem:[#allocation139_spill] sm:$0xff] %v17793_v59  ;;  %v7105_v10 = vcombine.high %v17787_v4, %v17790_v33  ;;  %v7106_v44 = vcombine.high %v17793_v59, %v17798_v52  ;;  %v22847_v4 = vld [vmem:[#allocation83_spill] sm:$0xff] }
 0x4f8   : > { %22790 = vst [vmem:[#allocation140_spill] sm:$0xff] %v17795_v55  ;;  %22791 = vst [vmem:[#allocation141_spill] sm:$0xff] %v17798_v52  ;;  %v5083_v16 = vcombine.low %v22798_v7, %v4068_v46  ;;  %v5147_v46 = vcombine.low %v17327_v17, %v17346_v41  ;;  %v22846_v52 = vld [vmem:[#allocation85_spill] sm:$0xff] }
 0x4f9   : > { %v6547_v30 = vpop.permute.xlu1 %6546  ;;  %v17808_v34 = vrot.slane %v7105_v10, %v15049_v14  ;;  %v6545_v21 = vpop.permute.xlu0 %6544  ;;  %v17815_v35 = vrot.slane %v7106_v44, %v15049_v14  ;;  %v5085_v44 = vcombine.low %v22800_v42, %v4069_v19  ;;  %v22845_v42 = vld [vmem:[#allocation81_spill] sm:$0xff] }
 0x4fa   : > { %6665 = vrot.lane.b32.xlu1 %v6547_v30, %s14676_s23  ;;  %v22797_v30 = vld [vmem:[#allocation47_spill] sm:$0xff] }
 0x4fb   : > { %6655 = vrot.lane.b32.xlu0 %v6594_v26, %s14676_s23  ;;  %22792 = vst [vmem:[#allocation142_spill] sm:$0xff] %v17808_v34  ;;  %22795 = vst [vmem:[#allocation111_spill] sm:$0xff] %v17815_v35  ;;  %v6595_v26 = vsel %vm561_vm2, 0.0, %v6541_v8  ;;  %v5082_v55 = vcombine.low %v22797_v30, %v22793_v15  ;;  %v5084_v8 = vcombine.low %v4070_v39, %v22794_v45 }
 0x4fc   : > { %v17840_v15 = vrot.slane %v5083_v16, %v15049_v14  ;;  %v17848_v7 = vrot.slane %v5085_v44, %v15049_v14  ;;  %v5145_v45 = vcombine.low %v17293_v54, %v17296_v36  ;;  %v14285_v35 = vcombine.high %v17327_v17, %v17346_v41 }
 0x4fd   : > { %v17819_v47 = vpop.permute.xlu1 %7702  ;;  %v17827_v49 = vpop.permute.xlu0 %7700  ;;  %v17837_v10 = vrot.slane %v5082_v55, %v15049_v14  ;;  %v17843_v30 = vrot.slane %v5084_v8, %v15049_v14 }
 0x4fe   : > { %22796 = vst [vmem:[#allocation112_spill] sm:$0xff] %v17819_v47  ;;  %22799 = vst [vmem:[#allocation47_spill] sm:$0xff] %v17827_v49  ;;  %v17885_v41 = vrot.slane %v14285_v35, %v15049_v14  ;;  %v22830_v49 = vld [vmem:[#allocation56_spill] sm:$0xff] }
 0x4ff   : > { %6659 = vrot.lane.b32.xlu0 %v6595_v26, %s14676_s23  ;;  %v6596_v26 = vsel %vm561_vm2, 0.0, %v6545_v21  ;;  %22802 = vst [vmem:[#allocation143_spill] sm:$0xff] %v17837_v10  ;;  %22803 = vst [vmem:[#allocation144_spill] sm:$0xff] %v17840_v15  ;;  %v7130_v39 = vcombine.high %v17837_v10, %v17840_v15  ;;  %v14284_v21 = vcombine.high %v17293_v54, %v17296_v36  ;;  %v22842_v10 = vld [vmem:[#allocation25_spill] sm:$0xff] }
 0x500   : > { %22804 = vst [vmem:[#allocation145_spill] sm:$0xff] %v17843_v30  ;;  %22806 = vst [vmem:[#allocation147_spill] sm:$0xff] %v17848_v7  ;;  %v7131_v16 = vcombine.high %v17843_v30, %v17848_v7  ;;  %v17870_v54 = vrot.slane %v5145_v45, %v15049_v14  ;;  %v22844_v30 = vld [vmem:[#allocation88_spill] sm:$0xff] }
 0x501   : > { %v17834_v47 = vpop.permute.xlu1 %6397  ;;  %v17845_v19 = vpop.permute.xlu0 %6395  ;;  %v17862_v8 = vrot.slane %v7130_v39, %v15049_v14  ;;  %v17874_v34 = vrot.slane %v14284_v21, %v15049_v14  ;;  %22813 = vst [vmem:[#allocation154_spill] sm:$0xff] %v17885_v41 }
 0x502   : > { %22801 = vst [vmem:[#allocation108_spill] sm:$0xff] %v17834_v47  ;;  %22805 = vst [vmem:[#allocation146_spill] sm:$0xff] %v17845_v19  ;;  %v22831_v19 = vld [vmem:[#allocation57_spill] sm:$0xff] }
 0x503   : > { %6663 = vrot.lane.b32.xlu0 %v6596_v26, %s14676_s23  ;;  %22807 = vst [vmem:[#allocation148_spill] sm:$0xff] %v17862_v8  ;;  %v17865_v26 = vrot.slane %v7131_v16, %v15049_v14  ;;  %22809 = vst [vmem:[#allocation150_spill] sm:$0xff] %v17870_v54  ;;  %v17882_v16 = vrot.slane %v5147_v46, %v15049_v14  ;;  %v7155_v45 = vcombine.high %v17870_v54, %v17874_v34  ;;  %v22839_v54 = vld [vmem:[#allocation65_spill] sm:$0xff] }
 0x504   : > { %22810 = vst [vmem:[#allocation151_spill] sm:$0xff] %v17874_v34  ;;  %v22840_v34 = vld [vmem:[#allocation30_spill] sm:$0xff] }
 0x505   : > { %v6551_v55 = vpop.permute.xlu1 %6550  ;;  %v6549_v44 = vpop.permute.xlu0 %6548  ;;  %22808 = vst [vmem:[#allocation149_spill] sm:$0xff] %v17865_v26  ;;  %22812 = vst [vmem:[#allocation153_spill] sm:$0xff] %v17882_v16  ;;  %v7156_v21 = vcombine.high %v17882_v16, %v17885_v41  ;;  %v22832_v16 = vld [vmem:[#allocation58_spill] sm:$0xff] }
 0x506   : > { %6669 = vrot.lane.b32.xlu1 %v6551_v55, %s14676_s23  ;;  %v6597_v36 = vsel %vm561_vm2, 0.0, %v6549_v44 }
 0x507   : > { %6667 = vrot.lane.b32.xlu0 %v6597_v36, %s14676_s23  ;;  %v17895_v36 = vrot.slane %v7155_v45, %v15049_v14  ;;  %v17898_v46 = vrot.slane %v7156_v21, %v15049_v14 }
 0x509   : > { %v17877_v55 = vpop.permute.xlu1 %6401 }
 0x50a   : > { %22811 = vst [vmem:[#allocation152_spill] sm:$0xff] %v17877_v55  ;;  %v17887_v17 = vpop.permute.xlu0 %7704 }
 0x50b   : > { %22814 = vst [vmem:[#allocation155_spill] sm:$0xff] %v17887_v17 }
 0x50d   : > { %v6555_v44 = vpop.permute.xlu1 %6554 }
 0x50e   : > { %6673 = vrot.lane.b32.xlu1 %v6555_v44, %s14676_s23 }
 0x50f   : > { %v17900_v39 = vpop.permute.xlu0 %6399 }
 0x510   : > { %22815 = vst [vmem:[#allocation156_spill] sm:$0xff] %v17900_v39 }
 0x511   : > { %v17904_v26 = vpop.permute.xlu1 %7706 }
 0x512   : > { %22816 = vst [vmem:[#allocation157_spill] sm:$0xff] %v17904_v26 }
 0x513   : > { %v6553_v8 = vpop.permute.xlu0 %6552 }
 0x514   : > { %v6598_v55 = vsel %vm561_vm2, 0.0, %v6553_v8 }
 0x515   : > { %6671 = vrot.lane.b32.xlu0 %v6598_v55, %s14676_s23  ;;  %v17908_v17 = vpop.permute.xlu1 %7710 }
 0x516   : > { %22817 = vst [vmem:[#allocation158_spill] sm:$0xff] %v17908_v17 }
 0x518   : > { %v17910_v44 = vpop.permute.xlu0 %7708 }
 0x519   : > { %22818 = vst [vmem:[#allocation159_spill] sm:$0xff] %v17910_v44 }
 0x51a   : > { %v17912_v45 = vpop.permute.xlu1 %6405 }
 0x51b   : > { %22819 = vst [vmem:[#allocation160_spill] sm:$0xff] %v17912_v45 }
 0x51c   : > { %v17914_v21 = vpop.permute.xlu0 %6403 }
 0x51d   : > { %22820 = vst [vmem:[#allocation161_spill] sm:$0xff] %v17914_v21 }
 0x51e   : > { %v6559_v47 = vpop.permute.xlu1 %6558 }
 0x51f   : > { %6677 = vrot.lane.b32.xlu1 %v6559_v47, %s14676_s23 }
 0x520   : > { %v6557_v39 = vpop.permute.xlu0 %6556 }
 0x521   : > { %v6599_v35 = vsel %vm561_vm2, 0.0, %v6557_v39 }
 0x522   : > { %6675 = vrot.lane.b32.xlu0 %v6599_v35, %s14676_s23 }
 0x523   : > { %v17919_v26 = vpop.permute.xlu1 %7714 }
 0x524   : > { %22821 = vst [vmem:[#allocation162_spill] sm:$0xff] %v17919_v26 }
 0x525   : > { %v17921_v8 = vpop.permute.xlu0 %7712 }
 0x526   : > { %22822 = vst [vmem:[#allocation163_spill] sm:$0xff] %v17921_v8 }
 0x527   : > { %v17923_v55 = vpop.permute.xlu1 %6409 }
 0x528   : > { %22823 = vst [vmem:[#allocation164_spill] sm:$0xff] %v17923_v55  ;;  %v22829_v55 = vld [vmem:[#allocation55_spill] sm:$0xff] }
 0x529   : > { %v17925_v17 = vpop.permute.xlu0 %6407 }
 0x52a   : > { %22824 = vst [vmem:[#allocation165_spill] sm:$0xff] %v17925_v17  ;;  %v4232_v17 = vcombine.low %v22830_v49, %v22829_v55  ;;  %v22836_v55 = vld [vmem:[#allocation67_spill] sm:$0xff] }
 0x52b   : > { %v6563_v44 = vpop.permute.xlu1 %6562 }
 0x52c   : > { %6681 = vrot.lane.b32.xlu1 %v6563_v44, %s14676_s23  ;;  %v4233_v44 = vcombine.low %v22832_v16, %v22831_v19 }
 0x52d   : > { %v6561_v45 = vpop.permute.xlu0 %6560 }
 0x52e   : > { %v6600_v21 = vsel %vm561_vm2, 0.0, %v6561_v45  ;;  %v4247_v49 = vrot.slane %v4233_v44, %v15049_v14 }
 0x52f   : > { %6679 = vrot.lane.b32.xlu0 %v6600_v21, %s14676_s23  ;;  %v17930_v47 = vpop.permute.xlu1 %7718 }
 0x530   : > { %22825 = vst [vmem:[#allocation166_spill] sm:$0xff] %v17930_v47  ;;  %v22833_v47 = vld [vmem:[#allocation32_spill] sm:$0xff] }
 0x531   : > { %v17932_v39 = vpop.permute.xlu0 %7716  ;;  %v17946_v41 = vrot.slane %v22833_v47, %v15049_v14 }
 0x532   : > { %22826 = vst [vmem:[#allocation167_spill] sm:$0xff] %v17932_v39  ;;  %v4240_v39 = vrot.slane %v4232_v17, %v15049_v14  ;;  %v3420_v17 = vcombine.high %v22842_v10, %v22842_v10 }
 0x533   : > { %v17934_v35 = vpop.permute.xlu1 %6413  ;;  %22834 = vst [vmem:[#allocation55_spill] sm:$0xff] %v17946_v41  ;;  %v4262_v47 = vrot.slane %v17946_v41, %v15049_v14 }
 0x534   : > { %22827 = vst [vmem:[#allocation168_spill] sm:$0xff] %v17934_v35  ;;  %v17967_v44 = vcombine.low %v4240_v39, %v4247_v49 }
 0x535   : > { %v17936_v26 = vpop.permute.xlu0 %6411  ;;  %v17979_v39 = vsel %vm561_vm2, %v4262_v47, 0.0 }
 0x536   : > { %22828 = vst [vmem:[#allocation169_spill] sm:$0xff] %v17936_v26  ;;  %v22837_v26 = vld [vmem:[#allocation68_spill] sm:$0xff] }
 0x537   : > { %v6567_v8 = vpop.permute.xlu1 %6566  ;;  %v4296_v19 = vcombine.low %v22837_v26, %v22836_v55  ;;  %v22843_v55 = vld [vmem:[#allocation86_spill] sm:$0xff] }
 0x538   : > { %6685 = vrot.lane.b32.xlu1 %v6567_v8, %s14676_s23  ;;  %v22838_v8 = vld [vmem:[#allocation66_spill] sm:$0xff]  ;;  %v4359_v7 = vcombine.low %v22844_v30, %v22843_v55  ;;  %v17984_v30 = vrot.slane %v3420_v17, %v15049_v14 }
 0x539   : > { %v6565_v45 = vpop.permute.xlu0 %6564  ;;  %v4310_v26 = vrot.slane %v4296_v19, %v15049_v14 }
 0x53a   : > { %v6601_v21 = vsel %vm561_vm2, 0.0, %v6565_v45  ;;  %v4295_v45 = vcombine.low %v22839_v54, %v22838_v8  ;;  %22849 = vst [vmem:[#allocation58_spill] sm:$0xff] %v17984_v30  ;;  %v4373_v19 = vrot.slane %v4359_v7, %v15049_v14  ;;  %v4388_v7 = vrot.slane %v17984_v30, %v15049_v14  ;;  %v22862_v30 = vld [vmem:[#allocation22_spill] sm:$0xff] }
 0x53b   : > { %6683 = vrot.lane.b32.xlu0 %v6601_v21, %s14676_s23  ;;  %v17949_v35 = vpop.permute.xlu1 %7722  ;;  %v17963_v21 = vrot.slane %v22840_v34, %v15049_v14  ;;  %v4358_v34 = vcombine.low %v22847_v4, %v22846_v52 }
 0x53c   : > { %22835 = vst [vmem:[#allocation56_spill] sm:$0xff] %v17949_v35  ;;  %v4303_v59 = vrot.slane %v4295_v45, %v15049_v14  ;;  %v22848_v35 = vld [vmem:[#allocation17_spill] sm:$0xff]  ;;  %v22850_v45 = vld [vmem:[#allocation16_spill] sm:$0xff] }
 0x53d   : > { %v17955_v16 = vpop.permute.xlu0 %7720  ;;  %22841 = vst [vmem:[#allocation57_spill] sm:$0xff] %v17963_v21  ;;  %v4325_v49 = vrot.slane %v17963_v21, %v15049_v14  ;;  %v4366_v47 = vrot.slane %v4358_v34, %v15049_v14 }
 0x53f   : > { %v6622_v15 = vpop.permute.xlu1 %6621 }
 0x540   : > { %v6722_v54 = vadd.f32 %v6622_v15, %v22845_v42  ;;  %v17986_v15 = vcombine.low %v4303_v59, %v4310_v26 }
 0x541   : > { %v6624_v8 = vpop.permute.xlu0 %6623 }
 0x542   : > { %v6723_v33 = vadd.f32 %v6624_v8, %v17967_v44  ;;  %v7890_v10 = vadd.f32 %v22848_v35, %v6722_v54  ;;  %v22851_v54 = vld [vmem:[#allocation42_spill] sm:$0xff] }
 0x543   : > { %v6626_v42 = vpop.permute.xlu1 %6625  ;;  %v17995_v8 = vrot.slane %v22851_v54, %v15049_v14  ;;  %v18016_v54 = vsel %vm561_vm2, %v4388_v7, 0.0 }
 0x544   : > { %v7891_v4 = vadd.f32 %v22850_v45, %v6723_v33  ;;  %v6724_v52 = vadd.f32 %v6626_v42, %v17979_v39  ;;  %7959 = vrot.lane.b32.xlu1 %v7890_v10, %s14676_s23  ;;  %v18001_v33 = vsel %vm561_vm2, %v4325_v49, 0.0  ;;  %v18005_v10 = vcombine.low %v4366_v47, %v4373_v19  ;;  %22855 = vst [vmem:[#allocation66_spill] sm:$0xff] %v18016_v54  ;;  %v22856_v19 = vld [vmem:[#allocation43_spill] sm:$0xff] }
 0x545   : > { %v6628_v55 = vpop.permute.xlu0 %6627  ;;  %22852 = vst [vmem:[#allocation32_spill] sm:$0xff] %v17995_v8  ;;  %22853 = vst [vmem:[#allocation67_spill] sm:$0xff] %v18001_v33  ;;  %v18020_v47 = vrot.slane %v22856_v19, %v15049_v14 }
 0x546   : > { %v6725_v17 = vadd.f32 %v6628_v55, %v17986_v15  ;;  %7961 = vrot.lane.b32.xlu0 %v7891_v4, %s14676_s23  ;;  %v7892_v59 = vadd.f32 %v22848_v35, %v6724_v52  ;;  %22854 = vst [vmem:[#allocation68_spill] sm:$0xff] %v18005_v10  ;;  %v4451_v4 = vrot.slane %v17995_v8, %v15049_v14  ;;  %v22858_v8 = vld [vmem:[#allocation44_spill] sm:$0xff] }
 0x547   : > { %v6630_v26 = vpop.permute.xlu1 %6629  ;;  %22857 = vst [vmem:[#allocation65_spill] sm:$0xff] %v18020_v47  ;;  %v4514_v19 = vrot.slane %v18020_v47, %v15049_v14 }
 0x548   : > { %v7893_v34 = vadd.f32 %v22850_v45, %v6725_v17  ;;  %v6726_v42 = vadd.f32 %v6630_v26, %v18001_v33  ;;  %7963 = vrot.lane.b32.xlu1 %v7892_v59, %s14676_s23 }
 0x549   : > { %v6632_v55 = vpop.permute.xlu0 %6631  ;;  %v18057_v9 = vsel %vm561_vm2, %v4514_v19, 0.0 }
 0x54a   : > { %v6727_v52 = vadd.f32 %v6632_v55, %v18005_v10  ;;  %7965 = vrot.lane.b32.xlu0 %v7893_v34, %s14676_s23  ;;  %v7894_v49 = vadd.f32 %v22848_v35, %v6726_v42  ;;  %v18027_v34 = vsel %vm561_vm2, %v4451_v4, 0.0  ;;  %v22864_v10 = vld [vmem:[#allocation106_spill] sm:$0xff] }
 0x54b   : > { %v6634_v17 = vpop.permute.xlu1 %6633 }
 0x54c   : > { %v7895_v59 = vadd.f32 %v22850_v45, %v6727_v52  ;;  %v6728_v26 = vadd.f32 %v6634_v17, %v18016_v54  ;;  %7967 = vrot.lane.b32.xlu1 %v7894_v49, %s14676_s23  ;;  %v18036_v52 = vrot.slane %v22858_v8, %v15049_v14  ;;  %v3621_v49 = vcombine.high %v22724_v43, %v22724_v43  ;;  %v14461_v8 = vld [vmem:[#allocation10] sm:$0xff]  ;;  %v22861_v43 = vld [vmem:[#allocation37_spill] sm:$0xff] }
 0x54d   : > { %v12006_v55 = vpop.permute.xlu0 %12005 }
 0x54e   : > { %v12215_v42 = vsel %vm561_vm2, 0.0, %v12006_v55  ;;  %7969 = vrot.lane.b32.xlu0 %v7895_v59, %s14676_s23  ;;  %v7896_v7 = vadd.f32 %v22848_v35, %v6728_v26  ;;  %v22859_v59 = vld [vmem:[#allocation91_spill] sm:$0xff]  ;;  %v22860_v26 = vld [vmem:[#allocation90_spill] sm:$0xff] }
 0x54f   : > { %v12250_v17 = vadd.f32 %v12215_v42, %v22755_v6  ;;  %v6638_v4 = vpop.permute.xlu1 %6637  ;;  %v4422_v55 = vcombine.low %v22860_v26, %v22859_v59  ;;  %v4421_v42 = vcombine.low %v22862_v30, %v22861_v43  ;;  %v22863_v6 = vld [vmem:[#allocation101_spill] sm:$0xff] }
 0x550   : > { %v6730_v47 = vadd.f32 %v6638_v4, %v18027_v34  ;;  %7971 = vrot.lane.b32.xlu1 %v7896_v7, %s14676_s23  ;;  %v4485_v21 = vcombine.low %v22864_v10, %v22863_v6  ;;  %v4577_v4 = vrot.slane %v18036_v52, %v15049_v14  ;;  %v18062_v7 = vrot.slane %v3621_v49, %v15049_v14  ;;  %v22866_v10 = vld [vmem:[#allocation35_spill] sm:$0xff]  ;;  %v22869_v26 = vld [vmem:[#allocation113_spill] sm:$0xff] }
 0x551   : > { %v13512_v54 = vadd.f32 %v14461_v8, %v12250_v17  ;;  %v12321_v33 = vpop.permute.xlu0 %12320  ;;  %v4436_v6 = vrot.slane %v4422_v55, %v15049_v14  ;;  %v4429_v59 = vrot.slane %v4421_v42, %v15049_v14  ;;  %v22871_v42 = vld [vmem:[#allocation28_spill] sm:$0xff] }
 0x552   : > { %v12495_v41 = vsel %vm561_vm2, 0.0, %v12321_v33  ;;  %v7898_v50 = vadd.f32 %v22848_v35, %v6730_v47  ;;  %22865 = vst [vmem:[#allocation30_spill] sm:$0xff] %v18062_v7  ;;  %v22867_v33 = vld [vmem:[#allocation103_spill] sm:$0xff]  ;;  %v4499_v49 = vrot.slane %v4485_v21, %v15049_v14  ;;  %v18080_v55 = vsel %vm561_vm2, %v4577_v4, 0.0 }
 0x553   : > { %13942 = vst.msk [vmem:[%s18044_s13] sm:$0xff] %vm2906_vm3, %v13512_v54  ;;  %12565 = vrot.lane.b32.xlu0 %v12495_v41, %s14676_s23  ;;  %v6642_v30 = vpop.permute.xlu1 %6641  ;;  %v4484_v17 = vcombine.low %v22867_v33, %v22866_v10  ;;  %v22870_v41 = vld [vmem:[#allocation26_spill] sm:$0xff]  ;;  %v4640_v43 = vrot.slane %v18062_v7, %v15049_v14  ;;  %v18088_v10 = vcombine.low %v4429_v59, %v4436_v6 }
 0x554   : > { %v6732_v47 = vadd.f32 %v6642_v30, %v18057_v9  ;;  %7975 = vrot.lane.b32.xlu1 %v7898_v50, %s14676_s23  ;;  %v4547_v8 = vcombine.low %v22870_v41, %v22869_v26  ;;  %v18086_v50 = vrot.slane %v16492_v62, %v15049_v14  ;;  %v22872_v33 = vld [vmem:[#allocation114_spill] sm:$0xff]  ;;  %v18107_v59 = vrot.slane %v16574_v20, %v15049_v14 }
 0x555   : > { %v18072_v19 = vpop.permute.xlu0 %13125  ;;  %v4492_v21 = vrot.slane %v4484_v17, %v15049_v14  ;;  %v18101_v6 = vsel %vm561_vm2, %v4640_v43, 0.0  ;;  %v4610_v43 = vcombine.low %v17407_v37, %v17399_v57  ;;  %v4674_v20 = vcombine.low %v17472_v18, %v17480_v58  ;;  %v22873_v57 = vld [vmem:[#allocation70_spill] sm:$0xff] }
 0x556   : > { %22868 = vst [vmem:[#allocation25_spill] sm:$0xff] %v18072_v19  ;;  %v7900_v54 = vadd.f32 %v22848_v35, %v6732_v47  ;;  %v4548_v47 = vcombine.low %v22872_v33, %v22871_v42  ;;  %v4555_v7 = vrot.slane %v4547_v8, %v15049_v14  ;;  %v4703_v17 = vrot.slane %v18086_v50, %v15049_v14 }
 0x557   : > { %v6646_v30 = vpop.permute.xlu1 %6645  ;;  %v18095_v41 = vcombine.low %v4492_v21, %v4499_v49  ;;  %v4673_v42 = vcombine.low %v17466_v53, %v17469_v27  ;;  %v18131_v37 = vrot.slane %v22873_v57, %v15049_v14 }
 0x558   : > { %v6734_v26 = vadd.f32 %v6646_v30, %v18080_v55  ;;  %7979 = vrot.lane.b32.xlu1 %v7900_v54, %s14676_s23  ;;  %v4562_v49 = vrot.slane %v4548_v47, %v15049_v14  ;;  %v4611_v30 = vcombine.low %v17410_v61, %v17422_v40  ;;  %v18125_v40 = vsel %vm561_vm2, %v4703_v17, 0.0 }
 0x559   : > { %v6636_v4 = vpop.permute.xlu0 %6635  ;;  %v4681_v17 = vrot.slane %v4673_v42, %v15049_v14  ;;  %v4737_v42 = vcombine.low %v17535_v13, %v17538_v24 }
 0x55a   : > { %v6729_v19 = vadd.f32 %v6636_v4, %v18088_v10  ;;  %v7902_v62 = vadd.f32 %v22848_v35, %v6734_v26  ;;  %v18133_v27 = vcombine.low %v4555_v7, %v4562_v49  ;;  %v4625_v18 = vrot.slane %v4611_v30, %v15049_v14 }
 0x55b   : > { %v6650_v54 = vpop.permute.xlu1 %6649 }
 0x55c   : > { %v7897_v21 = vadd.f32 %v22850_v45, %v6729_v19  ;;  %v6736_v8 = vadd.f32 %v6650_v54, %v18101_v6  ;;  %7983 = vrot.lane.b32.xlu1 %v7902_v62, %s14676_s23  ;;  %v4766_v19 = vrot.slane %v18107_v59, %v15049_v14  ;;  %v4618_v62 = vrot.slane %v4610_v43, %v15049_v14 }
 0x55d   : > { %v6640_v33 = vpop.permute.xlu0 %6639  ;;  %v9818_v4 = vpop.f32.mrb[18].mxu0  ;;  %v4688_v54 = vrot.slane %v4674_v20, %v15049_v14  ;;  %v4736_v43 = vcombine.low %v17529_v5, %v17532_v32 }
 0x55e   : > { %v6731_v47 = vadd.f32 %v6640_v33, %v18095_v41  ;;  %7973 = vrot.lane.b32.xlu0 %v7897_v21, %s14676_s23  ;;  %v7904_v61 = vadd.f32 %v22848_v35, %v6736_v8  ;;  %v3870_v21 = vcombine.high %v22757_v56, %v22757_v56  ;;  %v9820_v49 = vpop.f32.mrb[19].mxu0  ;;  %v18152_v20 = vsel %vm561_vm2, %v4766_v19, 0.0 }
 0x55f   : > { %v6654_v53 = vpop.permute.xlu1 %6653  ;;  %v10181_v33 = vcombine.low %v9818_v4, %v9820_v49  ;;  %v4829_v56 = vrot.slane %v18131_v37, %v15049_v14  ;;  %v18156_v57 = vcombine.low %v4618_v62, %v4625_v18  ;;  %v18175_v62 = vcombine.low %v4681_v17, %v4688_v54 }
 0x560   : > { %v7899_v58 = vadd.f32 %v22850_v45, %v6731_v47  ;;  %v6738_v26 = vadd.f32 %v6654_v53, %v18125_v40  ;;  %7987 = vrot.lane.b32.xlu1 %v7904_v61, %s14676_s23  ;;  %v10182_v47 = vcombine.high %v9818_v4, %v9820_v49  ;;  %v18165_v32 = vrot.slane %v3870_v21, %v15049_v14 }
 0x561   : > { %v6644_v7 = vpop.permute.xlu0 %6643  ;;  %v4751_v21 = vrot.slane %v4737_v42, %v15049_v14  ;;  %v18180_v49 = vsel %vm561_vm2, %v4829_v56, 0.0 }
 0x562   : > { %v6733_v30 = vadd.f32 %v6644_v7, %v18133_v27  ;;  %7977 = vrot.lane.b32.xlu0 %v7899_v58, %s14676_s23  ;;  %v7906_v8 = vadd.f32 %v22848_v35, %v6738_v26  ;;  %v22874_v26 = vld [vmem:[#allocation29_spill] sm:$0xff]  ;;  %v4744_v7 = vrot.slane %v4736_v43, %v15049_v14  ;;  %v4799_v43 = vcombine.low %v17577_v28, %v17580_v29 }
 0x563   : > { %v6658_v61 = vpop.permute.xlu1 %6657  ;;  %v18162_v5 = vrot.slane %v10181_v33, %v22874_v26  ;;  %v18171_v18 = vrot.slane %v10182_v47, %v22874_v26  ;;  %v4892_v42 = vrot.slane %v18165_v32, %v15049_v14 }
 0x564   : > { %v7901_v53 = vadd.f32 %v22850_v45, %v6733_v30  ;;  %v6740_v58 = vadd.f32 %v6658_v61, %v18152_v20  ;;  %7991 = vrot.lane.b32.xlu1 %v7906_v8, %s14676_s23  ;;  %v4800_v8 = vcombine.low %v17591_v63, %v17585_v51  ;;  %v18197_v63 = vcombine.low %v4744_v7, %v4751_v21 }
 0x565   : > { %v6648_v13 = vpop.permute.xlu0 %6647  ;;  %22875 = vst [vmem:[#allocation86_spill] sm:$0xff] %v18171_v18  ;;  %v10197_v4 = vcombine.high %v18162_v5, %v18162_v5  ;;  %v4807_v29 = vrot.slane %v4799_v43, %v15049_v14  ;;  %v18225_v43 = vrot.slane %v16890_v3, %v15049_v14  ;;  %v22881_v3 = vld [vmem:[#allocation33_spill] sm:$0xff] }
 0x566   : > { %v6735_v24 = vadd.f32 %v6648_v13, %v18156_v57  ;;  %7981 = vrot.lane.b32.xlu0 %v7901_v53, %s14676_s23  ;;  %v7908_v19 = vadd.f32 %v22848_v35, %v6740_v58  ;;  %v4814_v61 = vrot.slane %v4800_v8, %v15049_v14  ;;  %v4863_v53 = vcombine.low %v17641_v12, %v17644_v2  ;;  %v22878_v2 = vld [vmem:[#allocation62_spill] sm:$0xff] }
 0x567   : > { %v6662_v30 = vpop.permute.xlu1 %6661  ;;  %v18188_v17 = vcombine.low %v10197_v4, %v18171_v18  ;;  %v4862_v13 = vcombine.low %v17630_v48, %v17638_v38  ;;  %v6450_v7 = vsel %vm561_vm2, 0.0, %v22878_v2  ;;  %v4925_v2 = vcombine.low %v17679_v22, %v17688_v23  ;;  %v22909_v18 = vld [vmem:[#allocation58_spill] sm:$0xff] }
 0x568   : > { %v7903_v33 = vadd.f32 %v22850_v45, %v6735_v24  ;;  %v6742_v47 = vadd.f32 %v6662_v30, %v18180_v49  ;;  %7995 = vrot.lane.b32.xlu1 %v7908_v19, %s14676_s23  ;;  %v18208_v24 = vsel %vm561_vm2, %v4892_v42, 0.0  ;;  %v18215_v21 = vcombine.low %v4807_v29, %v4814_v61  ;;  %v22882_v29 = vld [vmem:[#allocation34_spill] sm:$0xff] }
 0x569   : > { %22876 = vst [vmem:[#allocation88_spill] sm:$0xff] %v18188_v17  ;;  %v6652_v54 = vpop.permute.xlu0 %6651  ;;  %22877 = vst [vmem:[#allocation81_spill] sm:$0xff] %v18208_v24  ;;  %v4877_v30 = vrot.slane %v4863_v53, %v15049_v14  ;;  %v18258_v23 = vrot.slane %v17395_v0, %v15049_v14  ;;  %v18273_v0 = vld [vmem:[#allocation7] sm:$0xff]  ;;  %v22906_v17 = vld [vmem:[#allocation74_spill] sm:$0xff] }
 0x56a   : > { %v6737_v56 = vadd.f32 %v6652_v54, %v18175_v62  ;;  %7985 = vrot.lane.b32.xlu0 %v7903_v33, %s14676_s23  ;;  %v7910_v51 = vadd.f32 %v22848_v35, %v6742_v47  ;;  %v22879_v33 = vld [vmem:[#allocation23_spill] sm:$0xff]  ;;  %v4870_v54 = vrot.slane %v4862_v13, %v15049_v14  ;;  %v22883_v13 = vcombine.low %v22881_v3, %v22882_v29  ;;  %v22891_v29 = vld [vmem:[#allocation61_spill] sm:$0xff] }
 0x56b   : > { %v7758_v47 = vsel %vm561_vm2, 0.0, %v22879_v33  ;;  %v22890_v3 = vld [vmem:[#allocation59_spill] sm:$0xff] }
 0x56c   : > { %v7905_v58 = vadd.f32 %v22850_v45, %v6737_v56  ;;  %7999 = vrot.lane.b32.xlu1 %v7910_v51, %s14676_s23  ;;  %v6666_v4 = vpop.permute.xlu1 %6665  ;;  %v6468_v56 = vadd.f32 %v6450_v7, %v17967_v44  ;;  %v22880_v51 = vld [vmem:[#allocation52_spill] sm:$0xff]  ;;  %v18233_v53 = vcombine.low %v4870_v54, %v4877_v30  ;;  %v4955_v7 = vrot.slane %v18225_v43, %v15049_v14 }
 0x56d   : > { %v6656_v28 = vpop.permute.xlu0 %6655  ;;  %v6744_v12 = vadd.f32 %v6666_v4, %v18208_v24  ;;  %v6772_v61 = vcombine.high %v22880_v51, %v22880_v51  ;;  %v4933_v54 = vrot.slane %v4925_v2, %v15049_v14  ;;  %v7172_v2 = vcombine.high %v18258_v23, %v18258_v23 }
 0x56e   : > { %v6739_v19 = vadd.f32 %v6656_v28, %v18197_v63  ;;  %7989 = vrot.lane.b32.xlu0 %v7905_v58, %s14676_s23  ;;  %v4926_v58 = vcombine.low %v17693_v25, %v17696_v1  ;;  %v7774_v1 = vsel %vm561_vm2, 0.0, %v17955_v16  ;;  %v18267_v16 = vrot.slane %v22778_v31, %v15049_v14 }
 0x56f   : > { %v7912_v48 = vadd.f32 %v22848_v35, %v6744_v12  ;;  %v22884_v12 = vld [vmem:[#allocation79_spill] sm:$0xff] }
 0x570   : > { %v7907_v8 = vadd.f32 %v22850_v45, %v6739_v19  ;;  %v7775_v19 = vadd.f32 %v7758_v47, %v22883_v13  ;;  %v6451_v44 = vsel %vm561_vm2, 0.0, %v22884_v12  ;;  %v4940_v33 = vrot.slane %v4926_v58, %v15049_v14  ;;  %22887 = vst [vmem:[#allocation83_spill] sm:$0xff] %v18267_v16  ;;  %v22889_v58 = vld [vmem:[#allocation71_spill] sm:$0xff] }
 0x571   : > { %v6660_v38 = vpop.permute.xlu0 %6659  ;;  %8003 = vrot.lane.b32.xlu1 %v7912_v48, %s14676_s23  ;;  %v6470_v47 = vadd.f32 %v6451_v44, %v17986_v15  ;;  %v22892_v13 = vcombine.low %v22890_v3, %v22891_v29 }
 0x572   : > { %v6741_v42 = vadd.f32 %v6660_v38, %v18215_v21  ;;  %7993 = vrot.lane.b32.xlu0 %v7907_v8, %s14676_s23  ;;  %v7811_v25 = vadd.f32 %v7775_v19, %v6468_v56  ;;  %v6779_v8 = vrot.slane %v6772_v61, %v15049_v14  ;;  %v22885_v38 = vld [vmem:[#allocation72_spill] sm:$0xff]  ;;  %v22888_v56 = vcombine.low %v17895_v36, %v17898_v46  ;;  %v22894_v46 = vld [vmem:[#allocation63_spill] sm:$0xff] }
 0x573   : > { %v7759_v48 = vsel %vm561_vm2, 0.0, %v22885_v38  ;;  %v18283_v36 = vcombine.low %v4933_v54, %v4940_v33  ;;  %v4989_v33 = vcombine.low %v17748_v60, %v17751_v11  ;;  %v7179_v54 = vrot.slane %v7172_v2, %v15049_v14  ;;  %v22902_v2 = vld [vmem:[#allocation57_spill] sm:$0xff] }
 0x574   : > { %v7909_v28 = vadd.f32 %v22850_v45, %v6741_v42  ;;  %v18263_v42 = vsel %vm561_vm2, %v4955_v7, 0.0  ;;  %v7807_v51 = vadd.f32 %v7774_v1, %v22888_v56  ;;  %v7847_v15 = vadd.f32 %v18273_v0, %v7811_v25  ;;  %v22896_v56 = vld [vmem:[#allocation98_spill] sm:$0xff] }
 0x575   : > { %v6664_v4 = vpop.permute.xlu0 %6663  ;;  %22886 = vst [vmem:[#allocation85_spill] sm:$0xff] %v18263_v42  ;;  %v7777_v19 = vadd.f32 %v7759_v48, %v22892_v13  ;;  %22893 = vst [vmem:[#allocation17_spill] sm:$0xff] %v18283_v36  ;;  %v18315_v13 = vld [vmem:[#allocation7 + $0x8] sm:$0x3] }
 0x576   : > { %v6743_v30 = vadd.f32 %v6664_v4, %v18233_v53  ;;  %7997 = vrot.lane.b32.xlu0 %v7909_v28, %s14676_s23  ;;  %v6469_v28 = vadd.f32 %v22889_v58, %v17979_v39  ;;  %v7214_v4 = vsel %vm561_vm2, %v6779_v8, 0.0  ;;  %v5018_v39 = vrot.slane %v18267_v16, %v15049_v14  ;;  %v22898_v58 = vld [vmem:[#allocation92_spill] sm:$0xff] }
 0x577   : > { %v7776_v12 = vadd.f32 %v22894_v46, %v7214_v4  ;;  %v7813_v44 = vadd.f32 %v7777_v19, %v6470_v47  ;;  %v18292_v25 = vadd.f32 %v18273_v0, %v7807_v51  ;;  %v8119_v8 = vcombine.high %v7847_v15, %v7847_v15  ;;  %v22900_v4 = vld [vmem:[#allocation55_spill] sm:$0xff] }
 0x578   : > { %v7911_v22 = vadd.f32 %v22850_v45, %v6743_v30  ;;  %v6670_v61 = vpop.permute.xlu1 %6669  ;;  %v8126_v38 = vrot.slane %v7847_v15, %v22874_v26  ;;  %v6452_v51 = vsel %vm561_vm2, 0.0, %v22896_v56  ;;  %v22899_v15 = vld [vmem:[#allocation89_spill] sm:$0xff]  ;;  %v6797_v46 = vcombine.high %v22900_v4, %v22900_v4  ;;  %v22904_v56 = vld [vmem:[#allocation38_spill] sm:$0xff]  ;;  %v22905_v4 = vld [vmem:[#allocation56_spill] sm:$0xff] }
 0x579   : > { %v6746_v31 = vadd.f32 %v6670_v61, %v18263_v42  ;;  %v6668_v7 = vpop.permute.xlu0 %6667  ;;  %22895 = vst [vmem:[#allocation16_spill] sm:$0xff] %v18292_v25  ;;  %v7812_v48 = vadd.f32 %v7776_v12, %v6469_v28  ;;  %v7849_v47 = vadd.f32 %v18273_v0, %v7813_v44  ;;  %v18305_v61 = vsel %vm561_vm2, %v5018_v39, 0.0  ;;  %v22901_v12 = vld [vmem:[#allocation87_spill] sm:$0xff]  ;;  %v22921_v42 = vld [vmem:[#allocation141_spill] sm:$0xff] }
 0x57a   : > { %8001 = vrot.lane.b32.xlu0 %v7911_v22, %s14676_s23  ;;  %v6745_v1 = vadd.f32 %v6668_v7, %v18283_v36  ;;  %22897 = vst [vmem:[#allocation42_spill] sm:$0xff] %v18305_v61  ;;  %v4988_v28 = vcombine.low %v22899_v15, %v22898_v58  ;;  %v8887_v3 = vcombine.high %v18292_v25, %v18292_v25  ;;  %v7760_v44 = vsel %vm561_vm2, 0.0, %v22901_v12  ;;  %v22917_v25 = vld [vmem:[#allocation27_spill] sm:$0xff] }
 0x57b   : > { %v7914_v30 = vadd.f32 %v22848_v35, %v6746_v31  ;;  %v18313_v11 = vrot.slane %v8119_v8, %v22874_v26  ;;  %v8134_v29 = vcombine.high %v8126_v38, %v8126_v38  ;;  %v18318_v19 = vadd.f32 %v18315_v13, %v7812_v48  ;;  %v22922_v36 = vld [vmem:[#allocation139_spill] sm:$0xff] }
 0x57c   : > { %v7913_v22 = vadd.f32 %v22850_v45, %v6745_v1  ;;  %v6822_v7 = vcombine.high %v22902_v2, %v22902_v2  ;;  %v8167_v39 = vcombine.high %v7849_v47, %v7849_v47  ;;  %v22903_v1 = vld [vmem:[#allocation68_spill] sm:$0xff]  ;;  %v6453_v58 = vsel %vm561_vm2, 0.0, %v22904_v56  ;;  %v22916_v2 = vld [vmem:[#allocation31_spill] sm:$0xff] }
 0x57d   : > { %8007 = vrot.lane.b32.xlu1 %v7914_v30, %s14676_s23  ;;  %v5003_v30 = vrot.slane %v4989_v33, %v15049_v14  ;;  %v6472_v8 = vadd.f32 %v6452_v51, %v22903_v1  ;;  %v4996_v15 = vrot.slane %v4988_v28, %v15049_v14  ;;  %v8174_v33 = vrot.slane %v7849_v47, %v22874_v26  ;;  %v22907_v51 = vld [vmem:[#allocation75_spill] sm:$0xff] }
 0x57e   : > { %8005 = vrot.lane.b32.xlu0 %v7913_v22, %s14676_s23  ;;  %v7230_v22 = vsel %vm561_vm2, %v7179_v54, 0.0  ;;  %v22908_v1 = vcombine.low %v22906_v17, %v22907_v51  ;;  %v18345_v56 = vcombine.low %v8126_v38, %v8134_v29  ;;  %v6804_v28 = vrot.slane %v6797_v46, %v15049_v14 }
 0x57f   : > { %v7808_v12 = vadd.f32 %v22905_v4, %v7230_v22  ;;  %v18350_v4 = vcombine.low %v4996_v15, %v5003_v30  ;;  %v18353_v47 = vrot.slane %v8167_v39, %v22874_v26  ;;  %v6829_v17 = vrot.slane %v6822_v7, %v15049_v14  ;;  %v22914_v15 = vld [vmem:[#allocation67_spill] sm:$0xff] }
 0x580   : > { %v6674_v60 = vpop.permute.xlu1 %6673  ;;  %v7779_v54 = vadd.f32 %v7760_v44, %v22908_v1  ;;  %v6474_v51 = vadd.f32 %v6453_v58, %v18088_v10  ;;  %v8182_v30 = vcombine.high %v8174_v33, %v8174_v33  ;;  %v22918_v7 = vcombine.low %v22916_v2, %v22917_v25 }
 0x581   : > { %v6748_v31 = vadd.f32 %v6674_v60, %v18305_v61  ;;  %v8901_v60 = vrot.slane %v8887_v3, %v22874_v26  ;;  %v22910_v3 = vld [vmem:[#allocation36_spill] sm:$0xff]  ;;  %22911 = vst [vmem:[#allocation43_spill] sm:$0xff] %v18350_v4  ;;  %v7880_v46 = vadd.f32 %v18315_v13, %v7808_v12  ;;  %v7215_v58 = vsel %vm561_vm2, %v6804_v28, 0.0 }
 0x582   : > { %v7761_v22 = vsel %vm561_vm2, 0.0, %v22910_v3  ;;  %v7815_v44 = vadd.f32 %v7779_v54, %v6472_v8  ;;  %v22915_v3 = vld [vmem:[#allocation84_spill] sm:$0xff]  ;;  %v22919_v54 = vld [vmem:[#allocation138_spill] sm:$0xff]  ;;  %v5052_v12 = vcombine.low %v22922_v36, %v22921_v42  ;;  %v18384_v42 = vcombine.low %v8174_v33, %v8182_v30 }
 0x583   : > { %v7916_v48 = vadd.f32 %v22848_v35, %v6748_v31  ;;  %v6847_v31 = vcombine.high %v22909_v18, %v22909_v18  ;;  %v8903_v29 = vcombine.high %v8901_v60, %v8901_v60  ;;  %v6471_v39 = vadd.f32 %v22915_v3, %v22914_v15 }
 0x584   : > { %v7781_v8 = vadd.f32 %v7761_v22, %v22918_v7  ;;  %v7216_v15 = vsel %vm561_vm2, %v6829_v17, 0.0  ;;  %v7851_v3 = vadd.f32 %v18273_v0, %v7815_v44  ;;  %v8910_v22 = vrot.slane %v7880_v46, %v22874_v26  ;;  %22924 = vst [vmem:[#allocation91_spill] sm:$0xff] %v18384_v42  ;;  %v22926_v44 = vld [vmem:[#allocation66_spill] sm:$0xff] }
 0x585   : > { %8011 = vrot.lane.b32.xlu1 %v7916_v48, %s14676_s23  ;;  %v22912_v48 = vld [vmem:[#allocation104_spill] sm:$0xff]  ;;  %v6854_v10 = vrot.slane %v6847_v31, %v15049_v14  ;;  %v9642_v28 = vcombine.low %v8901_v60, %v8903_v29  ;;  %v5066_v60 = vrot.slane %v5052_v12, %v15049_v14 }
 0x586   : > { %v18359_v38 = vrot.slane %v22912_v48, %v15049_v14  ;;  %v22920_v48 = vld [vmem:[#allocation99_spill] sm:$0xff]  ;;  %v7817_v25 = vadd.f32 %v7781_v8, %v6474_v51  ;;  %v22927_v51 = vld [vmem:[#allocation94_spill] sm:$0xff]  ;;  %v22928_v8 = vld [vmem:[#allocation45_spill] sm:$0xff]  ;;  %v8215_v29 = vcombine.high %v7851_v3, %v7851_v3  ;;  %v8222_v46 = vrot.slane %v7851_v3, %v22874_v26 }
 0x587   : > { %v6672_v18 = vpop.permute.xlu0 %6671  ;;  %v5051_v61 = vcombine.low %v22920_v48, %v22919_v54  ;;  %v7217_v17 = vsel %vm561_vm2, %v6854_v10, 0.0  ;;  %v6473_v7 = vadd.f32 %v22927_v51, %v22926_v44  ;;  %v22931_v10 = vld [vmem:[#allocation109_spill] sm:$0xff] }
 0x588   : > { %22913 = vst [vmem:[#allocation44_spill] sm:$0xff] %v18359_v38  ;;  %v6747_v1 = vadd.f32 %v6672_v18, %v18350_v4  ;;  %v22923_v4 = vld [vmem:[#allocation82_spill] sm:$0xff]  ;;  %v5081_v31 = vrot.slane %v18359_v38, %v15049_v14  ;;  %v7853_v33 = vadd.f32 %v18273_v0, %v7817_v25  ;;  %v4071_v48 = vcombine.high %v22931_v10, %v22931_v10  ;;  %v22933_v25 = vld [vmem:[#allocation65_spill] sm:$0xff] }
 0x589   : > { %v7778_v24 = vadd.f32 %v22923_v4, %v7215_v58  ;;  %v22925_v4 = vld [vmem:[#allocation21_spill] sm:$0xff]  ;;  %v6454_v58 = vsel %vm561_vm2, 0.0, %v22928_v8  ;;  %v5059_v54 = vrot.slane %v5051_v61, %v15049_v14  ;;  %v9649_v61 = vrot.slane %v9642_v28, %v22874_v26  ;;  %v22936_v28 = vld [vmem:[#allocation110_spill] sm:$0xff] }
 0x58a   : > { %v7915_v18 = vadd.f32 %v22850_v45, %v6747_v1  ;;  %v7780_v1 = vadd.f32 %v22925_v4, %v7216_v15  ;;  %v6476_v12 = vadd.f32 %v6454_v58, %v18095_v41  ;;  %v22932_v4 = vld [vmem:[#allocation32_spill] sm:$0xff]  ;;  %v6897_v44 = vcombine.high %v22933_v25, %v22933_v25  ;;  %v22934_v8 = vld [vmem:[#allocation105_spill] sm:$0xff]  ;;  %v22937_v41 = vld [vmem:[#allocation95_spill] sm:$0xff] }
 0x58b   : > { %v7814_v36 = vadd.f32 %v7778_v24, %v6471_v39  ;;  %v22929_v24 = vld [vmem:[#allocation48_spill] sm:$0xff]  ;;  %v18399_v39 = vsel %vm561_vm2, %v5081_v31, 0.0  ;;  %v6872_v3 = vcombine.high %v22932_v4, %v22932_v4  ;;  %v18412_v2 = vcombine.low %v5059_v54, %v5066_v60 }
 0x58c   : > { %8009 = vrot.lane.b32.xlu0 %v7915_v18, %s14676_s23  ;;  %v7762_v30 = vsel %vm561_vm2, 0.0, %v22929_v24  ;;  %22930 = vst [vmem:[#allocation90_spill] sm:$0xff] %v18399_v39  ;;  %v9656_v18 = vrot.slane %v8910_v22, %v22874_v26  ;;  %v7816_v31 = vadd.f32 %v7780_v1, %v6473_v7  ;;  %v7782_v24 = vadd.f32 %v22934_v8, %v7217_v17  ;;  %v22938_v58 = vld [vmem:[#allocation96_spill] sm:$0xff] }
 0x58d   : > { %v8263_v22 = vcombine.high %v7853_v33, %v7853_v33  ;;  %v6475_v38 = vadd.f32 %v22936_v28, %v18027_v34  ;;  %v22939_v42 = vcombine.low %v22937_v41, %v22938_v58  ;;  %v8230_v1 = vcombine.high %v8222_v46, %v8222_v46  ;;  %v22943_v8 = vld [vmem:[#allocation116_spill] sm:$0xff]  ;;  %v22945_v58 = vld [vmem:[#allocation143_spill] sm:$0xff] }
 0x58e   : > { %v18414_v10 = vcombine.low %v9649_v61, %v9656_v18  ;;  %v18426_v17 = vrot.slane %v4071_v48, %v15049_v14  ;;  %v6879_v60 = vrot.slane %v6872_v3, %v15049_v14  ;;  %v6904_v34 = vrot.slane %v6897_v44, %v15049_v14  ;;  %v22940_v18 = vld [vmem:[#allocation51_spill] sm:$0xff]  ;;  %v22942_v61 = vld [vmem:[#allocation145_spill] sm:$0xff]  ;;  %v22944_v41 = vld [vmem:[#allocation144_spill] sm:$0xff] }
 0x58f   : > { %v7783_v4 = vadd.f32 %v7762_v30, %v22939_v42  ;;  %v6455_v42 = vsel %vm561_vm2, 0.0, %v22940_v18  ;;  %v18435_v30 = vadd.f32 %v18315_v13, %v7814_v36  ;;  %v22941_v48 = vld [vmem:[#allocation147_spill] sm:$0xff]  ;;  %v18445_v3 = vrot.slane %v8263_v22, %v22874_v26  ;;  %v22957_v36 = vld [vmem:[#allocation41_spill] sm:$0xff] }
 0x590   : > { %22935 = vst [vmem:[#allocation37_spill] sm:$0xff] %v18414_v10  ;;  %v7818_v44 = vadd.f32 %v7782_v24, %v6475_v38  ;;  %v7763_v28 = vsel %vm561_vm2, 0.0, %v22943_v8  ;;  %v7218_v24 = vsel %vm561_vm2, %v6879_v60, 0.0  ;;  %v7219_v22 = vsel %vm561_vm2, %v6904_v34, 0.0  ;;  %v22947_v18 = vld [vmem:[#allocation107_spill] sm:$0xff]  ;;  %v22950_v60 = vld [vmem:[#allocation49_spill] sm:$0xff] }
 0x591   : > { %v6678_v15 = vpop.permute.xlu1 %6677  ;;  %v7819_v54 = vadd.f32 %v7783_v4, %v6476_v12  ;;  %v8270_v12 = vrot.slane %v7853_v33, %v22874_v26  ;;  %v5114_v4 = vcombine.low %v22945_v58, %v22944_v41  ;;  %v18457_v33 = vcombine.low %v8222_v46, %v8230_v1  ;;  %v22951_v58 = vld [vmem:[#allocation53_spill] sm:$0xff] }
 0x592   : > { %v6750_v51 = vadd.f32 %v6678_v15, %v18399_v39  ;;  %v18423_v15 = vrot.slane %v8215_v29, %v22874_v26  ;;  %v18438_v29 = vadd.f32 %v18315_v13, %v7816_v31  ;;  %v6478_v31 = vadd.f32 %v6455_v42, %v18133_v27 }
 0x593   : > { %v7855_v38 = vadd.f32 %v18273_v0, %v7819_v54  ;;  %v6922_v42 = vcombine.high %v18036_v52, %v18036_v52  ;;  %v8278_v46 = vcombine.high %v8270_v12, %v8270_v12  ;;  %v18473_v54 = vadd.f32 %v18315_v13, %v7818_v44 }
 0x594   : > { %v6676_v16 = vpop.permute.xlu0 %6675  ;;  %v7918_v25 = vadd.f32 %v22848_v35, %v6750_v51  ;;  %v5115_v51 = vcombine.low %v22942_v61, %v22941_v48  ;;  %v22949_v61 = vld [vmem:[#allocation124_spill] sm:$0xff]  ;;  %v7784_v34 = vadd.f32 %v22950_v60, %v7218_v24  ;;  %v5122_v52 = vrot.slane %v5114_v4, %v15049_v14  ;;  %v22954_v24 = vld [vmem:[#allocation115_spill] sm:$0xff]  ;;  %v22955_v60 = vld [vmem:[#allocation30_spill] sm:$0xff] }
 0x595   : > { %v6749_v7 = vadd.f32 %v6676_v16, %v18412_v2  ;;  %v6456_v8 = vsel %vm561_vm2, 0.0, %v22949_v61  ;;  %v22953_v61 = vld [vmem:[#allocation128_spill] sm:$0xff]  ;;  %v6947_v4 = vcombine.high %v22955_v60, %v22955_v60 }
 0x596   : > { %8015 = vrot.lane.b32.xlu1 %v7918_v25, %s14676_s23  ;;  %v5144_v25 = vrot.slane %v18426_v17, %v15049_v14  ;;  %v6457_v1 = vsel %vm561_vm2, 0.0, %v22953_v61 }
 0x597   : > { %v7917_v16 = vadd.f32 %v22850_v45, %v6749_v7  ;;  %v22946_v7 = vld [vmem:[#allocation39_spill] sm:$0xff]  ;;  %v6482_v60 = vadd.f32 %v6457_v1, %v18175_v62  ;;  %v22965_v1 = vld [vmem:[#allocation154_spill] sm:$0xff] }
 0x598   : > { %v22948_v48 = vcombine.low %v22946_v7, %v22947_v18  ;;  %v18480_v7 = vsel %vm561_vm2, %v5144_v25, 0.0  ;;  %v22956_v25 = vld [vmem:[#allocation40_spill] sm:$0xff] }
 0x599   : > { %8013 = vrot.lane.b32.xlu0 %v7917_v16, %s14676_s23  ;;  %v5129_v16 = vrot.slane %v5115_v51, %v15049_v14  ;;  %22952 = vst [vmem:[#allocation22_spill] sm:$0xff] %v18480_v7  ;;  %v8311_v51 = vcombine.high %v7855_v38, %v7855_v38  ;;  %v22958_v10 = vcombine.low %v22956_v25, %v22957_v36  ;;  %v22964_v25 = vld [vmem:[#allocation150_spill] sm:$0xff] }
 0x59a   : > { %v7785_v27 = vadd.f32 %v7763_v28, %v22948_v48  ;;  %v7764_v28 = vsel %vm561_vm2, 0.0, %v22951_v58  ;;  %v6480_v48 = vadd.f32 %v6456_v8, %v18156_v57  ;;  %v22959_v57 = vld [vmem:[#allocation54_spill] sm:$0xff] }
 0x59b   : > { %v18491_v58 = vcombine.low %v5122_v52, %v5129_v16  ;;  %v7787_v39 = vadd.f32 %v7764_v28, %v22958_v10  ;;  %v7765_v8 = vsel %vm561_vm2, 0.0, %v22959_v57  ;;  %v18504_v52 = vcombine.low %v8270_v12, %v8278_v46  ;;  %v22966_v57 = vld [vmem:[#allocation153_spill] sm:$0xff] }
 0x59c   : > { %v7821_v41 = vadd.f32 %v7785_v27, %v6478_v31  ;;  %v6477_v31 = vadd.f32 %v22954_v24, %v18057_v9  ;;  %v6929_v27 = vrot.slane %v6922_v42, %v15049_v14  ;;  %v18507_v10 = vrot.slane %v7855_v38, %v22874_v26  ;;  %v22967_v38 = vld [vmem:[#allocation50_spill] sm:$0xff] }
 0x59d   : > { %v18510_v36 = vrot.slane %v8311_v51, %v22874_v26  ;;  %v7823_v28 = vadd.f32 %v7787_v39, %v6480_v48  ;;  %v5178_v12 = vcombine.low %v22966_v57, %v22965_v1  ;;  %v6954_v39 = vrot.slane %v6947_v4, %v15049_v14 }
 0x59e   : > { %v6682_v18 = vpop.permute.xlu1 %6681  ;;  %v7820_v24 = vadd.f32 %v7784_v34, %v6477_v31  ;;  %v7857_v42 = vadd.f32 %v18273_v0, %v7821_v41  ;;  %v22963_v41 = vld [vmem:[#allocation151_spill] sm:$0xff]  ;;  %v7220_v51 = vsel %vm561_vm2, %v6929_v27, 0.0  ;;  %v22968_v27 = vld [vmem:[#allocation46_spill] sm:$0xff] }
 0x59f   : > { %v6752_v44 = vadd.f32 %v6682_v18, %v18480_v7  ;;  %v6972_v18 = vcombine.high %v18086_v50, %v18086_v50  ;;  %v22960_v50 = vld [vmem:[#allocation117_spill] sm:$0xff]  ;;  %v5177_v62 = vcombine.low %v22964_v25, %v22963_v41  ;;  %v7786_v4 = vadd.f32 %v22968_v27, %v7219_v22  ;;  %v22970_v25 = vld [vmem:[#allocation120_spill] sm:$0xff]  ;;  %v22975_v27 = vld [vmem:[#allocation127_spill] sm:$0xff] }
 0x5a0   : > { %v7788_v1 = vadd.f32 %v22970_v25, %v7220_v51  ;;  %v7221_v57 = vsel %vm561_vm2, %v6954_v39, 0.0  ;;  %v6997_v51 = vcombine.high %v18107_v59, %v18107_v59  ;;  %v7022_v25 = vcombine.high %v18131_v37, %v18131_v37  ;;  %v22979_v37 = vld [vmem:[#allocation119_spill] sm:$0xff] }
 0x5a1   : > { %v6680_v61 = vpop.permute.xlu0 %6679  ;;  %v7920_v9 = vadd.f32 %v22848_v35, %v6752_v44  ;;  %v22961_v44 = vld [vmem:[#allocation118_spill] sm:$0xff]  ;;  %v6979_v48 = vrot.slane %v6972_v18, %v15049_v14  ;;  %v8366_v18 = vrot.slane %v7857_v42, %v22874_v26 }
 0x5a2   : > { %v6751_v16 = vadd.f32 %v6680_v61, %v18491_v58  ;;  %v22962_v34 = vcombine.low %v22960_v50, %v22961_v44  ;;  %v6479_v61 = vadd.f32 %v22967_v38, %v18080_v55  ;;  %v5207_v44 = vrot.slane %v18258_v23, %v15049_v14  ;;  %v22973_v38 = vld [vmem:[#allocation78_spill] sm:$0xff] }
 0x5a3   : > { %8019 = vrot.lane.b32.xlu1 %v7920_v9, %s14676_s23  ;;  %v18527_v9 = vadd.f32 %v18315_v13, %v7820_v24  ;;  %v7859_v24 = vadd.f32 %v18273_v0, %v7823_v28  ;;  %v5192_v23 = vrot.slane %v5178_v12, %v15049_v14  ;;  %v8374_v12 = vcombine.high %v8366_v18, %v8366_v18 }
 0x5a4   : > { %v7789_v31 = vadd.f32 %v7765_v8, %v22962_v34  ;;  %v7919_v46 = vadd.f32 %v22850_v45, %v6751_v16  ;;  %v8359_v8 = vcombine.high %v7857_v42, %v7857_v42  ;;  %v8326_v16 = vcombine.high %v18507_v10, %v18507_v10  ;;  %v22969_v34 = vld [vmem:[#allocation122_spill] sm:$0xff] }
 0x5a5   : > { %v7822_v41 = vadd.f32 %v7786_v4, %v6479_v61  ;;  %v18551_v28 = vsel %vm561_vm2, %v5207_v44, 0.0  ;;  %v6458_v61 = vsel %vm561_vm2, 0.0, %v22973_v38  ;;  %v22976_v4 = vld [vmem:[#allocation73_spill] sm:$0xff] }
 0x5a6   : > { %v7825_v50 = vadd.f32 %v7789_v31, %v6482_v60  ;;  %8017 = vrot.lane.b32.xlu0 %v7919_v46, %s14676_s23  ;;  %v6481_v60 = vadd.f32 %v22969_v34, %v18101_v6  ;;  %v5185_v31 = vrot.slane %v5177_v62, %v15049_v14  ;;  %v7222_v46 = vsel %vm561_vm2, %v6979_v48, 0.0  ;;  %22971 = vst [vmem:[#allocation101_spill] sm:$0xff] %v18551_v28 }
 0x5a7   : > { %v18547_v22 = vrot.slane %v8359_v8, %v22874_v26  ;;  %v18555_v6 = vrot.slane %v18162_v5, %v22874_v26  ;;  %v8407_v48 = vcombine.high %v7859_v24, %v7859_v24  ;;  %v8414_v8 = vrot.slane %v7859_v24, %v22874_v26 }
 0x5a8   : > { %v7861_v42 = vadd.f32 %v18273_v0, %v7825_v50  ;;  %v7824_v50 = vadd.f32 %v7788_v1, %v6481_v60  ;;  %v18563_v44 = vcombine.low %v5185_v31, %v5192_v23  ;;  %v6483_v5 = vadd.f32 %v22975_v27, %v18125_v40  ;;  %v22977_v31 = vld [vmem:[#allocation126_spill] sm:$0xff] }
 0x5a9   : > { %22972 = vst [vmem:[#allocation106_spill] sm:$0xff] %v18555_v6  ;;  %v7766_v34 = vsel %vm561_vm2, 0.0, %v22976_v4  ;;  %v11901_v60 = vrot.slane %v18555_v6, 7  ;;  %v7790_v23 = vadd.f32 %v22977_v31, %v7221_v57  ;;  %v22978_v1 = vld [vmem:[#allocation130_spill] sm:$0xff]  ;;  %v7004_v4 = vrot.slane %v6997_v51, %v15049_v14 }
 0x5aa   : > { %v6686_v62 = vpop.permute.xlu1 %6685  ;;  %22974 = vst [vmem:[#allocation35_spill] sm:$0xff] %v18563_v44  ;;  %v8455_v55 = vcombine.high %v7861_v42, %v7861_v42  ;;  %v8462_v40 = vrot.slane %v7861_v42, %v22874_v26  ;;  %v6485_v27 = vadd.f32 %v22978_v1, %v18152_v20  ;;  %v8422_v42 = vcombine.high %v8414_v8, %v8414_v8  ;;  %v22983_v1 = vld [vmem:[#allocation69_spill] sm:$0xff] }
 0x5ab   : > { %v6754_v39 = vadd.f32 %v6686_v62, %v18551_v28  ;;  %v6484_v62 = vadd.f32 %v6458_v61, %v18197_v63  ;;  %v22980_v63 = vld [vmem:[#allocation121_spill] sm:$0xff]  ;;  %v7826_v31 = vadd.f32 %v7790_v23, %v6483_v5  ;;  %v7029_v51 = vrot.slane %v7022_v25, %v15049_v14 }
 0x5ac   : > { %v22981_v61 = vcombine.low %v22979_v37, %v22980_v63  ;;  %v22982_v28 = vld [vmem:[#allocation77_spill] sm:$0xff]  ;;  %v18611_v25 = vcombine.low %v8366_v18, %v8374_v12  ;;  %v22985_v63 = vld [vmem:[#allocation20_spill] sm:$0xff] }
 0x5ad   : > { %v6684_v38 = vpop.permute.xlu0 %6683  ;;  %v7922_v59 = vadd.f32 %v22848_v35, %v6754_v39  ;;  %v18582_v35 = vrot.slane %v8407_v48, %v22874_v26  ;;  %v7792_v20 = vadd.f32 %v22982_v28, %v7222_v46  ;;  %v18606_v46 = vadd.f32 %v18315_v13, %v7822_v41 }
 0x5ae   : > { %v6753_v24 = vadd.f32 %v6684_v38, %v18563_v44  ;;  %v7791_v39 = vadd.f32 %v7766_v34, %v22981_v61  ;;  %v7047_v38 = vcombine.high %v18165_v32, %v18165_v32  ;;  %v11902_v34 = vsel %vm561_vm2, %v22983_v1, %v11901_v60 }
 0x5af   : > { %8023 = vrot.lane.b32.xlu1 %v7922_v59, %s14676_s23  ;;  %v18593_v59 = vrot.slane %v8455_v55, %v22874_v26  ;;  %v18600_v32 = vcombine.high %v18555_v6, %v18555_v6  ;;  %v8470_v28 = vcombine.high %v8462_v40, %v8462_v40  ;;  %v7828_v5 = vadd.f32 %v7792_v20, %v6485_v27 }
 0x5b0   : > { %v7921_v57 = vadd.f32 %v22850_v45, %v6753_v24  ;;  %v7827_v48 = vadd.f32 %v7791_v39, %v6484_v62  ;;  %v18603_v45 = vcombine.low %v18507_v10, %v8326_v16  ;;  %v18614_v62 = vadd.f32 %v18315_v13, %v7824_v50  ;;  %v22986_v39 = vld [vmem:[#allocation24_spill] sm:$0xff] }
 0x5b1   : > { %22984 = vst [vmem:[#allocation103_spill] sm:$0xff] %v18600_v32  ;;  %v7054_v24 = vrot.slane %v7047_v38, %v15049_v14  ;;  %v18619_v16 = vcombine.low %v8414_v8, %v8422_v42  ;;  %v18622_v41 = vadd.f32 %v18315_v13, %v7826_v31  ;;  %v7223_v60 = vsel %vm561_vm2, %v7004_v4, 0.0 }
 0x5b2   : > { %8021 = vrot.lane.b32.xlu0 %v7921_v57, %s14676_s23  ;;  %v7863_v18 = vadd.f32 %v18273_v0, %v7827_v48  ;;  %v18629_v12 = vsel %vm561_vm2, %v7029_v51, 0.0  ;;  %v13021_v27 = vrot.slane %v18600_v32, 7  ;;  %v18632_v37 = vcombine.low %v8462_v40, %v8470_v28  ;;  %v22987_v57 = vld [vmem:[#allocation136_spill] sm:$0xff] }
 0x5b3   : > { %12007 = vrot.lane.b32.xlu1 %v11902_v34, %s14677_s15  ;;  %v18635_v8 = vadd.f32 %v18315_v13, %v7828_v5  ;;  %v8111_v61 = vcombine.high %v22985_v63, %v22985_v63  ;;  %v18642_v38 = vadd.f32 %v22986_v39, %v7223_v60  ;;  %v6459_v42 = vsel %vm561_vm2, 0.0, %v22987_v57  ;;  %v22990_v39 = vld [vmem:[#allocation123_spill] sm:$0xff] }
 0x5b4   : > { %v18647_v31 = vsel %vm561_vm2, %v7054_v24, 0.0  ;;  %v8142_v20 = vrot.slane %v18318_v19, %v22874_v26  ;;  %v8503_v5 = vcombine.high %v7863_v18, %v7863_v18  ;;  %v8510_v60 = vrot.slane %v7863_v18, %v22874_v26 }
 0x5b5   : > { %v22991_v57 = vrot.slane %v22990_v39, 7  ;;  %v6486_v23 = vadd.f32 %v6459_v42, %v18215_v21  ;;  %v8960_v10 = vrot.slane %v18345_v56, %v22874_v26 }
 0x5b6   : > { %v7960_v50 = vpop.permute.xlu1 %7959  ;;  %v18680_v6 = vrot.slane %v8503_v5, %v22874_v26  ;;  %v8518_v56 = vcombine.high %v8510_v60, %v8510_v60 }
 0x5b7   : > { %v8118_v4 = vrot.slane %v7960_v50, %v22874_v26  ;;  %12322 = vrot.lane.b32.xlu1 %v11902_v34, %s14678_s17  ;;  %v22988_v34 = vcombine.high %v18313_v11, %v18313_v11  ;;  %v22989_v50 = vld [vmem:[#allocation80_spill] sm:$0xff]  ;;  %v13022_v19 = vsel %vm561_vm2, %v22991_v57, %v13021_v27  ;;  %v22994_v57 = vld [vmem:[#allocation125_spill] sm:$0xff] }
 0x5b8   : > { %v7962_v40 = vpop.permute.xlu0 %7961  ;;  %v7767_v24 = vsel %vm561_vm2, 0.0, %v22989_v50  ;;  %v22993_v27 = vld [vmem:[#allocation60_spill] sm:$0xff] }
 0x5b9   : > { %v8143_v51 = vcombine.high %v7962_v40, %v7962_v40  ;;  %v8150_v48 = vrot.slane %v7962_v40, %v22874_v26  ;;  %v8945_v1 = vcombine.low %v8111_v61, %v8118_v4  ;;  %v8962_v28 = vcombine.low %v18313_v11, %v22988_v34  ;;  %v22992_v11 = vld [vmem:[#allocation140_spill] sm:$0xff] }
 0x5ba   : > { %v7964_v63 = vpop.permute.xlu1 %7963  ;;  %v6460_v18 = vsel %vm561_vm2, 0.0, %v22992_v11  ;;  %v22995_v21 = vcombine.low %v22993_v27, %v22994_v57  ;;  %v22997_v27 = vld [vmem:[#allocation76_spill] sm:$0xff]  ;;  %v22998_v57 = vld [vmem:[#allocation129_spill] sm:$0xff] }
 0x5bb   : > { %v8157_v61 = vrot.slane %v8143_v51, %v22874_v26  ;;  %v8963_v4 = vcombine.low %v8142_v20, %v8150_v48  ;;  %v8953_v40 = vrot.slane %v8945_v1, %v22874_v26  ;;  %13127 = vrot.lane.b32.xlu1 %v13022_v19, %s14677_s15  ;;  %v8158_v34 = vcombine.high %v8150_v48, %v8150_v48  ;;  %v22996_v51 = vld [vmem:[#allocation93_spill] sm:$0xff] }
 0x5bc   : > { %v7966_v55 = vpop.permute.xlu0 %7965  ;;  %v8166_v50 = vrot.slane %v7964_v63, %v22874_v26  ;;  %v7793_v42 = vadd.f32 %v7767_v24, %v22995_v21  ;;  %v7768_v20 = vsel %vm561_vm2, 0.0, %v22996_v51  ;;  %v8970_v19 = vrot.slane %v8962_v28, %v22874_v26 }
 0x5bd   : > { %v8977_v1 = vrot.slane %v8963_v4, %v22874_v26  ;;  %v8191_v39 = vcombine.high %v7966_v55, %v7966_v55  ;;  %v8198_v48 = vrot.slane %v7966_v55, %v22874_v26  ;;  %v8159_v11 = vcombine.high %v8157_v61, %v8157_v61 }
 0x5be   : > { %v7968_v32 = vpop.permute.xlu1 %7967  ;;  %v8961_v63 = vcombine.low %v8953_v40, %v8960_v10  ;;  %v7829_v7 = vadd.f32 %v7793_v42, %v6486_v23  ;;  %v6488_v24 = vadd.f32 %v6460_v18, %v18233_v53  ;;  %v22999_v21 = vcombine.low %v22997_v27, %v22998_v57  ;;  %v23004_v27 = vld [vmem:[#allocation83_spill] sm:$0xff] }
 0x5bf   : > { %v8979_v4 = vcombine.low %v8158_v34, %v8157_v61  ;;  %v8980_v44 = vcombine.low %v8159_v11, %v8166_v50  ;;  %v8978_v55 = vcombine.low %v8970_v19, %v8977_v1  ;;  %v8238_v10 = vrot.slane %v18438_v29, %v22874_v26  ;;  %v23003_v34 = vld [vmem:[#allocation135_spill] sm:$0xff]  ;;  %v23007_v19 = vld [vmem:[#allocation18_spill] sm:$0xff] }
 0x5c0   : > { %v7795_v51 = vadd.f32 %v7768_v20, %v22999_v21  ;;  %v7970_v28 = vpop.permute.xlu0 %7969  ;;  %14312 = vmatmul.mubr.msk.f32.gmra.mrb[20].mxu0 %vm2906_vm3, %v8961_v63  ;;  %v23000_v40 = vmov 0.0   ;;  %v23001_v53 = vcombine.high %v18353_v47, %v18353_v47  ;;  %v23002_v61 = vcombine.high %v18423_v15, %v18423_v15 }
 0x5c1   : > { %v18690_v5 = vrot.slane %v7970_v28, %v22874_v26  ;;  %9828 = vmatprep.mubr.f32.mxu0 %v23000_v40  ;;  %v6487_v50 = vadd.f32 %v23003_v34, %v18180_v49  ;;  %v8205_v29 = vrot.slane %v8191_v39, %v22874_v26  ;;  %v8206_v42 = vcombine.high %v8198_v48, %v8198_v48 }
 0x5c2   : > { %v8997_v23 = vcombine.low %v18353_v47, %v23001_v53  ;;  %v9047_v18 = vcombine.low %v18423_v15, %v23002_v61  ;;  %v8994_v20 = vrot.slane %v8980_v44, %v22874_v26  ;;  %v18705_v1 = vpop.permute.xlu1 %7971  ;;  %v18709_v11 = vcombine.low %v8510_v60, %v8518_v56 }
 0x5c3   : > { %v7831_v47 = vadd.f32 %v7795_v51, %v6488_v24  ;;  %v9048_v63 = vcombine.low %v8238_v10, %v18690_v5  ;;  %v7865_v15 = vadd.f32 %v18273_v0, %v7829_v7  ;;  %v7072_v49 = vcombine.high %v18225_v43, %v18225_v43  ;;  %v23005_v51 = vld [vmem:[#allocation64_spill] sm:$0xff] }
 0x5c4   : > { %v7097_v39 = vcombine.high %v23004_v27, %v23004_v27  ;;  %14313 = vmatmul.mubr.msk.f32.gmra.mrb[22].mxu0 %vm2906_vm3, %v8978_v55  ;;  %v8987_v44 = vrot.slane %v8979_v4, %v22874_v26  ;;  %v8190_v57 = vrot.slane %v18435_v30, %v22874_v26  ;;  %v9011_v7 = vrot.slane %v8997_v23, %v22874_v26  ;;  %v23006_v30 = vld [vmem:[#allocation146_spill] sm:$0xff] }
 0x5c5   : > { %v9062_v60 = vrot.slane %v9048_v63, %v22874_v26  ;;  %v12566_v56 = vpop.permute.xlu0 %12565  ;;  %9834 = vmatprep.mubr.f32.mxu0 %v23000_v40  ;;  %v9055_v24 = vrot.slane %v9047_v18, %v22874_v26  ;;  %v9014_v43 = vcombine.low %v8206_v42, %v8205_v29  ;;  %v8214_v21 = vrot.slane %v7968_v32, %v22874_v26  ;;  %v23008_v32 = vld [vmem:[#allocation91_spill] sm:$0xff] }
 0x5c6   : > { %v12775_v10 = vadd.f32 %v12566_v56, %v23005_v51  ;;  %v18727_v55 = vpop.permute.xlu1 %7975  ;;  %v8995_v4 = vcombine.low %v8987_v44, %v8994_v20  ;;  %v7867_v53 = vadd.f32 %v18273_v0, %v7831_v47  ;;  %v6461_v61 = vsel %vm561_vm2, 0.0, %v23006_v30  ;;  %v23009_v44 = vld [vmem:[#allocation81_spill] sm:$0xff] }
 0x5c7   : > { %v8239_v34 = vcombine.high %v7970_v28, %v7970_v28  ;;  %v18732_v63 = vcombine.low %v9055_v24, %v9062_v60  ;;  %v9013_v27 = vcombine.low %v8190_v57, %v8198_v48  ;;  %v8207_v23 = vcombine.high %v8205_v29, %v8205_v29  ;;  %v23010_v51 = vld [vmem:[#allocation97_spill] sm:$0xff]  ;;  %v23011_v28 = vld [vmem:[#allocation47_spill] sm:$0xff] }
 0x5c8   : > { %v13592_v18 = vadd.f32 %v23007_v19, %v12775_v10  ;;  %14314 = vmatmul.mubr.msk.f32.gmra.mrb[24].mxu0 %vm2906_vm3, %v8995_v4  ;;  %v9004_v42 = vrot.slane %v23008_v32, %v22874_v26  ;;  %v8551_v56 = vcombine.high %v7865_v15, %v7865_v15  ;;  %v8558_v20 = vrot.slane %v7865_v15, %v22874_v26  ;;  %v23012_v24 = vld [vmem:[#allocation17_spill] sm:$0xff] }
 0x5c9   : > { %v7830_v47 = vadd.f32 %v18642_v38, %v6487_v50  ;;  %v6489_v30 = vadd.f32 %v23010_v51, %v23009_v44  ;;  %9840 = vmatprep.mubr.f32.mxu0 %v23000_v40  ;;  %v7769_v48 = vsel %vm561_vm2, 0.0, %v23011_v28  ;;  %v9030_v29 = vcombine.low %v8207_v23, %v8214_v21  ;;  %v23013_v4 = vld [vmem:[#allocation137_spill] sm:$0xff] }
 0x5ca   : > { %13732 = vrot.lane.b32.xlu0 %v13592_v18, %s14676_s23  ;;  %v9012_v57 = vcombine.low %v9004_v42, %v9011_v7  ;;  %v9028_v60 = vrot.slane %v9014_v43, %v22874_v26  ;;  %v6490_v10 = vadd.f32 %v6461_v61, %v23012_v24  ;;  %v7079_v15 = vrot.slane %v7072_v49, %v15049_v14  ;;  %v18755_v23 = vpop.permute.xlu1 %7979  ;;  %v23014_v43 = vld [vmem:[#allocation131_spill] sm:$0xff] }
 0x5cb   : > { %v7104_v38 = vrot.slane %v7097_v39, %v15049_v14  ;;  %v8253_v50 = vrot.slane %v8239_v34, %v22874_v26  ;;  %v7796_v32 = vadd.f32 %v23013_v4, %v18629_v12  ;;  %v8599_v44 = vcombine.high %v7867_v53, %v7867_v53  ;;  %v23015_v39 = vld [vmem:[#allocation132_spill] sm:$0xff] }
 0x5cc   : > { %v8606_v51 = vrot.slane %v7867_v53, %v22874_v26  ;;  %v9021_v21 = vrot.slane %v9013_v27, %v22874_v26  ;;  %14315 = vmatmul.mubr.msk.f32.gmra.mrb[26].mxu0 %vm2906_vm3, %v9012_v57  ;;  %v18759_v7 = vrot.slane %v8551_v56, %v22874_v26  ;;  %v8566_v49 = vcombine.high %v8558_v20, %v8558_v20  ;;  %v23017_v56 = vld [vmem:[#allocation44_spill] sm:$0xff] }
 0x5cd   : > { %v23016_v61 = vcombine.low %v23014_v43, %v23015_v39  ;;  %v8262_v12 = vrot.slane %v18705_v1, %v22874_v26  ;;  %9846 = vmatprep.mubr.f32.mxu0 %v23000_v40  ;;  %v18768_v53 = vadd.f32 %v18315_v13, %v7830_v47  ;;  %v7832_v27 = vadd.f32 %v7796_v32, %v6489_v30  ;;  %v23018_v39 = vld [vmem:[#allocation112_spill] sm:$0xff] }
 0x5ce   : > { %v9038_v18 = vrot.slane %v9030_v29, %v22874_v26  ;;  %v9029_v42 = vcombine.low %v9021_v21, %v9028_v60  ;;  %v7122_v57 = vcombine.high %v23017_v56, %v23017_v56  ;;  %v8254_v24 = vcombine.high %v18690_v5, %v18690_v5  ;;  %v18796_v21 = vpop.permute.xlu1 %7983  ;;  %v23027_v29 = vld [vmem:[#allocation133_spill] sm:$0xff] }
 0x5cf   : > { %v7797_v34 = vadd.f32 %v7769_v48, %v23016_v61  ;;  %v8255_v48 = vcombine.high %v8253_v50, %v8253_v50  ;;  %v18776_v4 = vrot.slane %v8599_v44, %v22874_v26  ;;  %v8614_v1 = vcombine.high %v8606_v51, %v8606_v51 }
 0x5d0   : > { %v18779_v43 = vsel %vm561_vm2, %v7079_v15, 0.0  ;;  %v7974_v47 = vpop.permute.xlu0 %7973  ;;  %14316 = vmatmul.mubr.msk.f32.gmra.mrb[28].mxu0 %vm2906_vm3, %v9029_v42  ;;  %v9045_v30 = vrot.slane %v18457_v33, %v22874_v26  ;;  %v18786_v60 = vcombine.low %v8558_v20, %v8566_v49  ;;  %v18789_v5 = vsel %vm561_vm2, %v7104_v38, 0.0  ;;  %v23021_v42 = vld [vmem:[#allocation108_spill] sm:$0xff] }
 0x5d1   : > { %v7833_v28 = vadd.f32 %v7797_v34, %v6490_v10  ;;  %v9065_v10 = vcombine.low %v8255_v48, %v8262_v12  ;;  %9852 = vmatprep.mubr.f32.mxu0 %v23000_v40  ;;  %v18793_v15 = vadd.f32 %v18315_v13, %v7832_v27  ;;  %v8287_v32 = vcombine.high %v7974_v47, %v7974_v47  ;;  %v23020_v27 = vld [vmem:[#allocation85_spill] sm:$0xff]  ;;  %v23022_v48 = vld [vmem:[#allocation156_spill] sm:$0xff]  ;;  %v23028_v34 = vld [vmem:[#allocation134_spill] sm:$0xff] }
 0x5d2   : > { %v8294_v44 = vrot.slane %v7974_v47, %v22874_v26  ;;  %v9046_v33 = vcombine.low %v9038_v18, %v9045_v30  ;;  %v7798_v61 = vadd.f32 %v23018_v39, %v18647_v31  ;;  %v18802_v38 = vrot.slane %v7122_v57, %v15049_v14  ;;  %v23023_v31 = vld [vmem:[#allocation155_spill] sm:$0xff]  ;;  %v18840_v19 = vpop.permute.xlu1 %7987 }
 0x5d3   : > { %v7869_v20 = vadd.f32 %v18273_v0, %v7833_v28  ;;  %v9064_v49 = vcombine.low %v8254_v24, %v8253_v50  ;;  %v18806_v12 = vcombine.low %v8606_v51, %v8614_v1  ;;  %v6491_v56 = vadd.f32 %v23021_v42, %v23020_v27 }
 0x5d4   : > { %v6462_v18 = vsel %vm561_vm2, 0.0, %v23022_v48  ;;  %v7978_v47 = vpop.permute.xlu0 %7977  ;;  %14317 = vmatmul.mubr.msk.f32.gmra.mrb[30].mxu0 %vm2906_vm3, %v9046_v33  ;;  %v7770_v28 = vsel %vm561_vm2, 0.0, %v23023_v31  ;;  %v9079_v57 = vrot.slane %v9065_v10, %v22874_v26  ;;  %v23024_v50 = vcombine.high %v18445_v3, %v18445_v3  ;;  %v23026_v48 = vld [vmem:[#allocation43_spill] sm:$0xff] }
 0x5d5   : > { %23019 = vst [vmem:[#allocation113_spill] sm:$0xff] %v18806_v12  ;;  %9858 = vmatprep.mubr.f32.mxu0 %v23000_v40  ;;  %v23025_v24 = vcombine.high %v18510_v36, %v18510_v36  ;;  %v8301_v30 = vrot.slane %v8287_v32, %v22874_v26  ;;  %v8302_v33 = vcombine.high %v8294_v44, %v8294_v44 }
 0x5d6   : > { %v9082_v51 = vcombine.low %v18445_v3, %v23024_v50  ;;  %v8334_v39 = vrot.slane %v18527_v9, %v22874_v26  ;;  %v18829_v10 = vrot.slane %v7978_v47, %v22874_v26  ;;  %v8647_v27 = vcombine.high %v7869_v20, %v7869_v20 }
 0x5d7   : > { %v9132_v1 = vcombine.low %v18510_v36, %v23025_v24  ;;  %v8654_v42 = vrot.slane %v7869_v20, %v22874_v26  ;;  %v6492_v31 = vadd.f32 %v6462_v18, %v23026_v48  ;;  %v9072_v3 = vrot.slane %v9064_v49, %v22874_v26 }
 0x5d8   : > { %v7834_v50 = vadd.f32 %v7798_v61, %v6491_v56  ;;  %v23029_v36 = vcombine.low %v23027_v29, %v23028_v34  ;;  %v7147_v32 = vcombine.high %v18426_v17, %v18426_v17  ;;  %v9133_v9 = vcombine.low %v8334_v39, %v18829_v10  ;;  %v18842_v12 = vpop.permute.xlu0 %7981  ;;  %14318 = vmatmul.mubr.msk.f32.gmra.mrb[32].mxu0 %vm2906_vm3, %v18732_v63 }
 0x5d9   : > { %v8286_v20 = vrot.slane %v18473_v54, %v22874_v26  ;;  %9864 = vmatprep.mubr.f32.mxu0 %v23000_v40  ;;  %v9080_v61 = vcombine.low %v9072_v3, %v9079_v57  ;;  %v9096_v29 = vrot.slane %v9082_v51, %v22874_v26  ;;  %v9140_v49 = vrot.slane %v9132_v1, %v22874_v26 }
 0x5da   : > { %v7799_v24 = vadd.f32 %v7770_v28, %v23029_v36  ;;  %v8303_v17 = vcombine.high %v8301_v30, %v8301_v30  ;;  %v9099_v34 = vcombine.low %v8302_v33, %v8301_v30  ;;  %v8335_v56 = vcombine.high %v7978_v47, %v7978_v47  ;;  %v23030_v30 = vld [vmem:[#allocation159_spill] sm:$0xff]  ;;  %v18876_v36 = vpop.permute.xlu1 %7991 }
 0x5db   : > { %v9147_v18 = vrot.slane %v9133_v9, %v22874_v26  ;;  %v18853_v28 = vrot.slane %v8647_v27, %v22874_v26  ;;  %v8662_v39 = vcombine.high %v8654_v42, %v8654_v42  ;;  %v9089_v54 = vrot.slane %v18504_v52, %v22874_v26  ;;  %v23031_v27 = vld [vmem:[#allocation161_spill] sm:$0xff] }
 0x5dc   : > { %v7835_v63 = vadd.f32 %v7799_v24, %v6492_v31  ;;  %v8310_v57 = vrot.slane %v18727_v55, %v22874_v26  ;;  %v9098_v48 = vcombine.low %v8286_v20, %v8294_v44  ;;  %v18859_v51 = vpop.permute.xlu0 %7985  ;;  %v8430_v1 = vrot.slane %v18614_v62, %v22874_v26  ;;  %14319 = vmatmul.mubr.msk.f32.gmra.mrb[34].mxu0 %vm2906_vm3, %v9080_v61 }
 0x5dd   : > { %v18864_v47 = vcombine.low %v9140_v49, %v9147_v18  ;;  %v7771_v33 = vsel %vm561_vm2, 0.0, %v23030_v30  ;;  %v6463_v31 = vsel %vm561_vm2, 0.0, %v23031_v27  ;;  %9870 = vmatprep.mubr.f32.mxu0 %v23000_v40  ;;  %v9097_v52 = vcombine.low %v9089_v54, %v9096_v29  ;;  %v23033_v29 = vld [vmem:[#allocation157_spill] sm:$0xff] }
 0x5de   : > { %v23032_v55 = vcombine.high %v18582_v35, %v18582_v35  ;;  %v9115_v3 = vcombine.low %v8303_v17, %v8310_v57  ;;  %v8349_v62 = vrot.slane %v8335_v56, %v22874_v26  ;;  %v18880_v24 = vrot.slane %v18859_v51, %v22874_v26  ;;  %v23034_v17 = vld [vmem:[#allocation42_spill] sm:$0xff]  ;;  %v23035_v56 = vld [vmem:[#allocation152_spill] sm:$0xff] }
 0x5df   : > { %v9113_v9 = vrot.slane %v9099_v34, %v22874_v26  ;;  %v18884_v20 = vadd.f32 %v18315_v13, %v7834_v50  ;;  %v7871_v61 = vadd.f32 %v18273_v0, %v7835_v63  ;;  %v7800_v49 = vadd.f32 %v23033_v29, %v18779_v43 }
 0x5e0   : > { %v9217_v44 = vcombine.low %v18582_v35, %v23032_v55  ;;  %v18890_v35 = vrot.slane %v7147_v32, %v15049_v14  ;;  %v6493_v18 = vadd.f32 %v23035_v56, %v23034_v17  ;;  %v6494_v54 = vadd.f32 %v6463_v31, %v18412_v2  ;;  %v18897_v30 = vpop.permute.xlu0 %7989  ;;  %14320 = vmatmul.mubr.msk.f32.gmra.mrb[36].mxu0 %vm2906_vm3, %v9097_v52  ;;  %v23036_v14 = vld [vmem:[#allocation100_spill] sm:$0xff]  ;;  %v23037_v32 = vld [vmem:[#allocation102_spill] sm:$0xff] }
 0x5e1   : > { %v9106_v57 = vrot.slane %v9098_v48, %v22874_v26  ;;  %v9218_v34 = vcombine.low %v8430_v1, %v18880_v24  ;;  %v8663_v50 = vcombine.high %v18853_v28, %v18853_v28  ;;  %v18902_v43 = vcombine.low %v8654_v42, %v8662_v39  ;;  %9876 = vmatprep.mubr.f32.mxu0 %v23000_v40 }
 0x5e2   : > { %v23038_v63 = vcombine.low %v23036_v14, %v23037_v32  ;;  %v9225_v2 = vrot.slane %v9217_v44, %v22874_v26  ;;  %v8351_v48 = vcombine.high %v8349_v62, %v8349_v62  ;;  %v9123_v55 = vrot.slane %v9115_v3, %v22874_v26  ;;  %v23042_v32 = vld [vmem:[#allocation160_spill] sm:$0xff] }
 0x5e3   : > { %v9232_v1 = vrot.slane %v9218_v34, %v22874_v26  ;;  %v9114_v31 = vcombine.low %v9106_v57, %v9113_v9  ;;  %v8695_v52 = vcombine.high %v7871_v61, %v7871_v61  ;;  %v7836_v29 = vadd.f32 %v7800_v49, %v6493_v18  ;;  %v18921_v9 = vpop.permute.xlu1 %7995 }
 0x5e4   : > { %v7801_v27 = vadd.f32 %v7771_v33, %v23038_v63  ;;  %v9130_v42 = vrot.slane %v18603_v45, %v22874_v26  ;;  %v23039_v39 = vcombine.high %v18547_v22, %v18547_v22  ;;  %v8358_v44 = vrot.slane %v18755_v23, %v22874_v26  ;;  %v18923_v3 = vpop.permute.xlu0 %7993 }
 0x5e5   : > { %v8350_v56 = vcombine.high %v18829_v10, %v18829_v10  ;;  %14321 = vmatmul.mubr.msk.f32.gmra.mrb[38].mxu0 %vm2906_vm3, %v9114_v31  ;;  %v18926_v49 = vcombine.low %v9225_v2, %v9232_v1  ;;  %v18929_v45 = vrot.slane %v7871_v61, %v22874_v26  ;;  %v8526_v23 = vrot.slane %v18635_v8, %v22874_v26  ;;  %v23041_v8 = vld [vmem:[#allocation90_spill] sm:$0xff] }
 0x5e6   : > { %v9167_v33 = vcombine.low %v18547_v22, %v23039_v39  ;;  %v7837_v17 = vadd.f32 %v7801_v27, %v6494_v54  ;;  %v8383_v22 = vcombine.high %v18842_v12, %v18842_v12  ;;  %9882 = vmatprep.mubr.f32.mxu0 %v23000_v40  ;;  %v23040_v10 = vcombine.high %v18680_v6, %v18680_v6 }
 0x5e7   : > { %v9150_v54 = vcombine.low %v8351_v48, %v8358_v44  ;;  %v8390_v57 = vrot.slane %v18842_v12, %v22874_v26  ;;  %v18944_v61 = vrot.slane %v18923_v3, %v22874_v26  ;;  %v9131_v34 = vcombine.low %v9123_v55, %v9130_v42 }
 0x5e8   : > { %v9302_v18 = vcombine.low %v18680_v6, %v23040_v10  ;;  %v18947_v14 = vrot.slane %v8695_v52, %v22874_v26  ;;  %v6495_v63 = vadd.f32 %v23042_v32, %v23041_v8  ;;  %v8382_v27 = vrot.slane %v18606_v46, %v22874_v26  ;;  %v18959_v31 = vpop.permute.xlu0 %7997  ;;  %v23043_v52 = vld [vmem:[#allocation158_spill] sm:$0xff] }
 0x5e9   : > { %v9181_v6 = vrot.slane %v9167_v33, %v22874_v26  ;;  %v18955_v2 = vadd.f32 %v18315_v13, %v7836_v29  ;;  %v7873_v12 = vadd.f32 %v18273_v0, %v7837_v17  ;;  %v9149_v48 = vcombine.low %v8350_v56, %v8349_v62  ;;  %14322 = vmatmul.mubr.msk.f32.gmra.mrb[40].mxu0 %vm2906_vm3, %v9131_v34  ;;  %v18970_v62 = vpop.permute.xlu1 %7999 }
 0x5ea   : > { %v9303_v1 = vcombine.low %v8526_v23, %v18944_v61  ;;  %v8710_v55 = vcombine.high %v18929_v45, %v18929_v45  ;;  %v7802_v46 = vadd.f32 %v23043_v52, %v18789_v5  ;;  %v8397_v42 = vrot.slane %v8383_v22, %v22874_v26  ;;  %9888 = vmatprep.mubr.f32.mxu0 %v23000_v40  ;;  %v23045_v52 = vld [vmem:[#allocation163_spill] sm:$0xff] }
 0x5eb   : > { %v9174_v0 = vrot.slane %v18611_v25, %v22874_v26  ;;  %v8398_v13 = vcombine.high %v8390_v57, %v8390_v57  ;;  %v9164_v39 = vrot.slane %v9150_v54, %v22874_v26  ;;  %v9310_v33 = vrot.slane %v9302_v18, %v22874_v26 }
 0x5ec   : > { %v9317_v29 = vrot.slane %v9303_v1, %v22874_v26  ;;  %v8711_v17 = vcombine.high %v18947_v14, %v18947_v14  ;;  %v18977_v5 = vadd.f32 %v7802_v46, %v6495_v63  ;;  %v9215_v56 = vrot.slane %v18619_v16, %v22874_v26  ;;  %v8002_v23 = vpop.permute.xlu0 %8001 }
 0x5ed   : > { %v9182_v44 = vcombine.low %v9174_v0, %v9181_v6  ;;  %v8743_v22 = vcombine.high %v7873_v12, %v7873_v12  ;;  %v18982_v25 = vrot.slane %v7873_v12, %v22874_v26  ;;  %14323 = vmatmul.mubr.msk.f32.gmra.mrb[42].mxu0 %vm2906_vm3, %v18864_v47  ;;  %v9157_v10 = vrot.slane %v9149_v48, %v22874_v26  ;;  %v8004_v12 = vpop.permute.xlu1 %8003 }
 0x5ee   : > { %v18987_v18 = vcombine.low %v9310_v33, %v9317_v29  ;;  %v8399_v54 = vcombine.high %v8397_v42, %v8397_v42  ;;  %v8622_v34 = vrot.slane %v18793_v15, %v22874_v26  ;;  %v8623_v8 = vcombine.high %v8002_v23, %v8002_v23  ;;  %9894 = vmatprep.mubr.f32.mxu0 %v23000_v40  ;;  %v23046_v15 = vld [vmem:[#allocation165_spill] sm:$0xff] }
 0x5ef   : > { %v23044_v32 = vcombine.high %v18776_v4, %v18776_v4  ;;  %v9184_v6 = vcombine.low %v8398_v13, %v8397_v42  ;;  %v8431_v47 = vcombine.high %v18859_v51, %v18859_v51  ;;  %v8630_v48 = vrot.slane %v8002_v23, %v22874_v26 }
 0x5f0   : > { %v9165_v1 = vcombine.low %v9157_v10, %v9164_v39  ;;  %v7772_v46 = vsel %vm561_vm2, 0.0, %v23045_v52  ;;  %v6464_v0 = vsel %vm561_vm2, 0.0, %v23046_v15  ;;  %v8406_v29 = vrot.slane %v18796_v21, %v22874_v26 }
 0x5f1   : > { %v9387_v63 = vcombine.low %v18776_v4, %v23044_v32  ;;  %v8637_v33 = vrot.slane %v8623_v8, %v22874_v26  ;;  %v9183_v4 = vcombine.low %v8382_v27, %v8390_v57  ;;  %v8638_v42 = vcombine.high %v8630_v48, %v8630_v48 }
 0x5f2   : > { %v9388_v13 = vcombine.low %v8622_v34, %v8630_v48  ;;  %14324 = vmatmul.mubr.msk.f32.gmra.mrb[44].mxu0 %vm2906_vm3, %v9165_v1  ;;  %v23047_v51 = vcombine.high %v18593_v59, %v18593_v59  ;;  %v9200_v23 = vcombine.low %v8399_v54, %v8406_v29  ;;  %v8646_v10 = vrot.slane %v8004_v12, %v22874_v26  ;;  %v23049_v1 = vld [vmem:[#allocation111_spill] sm:$0xff]  ;;  %v8006_v29 = vpop.permute.xlu0 %8005 }
 0x5f3   : > { %v8639_v32 = vcombine.high %v8637_v33, %v8637_v33  ;;  %9900 = vmatprep.mubr.f32.mxu0 %v23000_v40  ;;  %v9395_v21 = vrot.slane %v9387_v63, %v22874_v26  ;;  %v8445_v57 = vrot.slane %v8431_v47, %v22874_v26  ;;  %v9404_v34 = vcombine.low %v8638_v42, %v8637_v33 }
 0x5f4   : > { %v19011_v39 = vcombine.low %v18593_v59, %v23047_v51  ;;  %v9402_v27 = vrot.slane %v9388_v13, %v22874_v26  ;;  %v9198_v8 = vrot.slane %v9184_v6, %v22874_v26  ;;  %v19020_v48 = vrot.slane %v8743_v22, %v22874_v26  ;;  %v23048_v59 = vld [vmem:[#allocation142_spill] sm:$0xff] }
 0x5f5   : > { %v23050_v54 = vcombine.low %v23048_v59, %v23049_v1  ;;  %v9405_v12 = vcombine.low %v8639_v32, %v8646_v10  ;;  %v9422_v63 = vcombine.low %v18853_v28, %v8663_v50  ;;  %v6496_v47 = vadd.f32 %v6464_v0, %v18491_v58  ;;  %v8008_v28 = vpop.permute.xlu1 %8007 }
 0x5f6   : > { %v9191_v15 = vrot.slane %v9183_v4, %v22874_v26  ;;  %14325 = vmatmul.mubr.msk.f32.gmra.mrb[46].mxu0 %vm2906_vm3, %v9182_v44  ;;  %v9266_v22 = vrot.slane %v19011_v39, %v22874_v26  ;;  %v19034_v6 = vcombine.low %v9395_v21, %v9402_v27  ;;  %v8671_v42 = vcombine.high %v8006_v29, %v8006_v29 }
 0x5f7   : > { %v7803_v52 = vadd.f32 %v7772_v46, %v23050_v54  ;;  %v9412_v46 = vrot.slane %v9404_v34, %v22874_v26  ;;  %v9419_v33 = vrot.slane %v9405_v12, %v22874_v26  ;;  %v8678_v13 = vrot.slane %v8006_v29, %v22874_v26  ;;  %9906 = vmatprep.mubr.f32.mxu0 %v23000_v40  ;;  %v19068_v29 = vld [vmem:[#allocation7 + $0x8] sm:$0x3] }
 0x5f8   : > { %v8447_v58 = vcombine.high %v8445_v57, %v8445_v57  ;;  %v8670_v50 = vrot.slane %v18884_v20, %v22874_v26  ;;  %v9199_v44 = vcombine.low %v9191_v15, %v9198_v8  ;;  %v9208_v0 = vrot.slane %v9200_v23, %v22874_v26 }
 0x5f9   : > { %v9420_v4 = vcombine.low %v9412_v46, %v9419_v33  ;;  %v8685_v51 = vrot.slane %v8671_v42, %v22874_v26  ;;  %v8686_v39 = vcombine.high %v8678_v13, %v8678_v13  ;;  %v9436_v10 = vrot.slane %v9422_v63, %v22874_v26  ;;  %v19091_v42 = vld [vmem:[#allocation7] sm:$0xff] }
 0x5fa   : > { %v8454_v32 = vrot.slane %v18840_v19, %v22874_v26  ;;  %v8446_v21 = vcombine.high %v18880_v24, %v18880_v24  ;;  %v8694_v27 = vrot.slane %v8008_v28, %v22874_v26  ;;  %14326 = vmatmul.mubr.msk.f32.gmra.mrb[48].mxu0 %vm2906_vm3, %v9199_v44  ;;  %v9429_v20 = vrot.slane %v18902_v43, %v22874_v26 }
 0x5fb   : > { %v9438_v23 = vcombine.low %v8670_v50, %v8678_v13  ;;  %v9439_v34 = vcombine.low %v8686_v39, %v8685_v51  ;;  %v8687_v8 = vcombine.high %v8685_v51, %v8685_v51  ;;  %14339 = vmatmul.mubr.msk.f32.vlgmr.msra.gmra.mrb[40].mxu1 %vm2906_vm3, %v9420_v4  ;;  %9912 = vmatprep.mubr.f32.mxu0 %v23000_v40 }
 0x5fc   : > { %v9235_v59 = vcombine.low %v8447_v58, %v8454_v32  ;;  %v8479_v19 = vcombine.high %v18897_v30, %v18897_v30  ;;  %v8486_v24 = vrot.slane %v18897_v30, %v22874_v26  ;;  %9990 = vmatprep.mubr.f32.mxu1 %v23000_v40  ;;  %v9216_v43 = vcombine.low %v9208_v0, %v9215_v56 }
 0x5fd   : > { %v7839_v1 = vadd.f32 %v7803_v52, %v6496_v47  ;;  %v9455_v54 = vcombine.low %v8687_v8, %v8694_v27  ;;  %v9437_v12 = vcombine.low %v9429_v20, %v9436_v10  ;;  %v9453_v63 = vrot.slane %v9439_v34, %v22874_v26  ;;  %v23051_v52 = vld [vmem:[#allocation169_spill] sm:$0xff]  ;;  %v23053_v10 = vld [vmem:[#allocation167_spill] sm:$0xff] }
 0x5fe   : > { %v9456_v15 = vcombine.low %v18929_v45, %v8710_v55  ;;  %v19072_v30 = vadd.f32 %v19068_v29, %v18977_v5  ;;  %v9234_v46 = vcombine.low %v8446_v21, %v8445_v57  ;;  %v8478_v16 = vrot.slane %v18622_v41, %v22874_v26  ;;  %14327 = vmatmul.mubr.msk.f32.gmra.mrb[50].mxu0 %vm2906_vm3, %v9216_v43  ;;  %v8010_v0 = vpop.permute.xlu0 %8009 }
 0x5ff   : > { %v8758_v56 = vcombine.high %v18982_v25, %v18982_v25  ;;  %v6465_v47 = vsel %vm561_vm2, 0.0, %v23051_v52  ;;  %v9446_v45 = vrot.slane %v9438_v23, %v22874_v26  ;;  %14340 = vmatmul.mubr.msk.f32.gmra.mrb[42].mxu1 %vm2906_vm3, %v9437_v12  ;;  %9918 = vmatprep.mubr.f32.mxu0 %v23000_v40  ;;  %v9259_v55 = vrot.slane %v18632_v37, %v22874_v26  ;;  %v23052_v37 = vld [vmem:[#allocation35_spill] sm:$0xff] }
 0x600   : > { %v8759_v41 = vcombine.high %v19020_v48, %v19020_v48  ;;  %v8493_v5 = vrot.slane %v8479_v19, %v22874_v26  ;;  %v8494_v57 = vcombine.high %v8486_v24, %v8486_v24  ;;  %9996 = vmatprep.mubr.f32.mxu1 %v23000_v40  ;;  %v9249_v33 = vrot.slane %v9235_v59, %v22874_v26 }
 0x601   : > { %v19094_v13 = vadd.f32 %v19091_v42, %v7839_v1  ;;  %v9463_v28 = vrot.slane %v9455_v54, %v22874_v26  ;;  %v9454_v58 = vcombine.low %v9446_v45, %v9453_v63  ;;  %v9267_v50 = vcombine.low %v9259_v55, %v9266_v22  ;;  %v8012_v22 = vpop.permute.xlu1 %8011 }
 0x602   : > { %v6498_v44 = vadd.f32 %v6465_v47, %v23052_v37  ;;  %v8718_v4 = vrot.slane %v18955_v2, %v22874_v26  ;;  %14328 = vmatmul.mubr.msk.f32.gmra.mrb[52].mxu0 %vm2906_vm3, %v18926_v49  ;;  %v9242_v51 = vrot.slane %v9234_v46, %v22874_v26  ;;  %v9472_v39 = vcombine.low %v18947_v14, %v8711_v17  ;;  %v23054_v46 = vld [vmem:[#allocation148_spill] sm:$0xff] }
 0x603   : > { %v7773_v32 = vsel %vm561_vm2, 0.0, %v23053_v10  ;;  %v8719_v21 = vcombine.high %v8010_v0, %v8010_v0  ;;  %v8726_v27 = vrot.slane %v8010_v0, %v22874_v26  ;;  %14341 = vmatmul.mubr.msk.f32.gmra.mrb[44].mxu1 %vm2906_vm3, %v9454_v58  ;;  %v9470_v2 = vrot.slane %v9456_v15, %v22874_v26  ;;  %9924 = vmatprep.mubr.f32.mxu0 %v23000_v40  ;;  %v23058_v58 = vld [vmem:[#allocation22_spill] sm:$0xff]  ;;  %v23059_v37 = vld [vmem:[#allocation164_spill] sm:$0xff] }
 0x604   : > { %v8495_v49 = vcombine.high %v8493_v5, %v8493_v5  ;;  %v9269_v20 = vcombine.low %v8494_v57, %v8493_v5  ;;  %v8527_v23 = vcombine.high %v18923_v3, %v18923_v3  ;;  %10002 = vmatprep.mubr.f32.mxu1 %v23000_v40  ;;  %v9250_v14 = vcombine.low %v9242_v51, %v9249_v33  ;;  %v23057_v33 = vld [vmem:[#allocation162_spill] sm:$0xff] }
 0x605   : > { %v8733_v17 = vrot.slane %v8719_v21, %v22874_v26  ;;  %v8734_v34 = vcombine.high %v8726_v27, %v8726_v27  ;;  %v9473_v8 = vcombine.low %v8718_v4, %v8726_v27  ;;  %v9471_v59 = vcombine.low %v9463_v28, %v9470_v2 }
 0x606   : > { %v8502_v19 = vrot.slane %v18876_v36, %v22874_v26  ;;  %v9268_v43 = vcombine.low %v8478_v16, %v8486_v24  ;;  %v8742_v1 = vrot.slane %v8012_v22, %v22874_v26  ;;  %14329 = vmatmul.mubr.msk.f32.gmra.mrb[54].mxu0 %vm2906_vm3, %v9250_v14  ;;  %v9480_v54 = vrot.slane %v9472_v39, %v22874_v26  ;;  %v23055_v36 = vld [vmem:[#allocation149_spill] sm:$0xff] }
 0x607   : > { %v7228_v3 = vsel %vm561_vm2, %v18802_v38, 0.0  ;;  %v8735_v12 = vcombine.high %v8733_v17, %v8733_v17  ;;  %v9487_v63 = vrot.slane %v9473_v8, %v22874_v26  ;;  %v9489_v15 = vcombine.low %v8734_v34, %v8733_v17  ;;  %14342 = vmatmul.mubr.msk.f32.gmra.mrb[46].mxu1 %vm2906_vm3, %v9471_v59  ;;  %9930 = vmatprep.mubr.f32.mxu0 %v23000_v40 }
 0x608   : > { %v23056_v24 = vcombine.low %v23054_v46, %v23055_v36  ;;  %v9285_v52 = vcombine.low %v8495_v49, %v8502_v19  ;;  %v8541_v47 = vrot.slane %v8527_v23, %v22874_v26  ;;  %10008 = vmatprep.mubr.f32.mxu1 %v23000_v40  ;;  %v9283_v45 = vrot.slane %v9269_v20, %v22874_v26  ;;  %v8016_v17 = vpop.permute.xlu1 %8015 }
 0x609   : > { %v8798_v38 = vrot.slane %v19094_v13, %v22874_v26  ;;  %v9490_v55 = vcombine.low %v8735_v12, %v8742_v1  ;;  %v9488_v5 = vcombine.low %v9480_v54, %v9487_v63  ;;  %v9507_v57 = vcombine.low %v19020_v48, %v8759_v41 }
 0x60a   : > { %v7805_v16 = vadd.f32 %v7773_v32, %v23056_v24  ;;  %v7804_v28 = vadd.f32 %v23057_v33, %v7228_v3  ;;  %v6497_v0 = vadd.f32 %v23059_v37, %v23058_v58  ;;  %v9276_v51 = vrot.slane %v9268_v43, %v22874_v26  ;;  %14330 = vmatmul.mubr.msk.f32.gmra.mrb[56].mxu0 %vm2906_vm3, %v9267_v50  ;;  %v23061_v33 = vld [vmem:[#allocation166_spill] sm:$0xff] }
 0x60b   : > { %v9506_v39 = vcombine.low %v18982_v25, %v8758_v56  ;;  %14343 = vmatmul.mubr.msk.f32.gmra.mrb[48].mxu1 %vm2906_vm3, %v9488_v5  ;;  %v9497_v10 = vrot.slane %v9489_v15, %v22874_v26  ;;  %v9504_v48 = vrot.slane %v9490_v55, %v22874_v26  ;;  %9936 = vmatprep.mubr.f32.mxu0 %v23000_v40  ;;  %v8014_v49 = vpop.permute.xlu0 %8013  ;;  %v7229_v12 = vsel %vm561_vm2, %v18890_v35, 0.0 }
 0x60c   : > { %v7841_v4 = vadd.f32 %v7805_v16, %v6498_v44  ;;  %v8791_v41 = vcombine.high %v19094_v13, %v19094_v13  ;;  %v8543_v44 = vcombine.high %v8541_v47, %v8541_v47  ;;  %10014 = vmatprep.mubr.f32.mxu1 %v23000_v40  ;;  %v9284_v50 = vcombine.low %v9276_v51, %v9283_v45 }
 0x60d   : > { %v9293_v32 = vrot.slane %v9285_v52, %v22874_v26  ;;  %v8806_v22 = vcombine.high %v8798_v38, %v8798_v38  ;;  %v9505_v21 = vcombine.low %v9497_v10, %v9504_v48  ;;  %v9521_v25 = vrot.slane %v9507_v57, %v22874_v26 }
 0x60e   : > { %v9300_v56 = vrot.slane %v18709_v11, %v22874_v26  ;;  %v7877_v27 = vadd.f32 %v19091_v42, %v7841_v4  ;;  %v8550_v2 = vrot.slane %v18921_v9, %v22874_v26  ;;  %v8542_v13 = vcombine.high %v18944_v61, %v18944_v61  ;;  %14331 = vmatmul.mubr.msk.f32.gmra.mrb[58].mxu0 %vm2906_vm3, %v9284_v50 }
 0x60f   : > { %v8766_v20 = vrot.slane %v19072_v30, %v22874_v26  ;;  %v8767_v23 = vcombine.high %v8014_v49, %v8014_v49  ;;  %v8774_v14 = vrot.slane %v8014_v49, %v22874_v26  ;;  %14344 = vmatmul.mubr.msk.f32.gmra.mrb[50].mxu1 %vm2906_vm3, %v9505_v21  ;;  %v9514_v11 = vrot.slane %v9506_v39, %v22874_v26 }
 0x610   : > { %9942 = vmatprep.mubr.f32.mxu0 %v23000_v40  ;;  %v9320_v42 = vcombine.low %v8543_v44, %v8550_v2  ;;  %v8575_v9 = vcombine.high %v18959_v31, %v18959_v31  ;;  %v8582_v61 = vrot.slane %v18959_v31, %v22874_v26  ;;  %10020 = vmatprep.mubr.f32.mxu1 %v23000_v40 }
 0x611   : > { %v9301_v30 = vcombine.low %v9293_v32, %v9300_v56  ;;  %v8781_v34 = vrot.slane %v8767_v23, %v22874_v26  ;;  %v8782_v8 = vcombine.high %v8774_v14, %v8774_v14  ;;  %v9523_v59 = vcombine.low %v8766_v20, %v8774_v14 }
 0x612   : > { %v9522_v19 = vcombine.low %v9514_v11, %v9521_v25  ;;  %v8805_v43 = vrot.slane %v8791_v41, %v22874_v26  ;;  %v7840_v1 = vadd.f32 %v7804_v28, %v6497_v0  ;;  %v8839_v54 = vcombine.high %v7877_v27, %v7877_v27  ;;  %v23063_v41 = vld [vmem:[#allocation168_spill] sm:$0xff] }
 0x613   : > { %v9319_v3 = vcombine.low %v8542_v13, %v8541_v47  ;;  %14332 = vmatmul.mubr.msk.f32.gmra.mrb[60].mxu0 %vm2906_vm3, %v9301_v30  ;;  %v9524_v31 = vcombine.low %v8782_v8, %v8781_v34  ;;  %v8783_v63 = vcombine.high %v8781_v34, %v8781_v34  ;;  %v8790_v15 = vrot.slane %v8016_v17, %v22874_v26 }
 0x614   : > { %14345 = vmatmul.mubr.msk.f32.gmra.mrb[52].mxu1 %vm2906_vm3, %v9522_v19  ;;  %9948 = vmatprep.mubr.f32.mxu0 %v23000_v40  ;;  %v8589_v46 = vrot.slane %v8575_v9, %v22874_v26  ;;  %v8590_v36 = vcombine.high %v8582_v61, %v8582_v61  ;;  %v9334_v24 = vrot.slane %v9320_v42, %v22874_v26 }
 0x615   : > { %10026 = vmatprep.mubr.f32.mxu1 %v23000_v40  ;;  %v23060_v16 = vcombine.high %v18759_v7, %v18759_v7  ;;  %v9541_v52 = vcombine.low %v8798_v38, %v8806_v22  ;;  %v9531_v47 = vrot.slane %v9523_v59, %v22874_v26  ;;  %v9540_v45 = vcombine.low %v8783_v63, %v8790_v15  ;;  %v8020_v20 = vpop.permute.xlu1 %8019  ;;  %v23064_v63 = vld [vmem:[#allocation113_spill] sm:$0xff] }
 0x616   : > { %v9538_v55 = vrot.slane %v9524_v31, %v22874_v26  ;;  %v8807_v5 = vcombine.high %v8805_v43, %v8805_v43  ;;  %v7876_v57 = vadd.f32 %v19068_v29, %v7840_v1  ;;  %v7806_v28 = vadd.f32 %v23061_v33, %v7229_v12 }
 0x617   : > { %v9337_v35 = vcombine.low %v18759_v7, %v23060_v16  ;;  %14333 = vmatmul.mubr.msk.f32.gmra.mrb[62].mxu0 %vm2906_vm3, %v18987_v18  ;;  %v9327_v58 = vrot.slane %v9319_v3, %v22874_v26  ;;  %v8853_v37 = vrot.slane %v8839_v54, %v22874_v26  ;;  %v8574_v7 = vrot.slane %v18768_v53, %v22874_v26  ;;  %v23062_v18 = vld [vmem:[#allocation101_spill] sm:$0xff] }
 0x618   : > { %v9548_v38 = vrot.slane %v9540_v45, %v22874_v26  ;;  %v9539_v0 = vcombine.low %v9531_v47, %v9538_v55  ;;  %9954 = vmatprep.mubr.f32.mxu0 %v23000_v40  ;;  %v8591_v4 = vcombine.high %v8589_v46, %v8589_v46  ;;  %v9354_v51 = vcombine.low %v8590_v36, %v8589_v46  ;;  %v8018_v21 = vpop.permute.xlu0 %8017 }
 0x619   : > { %v9335_v39 = vcombine.low %v9327_v58, %v9334_v24  ;;  %v9351_v10 = vrot.slane %v9337_v35, %v22874_v26  ;;  %v8846_v48 = vrot.slane %v7877_v27, %v22874_v26  ;;  %v6499_v44 = vadd.f32 %v23063_v41, %v23062_v18  ;;  %v23065_v35 = vld [vmem:[#allocation16_spill] sm:$0xff]  ;;  %v23066_v58 = vld [vmem:[#allocation106_spill] sm:$0xff] }
 0x61a   : > { %14346 = vmatmul.mubr.msk.f32.gmra.mrb[54].mxu1 %vm2906_vm3, %v9539_v0  ;;  %v9555_v50 = vrot.slane %v9541_v52, %v22874_v26  ;;  %v9344_v53 = vrot.slane %v18786_v60, %v22874_v26  ;;  %v8598_v32 = vrot.slane %v18970_v62, %v22874_v26  ;;  %v9353_v22 = vcombine.low %v8574_v7, %v8582_v61 }
 0x61b   : > { %10032 = vmatprep.mubr.f32.mxu1 %v23000_v40  ;;  %14334 = vmatmul.mubr.msk.f32.gmra.mrb[64].mxu0 %vm2906_vm3, %v9335_v39  ;;  %v9557_v25 = vcombine.low %v8805_v43, %v8807_v5  ;;  %v8814_v56 = vrot.slane %v7876_v57, %v22874_v26  ;;  %v8815_v27 = vcombine.high %v8018_v21, %v8018_v21 }
 0x61c   : > { %v8822_v2 = vrot.slane %v8018_v21, %v22874_v26  ;;  %v9556_v13 = vcombine.low %v9548_v38, %v9555_v50  ;;  %9960 = vmatprep.mubr.f32.mxu0 %v23000_v40  ;;  %v8855_v49 = vcombine.high %v8853_v37, %v8853_v37  ;;  %v9370_v60 = vcombine.low %v8591_v4, %v8598_v32 }
 0x61d   : > { %v9352_v23 = vcombine.low %v9344_v53, %v9351_v10  ;;  %v9368_v62 = vrot.slane %v9354_v51, %v22874_v26  ;;  %v7842_v14 = vadd.f32 %v7806_v28, %v6499_v44  ;;  %v8829_v11 = vrot.slane %v8815_v27, %v22874_v26 }
 0x61e   : > { %v8830_v42 = vcombine.high %v8822_v2, %v8822_v2  ;;  %v9558_v9 = vcombine.low %v8814_v56, %v8822_v2  ;;  %14347 = vmatmul.mubr.msk.f32.gmra.mrb[56].mxu1 %vm2906_vm3, %v9556_v13  ;;  %v8854_v61 = vcombine.high %v8846_v48, %v8846_v48  ;;  %v9361_v17 = vrot.slane %v9353_v22, %v22874_v26  ;;  %v23067_v13 = vld [vmem:[#allocation37_spill] sm:$0xff] }
 0x61f   : > { %14335 = vmatmul.mubr.msk.f32.gmra.mrb[66].mxu0 %vm2906_vm3, %v9352_v23  ;;  %10038 = vmatprep.mubr.f32.mxu1 %v23000_v40  ;;  %v9565_v30 = vrot.slane %v9557_v25, %v22874_v26  ;;  %v8831_v59 = vcombine.high %v8829_v11, %v8829_v11  ;;  %v8838_v19 = vrot.slane %v8020_v20, %v22874_v26 }
 0x620   : > { %v9572_v34 = vrot.slane %v9558_v9, %v22874_v26  ;;  %v9574_v8 = vcombine.low %v8830_v42, %v8829_v11  ;;  %9966 = vmatprep.mubr.f32.mxu0 %v23000_v40  ;;  %v9369_v43 = vcombine.low %v9361_v17, %v9368_v62  ;;  %v9378_v1 = vrot.slane %v9370_v60, %v22874_v26 }
 0x621   : > { %v9592_v54 = vcombine.low %v8853_v37, %v8855_v49  ;;  %v9575_v3 = vcombine.low %v8831_v59, %v8838_v19  ;;  %v9591_v31 = vcombine.low %v8846_v48, %v8854_v61  ;;  %v9385_v15 = vrot.slane %v23064_v63, %v22874_v26  ;;  %v8024_v16 = vpop.permute.xlu1 %8023  ;;  %v14466_v48 = vld [vmem:[#allocation10 + $0x8] sm:$0x7]  ;;  %v23069_v19 = vld [vmem:[#allocation88_spill] sm:$0xff] }
 0x622   : > { %v9573_v12 = vcombine.low %v9565_v30, %v9572_v34  ;;  %v7878_v46 = vadd.f32 %v19068_v29, %v7842_v14  ;;  %v9582_v24 = vrot.slane %v9574_v8, %v22874_v26  ;;  %v8894_v52 = vrot.slane %v23065_v35, %v22874_v26  ;;  %v23068_v14 = vld [vmem:[#allocation86_spill] sm:$0xff] }
 0x623   : > { %14336 = vmatmul.mubr.msk.f32.gmra.mrb[68].mxu0 %vm2906_vm3, %v9369_v43  ;;  %v9589_v36 = vrot.slane %v9575_v3, %v22874_v26  ;;  %v9386_v47 = vcombine.low %v9378_v1, %v9385_v15  ;;  %v9606_v45 = vrot.slane %v9592_v54, %v22874_v26  ;;  %v9599_v5 = vrot.slane %v9591_v31, %v22874_v26 }
 0x624   : > { %14348 = vmatmul.mubr.msk.f32.gmra.mrb[58].mxu1 %vm2906_vm3, %v9573_v12  ;;  %9972 = vmatprep.mubr.f32.mxu0 %v23000_v40  ;;  %v8022_v29 = vpop.permute.xlu0 %8021  ;;  %v8862_v57 = vrot.slane %v7878_v46, %v22874_v26  ;;  %v19245_v37 = vsel %vm11864_vm4, %v23066_v58, 0.0  ;;  %v8902_v38 = vcombine.high %v8894_v52, %v8894_v52  ;;  %v8886_v50 = vrot.slane %v8024_v16, %v22874_v26 }
 0x625   : > { %10044 = vmatprep.mubr.f32.mxu1 %v23000_v40  ;;  %v9590_v55 = vcombine.low %v9582_v24, %v9589_v36  ;;  %v8863_v33 = vcombine.high %v8022_v29, %v8022_v29  ;;  %v8870_v28 = vrot.slane %v8022_v29, %v22874_v26  ;;  %v12008_v7 = vpop.permute.xlu1 %12007  ;;  %v9607_v0 = vcombine.low %v9599_v5, %v9606_v45 }
 0x626   : > { %v12251_v4 = vadd.f32 %v12008_v7, %v19245_v37  ;;  %v9626_v32 = vcombine.low %v8894_v52, %v8902_v38  ;;  %v10198_v11 = vcombine.high %v23068_v14, %v23068_v14  ;;  %v10986_v43 = vrot.slane %v23069_v19, %v22874_v26 }
 0x627   : > { %14337 = vmatmul.mubr.msk.f32.gmra.mrb[70].mxu0 %vm2906_vm3, %v9386_v47  ;;  %v8877_v51 = vrot.slane %v8863_v33, %v22874_v26  ;;  %v8878_v39 = vcombine.high %v8870_v28, %v8870_v28  ;;  %v9608_v10 = vcombine.low %v8862_v57, %v8870_v28 }
 0x628   : > { %14349 = vmatmul.mubr.msk.f32.gmra.mrb[60].mxu1 %vm2906_vm3, %v9590_v55  ;;  %9978 = vmatprep.mubr.f32.mxu0 %v23000_v40  ;;  %v13513_v18 = vadd.f32 %v14466_v48, %v12251_v4  ;;  %v9640_v27 = vrot.slane %v9626_v32, %v22874_v26 }
 0x629   : > { %10050 = vmatprep.mubr.f32.mxu1 %v23000_v40  ;;  %v9609_v41 = vcombine.low %v8878_v39, %v8877_v51  ;;  %v8879_v44 = vcombine.high %v8877_v51, %v8877_v51  ;;  %v12323_v53 = vpop.permute.xlu1 %12322  ;;  %v9616_v22 = vrot.slane %v9608_v10, %v22874_v26 }
 0x62a   : > { %13944 = vst.msk [vmem:[%s18044_s13 + $0x8] sm:$0x7] %vm13943_vm5, %v13513_v18  ;;  %12567 = vrot.lane.b32.xlu1 %v12323_v53, %s14676_s23 }
 0x62b   : > { %14338 = vmatmul.mubr.msk.f32.gmra.mrb[72].mxu0 %vm2906_vm3, %v19034_v6  ;;  %v9625_v21 = vcombine.low %v8879_v44, %v8886_v50  ;;  %v9623_v6 = vrot.slane %v9609_v41, %v22874_v26 }
 0x62c   : > { %14350 = vmatmul.mubr.msk.f32.gmra.mrb[62].mxu1 %vm2906_vm3, %v9607_v0 }
 0x62d   : > { %10056 = vmatprep.mubr.f32.mxu1 %v23000_v40  ;;  %v9633_v25 = vrot.slane %v9625_v21, %v22874_v26  ;;  %v9624_v56 = vcombine.low %v9616_v22, %v9623_v6 }
 0x62f   : > { %v9641_v2 = vcombine.low %v9633_v25, %v9640_v27 }
 0x630   : > { %14351 = vmatmul.mubr.msk.f32.gmra.mrb[64].mxu1 %vm2906_vm3, %v9624_v56 }
 0x631   : > { %10062 = vmatprep.mubr.f32.mxu1 %v23000_v40 }
 0x634   : > { %14352 = vmatmul.mubr.msk.f32.gmra.mrb[66].mxu1 %vm2906_vm3, %v9641_v2 }
 0x635   : > { %10068 = vmatprep.mubr.f32.mxu1 %v23000_v40 }
 0x638   : > { %14353 = vmatmul.mubr.msk.f32.gmra.mrb[68].mxu1 %vm2906_vm3, %v23067_v13 }
 0x63c   : > { %v13733_v49 = vpop.permute.xlu0 %13732 }
 0x63d   : > { %13945 = vst.msk [vmem:[%s18044_s13 + $0x10] sm:$0xff] %vm2906_vm3, %v13733_v49 }
 0x693   : > { %v9824_v60 = vpop.f32.mrb[20].mxu0 }
 0x694   : > { %v9826_v20 = vpop.f32.mrb[21].mxu0 }
 0x695   : > { %v10199_v23 = vcombine.low %v9824_v60, %v9826_v20  ;;  %v10200_v62 = vcombine.high %v9824_v60, %v9826_v20 }
 0x697   : > { %v10207_v42 = vrot.slane %v10199_v23, %v22874_v26  ;;  %v10214_v9 = vrot.slane %v10200_v62, %v22874_v26  ;;  %v9830_v61 = vpop.f32.mrb[22].mxu0 }
 0x698   : > { %v9832_v17 = vpop.f32.mrb[23].mxu0 }
 0x699   : > { %v10215_v40 = vcombine.high %v10207_v42, %v10207_v42  ;;  %v10216_v30 = vcombine.high %v10214_v9, %v10214_v9  ;;  %v10979_v34 = vcombine.low %v10198_v11, %v10207_v42  ;;  %v10217_v8 = vcombine.low %v9830_v61, %v9832_v17 }
 0x69a   : > { %v10218_v59 = vcombine.high %v9830_v61, %v9832_v17 }
 0x69b   : > { %v10993_v1 = vrot.slane %v10979_v34, %v22874_v26  ;;  %v11002_v54 = vcombine.low %v10214_v9, %v10216_v30  ;;  %v10225_v3 = vrot.slane %v10217_v8, %v22874_v26  ;;  %v9836_v12 = vpop.f32.mrb[24].mxu0  ;;  %v19280_v31 = vrot.slane %v10215_v40, %v22874_v26 }
 0x69c   : > { %v10232_v63 = vrot.slane %v10218_v59, %v22874_v26  ;;  %v9838_v15 = vpop.f32.mrb[25].mxu0 }
 0x69d   : > { %v19283_v46 = vcombine.low %v10986_v43, %v10993_v1  ;;  %v10233_v36 = vcombine.high %v10225_v3, %v10225_v3  ;;  %v10235_v24 = vcombine.low %v9836_v12, %v9838_v15  ;;  %v11010_v16 = vrot.slane %v11002_v54, %v22874_v26 }
 0x69e   : > { %v10236_v35 = vcombine.high %v9836_v12, %v9838_v15  ;;  %v10234_v52 = vcombine.high %v10232_v63, %v10232_v63  ;;  %v11904_v33 = vrot.slane %v19280_v31, 7  ;;  %v19292_v28 = vcombine.high %v10986_v43, %v10993_v1  ;;  %v19341_v15 = vpop.permute.xlu1 %13127 }
 0x69f   : > { %23070 = vst [vmem:[#allocation26_spill] sm:$0xff] %v19283_v46  ;;  %v11003_v47 = vcombine.low %v10225_v3, %v10233_v36  ;;  %v10243_v45 = vrot.slane %v10235_v24, %v22874_v26  ;;  %v9842_v55 = vpop.f32.mrb[26].mxu0  ;;  %v11903_v29 = vrot.slane %v19283_v46, 7  ;;  %v19296_v58 = vcombine.high %v19280_v31, %v19280_v31 }
 0x6a0   : > { %v19289_v5 = vrot.slane %v10236_v35, %v22874_v26  ;;  %v9844_v57 = vpop.f32.mrb[27].mxu0  ;;  %v13023_v32 = vrot.slane %v19292_v28, 7  ;;  %v19315_v13 = vrot.slane %v10232_v63, %v22874_v26 }
 0x6a1   : > { %v11017_v7 = vrot.slane %v11003_v47, %v22874_v26  ;;  %v10251_v38 = vcombine.high %v10243_v45, %v10243_v45  ;;  %v11026_v0 = vcombine.low %v10234_v52, %v10243_v45  ;;  %v10253_v4 = vcombine.low %v9842_v55, %v9844_v57  ;;  %12009 = vrot.lane.b32.xlu0 %v11903_v29, %s14677_s15 }
 0x6a2   : > { %v10254_v51 = vcombine.high %v9842_v55, %v9844_v57  ;;  %v11905_v39 = vsel %vm561_vm2, %v11903_v29, %v11904_v33  ;;  %v13024_v22 = vrot.slane %v19296_v58, 7  ;;  %v11907_v19 = vrot.slane %v19315_v13, 7 }
 0x6a3   : > { %v19301_v10 = vcombine.low %v11010_v16, %v11017_v7  ;;  %v11027_v48 = vcombine.low %v10251_v38, %v19289_v5  ;;  %v10261_v18 = vrot.slane %v10253_v4, %v22874_v26  ;;  %12011 = vrot.lane.b32.xlu1 %v11905_v39, %s14677_s15  ;;  %v9848_v41 = vpop.f32.mrb[28].mxu0  ;;  %v11034_v44 = vrot.slane %v11026_v0, %v22874_v26  ;;  %v12568_v0 = vpop.permute.xlu1 %12567 }
 0x6a4   : > { %v10268_v50 = vrot.slane %v10254_v51, %v22874_v26  ;;  %v9850_v53 = vpop.f32.mrb[29].mxu0  ;;  %v19312_v2 = vcombine.high %v11010_v16, %v11017_v7  ;;  %v13025_v61 = vsel %vm561_vm2, %v13023_v32, %v13024_v22  ;;  %v19355_v38 = vcombine.high %v19315_v13, %v19315_v13 }
 0x6a5   : > { %23071 = vst [vmem:[#allocation28_spill] sm:$0xff] %v19301_v10  ;;  %v11041_v21 = vrot.slane %v11027_v48, %v22874_v26  ;;  %v10269_v6 = vcombine.high %v10261_v18, %v10261_v18  ;;  %v10271_v25 = vcombine.low %v9848_v41, %v9850_v53  ;;  %v10272_v56 = vcombine.high %v9848_v41, %v9850_v53 }
 0x6a6   : > { %12324 = vrot.lane.b32.xlu0 %v11903_v29, %s14678_s17  ;;  %v10270_v27 = vcombine.high %v10268_v50, %v10268_v50  ;;  %23072 = vst [vmem:[#allocation114_spill] sm:$0xff] %v19312_v2  ;;  %v11906_v34 = vrot.slane %v19301_v10, 7  ;;  %23076 = vst [vmem:[#allocation23_spill] sm:$0xff] %v19355_v38  ;;  %v13026_v41 = vrot.slane %v19312_v2, 7 }
 0x6a7   : > { %v19317_v49 = vcombine.low %v11034_v44, %v11041_v21  ;;  %v11050_v60 = vcombine.low %v10261_v18, %v10269_v6  ;;  %v19320_v20 = vrot.slane %v10271_v25, %v22874_v26  ;;  %12326 = vrot.lane.b32.xlu1 %v11905_v39, %s14678_s17  ;;  %v9854_v23 = vpop.f32.mrb[30].mxu0  ;;  %v10286_v14 = vrot.slane %v10272_v56, %v22874_v26 }
 0x6a8   : > { %v11051_v62 = vcombine.low %v10268_v50, %v10270_v27  ;;  %v9856_v11 = vpop.f32.mrb[31].mxu0  ;;  %v19333_v43 = vcombine.high %v11034_v44, %v11041_v21  ;;  %v11908_v52 = vsel %vm561_vm2, %v11906_v34, %v11907_v19  ;;  %v10252_v39 = vcombine.high %v19289_v5, %v19289_v5 }
 0x6a9   : > { %23073 = vst [vmem:[#allocation70_spill] sm:$0xff] %v19317_v49  ;;  %v11058_v42 = vrot.slane %v11050_v60, %v22874_v26  ;;  %v10287_v9 = vcombine.high %v19320_v20, %v19320_v20  ;;  %v10289_v40 = vcombine.low %v9854_v23, %v9856_v11  ;;  %v10290_v30 = vcombine.high %v9854_v23, %v9856_v11 }
 0x6aa   : > { %13129 = vrot.lane.b32.xlu0 %v13023_v32, %s14677_s15  ;;  %v11065_v17 = vrot.slane %v11051_v62, %v22874_v26  ;;  %23074 = vst [vmem:[#allocation29_spill] sm:$0xff] %v19333_v43  ;;  %v10288_v54 = vcombine.high %v10286_v14, %v10286_v14  ;;  %v12776_v21 = vadd.f32 %v12568_v0, %v19245_v37  ;;  %v13027_v56 = vrot.slane %v19355_v38, 7 }
 0x6ab   : > { %v11074_v8 = vcombine.low %v10287_v9, %v10286_v14  ;;  %13131 = vrot.lane.b32.xlu1 %v13025_v61, %s14677_s15  ;;  %v9860_v59 = vpop.f32.mrb[32].mxu0  ;;  %v19338_v3 = vrot.slane %v10289_v40, %v22874_v26  ;;  %v10304_v12 = vrot.slane %v10290_v30, %v22874_v26  ;;  %v19378_v14 = vrot.slane %v10252_v39, %v22874_v26  ;;  %v23081_v30 = vld [vmem:[#allocation19_spill] sm:$0xff] }
 0x6ac   : > { %v19335_v1 = vcombine.low %v11058_v42, %v11065_v17  ;;  %v9862_v63 = vpop.f32.mrb[33].mxu0  ;;  %v19367_v22 = vcombine.high %v11058_v42, %v11065_v17  ;;  %v13028_v37 = vsel %vm561_vm2, %v13026_v41, %v13027_v56  ;;  %v11909_v40 = vrot.slane %v19317_v49, 7 }
 0x6ad   : > { %v10307_v36 = vcombine.low %v9860_v59, %v9862_v63  ;;  %v10308_v24 = vcombine.high %v9860_v59, %v9862_v63  ;;  %v10306_v16 = vcombine.high %v10304_v12, %v10304_v12  ;;  %v11075_v35 = vcombine.low %v10288_v54, %v19338_v3  ;;  %23079 = vst [vmem:[#allocation34_spill] sm:$0xff] %v19378_v14 }
 0x6ae   : > { %23075 = vst [vmem:[#allocation62_spill] sm:$0xff] %v19335_v1  ;;  %12013 = vrot.lane.b32.xlu0 %v11906_v34, %s14677_s15  ;;  %v11082_v29 = vrot.slane %v11074_v8, %v22874_v26  ;;  %23078 = vst [vmem:[#allocation33_spill] sm:$0xff] %v19367_v22 }
 0x6af   : > { %v10315_v47 = vrot.slane %v10307_v36, %v22874_v26  ;;  %v19348_v45 = vrot.slane %v10308_v24, %v22874_v26  ;;  %12015 = vrot.lane.b32.xlu1 %v11908_v52, %s14677_s15  ;;  %v9866_v55 = vpop.f32.mrb[34].mxu0  ;;  %v11089_v57 = vrot.slane %v11075_v35, %v22874_v26  ;;  %v11098_v33 = vcombine.low %v10304_v12, %v10306_v16 }
 0x6b0   : > { %v9868_v7 = vpop.f32.mrb[35].mxu0 }
 0x6b1   : > { %v10323_v4 = vcombine.high %v10315_v47, %v10315_v47  ;;  %v10325_v51 = vcombine.low %v9866_v55, %v9868_v7  ;;  %v19360_v48 = vcombine.low %v11082_v29, %v11089_v57  ;;  %v10326_v18 = vcombine.high %v9866_v55, %v9868_v7 }
 0x6b2   : > { %12328 = vrot.lane.b32.xlu0 %v11906_v34, %s14678_s17  ;;  %v10324_v44 = vcombine.high %v19348_v45, %v19348_v45  ;;  %v11106_v5 = vrot.slane %v11098_v33, %v22874_v26  ;;  %v13593_v34 = vadd.f32 %v23081_v30, %v12776_v21  ;;  %v19392_v16 = vcombine.high %v11082_v29, %v11089_v57 }
 0x6b3   : > { %23077 = vst [vmem:[#allocation52_spill] sm:$0xff] %v19360_v48  ;;  %v11099_v50 = vcombine.low %v10315_v47, %v10323_v4  ;;  %v10333_v53 = vrot.slane %v10325_v51, %v22874_v26  ;;  %12330 = vrot.lane.b32.xlu1 %v11908_v52, %s14678_s17  ;;  %v9872_v32 = vpop.f32.mrb[36].mxu0  ;;  %v19372_v6 = vrot.slane %v10326_v18, %v22874_v26  ;;  %v11910_v33 = vrot.slane %v19378_v14, 7 }
 0x6b4   : > { %v9874_v25 = vpop.f32.mrb[37].mxu0  ;;  %23082 = vst [vmem:[#allocation72_spill] sm:$0xff] %v19392_v16  ;;  %v19404_v51 = vrot.slane %v19320_v20, %v22874_v26  ;;  %v10305_v20 = vcombine.high %v19338_v3, %v19338_v3  ;;  %v13029_v21 = vrot.slane %v19333_v43, 7 }
 0x6b5   : > { %v11113_v27 = vrot.slane %v11099_v50, %v22874_v26  ;;  %v10341_v60 = vcombine.high %v10333_v53, %v10333_v53  ;;  %v11122_v23 = vcombine.low %v10324_v44, %v10333_v53  ;;  %v10343_v62 = vcombine.low %v9872_v32, %v9874_v25 }
 0x6b6   : > { %13133 = vrot.lane.b32.xlu0 %v13026_v41, %s14677_s15  ;;  %v10344_v11 = vcombine.high %v9872_v32, %v9874_v25  ;;  %23084 = vst [vmem:[#allocation59_spill] sm:$0xff] %v19404_v51  ;;  %v11911_v39 = vsel %vm561_vm2, %v11909_v40, %v11910_v33  ;;  %v19418_v50 = vcombine.high %v19378_v14, %v19378_v14 }
 0x6b7   : > { %v19381_v42 = vcombine.low %v11106_v5, %v11113_v27  ;;  %v11123_v9 = vcombine.low %v10341_v60, %v19372_v6  ;;  %v10351_v61 = vrot.slane %v10343_v62, %v22874_v26  ;;  %13135 = vrot.lane.b32.xlu1 %v13028_v37, %s14677_s15  ;;  %v11130_v8 = vrot.slane %v11122_v23, %v22874_v26 }
 0x6b8   : > { %v9878_v17 = vpop.f32.mrb[38].mxu0  ;;  %v10358_v59 = vrot.slane %v10344_v11, %v22874_v26  ;;  %23085 = vst [vmem:[#allocation61_spill] sm:$0xff] %v19418_v50  ;;  %v19424_v25 = vcombine.high %v11106_v5, %v11113_v27  ;;  %v11912_v5 = vrot.slane %v19335_v1, 7  ;;  %v13030_v27 = vrot.slane %v19418_v50, 7 }
 0x6b9   : > { %23080 = vst [vmem:[#allocation79_spill] sm:$0xff] %v19381_v42  ;;  %v9880_v19 = vpop.f32.mrb[39].mxu0  ;;  %v11137_v54 = vrot.slane %v11123_v9, %v22874_v26  ;;  %v10359_v12 = vcombine.high %v10351_v61, %v10351_v61 }
 0x6ba   : > { %v10361_v63 = vcombine.low %v9878_v17, %v9880_v19  ;;  %v10362_v36 = vcombine.high %v9878_v17, %v9880_v19  ;;  %12017 = vrot.lane.b32.xlu0 %v11909_v40, %s14677_s15  ;;  %v10360_v24 = vcombine.high %v10358_v59, %v10358_v59  ;;  %23086 = vst [vmem:[#allocation63_spill] sm:$0xff] %v19424_v25 }
 0x6bb   : > { %v19394_v35 = vcombine.low %v11130_v8, %v11137_v54  ;;  %v11146_v52 = vcombine.low %v10351_v61, %v10359_v12  ;;  %13734 = vrot.lane.b32.xlu1 %v13593_v34, %s14676_s23  ;;  %v19447_v19 = vcombine.high %v11130_v8, %v11137_v54  ;;  %v19450_v12 = vrot.slane %v10305_v20, %v22874_v26 }
 0x6bc   : > { %v19397_v47 = vrot.slane %v10361_v63, %v22874_v26  ;;  %v9884_v55 = vpop.f32.mrb[40].mxu0  ;;  %v11147_v7 = vcombine.low %v10358_v59, %v10360_v24  ;;  %v10376_v0 = vrot.slane %v10362_v36, %v22874_v26  ;;  %v19445_v59 = vcombine.high %v19404_v51, %v19404_v51 }
 0x6bd   : > { %23083 = vst [vmem:[#allocation71_spill] sm:$0xff] %v19394_v35  ;;  %v9886_v4 = vpop.f32.mrb[41].mxu0  ;;  %v19407_v29 = vrot.slane %v11146_v52, %v22874_v26  ;;  %23089 = vst [vmem:[#allocation89_spill] sm:$0xff] %v19447_v19  ;;  %v11913_v8 = vrot.slane %v19404_v51, 7  ;;  %v10342_v54 = vcombine.high %v19372_v6, %v19372_v6  ;;  %v19475_v6 = vrot.slane %v19348_v45, %v22874_v26 }
 0x6be   : > { %v10377_v57 = vcombine.high %v19397_v47, %v19397_v47  ;;  %12332 = vrot.lane.b32.xlu0 %v11909_v40, %s14678_s17  ;;  %v19414_v18 = vrot.slane %v11147_v7, %v22874_v26  ;;  %v10379_v41 = vcombine.low %v9884_v55, %v9886_v4  ;;  %v10380_v44 = vcombine.high %v9884_v55, %v9886_v4 }
 0x6bf   : > { %12019 = vrot.lane.b32.xlu1 %v11911_v39, %s14677_s15  ;;  %v10378_v60 = vcombine.high %v10376_v0, %v10376_v0  ;;  %23088 = vst [vmem:[#allocation92_spill] sm:$0xff] %v19445_v59  ;;  %23090 = vst [vmem:[#allocation55_spill] sm:$0xff] %v19450_v12  ;;  %v13031_v7 = vsel %vm561_vm2, %v13029_v21, %v13030_v27  ;;  %v19491_v45 = vrot.slane %v10342_v54, %v22874_v26 }
 0x6c0   : > { %v11170_v53 = vcombine.low %v10377_v57, %v10376_v0  ;;  %v9890_v32 = vpop.f32.mrb[42].mxu0  ;;  %v19428_v56 = vcombine.low %v19407_v29, %v19414_v18  ;;  %v19431_v23 = vrot.slane %v10379_v41, %v22874_v26  ;;  %v10394_v62 = vrot.slane %v10380_v44, %v22874_v26  ;;  %23092 = vst [vmem:[#allocation57_spill] sm:$0xff] %v19475_v6 }
 0x6c1   : > { %v9892_v11 = vpop.f32.mrb[43].mxu0  ;;  %v13032_v57 = vrot.slane %v19367_v22, 7  ;;  %23093 = vst [vmem:[#allocation68_spill] sm:$0xff] %v19491_v45  ;;  %v11914_v27 = vsel %vm561_vm2, %v11912_v5, %v11913_v8  ;;  %v19536_v30 = vcombine.high %v19450_v12, %v19450_v12 }
 0x6c2   : > { %23087 = vst [vmem:[#allocation98_spill] sm:$0xff] %v19428_v56  ;;  %v10397_v3 = vcombine.low %v9890_v32, %v9892_v11  ;;  %v10398_v37 = vcombine.high %v9890_v32, %v9892_v11  ;;  %13137 = vrot.lane.b32.xlu0 %v13029_v21, %s14677_s15  ;;  %v10396_v9 = vcombine.high %v10394_v62, %v10394_v62 }
 0x6c3   : > { %v11171_v61 = vcombine.low %v10378_v60, %v19431_v23  ;;  %12334 = vrot.lane.b32.xlu1 %v11911_v39, %s14678_s17  ;;  %v19453_v63 = vrot.slane %v11170_v53, %v22874_v26  ;;  %v13033_v53 = vrot.slane %v19445_v59, 7  ;;  %23097 = vst [vmem:[#allocation75_spill] sm:$0xff] %v19536_v30  ;;  %v13036_v1 = vrot.slane %v19536_v30, 7 }
 0x6c4   : > { %v10405_v17 = vrot.slane %v10397_v3, %v22874_v26  ;;  %v19440_v40 = vrot.slane %v10398_v37, %v22874_v26  ;;  %v11194_v24 = vcombine.low %v10394_v62, %v10396_v9  ;;  %v19484_v62 = vrot.slane %v19360_v48, 7 }
 0x6c5   : > { %v9896_v34 = vpop.f32.mrb[44].mxu0  ;;  %v19456_v36 = vrot.slane %v11171_v61, %v22874_v26 }
 0x6c6   : > { %v9898_v52 = vpop.f32.mrb[45].mxu0  ;;  %v10413_v55 = vcombine.high %v10405_v17, %v10405_v17  ;;  %12021 = vrot.lane.b32.xlu0 %v11912_v5, %s14677_s15  ;;  %v10414_v39 = vcombine.high %v19440_v40, %v19440_v40  ;;  %v19478_v32 = vrot.slane %v11194_v24, %v22874_v26 }
 0x6c7   : > { %v10415_v33 = vcombine.low %v9896_v34, %v9898_v52  ;;  %v19465_v0 = vcombine.low %v19453_v63, %v19456_v36  ;;  %v10416_v4 = vcombine.high %v9896_v34, %v9898_v52  ;;  %13139 = vrot.lane.b32.xlu1 %v13031_v7, %s14677_s15 }
 0x6c8   : > { %v11195_v41 = vcombine.low %v10405_v17, %v10413_v55  ;;  %v11916_v17 = vrot.slane %v19450_v12, 7 }
 0x6c9   : > { %23091 = vst [vmem:[#allocation87_spill] sm:$0xff] %v19465_v0  ;;  %v10423_v44 = vrot.slane %v10415_v33, %v22874_v26  ;;  %v9902_v20 = vpop.f32.mrb[46].mxu0  ;;  %v19481_v21 = vrot.slane %v10416_v4, %v22874_v26  ;;  %v13034_v33 = vsel %vm561_vm2, %v13032_v57, %v13033_v53 }
 0x6ca   : > { %v9904_v60 = vpop.f32.mrb[47].mxu0  ;;  %v19487_v11 = vrot.slane %v11195_v41, %v22874_v26  ;;  %12336 = vrot.lane.b32.xlu0 %v11912_v5, %s14678_s17  ;;  %v19509_v4 = vsel %vm561_vm2, %v19484_v62, %v11916_v17 }
 0x6cb   : > { %v10431_v3 = vcombine.high %v10423_v44, %v10423_v44  ;;  %v11218_v37 = vcombine.low %v10414_v39, %v10423_v44  ;;  %v10433_v9 = vcombine.low %v9902_v20, %v9904_v60  ;;  %v10434_v61 = vcombine.high %v9902_v20, %v9904_v60  ;;  %12023 = vrot.lane.b32.xlu1 %v11914_v27, %s14677_s15 }
 0x6cc   : > { %v19497_v34 = vcombine.low %v19478_v32, %v19487_v11  ;;  %v19513_v39 = vcombine.high %v19407_v29, %v19414_v18 }
 0x6cd   : > { %v11219_v24 = vcombine.low %v10431_v3, %v19481_v21  ;;  %v10441_v52 = vrot.slane %v10433_v9, %v22874_v26  ;;  %v9908_v55 = vpop.f32.mrb[48].mxu0  ;;  %v19504_v7 = vrot.slane %v11218_v37, %v22874_v26  ;;  %v10448_v5 = vrot.slane %v10434_v61, %v22874_v26 }
 0x6ce   : > { %23094 = vst [vmem:[#allocation38_spill] sm:$0xff] %v19497_v34  ;;  %v9986_v8 = vpop.f32.mrb[40].mxu1  ;;  %v9910_v54 = vpop.f32.mrb[49].mxu0  ;;  %13141 = vrot.lane.b32.xlu0 %v13032_v57, %s14677_s15  ;;  %v19520_v61 = vrot.slane %v19381_v42, 7 }
 0x6cf   : > { %v19516_v41 = vrot.slane %v11219_v24, %v22874_v26  ;;  %v10449_v44 = vcombine.high %v10441_v52, %v10441_v52  ;;  %v9988_v20 = vpop.f32.mrb[41].mxu1  ;;  %v10451_v53 = vcombine.low %v9908_v55, %v9910_v54  ;;  %v10452_v60 = vcombine.high %v9908_v55, %v9910_v54  ;;  %12338 = vrot.lane.b32.xlu1 %v11914_v27, %s14678_s17 }
 0x6d0   : > { %v10450_v3 = vcombine.high %v10448_v5, %v10448_v5  ;;  %v10685_v37 = vcombine.low %v9986_v8, %v9988_v20  ;;  %v10686_v9 = vcombine.high %v9986_v8, %v9988_v20  ;;  %v13035_v55 = vrot.slane %v19392_v16, 7 }
 0x6d1   : > { %v19524_v17 = vcombine.low %v19504_v7, %v19516_v41  ;;  %v11242_v29 = vcombine.low %v10441_v52, %v10449_v44  ;;  %v19527_v18 = vrot.slane %v10451_v53, %v22874_v26  ;;  %v9914_v24 = vpop.f32.mrb[50].mxu0  ;;  %v11919_v52 = vrot.slane %v19475_v6, 7 }
 0x6d2   : > { %v11243_v57 = vcombine.low %v10448_v5, %v10450_v3  ;;  %v19532_v54 = vrot.slane %v10685_v37, %v22874_v26  ;;  %v9992_v8 = vpop.f32.mrb[42].mxu1  ;;  %v9916_v20 = vpop.f32.mrb[51].mxu0  ;;  %v19541_v44 = vrot.slane %v19397_v47, %v22874_v26  ;;  %v10466_v5 = vrot.slane %v10452_v60, %v22874_v26  ;;  %12025 = vrot.lane.b32.xlu0 %v19484_v62, %s14677_s15 }
 0x6d3   : > { %23095 = vst [vmem:[#allocation56_spill] sm:$0xff] %v19524_v17  ;;  %23096 = vst [vmem:[#allocation74_spill] sm:$0xff] %v19527_v18  ;;  %v19544_v27 = vrot.slane %v11242_v29, %v22874_v26  ;;  %v10467_v53 = vcombine.high %v19527_v18, %v19527_v18  ;;  %v9994_v3 = vpop.f32.mrb[43].mxu1  ;;  %v19555_v42 = vrot.slane %v10686_v9, %v22874_v26  ;;  %13143 = vrot.lane.b32.xlu1 %v13034_v33, %s14677_s15 }
 0x6d4   : > { %23098 = vst [vmem:[#allocation58_spill] sm:$0xff] %v19541_v44  ;;  %v19552_v37 = vrot.slane %v11243_v57, %v22874_v26  ;;  %v10701_v47 = vcombine.high %v19532_v54, %v19532_v54  ;;  %v10703_v29 = vcombine.low %v9992_v8, %v9994_v3  ;;  %v10704_v12 = vcombine.high %v9992_v8, %v9994_v3 }
 0x6d5   : > { %23099 = vst [vmem:[#allocation36_spill] sm:$0xff] %v19555_v42  ;;  %v11266_v16 = vcombine.low %v10467_v53, %v10466_v5  ;;  %v10469_v60 = vcombine.low %v9914_v24, %v9916_v20  ;;  %v10470_v59 = vcombine.high %v9914_v24, %v9916_v20  ;;  %v9920_v48 = vpop.f32.mrb[52].mxu0  ;;  %v10468_v53 = vcombine.high %v10466_v5, %v10466_v5 }
 0x6d6   : > { %v19562_v22 = vcombine.low %v19544_v27, %v19552_v37  ;;  %v19565_v57 = vcombine.low %v10701_v47, %v19555_v42  ;;  %v10711_v9 = vrot.slane %v10703_v29, %v22874_v26  ;;  %v9998_v51 = vpop.f32.mrb[44].mxu1  ;;  %v9922_v50 = vpop.f32.mrb[53].mxu0  ;;  %v10718_v8 = vrot.slane %v10704_v12, %v22874_v26  ;;  %12340 = vrot.lane.b32.xlu0 %v19484_v62, %s14678_s17 }
 0x6d7   : > { %v19571_v24 = vrot.slane %v10469_v60, %v22874_v26  ;;  %v10484_v33 = vrot.slane %v10470_v59, %v22874_v26  ;;  %v10000_v20 = vpop.f32.mrb[45].mxu1  ;;  %v19578_v29 = vcombine.high %v19475_v6, %v19475_v6  ;;  %12027 = vrot.lane.b32.xlu1 %v19509_v4, %s14677_s15  ;;  %v19585_v59 = vsel %vm561_vm2, %v19520_v61, %v11919_v52 }
 0x6d8   : > { %23100 = vst [vmem:[#allocation104_spill] sm:$0xff] %v19562_v22  ;;  %v10719_v3 = vcombine.high %v10711_v9, %v10711_v9  ;;  %v10721_v47 = vcombine.low %v9998_v51, %v10000_v20  ;;  %v10722_v42 = vcombine.high %v9998_v51, %v10000_v20  ;;  %v10720_v30 = vcombine.high %v10718_v8, %v10718_v8 }
 0x6d9   : > { %23101 = vst [vmem:[#allocation67_spill] sm:$0xff] %v19571_v24  ;;  %23102 = vst [vmem:[#allocation84_spill] sm:$0xff] %v19578_v29  ;;  %v10486_v5 = vcombine.high %v10484_v33, %v10484_v33  ;;  %v11267_v12 = vcombine.low %v10468_v53, %v19571_v24  ;;  %v9926_v60 = vpop.f32.mrb[54].mxu0  ;;  %v10487_v51 = vcombine.low %v9920_v48, %v9922_v50 }
 0x6da   : > { %v11530_v62 = vcombine.low %v10711_v9, %v10719_v3  ;;  %v19588_v43 = vrot.slane %v10721_v47, %v22874_v26  ;;  %v10004_v20 = vpop.f32.mrb[46].mxu1  ;;  %v9928_v6 = vpop.f32.mrb[55].mxu0  ;;  %v13037_v22 = vsel %vm561_vm2, %v13035_v55, %v13036_v1  ;;  %v19592_v18 = vrot.slane %v11266_v16, %v22874_v26  ;;  %13145 = vrot.lane.b32.xlu0 %v13035_v55, %s14677_s15 }
 0x6db   : > { %v11531_v53 = vcombine.low %v10718_v8, %v10720_v30  ;;  %v19595_v24 = vrot.slane %v11267_v12, %v22874_v26  ;;  %v10006_v14 = vpop.f32.mrb[47].mxu1  ;;  %v10736_v3 = vrot.slane %v10722_v42, %v22874_v26  ;;  %v13039_v16 = vrot.slane %v19578_v29, 7  ;;  %12342 = vrot.lane.b32.xlu1 %v19509_v4, %s14678_s17 }
 0x6dc   : > { %23103 = vst [vmem:[#allocation31_spill] sm:$0xff] %v19588_v43  ;;  %v19600_v9 = vrot.slane %v11530_v62, %v22874_v26  ;;  %v10737_v1 = vcombine.high %v19588_v43, %v19588_v43  ;;  %v11290_v55 = vcombine.low %v10484_v33, %v10486_v5  ;;  %v10488_v47 = vcombine.high %v9920_v48, %v9922_v50 }
 0x6dd   : > { %v19607_v30 = vrot.slane %v11531_v53, %v22874_v26  ;;  %v19611_v8 = vcombine.low %v19592_v18, %v19595_v24  ;;  %v19615_v12 = vpop.f32.mrb[56].mxu0  ;;  %v10495_v62 = vrot.slane %v10487_v51, %v22874_v26  ;;  %v10739_v52 = vcombine.low %v10004_v20, %v10006_v14 }
 0x6de   : > { %23104 = vst [vmem:[#allocation27_spill] sm:$0xff] %v19600_v9  ;;  %v11554_v42 = vcombine.low %v10737_v1, %v10736_v3  ;;  %v10740_v43 = vcombine.high %v10004_v20, %v10006_v14  ;;  %v10010_v29 = vpop.f32.mrb[48].mxu1  ;;  %v19618_v38 = vpop.f32.mrb[57].mxu0  ;;  %v19625_v33 = vrot.slane %v10488_v47, %v22874_v26  ;;  %v10505_v48 = vcombine.low %v9926_v60, %v9928_v6 }
 0x6df   : > { %23105 = vst [vmem:[#allocation138_spill] sm:$0xff] %v19607_v30  ;;  %23106 = vst [vmem:[#allocation99_spill] sm:$0xff] %v19611_v8  ;;  %v19622_v53 = vcombine.low %v19600_v9, %v19607_v30  ;;  %v10506_v50 = vcombine.high %v9926_v60, %v9928_v6  ;;  %v10012_v4 = vpop.f32.mrb[49].mxu1  ;;  %12029 = vrot.lane.b32.xlu0 %v19520_v61, %s14677_s15  ;;  %v10738_v5 = vcombine.high %v10736_v3, %v10736_v3 }
 0x6e0   : > { %23108 = vst [vmem:[#allocation139_spill] sm:$0xff] %v19625_v33  ;;  %v10503_v51 = vcombine.high %v10495_v62, %v10495_v62  ;;  %v19630_v14 = vrot.slane %v10739_v52, %v22874_v26  ;;  %v10754_v20 = vrot.slane %v10740_v43, %v22874_v26  ;;  %v10504_v1 = vcombine.high %v19625_v33, %v19625_v33 }
 0x6e1   : > { %23107 = vst [vmem:[#allocation141_spill] sm:$0xff] %v19622_v53  ;;  %v10513_v53 = vrot.slane %v10505_v48, %v22874_v26  ;;  %13147 = vrot.lane.b32.xlu1 %v13037_v22, %s14677_s15  ;;  %v19637_v47 = vpop.f32.mrb[58].mxu0  ;;  %v19640_v6 = vrot.slane %v19394_v35, 7  ;;  %v11922_v60 = vrot.slane %v19491_v45, 7  ;;  %v23110_v33 = vrot.slane %v19424_v25, 7 }
 0x6e2   : > { %23109 = vst [vmem:[#allocation82_spill] sm:$0xff] %v19630_v14  ;;  %v11291_v3 = vcombine.low %v10495_v62, %v10503_v51  ;;  %v10756_v8 = vcombine.high %v10754_v20, %v10754_v20  ;;  %v11555_v52 = vcombine.low %v10738_v5, %v19630_v14  ;;  %v10016_v9 = vpop.f32.mrb[50].mxu1  ;;  %v19644_v43 = vpop.f32.mrb[59].mxu0  ;;  %v19650_v22 = vrot.slane %v10506_v50, %v22874_v26 }
 0x6e3   : > { %v13040_v48 = vsel %vm561_vm2, %v23110_v33, %v13039_v16  ;;  %v10521_v30 = vcombine.high %v10513_v53, %v10513_v53  ;;  %v11314_v49 = vcombine.low %v10504_v1, %v10513_v53  ;;  %v10757_v35 = vcombine.low %v10010_v29, %v10012_v4  ;;  %v10018_v2 = vpop.f32.mrb[51].mxu1  ;;  %12344 = vrot.lane.b32.xlu0 %v19520_v61, %s14678_s17 }
 0x6e4   : > { %23111 = vst [vmem:[#allocation21_spill] sm:$0xff] %v19650_v22  ;;  %v19655_v62 = vrot.slane %v11290_v55, %v22874_v26  ;;  %v19658_v5 = vrot.slane %v11554_v42, %v22874_v26  ;;  %v19661_v51 = vrot.slane %v11291_v3, %v22874_v26  ;;  %v19664_v16 = vrot.slane %v11555_v52, %v22874_v26 }
 0x6e5   : > { %v11578_v33 = vcombine.low %v10754_v20, %v10756_v8  ;;  %v11315_v53 = vcombine.low %v10521_v30, %v19650_v22  ;;  %v10758_v50 = vcombine.high %v10010_v29, %v10012_v4  ;;  %12031 = vrot.lane.b32.xlu1 %v19585_v59, %s14677_s15  ;;  %v19673_v55 = vsel %vm561_vm2, %v19640_v6, %v11922_v60 }
 0x6e6   : > { %23112 = vst [vmem:[#allocation66_spill] sm:$0xff] %v19658_v5  ;;  %23113 = vst [vmem:[#allocation94_spill] sm:$0xff] %v19664_v16  ;;  %v19669_v61 = vpop.f32.mrb[60].mxu0  ;;  %v19677_v42 = vcombine.low %v19655_v62, %v19661_v51  ;;  %v19681_v1 = vcombine.low %v19658_v5, %v19664_v16  ;;  %v19684_v30 = vrot.slane %v11314_v49, %v22874_v26 }
 0x6e7   : > { %v10765_v29 = vrot.slane %v10757_v35, %v22874_v26  ;;  %v19687_v8 = vpop.f32.mrb[52].mxu1  ;;  %v19689_v4 = vpop.f32.mrb[61].mxu0  ;;  %v19692_v20 = vrot.slane %v11315_v53, %v22874_v26  ;;  %v19695_v60 = vrot.slane %v10758_v50, %v22874_v26  ;;  %v10523_v3 = vcombine.low %v19615_v12, %v19618_v38 }
 0x6e8   : > { %23114 = vst [vmem:[#allocation45_spill] sm:$0xff] %v19677_v42  ;;  %23115 = vst [vmem:[#allocation48_spill] sm:$0xff] %v19681_v1  ;;  %v10524_v52 = vcombine.high %v19615_v12, %v19618_v38  ;;  %v10024_v49 = vpop.f32.mrb[53].mxu1  ;;  %v23119_v35 = vrot.slane %v19424_v25, 7  ;;  %v10775_v1 = vcombine.low %v10016_v9, %v10018_v2  ;;  %v10776_v14 = vcombine.high %v10016_v9, %v10018_v2 }
 0x6e9   : > { %23116 = vst [vmem:[#allocation109_spill] sm:$0xff] %v19684_v30  ;;  %23117 = vst [vmem:[#allocation32_spill] sm:$0xff] %v19692_v20  ;;  %v10773_v22 = vcombine.high %v10765_v29, %v10765_v29  ;;  %v10541_v53 = vcombine.low %v19637_v47, %v19644_v43  ;;  %v19707_v50 = vrot.slane %v11578_v33, %v22874_v26  ;;  %12346 = vrot.lane.b32.xlu1 %v19585_v59, %s14678_s17 }
 0x6ea   : > { %23118 = vst [vmem:[#allocation65_spill] sm:$0xff] %v19695_v60  ;;  %13149 = vrot.lane.b32.xlu0 %v23119_v35, %s14677_s15  ;;  %v19711_v42 = vcombine.low %v19684_v30, %v19692_v20  ;;  %v10531_v38 = vrot.slane %v10523_v3, %v22874_v26  ;;  %v19716_v12 = vpop.f32.mrb[62].mxu0  ;;  %v10774_v2 = vcombine.high %v19695_v60, %v19695_v60 }
 0x6eb   : > { %23120 = vst [vmem:[#allocation105_spill] sm:$0xff] %v19707_v50  ;;  %v11579_v9 = vcombine.low %v10765_v29, %v10773_v22  ;;  %v10538_v33 = vrot.slane %v10524_v52, %v22874_v26  ;;  %v10783_v25 = vrot.slane %v10775_v1, %v22874_v26  ;;  %v19723_v5 = vpop.f32.mrb[63].mxu0  ;;  %v10542_v3 = vcombine.high %v19637_v47, %v19644_v43 }
 0x6ec   : > { %23121 = vst [vmem:[#allocation110_spill] sm:$0xff] %v19711_v42  ;;  %v10539_v42 = vcombine.high %v10531_v38, %v10531_v38  ;;  %v19728_v59 = vrot.slane %v10541_v53, %v22874_v26  ;;  %v10793_v30 = vcombine.low %v19687_v8, %v10024_v49  ;;  %v19737_v1 = vrot.slane %v10776_v14, %v22874_v26 }
 0x6ed   : > { %v19734_v22 = vrot.slane %v11579_v9, %v22874_v26  ;;  %v10540_v29 = vcombine.high %v10538_v33, %v10538_v33  ;;  %v10791_v52 = vcombine.high %v10783_v25, %v10783_v25  ;;  %v19739_v35 = vpop.f32.mrb[54].mxu1  ;;  %v11602_v47 = vcombine.low %v10774_v2, %v10783_v25  ;;  %13151 = vrot.lane.b32.xlu1 %v13040_v48, %s14677_s15 }
 0x6ee   : > { %23122 = vst [vmem:[#allocation95_spill] sm:$0xff] %v19728_v59  ;;  %12033 = vrot.lane.b32.xlu0 %v19640_v6, %s14677_s15  ;;  %23124 = vst [vmem:[#allocation51_spill] sm:$0xff] %v19737_v1  ;;  %v11338_v60 = vcombine.low %v10531_v38, %v10539_v42  ;;  %v10557_v43 = vcombine.high %v19728_v59, %v19728_v59  ;;  %v19743_v53 = vpop.f32.mrb[55].mxu1  ;;  %v19746_v20 = vpop.f32.mrb[64].mxu0  ;;  %v19749_v9 = vrot.slane %v19428_v56, 7 }
 0x6ef   : > { %23123 = vst [vmem:[#allocation96_spill] sm:$0xff] %v19734_v22  ;;  %v19753_v14 = vcombine.low %v19707_v50, %v19734_v22  ;;  %v11339_v16 = vcombine.low %v10538_v33, %v10540_v29  ;;  %v11603_v42 = vcombine.low %v10791_v52, %v19737_v1  ;;  %v10556_v25 = vrot.slane %v10542_v3, %v22874_v26  ;;  %v19757_v38 = vpop.f32.mrb[65].mxu0 }
 0x6f0   : > { %v19760_v2 = vrot.slane %v11338_v60, %v22874_v26  ;;  %v19763_v48 = vrot.slane %v11602_v47, %v22874_v26  ;;  %v19769_v59 = vcombine.high %v19491_v45, %v19491_v45  ;;  %v11925_v33 = vrot.slane %v19541_v44, 7 }
 0x6f1   : > { %23125 = vst [vmem:[#allocation147_spill] sm:$0xff] %v19753_v14  ;;  %v19773_v29 = vrot.slane %v11339_v16, %v22874_v26  ;;  %v19776_v3 = vrot.slane %v11603_v42, %v22874_v26  ;;  %v11362_v60 = vcombine.low %v10557_v43, %v10556_v25  ;;  %v10794_v52 = vcombine.high %v19687_v8, %v10024_v49  ;;  %v19779_v47 = vpop.f32.mrb[56].mxu1 }
 0x6f2   : > { %23126 = vst [vmem:[#allocation145_spill] sm:$0xff] %v19760_v2  ;;  %23127 = vst [vmem:[#allocation116_spill] sm:$0xff] %v19763_v48  ;;  %12348 = vrot.lane.b32.xlu0 %v19640_v6, %s14678_s17  ;;  %v10801_v1 = vrot.slane %v10793_v30, %v22874_v26  ;;  %v10559_v6 = vcombine.low %v19669_v61, %v19689_v4  ;;  %v10560_v14 = vcombine.high %v19669_v61, %v19689_v4  ;;  %v19788_v56 = vpop.f32.mrb[57].mxu1  ;;  %v19792_v43 = vpop.f32.mrb[66].mxu0 }
 0x6f3   : > { %23128 = vst [vmem:[#allocation144_spill] sm:$0xff] %v19769_v59  ;;  %23129 = vst [vmem:[#allocation143_spill] sm:$0xff] %v19773_v29  ;;  %v10577_v16 = vcombine.low %v19716_v12, %v19723_v5  ;;  %12035 = vrot.lane.b32.xlu1 %v19673_v55, %s14677_s15  ;;  %v19796_v8 = vcombine.low %v19760_v2, %v19773_v29  ;;  %v19800_v30 = vcombine.low %v19763_v48, %v19776_v3  ;;  %v19803_v4 = vpop.f32.mrb[67].mxu0 }
 0x6f4   : > { %23130 = vst [vmem:[#allocation39_spill] sm:$0xff] %v19776_v3  ;;  %v10558_v49 = vcombine.high %v10556_v25, %v10556_v25  ;;  %v10808_v61 = vrot.slane %v10794_v52, %v22874_v26  ;;  %v10809_v42 = vcombine.high %v10801_v1, %v10801_v1  ;;  %v19806_v45 = vrot.slane %v10559_v6, %v22874_v26 }
 0x6f5   : > { %23131 = vst [vmem:[#allocation107_spill] sm:$0xff] %v19796_v8  ;;  %23132 = vst [vmem:[#allocation124_spill] sm:$0xff] %v19800_v30  ;;  %v10574_v50 = vrot.slane %v10560_v14, %v22874_v26  ;;  %v10578_v22 = vcombine.high %v19716_v12, %v19723_v5  ;;  %v23134_v8 = vrot.slane %v19447_v19, 7  ;;  %v10585_v25 = vrot.slane %v10577_v16, %v22874_v26 }
 0x6f6   : > { %23133 = vst [vmem:[#allocation49_spill] sm:$0xff] %v19806_v45  ;;  %v10810_v48 = vcombine.high %v10808_v61, %v10808_v61  ;;  %v10811_v52 = vcombine.low %v19739_v35, %v19743_v53  ;;  %v10812_v30 = vcombine.high %v19739_v35, %v19743_v53  ;;  %v11626_v6 = vcombine.low %v10801_v1, %v10809_v42  ;;  %v19822_v5 = vpop.f32.mrb[68].mxu0 }
 0x6f7   : > { %13153 = vrot.lane.b32.xlu0 %v23134_v8, %s14677_s15  ;;  %v10576_v3 = vcombine.high %v10574_v50, %v10574_v50  ;;  %v11363_v14 = vcombine.low %v10558_v49, %v19806_v45  ;;  %12350 = vrot.lane.b32.xlu1 %v19673_v55, %s14678_s17  ;;  %v13042_v12 = vrot.slane %v19769_v59, 7  ;;  %v19826_v8 = vrot.slane %v11362_v60, %v22874_v26  ;;  %v19831_v35 = vpop.f32.mrb[58].mxu1  ;;  %v19833_v1 = vpop.f32.mrb[69].mxu0 }
 0x6f8   : > { %v11627_v16 = vcombine.low %v10808_v61, %v10810_v48  ;;  %v10593_v2 = vcombine.high %v10585_v25, %v10585_v25  ;;  %v19829_v29 = vrot.slane %v10811_v52, %v22874_v26  ;;  %v19836_v53 = vrot.slane %v11626_v6, %v22874_v26  ;;  %v19844_v60 = vpop.f32.mrb[59].mxu1 }
 0x6f9   : > { %v19839_v55 = vrot.slane %v11363_v14, %v22874_v26  ;;  %v11386_v49 = vcombine.low %v10574_v50, %v10576_v3  ;;  %v19842_v42 = vrot.slane %v10578_v22, %v22874_v26  ;;  %v23138_v52 = vrot.slane %v19447_v19, 7 }
 0x6fa   : > { %23135 = vst [vmem:[#allocation53_spill] sm:$0xff] %v19829_v29  ;;  %23136 = vst [vmem:[#allocation128_spill] sm:$0xff] %v19836_v53  ;;  %v19849_v48 = vrot.slane %v11627_v16, %v22874_v26  ;;  %v11387_v61 = vcombine.low %v10585_v25, %v10593_v2  ;;  %v11926_v14 = vsel %vm561_vm2, %v19749_v9, %v11925_v33  ;;  %v19864_v16 = vpop.f32.mrb[70].mxu0 }
 0x6fb   : > { %23137 = vst [vmem:[#allocation115_spill] sm:$0xff] %v19842_v42  ;;  %12037 = vrot.lane.b32.xlu0 %v19749_v9, %s14677_s15  ;;  %v13043_v6 = vsel %vm561_vm2, %v23138_v52, %v13042_v12  ;;  %v19858_v50 = vcombine.low %v19826_v8, %v19839_v55  ;;  %v10826_v22 = vrot.slane %v10812_v30, %v22874_v26  ;;  %v19879_v52 = vpop.f32.mrb[60].mxu1 }
 0x6fc   : > { %v10827_v3 = vcombine.high %v19829_v29, %v19829_v29  ;;  %13155 = vrot.lane.b32.xlu1 %v13043_v6, %s14677_s15  ;;  %v19869_v25 = vcombine.low %v19836_v53, %v19849_v48  ;;  %v19872_v33 = vrot.slane %v11386_v49, %v22874_v26  ;;  %v19875_v12 = vrot.slane %v11387_v61, %v22874_v26  ;;  %v19881_v6 = vpop.f32.mrb[71].mxu0 }
 0x6fd   : > { %23139 = vst [vmem:[#allocation30_spill] sm:$0xff] %v19858_v50  ;;  %v10595_v30 = vcombine.low %v19746_v20, %v19757_v38  ;;  %v10594_v2 = vcombine.high %v19842_v42, %v19842_v42  ;;  %v10829_v49 = vcombine.low %v19779_v47, %v19788_v56  ;;  %v19889_v50 = vpop.f32.mrb[61].mxu1  ;;  %v10631_v53 = vcombine.low %v19822_v5, %v19833_v1 }
 0x6fe   : > { %23140 = vst [vmem:[#allocation40_spill] sm:$0xff] %v19869_v25  ;;  %23141 = vst [vmem:[#allocation41_spill] sm:$0xff] %v19872_v33  ;;  %v11650_v29 = vcombine.low %v10827_v3, %v10826_v22  ;;  %v10596_v25 = vcombine.high %v19746_v20, %v19757_v38  ;;  %v19895_v61 = vcombine.low %v19872_v33, %v19875_v12 }
 0x6ff   : > { %23142 = vst [vmem:[#allocation54_spill] sm:$0xff] %v19875_v12  ;;  %12352 = vrot.lane.b32.xlu0 %v19749_v9, %s14678_s17  ;;  %v10603_v45 = vrot.slane %v10595_v30, %v22874_v26  ;;  %v10830_v3 = vcombine.high %v19779_v47, %v19788_v56  ;;  %v10613_v20 = vcombine.low %v19792_v43, %v19803_v4 }
 0x700   : > { %23143 = vst [vmem:[#allocation117_spill] sm:$0xff] %v19895_v61  ;;  %v10828_v38 = vcombine.high %v10826_v22, %v10826_v22  ;;  %v19903_v42 = vrot.slane %v10596_v25, %v22874_v26  ;;  %v19906_v59 = vrot.slane %v10829_v49, %v22874_v26  ;;  %v10614_v9 = vcombine.high %v19792_v43, %v19803_v4  ;;  %v19911_v61 = vpop.f32.mrb[72].mxu0  ;;  %v19915_v22 = vpop.f32.mrb[62].mxu1 }
 0x701   : > { %12039 = vrot.lane.b32.xlu1 %v11926_v14, %s14677_s15  ;;  %v10611_v30 = vcombine.high %v10603_v45, %v10603_v45  ;;  %v11410_v19 = vcombine.low %v10594_v2, %v10603_v45  ;;  %v10844_v56 = vrot.slane %v10830_v3, %v22874_v26  ;;  %v10621_v47 = vrot.slane %v10613_v20, %v22874_v26  ;;  %v19917_v25 = vpop.f32.mrb[73].mxu0  ;;  %v19921_v12 = vpop.f32.mrb[63].mxu1 }
 0x702   : > { %23144 = vst [vmem:[#allocation118_spill] sm:$0xff] %v19903_v42  ;;  %23145 = vst [vmem:[#allocation151_spill] sm:$0xff] %v19906_v59  ;;  %v11651_v49 = vcombine.low %v10828_v38, %v19906_v59  ;;  %v10628_v33 = vrot.slane %v10614_v9, %v22874_v26  ;;  %v23146_v43 = vrot.slane %v19513_v39, 7  ;;  %v19928_v3 = vrot.slane %v19465_v0, 7 }
 0x703   : > { %v11411_v45 = vcombine.low %v10611_v30, %v19903_v42  ;;  %v10846_v4 = vcombine.high %v10844_v56, %v10844_v56  ;;  %v10629_v2 = vcombine.high %v10621_v47, %v10621_v47  ;;  %v19931_v20 = vrot.slane %v11650_v29, %v22874_v26 }
 0x704   : > { %13157 = vrot.lane.b32.xlu0 %v23146_v43, %s14677_s15  ;;  %v19934_v38 = vrot.slane %v11410_v19, %v22874_v26  ;;  %v19937_v9 = vrot.slane %v11651_v49, %v22874_v26  ;;  %v10630_v59 = vcombine.high %v10628_v33, %v10628_v33  ;;  %v10847_v0 = vcombine.low %v19831_v35, %v19844_v60 }
 0x705   : > { %12354 = vrot.lane.b32.xlu1 %v11926_v14, %s14678_s17  ;;  %v19941_v43 = vrot.slane %v11411_v45, %v22874_v26  ;;  %v11674_v30 = vcombine.low %v10844_v56, %v10846_v4  ;;  %v11434_v42 = vcombine.low %v10621_v47, %v10629_v2  ;;  %v10848_v49 = vcombine.high %v19831_v35, %v19844_v60  ;;  %v10058_v45 = vpop.f32.mrb[64].mxu1 }
 0x706   : > { %23147 = vst [vmem:[#allocation150_spill] sm:$0xff] %v19934_v38  ;;  %v19947_v29 = vcombine.low %v19931_v20, %v19937_v9  ;;  %v11435_v19 = vcombine.low %v10628_v33, %v10630_v59  ;;  %v10855_v47 = vrot.slane %v10847_v0, %v22874_v26  ;;  %v10632_v60 = vcombine.high %v19822_v5, %v19833_v1  ;;  %v10060_v4 = vpop.f32.mrb[65].mxu1 }
 0x707   : > { %v19957_v14 = vcombine.low %v19934_v38, %v19941_v43  ;;  %v19960_v56 = vrot.slane %v11434_v42, %v22874_v26  ;;  %v19967_v35 = vrot.slane %v10848_v49, %v22874_v26  ;;  %v19972_v33 = vrot.slane %v10631_v53, %v22874_v26 }
 0x708   : > { %23148 = vst [vmem:[#allocation154_spill] sm:$0xff] %v19947_v29  ;;  %12041 = vrot.lane.b32.xlu0 %v19928_v3, %s14677_s15  ;;  %v19964_v59 = vrot.slane %v11435_v19, %v22874_v26  ;;  %v10863_v2 = vcombine.high %v10855_v47, %v10855_v47  ;;  %v10865_v42 = vcombine.low %v19879_v52, %v19889_v50 }
 0x709   : > { %23149 = vst [vmem:[#allocation153_spill] sm:$0xff] %v19957_v14  ;;  %23150 = vst [vmem:[#allocation50_spill] sm:$0xff] %v19960_v56  ;;  %v10866_v0 = vcombine.high %v19879_v52, %v19889_v50  ;;  %v10649_v19 = vcombine.low %v19864_v16, %v19881_v6  ;;  %v19981_v49 = vrot.slane %v11674_v30, %v22874_v26  ;;  %v19995_v30 = vpop.f32.mrb[66].mxu1 }
 0x70a   : > { %23151 = vst [vmem:[#allocation46_spill] sm:$0xff] %v19964_v59  ;;  %23152 = vst [vmem:[#allocation122_spill] sm:$0xff] %v19967_v35  ;;  %v19985_v5 = vcombine.low %v19960_v56, %v19964_v59  ;;  %v10646_v1 = vrot.slane %v10632_v60, %v22874_v26  ;;  %v10864_v53 = vcombine.high %v19967_v35, %v19967_v35  ;;  %v20005_v59 = vpop.f32.mrb[67].mxu1 }
 0x70b   : > { %23153 = vst [vmem:[#allocation120_spill] sm:$0xff] %v19972_v33  ;;  %v11675_v14 = vcombine.low %v10855_v47, %v10863_v2  ;;  %v10647_v50 = vcombine.high %v19972_v33, %v19972_v33  ;;  %v10873_v52 = vrot.slane %v10865_v42, %v22874_v26  ;;  %v19998_v56 = vrot.slane %v10866_v0, %v22874_v26 }
 0x70c   : > { %23154 = vst [vmem:[#allocation78_spill] sm:$0xff] %v19985_v5  ;;  %12356 = vrot.lane.b32.xlu0 %v19928_v3, %s14678_s17  ;;  %v10648_v29 = vcombine.high %v10646_v1, %v10646_v1  ;;  %v10650_v60 = vcombine.high %v19864_v16, %v19881_v6  ;;  %v20003_v5 = vrot.slane %v10649_v19, %v22874_v26  ;;  %v20017_v6 = vpop.f32.mrb[68].mxu1 }
 0x70d   : > { %23155 = vst [vmem:[#allocation127_spill] sm:$0xff] %v19998_v56  ;;  %v20008_v47 = vrot.slane %v11675_v14, %v22874_v26  ;;  %v11458_v2 = vcombine.low %v10647_v50, %v10646_v1  ;;  %v10881_v35 = vcombine.high %v10873_v52, %v10873_v52  ;;  %v11698_v42 = vcombine.low %v10864_v53, %v10873_v52  ;;  %v20028_v50 = vpop.f32.mrb[69].mxu1 }
 0x70e   : > { %23156 = vst [vmem:[#allocation73_spill] sm:$0xff] %v20003_v5  ;;  %v10664_v33 = vrot.slane %v10650_v60, %v22874_v26  ;;  %v11459_v38 = vcombine.low %v10648_v29, %v20003_v5  ;;  %23158 = vst [vmem:[#allocation130_spill] sm:$0xff] %v20017_v6  ;;  %v10884_v52 = vcombine.high %v19915_v22, %v19921_v12 }
 0x70f   : > { %v20014_v0 = vcombine.low %v19981_v49, %v20008_v47  ;;  %v11699_v16 = vcombine.low %v10881_v35, %v19998_v56  ;;  %v20020_v19 = vrot.slane %v11458_v2, %v22874_v26  ;;  %v20023_v14 = vrot.slane %v11698_v42, %v22874_v26  ;;  %23162 = vst [vmem:[#allocation69_spill] sm:$0xff] %v20028_v50 }
 0x710   : > { %v10666_v1 = vcombine.high %v10664_v33, %v10664_v33  ;;  %v20026_v53 = vrot.slane %v11459_v38, %v22874_v26  ;;  %v10883_v35 = vcombine.low %v19915_v22, %v19921_v12  ;;  %v10667_v60 = vcombine.low %v19911_v61, %v19917_v25 }
 0x711   : > { %23157 = vst [vmem:[#allocation126_spill] sm:$0xff] %v20014_v0  ;;  %23159 = vst [vmem:[#allocation119_spill] sm:$0xff] %v20020_v19  ;;  %v20031_v29 = vrot.slane %v11699_v16, %v22874_v26  ;;  %v10395_v2 = vcombine.high %v19431_v23, %v19431_v23  ;;  %v10668_v42 = vcombine.high %v19911_v61, %v19917_v25 }
 0x712   : > { %23160 = vst [vmem:[#allocation121_spill] sm:$0xff] %v20023_v14  ;;  %23161 = vst [vmem:[#allocation77_spill] sm:$0xff] %v20026_v53  ;;  %v20043_v38 = vcombine.low %v20020_v19, %v20026_v53  ;;  %v10901_v16 = vcombine.low %v10058_v45, %v10060_v4  ;;  %v10891_v12 = vrot.slane %v10883_v35, %v22874_v26 }
 0x713   : > { %23163 = vst [vmem:[#allocation20_spill] sm:$0xff] %v20031_v29  ;;  %v20049_v5 = vcombine.low %v20023_v14, %v20031_v29  ;;  %v10898_v22 = vrot.slane %v10884_v52, %v22874_v26  ;;  %v10675_v56 = vrot.slane %v10667_v60, %v22874_v26  ;;  %v11482_v0 = vcombine.low %v10664_v33, %v10666_v1  ;;  %v12010_v14 = vpop.permute.xlu0 %12009 }
 0x714   : > { %23164 = vst [vmem:[#allocation24_spill] sm:$0xff] %v20043_v38  ;;  %v20055_v23 = vrot.slane %v10668_v42, %v22874_v26  ;;  %v10902_v19 = vcombine.high %v10058_v45, %v10060_v4  ;;  %v20058_v38 = vrot.slane %v10901_v16, %v22874_v26  ;;  %v10899_v61 = vcombine.high %v10891_v12, %v10891_v12 }
 0x715   : > { %23165 = vst [vmem:[#allocation136_spill] sm:$0xff] %v20049_v5  ;;  %v10900_v25 = vcombine.high %v10898_v22, %v10898_v22  ;;  %v10683_v53 = vcombine.high %v10675_v56, %v10675_v56  ;;  %v20062_v5 = vcombine.high %v19541_v44, %v19541_v44  ;;  %v20070_v60 = vrot.slane %v10395_v2, %v22874_v26  ;;  %v12012_v2 = vpop.permute.xlu1 %12011 }
 0x716   : > { %23166 = vst [vmem:[#allocation80_spill] sm:$0xff] %v20055_v23  ;;  %23167 = vst [vmem:[#allocation140_spill] sm:$0xff] %v20058_v38  ;;  %v10684_v35 = vcombine.high %v20055_v23, %v20055_v23  ;;  %v10916_v52 = vrot.slane %v10902_v19, %v22874_v26  ;;  %v10917_v33 = vcombine.high %v20058_v38, %v20058_v38 }
 0x717   : > { %v11722_v1 = vcombine.low %v10891_v12, %v10899_v61  ;;  %v11723_v45 = vcombine.low %v10898_v22, %v10900_v25  ;;  %v11483_v4 = vcombine.low %v10675_v56, %v10683_v53  ;;  %v11490_v42 = vrot.slane %v11482_v0, %v22874_v26 }
 0x718   : > { %v11506_v16 = vcombine.low %v10684_v35, %v19532_v54  ;;  %v11746_v44 = vcombine.low %v10917_v33, %v10916_v52  ;;  %v13045_v12 = vrot.slane %v20062_v5, 7  ;;  %v20084_v56 = vrot.slane %v19565_v57, %v22874_v26 }
 0x719   : > { %v20075_v29 = vrot.slane %v11722_v1, %v22874_v26  ;;  %v20078_v19 = vrot.slane %v11723_v45, %v22874_v26  ;;  %v11497_v23 = vrot.slane %v11483_v4, %v22874_v26  ;;  %v10919_v54 = vcombine.low %v19995_v30, %v20005_v59  ;;  %v20113_v45 = vpop.permute.xlu0 %12324 }
 0x71a   : > { %v20087_v0 = vrot.slane %v11506_v16, %v22874_v26  ;;  %v10920_v53 = vcombine.high %v19995_v30, %v20005_v59  ;;  %v23171_v57 = vrot.slane %v19513_v39, 7  ;;  %v10918_v1 = vcombine.high %v10916_v52, %v10916_v52  ;;  %23174 = vst [vmem:[#allocation135_spill] sm:$0xff] %v20113_v45  ;;  %v23175_v16 = vld [vmem:[#allocation25_spill] sm:$0xff] }
 0x71b   : > { %v20095_v22 = vcombine.low %v20075_v29, %v20078_v19  ;;  %v20097_v61 = vcombine.low %v11490_v42, %v11497_v23  ;;  %v20099_v25 = vcombine.high %v11490_v42, %v11497_v23  ;;  %v20110_v59 = vrot.slane %v10919_v54, %v22874_v26 }
 0x71c   : > { %v13046_v35 = vsel %vm561_vm2, %v23171_v57, %v13045_v12  ;;  %v20106_v33 = vcombine.low %v20087_v0, %v20084_v56  ;;  %v10934_v30 = vrot.slane %v10920_v53, %v22874_v26  ;;  %v11928_v23 = vrot.slane %v20070_v60, 7  ;;  %v20127_v57 = vpop.permute.xlu1 %12326 }
 0x71d   : > { %23168 = vst [vmem:[#allocation60_spill] sm:$0xff] %v20095_v22  ;;  %23169 = vst [vmem:[#allocation125_spill] sm:$0xff] %v20097_v61  ;;  %13159 = vrot.lane.b32.xlu1 %v13046_v35, %s14677_s15  ;;  %v10937_v4 = vcombine.low %v20017_v6, %v20028_v50  ;;  %v20122_v52 = vcombine.high %v19453_v63, %v19456_v36  ;;  %v13335_v12 = vsel %vm561_vm2, 0.0, %v23175_v16  ;;  %v23177_v16 = vld [vmem:[#allocation103_spill] sm:$0xff] }
 0x71e   : > { %23170 = vst [vmem:[#allocation93_spill] sm:$0xff] %v20099_v25  ;;  %23172 = vst [vmem:[#allocation76_spill] sm:$0xff] %v20106_v33  ;;  %v10936_v54 = vcombine.high %v10934_v30, %v10934_v30  ;;  %v11747_v53 = vcombine.low %v10918_v1, %v20110_v59  ;;  %v11929_v35 = vsel %vm561_vm2, %v19928_v3, %v11928_v23  ;;  %v13130_v1 = vpop.permute.xlu0 %13129  ;;  %v12985_v3 = vsel %vm11864_vm4, %v23177_v16, 0.0  ;;  %v23178_v50 = vld [vmem:[#allocation123_spill] sm:$0xff] }
 0x71f   : > { %23173 = vst [vmem:[#allocation129_spill] sm:$0xff] %v20110_v59  ;;  %23176 = vst [vmem:[#allocation83_spill] sm:$0xff] %v20127_v57  ;;  %v10945_v45 = vrot.slane %v10937_v4, %v22874_v26  ;;  %v13047_v25 = vrot.slane %v20122_v52, 7  ;;  %v20135_v42 = vcombine.high %v20070_v60, %v20070_v60  ;;  %v20138_v63 = vrot.slane %v11746_v44, %v22874_v26 }
 0x720   : > { %v20141_v36 = vrot.slane %v11747_v53, %v22874_v26  ;;  %v11770_v23 = vcombine.low %v10934_v30, %v10936_v54  ;;  %v12216_v57 = vsel %vm561_vm2, 0.0, %v12010_v14  ;;  %v13370_v6 = vadd.f32 %v13335_v12, %v23178_v50  ;;  %v13132_v33 = vpop.permute.xlu1 %13131 }
 0x721   : > { %12043 = vrot.lane.b32.xlu1 %v11929_v35, %s14677_s15  ;;  %v10953_v4 = vcombine.high %v10945_v45, %v10945_v45  ;;  %13161 = vrot.lane.b32.xlu0 %v13047_v25, %s14677_s15  ;;  %v13371_v44 = vadd.f32 %v19341_v15, %v12985_v3  ;;  %v12252_v59 = vadd.f32 %v12216_v57, %v19283_v46  ;;  %v11930_v16 = vrot.slane %v19497_v34, 7  ;;  %v20175_v3 = vld [vmem:[#allocation10] sm:$0xff]  ;;  %v23205_v46 = vld [vmem:[#allocation145_spill] sm:$0xff] }
 0x722   : > { %v20152_v53 = vcombine.low %v20138_v63, %v20141_v36  ;;  %v13048_v30 = vrot.slane %v20135_v42, 7  ;;  %v20159_v54 = vsel %vm11864_vm4, %v19280_v31, 0.0  ;;  %v20163_v14 = vrot.slane %v19440_v40, %v22874_v26  ;;  %v12014_v12 = vpop.permute.xlu0 %12013 }
 0x723   : > { %v11771_v61 = vcombine.low %v10945_v45, %v10953_v4  ;;  %23180 = vst [vmem:[#allocation146_spill] sm:$0xff] %v20159_v54  ;;  %v13442_v15 = vadd.f32 %v13370_v6, %v12252_v59  ;;  %v12253_v50 = vadd.f32 %v12012_v2, %v20159_v54  ;;  %v20169_v45 = vcombine.high %v19478_v32, %v19487_v11 }
 0x724   : > { %23179 = vst [vmem:[#allocation64_spill] sm:$0xff] %v20152_v53  ;;  %v11778_v57 = vrot.slane %v11770_v23, %v22874_v26  ;;  %v13336_v40 = vsel %vm561_vm2, 0.0, %v13130_v1  ;;  %v12016_v2 = vpop.permute.xlu1 %12015  ;;  %v13049_v11 = vsel %vm561_vm2, %v13047_v25, %v13048_v30  ;;  %v20187_v1 = vld [vmem:[#allocation10 + $0x8] sm:$0x7]  ;;  %v12986_v25 = vsel %vm11864_vm4, %v19296_v58, 0.0 }
 0x725   : > { %12358 = vrot.lane.b32.xlu1 %v11929_v35, %s14678_s17  ;;  %v11785_v31 = vrot.slane %v11771_v61, %v22874_v26  ;;  %12045 = vrot.lane.b32.xlu0 %v11930_v16, %s14677_s15  ;;  %v13514_v6 = vadd.f32 %v20175_v3, %v13442_v15  ;;  %v13443_v59 = vadd.f32 %v13371_v44, %v12253_v50  ;;  %v11931_v61 = vrot.slane %v20163_v14, 7 }
 0x726   : > { %v13372_v4 = vadd.f32 %v13336_v40, %v19292_v28  ;;  %v12217_v44 = vsel %vm561_vm2, 0.0, %v12014_v12  ;;  %v20192_v15 = vpop.permute.xlu0 %12328  ;;  %v20200_v50 = vsel %vm11864_vm4, %v19315_v13, 0.0  ;;  %v13373_v28 = vadd.f32 %v13132_v33, %v12986_v25  ;;  %v23186_v25 = vld [vmem:[#allocation114_spill] sm:$0xff] }
 0x727   : > { %v20178_v35 = vcombine.low %v11778_v57, %v11785_v31  ;;  %v20180_v32 = vcombine.high %v11778_v57, %v11785_v31  ;;  %13947 = vst.msk [vmem:[%s18044_s13 + $0x20] sm:$0xff] %vm2906_vm3, %v13514_v6  ;;  %v13515_v23 = vadd.f32 %v20187_v1, %v13443_v59  ;;  %23183 = vst [vmem:[#allocation97_spill] sm:$0xff] %v20192_v15  ;;  %v13050_v40 = vrot.slane %v20169_v45, 7 }
 0x728   : > { %v12254_v30 = vadd.f32 %v12217_v44, %v19301_v10  ;;  %23184 = vst [vmem:[#allocation47_spill] sm:$0xff] %v20200_v50  ;;  %v20204_v57 = vcombine.high %v19504_v7, %v19516_v41  ;;  %v12255_v12 = vadd.f32 %v12016_v2, %v20200_v50  ;;  %v20209_v31 = vpop.permute.xlu1 %12330  ;;  %v11932_v58 = vsel %vm561_vm2, %v11930_v16, %v11931_v61 }
 0x729   : > { %23181 = vst [vmem:[#allocation91_spill] sm:$0xff] %v20178_v35  ;;  %23182 = vst [vmem:[#allocation81_spill] sm:$0xff] %v20180_v32  ;;  %13163 = vrot.lane.b32.xlu1 %v13049_v11, %s14677_s15  ;;  %12360 = vrot.lane.b32.xlu0 %v11930_v16, %s14678_s17  ;;  %v20216_v7 = vcombine.high %v19544_v27, %v19552_v37  ;;  %v10432_v41 = vcombine.high %v19481_v21, %v19481_v21  ;;  %v11933_v61 = vrot.slane %v19524_v17, 7 }
 0x72a   : > { %13948 = vst.msk [vmem:[%s18044_s13 + $0x28] sm:$0x7] %vm13943_vm5, %v13515_v23  ;;  %23185 = vst [vmem:[#allocation17_spill] sm:$0xff] %v20209_v31  ;;  %v13444_v6 = vadd.f32 %v13372_v4, %v12254_v30  ;;  %v13445_v13 = vadd.f32 %v13373_v28, %v12255_v12  ;;  %v13134_v59 = vpop.permute.xlu0 %13133  ;;  %v20223_v33 = vcombine.high %v20163_v14, %v20163_v14  ;;  %v23187_v28 = vld [vmem:[#allocation70_spill] sm:$0xff] }
 0x72b   : > { %v13337_v27 = vsel %vm561_vm2, 0.0, %v13134_v59  ;;  %v20236_v37 = vcombine.high %v19592_v18, %v19595_v24  ;;  %v20239_v23 = vrot.slane %v10432_v41, %v22874_v26  ;;  %v23188_v18 = vld [vmem:[#allocation138_spill] sm:$0xff]  ;;  %v23189_v24 = vld [vmem:[#allocation27_spill] sm:$0xff] }
 0x72c   : > { %v13516_v16 = vadd.f32 %v20175_v3, %v13444_v6  ;;  %v13517_v2 = vadd.f32 %v20187_v1, %v13445_v13  ;;  %v13136_v11 = vpop.permute.xlu1 %13135  ;;  %v13051_v4 = vrot.slane %v20223_v33, 7  ;;  %v13374_v30 = vadd.f32 %v13337_v27, %v23186_v25 }
 0x72d   : > { %12047 = vrot.lane.b32.xlu1 %v11932_v58, %s14677_s15  ;;  %13165 = vrot.lane.b32.xlu0 %v13050_v40, %s14677_s15  ;;  %v20251_v13 = vcombine.high %v23189_v24, %v23188_v18  ;;  %v20267_v25 = vcombine.high %v19655_v62, %v19661_v51  ;;  %v20278_v24 = vcombine.high %v20239_v23, %v20239_v23  ;;  %v23194_v51 = vld [vmem:[#allocation94_spill] sm:$0xff] }
 0x72e   : > { %13951 = vst.msk [vmem:[%s18044_s13 + $0x40] sm:$0xff] %vm2906_vm3, %v13516_v16  ;;  %v12018_v21 = vpop.permute.xlu0 %12017  ;;  %v13052_v6 = vsel %vm561_vm2, %v13050_v40, %v13051_v4  ;;  %v11934_v16 = vrot.slane %v20239_v23, 7 }
 0x72f   : > { %13952 = vst.msk [vmem:[%s18044_s13 + $0x48] sm:$0x7] %vm13943_vm5, %v13517_v2  ;;  %v12218_v44 = vsel %vm561_vm2, 0.0, %v12018_v21  ;;  %v23191_v2 = vld [vmem:[#allocation23_spill] sm:$0xff]  ;;  %v23192_v21 = vld [vmem:[#allocation34_spill] sm:$0xff] }
 0x730   : > { %v12256_v12 = vadd.f32 %v12218_v44, %v23187_v28  ;;  %v12987_v27 = vsel %vm11864_vm4, %v23191_v2, 0.0  ;;  %v20263_v4 = vsel %vm11864_vm4, %v23192_v21, 0.0 }
 0x731   : > { %12362 = vrot.lane.b32.xlu1 %v11932_v58, %s14678_s17  ;;  %12049 = vrot.lane.b32.xlu0 %v11933_v61, %s14677_s15  ;;  %v13735_v58 = vpop.permute.xlu1 %13734  ;;  %23193 = vst [vmem:[#allocation131_spill] sm:$0xff] %v20263_v4 }
 0x732   : > { %13946 = vst.msk [vmem:[%s18044_s13 + $0x18] sm:$0x7] %vm13943_vm5, %v13735_v58  ;;  %v13446_v59 = vadd.f32 %v13374_v30, %v12256_v12  ;;  %v20254_v41 = vpop.permute.xlu0 %12332  ;;  %v11935_v30 = vsel %vm561_vm2, %v11933_v61, %v11934_v16  ;;  %v13053_v12 = vrot.slane %v20204_v57, 7  ;;  %v13375_v58 = vadd.f32 %v13136_v11, %v12987_v27  ;;  %v23197_v16 = vld [vmem:[#allocation74_spill] sm:$0xff]  ;;  %v23198_v27 = vld [vmem:[#allocation104_spill] sm:$0xff] }
 0x733   : > { %23190 = vst [vmem:[#allocation137_spill] sm:$0xff] %v20254_v41  ;;  %v20288_v2 = vrot.slane %v23197_v16, %v22874_v26  ;;  %v23201_v16 = vld [vmem:[#allocation29_spill] sm:$0xff] }
 0x734   : > { %v13518_v40 = vadd.f32 %v20175_v3, %v13446_v59 }
 0x735   : > { %13167 = vrot.lane.b32.xlu1 %v13052_v6, %s14677_s15  ;;  %12364 = vrot.lane.b32.xlu0 %v11933_v61, %s14678_s17  ;;  %v12020_v44 = vpop.permute.xlu1 %12019  ;;  %v23195_v61 = vld [vmem:[#allocation66_spill] sm:$0xff]  ;;  %v11937_v10 = vrot.slane %v20288_v2, 7 }
 0x736   : > { %v12257_v6 = vadd.f32 %v12020_v44, %v20263_v4  ;;  %13955 = vst.msk [vmem:[%s18044_s13 + $0x60] sm:$0xff] %vm2906_vm3, %v13518_v40  ;;  %v13138_v18 = vpop.permute.xlu0 %13137  ;;  %v20282_v59 = vcombine.high %v23195_v61, %v23194_v51  ;;  %v11936_v40 = vrot.slane %v23198_v27, 7  ;;  %v13054_v51 = vrot.slane %v20278_v24, 7 }
 0x737   : > { %v13338_v44 = vsel %vm561_vm2, 0.0, %v13138_v18 }
 0x738   : > { %v13447_v62 = vadd.f32 %v13375_v58, %v12257_v6  ;;  %v23199_v58 = vld [vmem:[#allocation32_spill] sm:$0xff]  ;;  %v23200_v6 = vld [vmem:[#allocation109_spill] sm:$0xff]  ;;  %v13376_v28 = vadd.f32 %v13338_v44, %v23201_v16 }
 0x739   : > { %12051 = vrot.lane.b32.xlu1 %v11935_v30, %s14677_s15  ;;  %13169 = vrot.lane.b32.xlu0 %v13053_v12, %s14677_s15  ;;  %v20284_v11 = vpop.permute.xlu1 %12334  ;;  %v20296_v50 = vcombine.high %v23200_v6, %v23199_v58 }
 0x73a   : > { %23196 = vst [vmem:[#allocation132_spill] sm:$0xff] %v20284_v11  ;;  %v13519_v21 = vadd.f32 %v20187_v1, %v13447_v62  ;;  %v12022_v4 = vpop.permute.xlu0 %12021  ;;  %v23202_v62 = vld [vmem:[#allocation62_spill] sm:$0xff] }
 0x73b   : > { %v12219_v61 = vsel %vm561_vm2, 0.0, %v12022_v4  ;;  %v23204_v4 = vld [vmem:[#allocation143_spill] sm:$0xff] }
 0x73c   : > { %13956 = vst.msk [vmem:[%s18044_s13 + $0x68] sm:$0x7] %vm13943_vm5, %v13519_v21  ;;  %v12258_v54 = vadd.f32 %v12219_v61, %v23202_v62  ;;  %v11938_v21 = vsel %vm561_vm2, %v11936_v40, %v11937_v10  ;;  %v20314_v44 = vcombine.high %v23205_v46, %v23204_v4  ;;  %v13056_v61 = vrot.slane %v20216_v7, 7  ;;  %v23211_v4 = vld [vmem:[#allocation105_spill] sm:$0xff] }
 0x73d   : > { %12366 = vrot.lane.b32.xlu1 %v11935_v30, %s14678_s17  ;;  %12053 = vrot.lane.b32.xlu0 %v11936_v40, %s14677_s15  ;;  %v13140_v18 = vpop.permute.xlu1 %13139  ;;  %v13055_v30 = vsel %vm561_vm2, %v13053_v12, %v13054_v51  ;;  %v23207_v51 = vld [vmem:[#allocation61_spill] sm:$0xff]  ;;  %v20326_v62 = vcombine.high %v20288_v2, %v20288_v2 }
 0x73e   : > { %v13448_v58 = vadd.f32 %v13376_v28, %v12258_v54  ;;  %v20308_v6 = vpop.permute.xlu0 %12336  ;;  %23206 = vst [vmem:[#allocation112_spill] sm:$0xff] %v20314_v44  ;;  %v12988_v16 = vsel %vm11864_vm4, %v23207_v51, 0.0 }
 0x73f   : > { %23203 = vst [vmem:[#allocation44_spill] sm:$0xff] %v20308_v6  ;;  %v13377_v10 = vadd.f32 %v13140_v18, %v12988_v16  ;;  %v23213_v6 = vld [vmem:[#allocation99_spill] sm:$0xff] }
 0x740   : > { %v13520_v12 = vadd.f32 %v20175_v3, %v13448_v58  ;;  %v23212_v58 = vld [vmem:[#allocation67_spill] sm:$0xff]  ;;  %v11939_v18 = vrot.slane %v23213_v6, 7 }
 0x741   : > { %13171 = vrot.lane.b32.xlu1 %v13055_v30, %s14677_s15  ;;  %12368 = vrot.lane.b32.xlu0 %v11936_v40, %s14678_s17  ;;  %v23208_v30 = vld [vmem:[#allocation59_spill] sm:$0xff]  ;;  %v12024_v28 = vpop.permute.xlu1 %12023  ;;  %v23210_v40 = vld [vmem:[#allocation96_spill] sm:$0xff]  ;;  %v10485_v31 = vcombine.high %v23212_v58, %v23212_v58 }
 0x742   : > { %v20322_v54 = vsel %vm11864_vm4, %v23208_v30, 0.0  ;;  %v20331_v11 = vcombine.high %v23211_v4, %v23210_v40  ;;  %13959 = vst.msk [vmem:[%s18044_s13 + $0x80] sm:$0xff] %vm2906_vm3, %v13520_v12  ;;  %v13142_v51 = vpop.permute.xlu0 %13141  ;;  %v23215_v58 = vld [vmem:[#allocation39_spill] sm:$0xff] }
 0x743   : > { %23209 = vst [vmem:[#allocation85_spill] sm:$0xff] %v20322_v54  ;;  %v12259_v46 = vadd.f32 %v12024_v28, %v20322_v54  ;;  %v13057_v28 = vrot.slane %v20326_v62, 7  ;;  %v13339_v4 = vsel %vm561_vm2, 0.0, %v13142_v51  ;;  %v23216_v54 = vld [vmem:[#allocation116_spill] sm:$0xff]  ;;  %v20350_v12 = vrot.slane %v10485_v31, %v22874_v26  ;;  %v23217_v51 = vld [vmem:[#allocation33_spill] sm:$0xff] }
 0x744   : > { %v20347_v41 = vcombine.high %v23216_v54, %v23215_v58  ;;  %v23218_v54 = vld [vmem:[#allocation52_spill] sm:$0xff] }
 0x745   : > { %12055 = vrot.lane.b32.xlu1 %v11938_v21, %s14677_s15  ;;  %13173 = vrot.lane.b32.xlu0 %v13056_v61, %s14677_s15  ;;  %v13449_v30 = vadd.f32 %v13377_v10, %v12259_v46  ;;  %v20340_v16 = vpop.permute.xlu1 %12338  ;;  %v13058_v31 = vsel %vm561_vm2, %v13056_v61, %v13057_v28  ;;  %v23222_v28 = vld [vmem:[#allocation55_spill] sm:$0xff] }
 0x746   : > { %23214 = vst [vmem:[#allocation108_spill] sm:$0xff] %v20340_v16  ;;  %v12026_v10 = vpop.permute.xlu0 %12025  ;;  %v13378_v16 = vadd.f32 %v13339_v4, %v23217_v51  ;;  %v20379_v51 = vsel %vm11864_vm4, %v23222_v28, 0.0 }
 0x747   : > { %v13521_v40 = vadd.f32 %v20187_v1, %v13449_v30  ;;  %v12220_v46 = vsel %vm561_vm2, 0.0, %v12026_v10  ;;  %v20359_v30 = vcombine.high %v19826_v8, %v19839_v55  ;;  %v23220_v8 = vld [vmem:[#allocation128_spill] sm:$0xff]  ;;  %23223 = vst [vmem:[#allocation155_spill] sm:$0xff] %v20379_v51 }
 0x748   : > { %v12260_v58 = vadd.f32 %v12220_v46, %v23218_v54  ;;  %v20371_v55 = vcombine.high %v23220_v8, %v19849_v48  ;;  %v23221_v46 = vld [vmem:[#allocation92_spill] sm:$0xff]  ;;  %v23226_v54 = vld [vmem:[#allocation31_spill] sm:$0xff] }
 0x749   : > { %12370 = vrot.lane.b32.xlu1 %v11938_v21, %s14678_s17  ;;  %12057 = vrot.lane.b32.xlu0 %v11939_v18, %s14677_s15  ;;  %13960 = vst.msk [vmem:[%s18044_s13 + $0x88] sm:$0x7] %vm13943_vm5, %v13521_v40  ;;  %v13144_v15 = vpop.permute.xlu1 %13143  ;;  %v11940_v21 = vrot.slane %v20350_v12, 7  ;;  %v12989_v61 = vsel %vm11864_vm4, %v23221_v46, 0.0 }
 0x74a   : > { %v13450_v32 = vadd.f32 %v13378_v16, %v12260_v58  ;;  %v20366_v40 = vpop.permute.xlu0 %12340  ;;  %v13059_v58 = vrot.slane %v20236_v37, 7  ;;  %v13379_v48 = vadd.f32 %v13144_v15, %v12989_v61  ;;  %v23228_v15 = vld [vmem:[#allocation141_spill] sm:$0xff] }
 0x74b   : > { %23219 = vst [vmem:[#allocation156_spill] sm:$0xff] %v20366_v40  ;;  %v11941_v4 = vsel %vm561_vm2, %v11939_v18, %v11940_v21  ;;  %v23225_v21 = vld [vmem:[#allocation41_spill] sm:$0xff]  ;;  %v20397_v40 = vrot.slane %v23226_v54, %v22874_v26  ;;  %v11972_v61 = vrot.slane %v23228_v15, 7  ;;  %v23231_v15 = vld [vmem:[#allocation79_spill] sm:$0xff] }
 0x74c   : > { %v13522_v10 = vadd.f32 %v20175_v3, %v13450_v32 }
 0x74d   : > { %13175 = vrot.lane.b32.xlu1 %v13058_v31, %s14677_s15  ;;  %12372 = vrot.lane.b32.xlu0 %v11939_v18, %s14678_s17  ;;  %v12028_v16 = vpop.permute.xlu1 %12027  ;;  %v20384_v31 = vcombine.high %v20350_v12, %v20350_v12  ;;  %v23224_v18 = vld [vmem:[#allocation54_spill] sm:$0xff]  ;;  %23227 = vst [vmem:[#allocation43_spill] sm:$0xff] %v20397_v40  ;;  %v11973_v53 = vrot.slane %v20397_v40, 7 }
 0x74e   : > { %v12261_v8 = vadd.f32 %v12028_v16, %v20379_v51  ;;  %13963 = vst.msk [vmem:[%s18044_s13 + $0xa0] sm:$0xff] %vm2906_vm3, %v13522_v10  ;;  %v13146_v32 = vpop.permute.xlu0 %13145  ;;  %v20392_v46 = vcombine.high %v23225_v21, %v23224_v18  ;;  %v20407_v18 = vcombine.high %v19931_v20, %v19937_v9  ;;  %v23232_v20 = vld [vmem:[#allocation150_spill] sm:$0xff] }
 0x74f   : > { %v13060_v51 = vrot.slane %v20384_v31, 7  ;;  %v13340_v35 = vsel %vm561_vm2, 0.0, %v13146_v32  ;;  %v20420_v9 = vcombine.high %v23232_v20, %v19941_v43 }
 0x750   : > { %v13451_v28 = vadd.f32 %v13379_v48, %v12261_v8  ;;  %v23230_v8 = vld [vmem:[#allocation72_spill] sm:$0xff] }
 0x751   : > { %12059 = vrot.lane.b32.xlu1 %v11941_v4, %s14677_s15  ;;  %13177 = vrot.lane.b32.xlu0 %v13059_v58, %s14677_s15  ;;  %v20400_v16 = vpop.permute.xlu1 %12342  ;;  %v13380_v21 = vadd.f32 %v13340_v35, %v23230_v8  ;;  %v13061_v32 = vsel %vm561_vm2, %v13059_v58, %v13060_v51  ;;  %v11974_v35 = vsel %vm561_vm2, %v11972_v61, %v11973_v53  ;;  %v23234_v58 = vld [vmem:[#allocation75_spill] sm:$0xff]  ;;  %v23237_v53 = vld [vmem:[#allocation46_spill] sm:$0xff] }
 0x752   : > { %23229 = vst [vmem:[#allocation133_spill] sm:$0xff] %v20400_v16  ;;  %v13523_v10 = vadd.f32 %v20187_v1, %v13451_v28  ;;  %v12030_v48 = vpop.permute.xlu0 %12029  ;;  %v12990_v43 = vsel %vm11864_vm4, %v23234_v58, 0.0  ;;  %v20449_v58 = vcombine.high %v19981_v49, %v20008_v47  ;;  %v23245_v47 = vld [vmem:[#allocation139_spill] sm:$0xff] }
 0x753   : > { %v12221_v54 = vsel %vm561_vm2, 0.0, %v12030_v48  ;;  %v20429_v48 = vcombine.high %v20397_v40, %v20397_v40  ;;  %v23242_v40 = vld [vmem:[#allocation20_spill] sm:$0xff] }
 0x754   : > { %13964 = vst.msk [vmem:[%s18044_s13 + $0xa8] sm:$0x7] %vm13943_vm5, %v13523_v10  ;;  %v12262_v16 = vadd.f32 %v12221_v54, %v23231_v15  ;;  %v23235_v54 = vld [vmem:[#allocation57_spill] sm:$0xff]  ;;  %23239 = vst [vmem:[#allocation161_spill] sm:$0xff] %v20449_v58 }
 0x755   : > { %12374 = vrot.lane.b32.xlu1 %v11941_v4, %s14678_s17  ;;  %12101 = vrot.lane.b32.xlu0 %v11972_v61, %s14677_s15  ;;  %v13148_v28 = vpop.permute.xlu1 %13147  ;;  %v20436_v8 = vsel %vm11864_vm4, %v23235_v54, 0.0 }
 0x756   : > { %v13452_v4 = vadd.f32 %v13380_v21, %v12262_v16  ;;  %v20423_v10 = vpop.permute.xlu0 %12344  ;;  %23236 = vst [vmem:[#allocation159_spill] sm:$0xff] %v20436_v8  ;;  %v13092_v21 = vrot.slane %v20251_v13, 7 }
 0x757   : > { %23233 = vst [vmem:[#allocation134_spill] sm:$0xff] %v20423_v10  ;;  %v23243_v10 = vld [vmem:[#allocation121_spill] sm:$0xff] }
 0x758   : > { %v13524_v51 = vadd.f32 %v20175_v3, %v13452_v4  ;;  %v20461_v49 = vcombine.high %v23243_v10, %v23242_v40 }
 0x759   : > { %13179 = vrot.lane.b32.xlu1 %v13061_v32, %s14677_s15  ;;  %12416 = vrot.lane.b32.xlu0 %v11972_v61, %s14678_s17  ;;  %v12032_v16 = vpop.permute.xlu1 %12031  ;;  %v13381_v32 = vadd.f32 %v13148_v28, %v12990_v43  ;;  %v23238_v61 = vld [vmem:[#allocation50_spill] sm:$0xff]  ;;  %v23241_v43 = vld [vmem:[#allocation45_spill] sm:$0xff] }
 0x75a   : > { %v12263_v20 = vadd.f32 %v12032_v16, %v20436_v8  ;;  %v20442_v15 = vcombine.high %v23238_v61, %v23237_v53  ;;  %13967 = vst.msk [vmem:[%s18044_s13 + $0xc0] sm:$0xff] %vm2906_vm3, %v13524_v51  ;;  %v11942_v16 = vrot.slane %v23241_v43, 7  ;;  %v13093_v53 = vrot.slane %v20429_v48, 7  ;;  %23244 = vst [vmem:[#allocation42_spill] sm:$0xff] %v20461_v49  ;;  %v23250_v49 = vld [vmem:[#allocation119_spill] sm:$0xff] }
 0x75c   : > { %v13150_v4 = vpop.permute.xlu0 %13149  ;;  %v13453_v54 = vadd.f32 %v13381_v32, %v12263_v20  ;;  %v20465_v32 = vrot.slane %v23245_v47, %v22874_v26  ;;  %v13094_v38 = vsel %vm561_vm2, %v13092_v21, %v13093_v53  ;;  %v23249_v47 = vld [vmem:[#allocation77_spill] sm:$0xff] }
 0x75d   : > { %12103 = vrot.lane.b32.xlu1 %v11974_v35, %s14677_s15  ;;  %13221 = vrot.lane.b32.xlu0 %v13092_v21, %s14677_s15  ;;  %v20452_v28 = vpop.permute.xlu1 %12346  ;;  %v13341_v8 = vsel %vm561_vm2, 0.0, %v13150_v4  ;;  %v23247_v4 = vld [vmem:[#allocation71_spill] sm:$0xff]  ;;  %v20479_v58 = vcombine.high %v23250_v49, %v23249_v47  ;;  %v23252_v21 = vld [vmem:[#allocation68_spill] sm:$0xff]  ;;  %v13062_v49 = vrot.slane %v20267_v25, 7 }
 0x75e   : > { %23240 = vst [vmem:[#allocation157_spill] sm:$0xff] %v20452_v28  ;;  %v13525_v61 = vadd.f32 %v20187_v1, %v13453_v54  ;;  %v23246_v54 = vld [vmem:[#allocation63_spill] sm:$0xff] }
 0x75f   : > { %v13382_v28 = vadd.f32 %v13341_v8, %v23246_v54 }
 0x760   : > { %v12034_v51 = vpop.permute.xlu0 %12033  ;;  %13968 = vst.msk [vmem:[%s18044_s13 + $0xc8] sm:$0x7] %vm13943_vm5, %v13525_v61  ;;  %v11943_v61 = vrot.slane %v20465_v32, 7 }
 0x761   : > { %12418 = vrot.lane.b32.xlu1 %v11974_v35, %s14678_s17  ;;  %12061 = vrot.lane.b32.xlu0 %v11942_v16, %s14677_s15  ;;  %v12222_v20 = vsel %vm561_vm2, 0.0, %v12034_v51  ;;  %v13152_v35 = vpop.permute.xlu1 %13151  ;;  %v23251_v51 = vld [vmem:[#allocation84_spill] sm:$0xff] }
 0x762   : > { %v12264_v22 = vadd.f32 %v12222_v20, %v23247_v4  ;;  %v12991_v20 = vsel %vm11864_vm4, %v23251_v51, 0.0  ;;  %v11944_v53 = vsel %vm561_vm2, %v11942_v16, %v11943_v61 }
 0x763   : > { %v13383_v54 = vadd.f32 %v13152_v35, %v12991_v20  ;;  %v23257_v35 = vld [vmem:[#allocation48_spill] sm:$0xff] }
 0x764   : > { %v13454_v40 = vadd.f32 %v13382_v28, %v12264_v22  ;;  %v20475_v10 = vpop.permute.xlu0 %12348  ;;  %v20492_v28 = vcombine.high %v20075_v29, %v20078_v19  ;;  %v20505_v29 = vcombine.high %v20465_v32, %v20465_v32  ;;  %v11975_v61 = vrot.slane %v23257_v35, 7 }
 0x765   : > { %13223 = vrot.lane.b32.xlu1 %v13094_v38, %s14677_s15  ;;  %23248 = vst [vmem:[#allocation152_spill] sm:$0xff] %v20475_v10  ;;  %12376 = vrot.lane.b32.xlu0 %v11942_v16, %s14678_s17  ;;  %v20488_v38 = vsel %vm11864_vm4, %v23252_v21, 0.0  ;;  %v12036_v22 = vpop.permute.xlu1 %12035 }
 0x766   : > { %v13526_v8 = vadd.f32 %v20175_v3, %v13454_v40  ;;  %23253 = vst [vmem:[#allocation100_spill] sm:$0xff] %v20488_v38  ;;  %23254 = vst [vmem:[#allocation102_spill] sm:$0xff] %v20492_v28  ;;  %v12265_v47 = vadd.f32 %v12036_v22, %v20488_v38  ;;  %v23255_v40 = vld [vmem:[#allocation82_spill] sm:$0xff]  ;;  %v20514_v22 = vcombine.high %v20087_v0, %v20084_v56  ;;  %v23278_v28 = vld [vmem:[#allocation51_spill] sm:$0xff] }
 0x767   : > { %v10755_v4 = vcombine.high %v23255_v40, %v23255_v40  ;;  %v23260_v38 = vld [vmem:[#allocation98_spill] sm:$0xff]  ;;  %v20529_v0 = vcombine.high %v20138_v63, %v20141_v36 }
 0x768   : > { %13971 = vst.msk [vmem:[%s18044_s13 + $0xe0] sm:$0xff] %vm2906_vm3, %v13526_v8  ;;  %v13455_v19 = vadd.f32 %v13383_v54, %v12265_v47  ;;  %23258 = vst [vmem:[#allocation160_spill] sm:$0xff] %v20514_v22  ;;  %v13063_v54 = vrot.slane %v20505_v29, 7  ;;  %v23264_v36 = vld [vmem:[#allocation58_spill] sm:$0xff]  ;;  %v13068_v22 = vrot.slane %v20314_v44, 7 }
 0x769   : > { %12063 = vrot.lane.b32.xlu1 %v11944_v53, %s14677_s15  ;;  %v13154_v51 = vpop.permute.xlu0 %13153  ;;  %13181 = vrot.lane.b32.xlu0 %v13062_v49, %s14677_s15  ;;  %v20507_v16 = vpop.permute.xlu1 %12350  ;;  %v20517_v8 = vrot.slane %v10755_v4, %v22874_v26  ;;  %23261 = vst [vmem:[#allocation158_spill] sm:$0xff] %v20529_v0 }
 0x76a   : > { %23256 = vst [vmem:[#allocation90_spill] sm:$0xff] %v20507_v16  ;;  %v13527_v20 = vadd.f32 %v20187_v1, %v13455_v19  ;;  %v13342_v21 = vsel %vm561_vm2, 0.0, %v13154_v51  ;;  %v23259_v19 = vld [vmem:[#allocation89_spill] sm:$0xff]  ;;  %v13064_v4 = vsel %vm561_vm2, %v13062_v49, %v13063_v54  ;;  %v20543_v49 = vsel %vm11864_vm4, %v23264_v36, 0.0  ;;  %v23267_v36 = vld [vmem:[#allocation110_spill] sm:$0xff] }
 0x76b   : > { %v13384_v51 = vadd.f32 %v13342_v21, %v23259_v19  ;;  %23265 = vst [vmem:[#allocation165_spill] sm:$0xff] %v20543_v49  ;;  %v13095_v19 = vrot.slane %v20282_v59, 7 }
 0x76c   : > { %13972 = vst.msk [vmem:[%s18044_s13 + $0xe8] sm:$0x7] %vm13943_vm5, %v13527_v20 }
 0x76d   : > { %12378 = vrot.lane.b32.xlu1 %v11944_v53, %s14678_s17  ;;  %v12038_v40 = vpop.permute.xlu0 %12037  ;;  %12105 = vrot.lane.b32.xlu0 %v11975_v61, %s14677_s15  ;;  %v11976_v53 = vrot.slane %v20517_v8, 7 }
 0x76e   : > { %v12223_v47 = vsel %vm561_vm2, 0.0, %v12038_v40  ;;  %v13156_v56 = vpop.permute.xlu1 %13155 }
 0x76f   : > { %v12266_v16 = vadd.f32 %v12223_v47, %v23260_v38  ;;  %v11977_v21 = vsel %vm561_vm2, %v11975_v61, %v11976_v53  ;;  %v23263_v47 = vld [vmem:[#allocation144_spill] sm:$0xff]  ;;  %v11945_v38 = vrot.slane %v23267_v36, 7 }
 0x770   : > { %v12992_v63 = vsel %vm11864_vm4, %v23263_v47, 0.0 }
 0x771   : > { %13183 = vrot.lane.b32.xlu1 %v13064_v4, %s14677_s15  ;;  %v13456_v10 = vadd.f32 %v13384_v51, %v12266_v16  ;;  %v20534_v20 = vpop.permute.xlu0 %12352  ;;  %12420 = vrot.lane.b32.xlu0 %v11975_v61, %s14678_s17  ;;  %v20548_v16 = vcombine.high %v20517_v8, %v20517_v8  ;;  %v13385_v51 = vadd.f32 %v13156_v56, %v12992_v63  ;;  %v23266_v4 = vld [vmem:[#allocation21_spill] sm:$0xff] }
 0x772   : > { %23262 = vst [vmem:[#allocation163_spill] sm:$0xff] %v20534_v20  ;;  %v10522_v53 = vcombine.high %v23266_v4, %v23266_v4  ;;  %v23268_v4 = vld [vmem:[#allocation87_spill] sm:$0xff] }
 0x773   : > { %v13528_v40 = vadd.f32 %v20175_v3, %v13456_v10  ;;  %v12040_v54 = vpop.permute.xlu1 %12039  ;;  %v13096_v20 = vrot.slane %v20548_v16, 7 }
 0x774   : > { %v12267_v61 = vadd.f32 %v12040_v54, %v20543_v49 }
 0x775   : > { %12107 = vrot.lane.b32.xlu1 %v11977_v21, %s14677_s15  ;;  %13975 = vst.msk [vmem:[%s18044_s13 + $0x100] sm:$0xff] %vm2906_vm3, %v13528_v40  ;;  %13225 = vrot.lane.b32.xlu0 %v13095_v19, %s14677_s15  ;;  %v20563_v40 = vrot.slane %v10522_v53, %v22874_v26 }
 0x776   : > { %v13158_v10 = vpop.permute.xlu0 %13157  ;;  %v13457_v47 = vadd.f32 %v13385_v51, %v12267_v61 }
 0x777   : > { %v13343_v63 = vsel %vm561_vm2, 0.0, %v13158_v10  ;;  %v11946_v10 = vrot.slane %v20563_v40, 7 }
 0x778   : > { %v13529_v56 = vadd.f32 %v20187_v1, %v13457_v47  ;;  %v13386_v61 = vadd.f32 %v13343_v63, %v19513_v39  ;;  %v13097_v47 = vsel %vm561_vm2, %v13095_v19, %v13096_v20  ;;  %v20584_v39 = vcombine.high %v20563_v40, %v20563_v40  ;;  %v23269_v20 = vld [vmem:[#allocation107_spill] sm:$0xff] }
 0x779   : > { %12422 = vrot.lane.b32.xlu1 %v11977_v21, %s14678_s17  ;;  %12065 = vrot.lane.b32.xlu0 %v11945_v38, %s14677_s15  ;;  %v11947_v0 = vsel %vm561_vm2, %v11945_v38, %v11946_v10  ;;  %v23270_v19 = vld [vmem:[#allocation95_spill] sm:$0xff] }
 0x77a   : > { %v12042_v54 = vpop.permute.xlu0 %12041  ;;  %13976 = vst.msk [vmem:[%s18044_s13 + $0x108] sm:$0x7] %vm13943_vm5, %v13529_v56  ;;  %v13065_v56 = vrot.slane %v20296_v50, 7  ;;  %v20590_v63 = vrot.slane %v23270_v19, %v22874_v26 }
 0x77b   : > { %v12224_v51 = vsel %vm561_vm2, 0.0, %v12042_v54 }
 0x77c   : > { %v12268_v49 = vadd.f32 %v12224_v51, %v23268_v4  ;;  %v23271_v51 = vld [vmem:[#allocation147_spill] sm:$0xff] }
 0x77d   : > { %13227 = vrot.lane.b32.xlu1 %v13097_v47, %s14677_s15  ;;  %12380 = vrot.lane.b32.xlu0 %v11945_v38, %s14678_s17  ;;  %v13066_v38 = vrot.slane %v20584_v39, 7  ;;  %v20597_v47 = vpop.permute.xlu1 %12354 }
 0x77e   : > { %v13458_v21 = vadd.f32 %v13386_v61, %v12268_v49  ;;  %v11948_v49 = vrot.slane %v23269_v20, 7  ;;  %v11978_v61 = vrot.slane %v23271_v51, 7  ;;  %23272 = vst [vmem:[#allocation142_spill] sm:$0xff] %v20597_v47  ;;  %v20609_v19 = vpop.permute.xlu0 %12356 }
 0x77f   : > { %v13067_v54 = vsel %vm561_vm2, %v13065_v56, %v13066_v38  ;;  %23274 = vst [vmem:[#allocation111_spill] sm:$0xff] %v20609_v19 }
 0x780   : > { %v13530_v53 = vadd.f32 %v20175_v3, %v13458_v21  ;;  %v23273_v21 = vld [vmem:[#allocation65_spill] sm:$0xff] }
 0x781   : > { %12067 = vrot.lane.b32.xlu1 %v11947_v0, %s14677_s15  ;;  %13185 = vrot.lane.b32.xlu0 %v13065_v56, %s14677_s15  ;;  %v20601_v10 = vrot.slane %v23273_v21, %v22874_v26  ;;  %v12993_v21 = vsel %vm11864_vm4, %v20062_v5, 0.0 }
 0x782   : > { %13979 = vst.msk [vmem:[%s18044_s13 + $0x120] sm:$0xff] %vm2906_vm3, %v13530_v53 }
 0x783   : > { %v11979_v56 = vrot.slane %v20601_v10, 7 }
 0x785   : > { %12382 = vrot.lane.b32.xlu1 %v11947_v0, %s14678_s17  ;;  %12069 = vrot.lane.b32.xlu0 %v11948_v49, %s14677_s15  ;;  %v11949_v0 = vrot.slane %v20590_v63, 7 }
 0x787   : > { %v11950_v53 = vsel %vm561_vm2, %v11948_v49, %v11949_v0  ;;  %v20618_v0 = vsel %vm11864_vm4, %v20070_v60, 0.0 }
 0x788   : > { %23275 = vst [vmem:[#allocation169_spill] sm:$0xff] %v20618_v0 }
 0x789   : > { %13187 = vrot.lane.b32.xlu1 %v13067_v54, %s14677_s15  ;;  %12109 = vrot.lane.b32.xlu0 %v11978_v61, %s14677_s15  ;;  %v11980_v54 = vsel %vm561_vm2, %v11978_v61, %v11979_v56  ;;  %v20624_v56 = vcombine.high %v20590_v63, %v20590_v63 }
 0x78b   : > { %23276 = vst [vmem:[#allocation35_spill] sm:$0xff] %v20624_v56 }
 0x78d   : > { %12071 = vrot.lane.b32.xlu1 %v11950_v53, %s14677_s15  ;;  %12384 = vrot.lane.b32.xlu0 %v11948_v49, %s14678_s17 }
 0x78f   : > { %v13160_v38 = vpop.permute.xlu1 %13159 }
 0x790   : > { %v13387_v49 = vadd.f32 %v13160_v38, %v12993_v21  ;;  %v13098_v21 = vrot.slane %v20331_v11, 7 }
 0x791   : > { %12111 = vrot.lane.b32.xlu1 %v11980_v54, %s14677_s15  ;;  %12424 = vrot.lane.b32.xlu0 %v11978_v61, %s14678_s17 }
 0x793   : > { %v12044_v4 = vpop.permute.xlu1 %12043  ;;  %v13162_v19 = vpop.permute.xlu0 %13161 }
 0x794   : > { %v12269_v47 = vadd.f32 %v12044_v4, %v20618_v0  ;;  %v13344_v5 = vsel %vm561_vm2, 0.0, %v13162_v19  ;;  %v13069_v0 = vrot.slane %v20624_v56, 7 }
 0x795   : > { %12386 = vrot.lane.b32.xlu1 %v11950_v53, %s14678_s17  ;;  %13189 = vrot.lane.b32.xlu0 %v13068_v22, %s14677_s15  ;;  %v13388_v53 = vadd.f32 %v13344_v5, %v20122_v52 }
 0x796   : > { %v13459_v61 = vadd.f32 %v13387_v49, %v12269_v47  ;;  %v10792_v47 = vcombine.high %v23278_v28, %v23278_v28  ;;  %v20645_v49 = vcombine.high %v20601_v10, %v20601_v10  ;;  %v23279_v28 = vld [vmem:[#allocation124_spill] sm:$0xff] }
 0x797   : > { %v20629_v60 = vpop.permute.xlu1 %12358  ;;  %v12046_v4 = vpop.permute.xlu0 %12045  ;;  %v11981_v56 = vrot.slane %v23279_v28, 7 }
 0x798   : > { %23277 = vst [vmem:[#allocation167_spill] sm:$0xff] %v20629_v60  ;;  %v13531_v38 = vadd.f32 %v20187_v1, %v13459_v61  ;;  %v12225_v44 = vsel %vm561_vm2, 0.0, %v12046_v4  ;;  %v13070_v4 = vsel %vm561_vm2, %v13068_v22, %v13069_v0  ;;  %v20653_v52 = vrot.slane %v10792_v47, %v22874_v26 }
 0x799   : > { %12426 = vrot.lane.b32.xlu1 %v11980_v54, %s14678_s17  ;;  %v12270_v19 = vadd.f32 %v12225_v44, %v19497_v34  ;;  %13229 = vrot.lane.b32.xlu0 %v13098_v21, %s14677_s15  ;;  %v13099_v5 = vrot.slane %v20645_v49, 7  ;;  %v20662_v22 = vsel %vm11864_vm4, %v20163_v14, 0.0 }
 0x79a   : > { %13980 = vst.msk [vmem:[%s18044_s13 + $0x128] sm:$0x7] %vm13943_vm5, %v13531_v38  ;;  %v12994_v38 = vsel %vm11864_vm4, %v20135_v42, 0.0  ;;  %23280 = vst [vmem:[#allocation148_spill] sm:$0xff] %v20662_v22  ;;  %v11982_v42 = vrot.slane %v20653_v52, 7 }
 0x79b   : > { %v13164_v61 = vpop.permute.xlu1 %13163  ;;  %v13460_v54 = vadd.f32 %v13388_v53, %v12270_v19  ;;  %v20648_v60 = vpop.permute.xlu0 %12360  ;;  %v13100_v19 = vsel %vm561_vm2, %v13098_v21, %v13099_v5  ;;  %v23282_v5 = vld [vmem:[#allocation49_spill] sm:$0xff] }
 0x79c   : > { %v13389_v53 = vadd.f32 %v13164_v61, %v12994_v38  ;;  %v11983_v61 = vsel %vm561_vm2, %v11981_v56, %v11982_v42 }
 0x79d   : > { %13191 = vrot.lane.b32.xlu1 %v13070_v4, %s14677_s15  ;;  %v13532_v44 = vadd.f32 %v20175_v3, %v13460_v54  ;;  %12113 = vrot.lane.b32.xlu0 %v11981_v56, %s14677_s15 }
 0x79f   : > { %v12048_v0 = vpop.permute.xlu1 %12047  ;;  %13983 = vst.msk [vmem:[%s18044_s13 + $0x140] sm:$0xff] %vm2906_vm3, %v13532_v44  ;;  %v13166_v54 = vpop.permute.xlu0 %13165 }
 0x7a0   : > { %v12271_v47 = vadd.f32 %v12048_v0, %v20662_v22  ;;  %v13345_v14 = vsel %vm561_vm2, 0.0, %v13166_v54  ;;  %v13101_v0 = vrot.slane %v20347_v41, 7 }
 0x7a1   : > { %13231 = vrot.lane.b32.xlu1 %v13100_v19, %s14677_s15  ;;  %12428 = vrot.lane.b32.xlu0 %v11981_v56, %s14678_s17  ;;  %v20688_v56 = vcombine.high %v20653_v52, %v20653_v52 }
 0x7a2   : > { %v13461_v4 = vadd.f32 %v13389_v53, %v12271_v47  ;;  %v10575_v53 = vcombine.high %v23282_v5, %v23282_v5  ;;  %v13390_v47 = vadd.f32 %v13345_v14, %v20169_v45  ;;  %v20704_v5 = vsel %vm11864_vm4, %v20239_v23, 0.0 }
 0x7a3   : > { %v20672_v34 = vpop.permute.xlu1 %12362  ;;  %v12050_v38 = vpop.permute.xlu0 %12049  ;;  %v13102_v14 = vrot.slane %v20688_v56, 7  ;;  %23284 = vst [vmem:[#allocation162_spill] sm:$0xff] %v20704_v5 }
 0x7a4   : > { %23281 = vst [vmem:[#allocation149_spill] sm:$0xff] %v20672_v34  ;;  %v13533_v44 = vadd.f32 %v20187_v1, %v13461_v4  ;;  %v12226_v21 = vsel %vm561_vm2, 0.0, %v12050_v38  ;;  %v23283_v38 = vld [vmem:[#allocation30_spill] sm:$0xff] }
 0x7a5   : > { %12115 = vrot.lane.b32.xlu1 %v11983_v61, %s14677_s15  ;;  %v12272_v19 = vadd.f32 %v12226_v21, %v19524_v17  ;;  %13233 = vrot.lane.b32.xlu0 %v13101_v0, %s14677_s15  ;;  %v11951_v22 = vrot.slane %v23283_v38, 7  ;;  %v12995_v21 = vsel %vm11864_vm4, %v20223_v33, 0.0 }
 0x7a6   : > { %13984 = vst.msk [vmem:[%s18044_s13 + $0x148] sm:$0x7] %vm13943_vm5, %v13533_v44  ;;  %v20695_v44 = vrot.slane %v10575_v53, %v22874_v26 }
 0x7a7   : > { %v13168_v54 = vpop.permute.xlu1 %13167  ;;  %v13462_v4 = vadd.f32 %v13390_v47, %v12272_v19  ;;  %v20690_v42 = vpop.permute.xlu0 %12364  ;;  %v13103_v19 = vsel %vm561_vm2, %v13101_v0, %v13102_v14 }
 0x7a8   : > { %v11952_v33 = vrot.slane %v20695_v44, 7  ;;  %v20721_v0 = vcombine.high %v20695_v44, %v20695_v44 }
 0x7a9   : > { %12430 = vrot.lane.b32.xlu1 %v11983_v61, %s14678_s17  ;;  %v13534_v45 = vadd.f32 %v20175_v3, %v13462_v4  ;;  %12073 = vrot.lane.b32.xlu0 %v11951_v22, %s14677_s15  ;;  %v13391_v61 = vadd.f32 %v13168_v54, %v12995_v21 }
 0x7aa   : > { %v11953_v54 = vsel %vm561_vm2, %v11951_v22, %v11952_v33 }
 0x7ab   : > { %v12052_v47 = vpop.permute.xlu1 %12051  ;;  %13987 = vst.msk [vmem:[%s18044_s13 + $0x160] sm:$0xff] %vm2906_vm3, %v13534_v45  ;;  %v13170_v4 = vpop.permute.xlu0 %13169 }
 0x7ac   : > { %v12273_v53 = vadd.f32 %v12052_v47, %v20704_v5  ;;  %v13346_v23 = vsel %vm561_vm2, 0.0, %v13170_v4  ;;  %v13071_v47 = vrot.slane %v20359_v30, 7  ;;  %v23288_v5 = vld [vmem:[#allocation40_spill] sm:$0xff] }
 0x7ad   : > { %13235 = vrot.lane.b32.xlu1 %v13103_v19, %s14677_s15  ;;  %12388 = vrot.lane.b32.xlu0 %v11951_v22, %s14678_s17 }
 0x7ae   : > { %v13463_v17 = vadd.f32 %v13391_v61, %v12273_v53  ;;  %v13392_v61 = vadd.f32 %v13346_v23, %v20204_v57  ;;  %v23286_v53 = vld [vmem:[#allocation53_spill] sm:$0xff]  ;;  %v12996_v23 = vsel %vm11864_vm4, %v20278_v24, 0.0 }
 0x7af   : > { %v20714_v34 = vpop.permute.xlu1 %12366  ;;  %v12054_v21 = vpop.permute.xlu0 %12053  ;;  %v20732_v19 = vrot.slane %v23286_v53, %v22874_v26 }
 0x7b0   : > { %23285 = vst [vmem:[#allocation22_spill] sm:$0xff] %v20714_v34  ;;  %v13535_v45 = vadd.f32 %v20187_v1, %v13463_v17  ;;  %v12227_v14 = vsel %vm561_vm2, 0.0, %v12054_v21  ;;  %v11984_v34 = vrot.slane %v23288_v5, 7  ;;  %v13072_v21 = vrot.slane %v20721_v0, 7 }
 0x7b1   : > { %12075 = vrot.lane.b32.xlu1 %v11953_v54, %s14677_s15  ;;  %v12274_v17 = vadd.f32 %v12227_v14, %v23198_v27  ;;  %13193 = vrot.lane.b32.xlu0 %v13071_v47, %s14677_s15 }
 0x7b2   : > { %13988 = vst.msk [vmem:[%s18044_s13 + $0x168] sm:$0x7] %vm13943_vm5, %v13535_v45  ;;  %v20745_v45 = vsel %vm11864_vm4, %v20288_v2, 0.0 }
 0x7b3   : > { %v13172_v22 = vpop.permute.xlu1 %13171  ;;  %v13464_v4 = vadd.f32 %v13392_v61, %v12274_v17  ;;  %v20734_v33 = vpop.permute.xlu0 %12368  ;;  %23289 = vst [vmem:[#allocation166_spill] sm:$0xff] %v20745_v45 }
 0x7b4   : > { %23287 = vst [vmem:[#allocation164_spill] sm:$0xff] %v20734_v33  ;;  %v13393_v61 = vadd.f32 %v13172_v22, %v12996_v23  ;;  %v23307_v33 = vld [vmem:[#allocation153_spill] sm:$0xff] }
 0x7b5   : > { %12390 = vrot.lane.b32.xlu1 %v11953_v54, %s14678_s17  ;;  %v13536_v57 = vadd.f32 %v20175_v3, %v13464_v4  ;;  %12117 = vrot.lane.b32.xlu0 %v11984_v34, %s14677_s15  ;;  %v13073_v54 = vsel %vm561_vm2, %v13071_v47, %v13072_v21  ;;  %v11985_v4 = vrot.slane %v20732_v19, 7  ;;  %v20762_v47 = vcombine.high %v20732_v19, %v20732_v19 }
 0x7b7   : > { %v12056_v14 = vpop.permute.xlu1 %12055  ;;  %13991 = vst.msk [vmem:[%s18044_s13 + $0x180] sm:$0xff] %vm2906_vm3, %v13536_v57  ;;  %v13174_v53 = vpop.permute.xlu0 %13173  ;;  %v11986_v22 = vsel %vm561_vm2, %v11984_v34, %v11985_v4  ;;  %23291 = vst [vmem:[#allocation168_spill] sm:$0xff] %v20762_v47 }
 0x7b8   : > { %v12275_v17 = vadd.f32 %v12056_v14, %v20745_v45  ;;  %v13347_v24 = vsel %vm561_vm2, 0.0, %v13174_v53  ;;  %v13104_v14 = vrot.slane %v20371_v55, 7  ;;  %v23293_v53 = vld [vmem:[#allocation117_spill] sm:$0xff]  ;;  %v13105_v45 = vrot.slane %v20762_v47, 7 }
 0x7b9   : > { %13195 = vrot.lane.b32.xlu1 %v13073_v54, %s14677_s15  ;;  %12432 = vrot.lane.b32.xlu0 %v11984_v34, %s14678_s17  ;;  %v11954_v4 = vrot.slane %v23293_v53, 7 }
 0x7ba   : > { %v13465_v27 = vadd.f32 %v13393_v61, %v12275_v17  ;;  %v13394_v61 = vadd.f32 %v13347_v24, %v20216_v7  ;;  %v12997_v24 = vsel %vm11864_vm4, %v20326_v62, 0.0 }
 0x7bb   : > { %v20755_v2 = vpop.permute.xlu1 %12370  ;;  %v12058_v23 = vpop.permute.xlu0 %12057 }
 0x7bc   : > { %23290 = vst [vmem:[#allocation101_spill] sm:$0xff] %v20755_v2  ;;  %v13537_v57 = vadd.f32 %v20187_v1, %v13465_v27  ;;  %v12228_v21 = vsel %vm561_vm2, 0.0, %v12058_v23  ;;  %v23294_v23 = vld [vmem:[#allocation115_spill] sm:$0xff] }
 0x7bd   : > { %12119 = vrot.lane.b32.xlu1 %v11986_v22, %s14677_s15  ;;  %v12276_v27 = vadd.f32 %v12228_v21, %v23213_v6  ;;  %13237 = vrot.lane.b32.xlu0 %v13104_v14, %s14677_s15  ;;  %v20786_v21 = vsel %vm11864_vm4, %v20350_v12, 0.0 }
 0x7be   : > { %13992 = vst.msk [vmem:[%s18044_s13 + $0x188] sm:$0x7] %vm13943_vm5, %v13537_v57  ;;  %v20778_v57 = vrot.slane %v23294_v23, %v22874_v26  ;;  %23295 = vst [vmem:[#allocation16_spill] sm:$0xff] %v20786_v21  ;;  %v13106_v23 = vsel %vm561_vm2, %v13104_v14, %v13105_v45  ;;  %v23298_v45 = vld [vmem:[#allocation151_spill] sm:$0xff] }
 0x7bf   : > { %v13176_v34 = vpop.permute.xlu1 %13175  ;;  %v13466_v17 = vadd.f32 %v13394_v61, %v12276_v27  ;;  %v20771_v54 = vpop.permute.xlu0 %12372  ;;  %v10845_v14 = vcombine.high %v23298_v45, %v23298_v45 }
 0x7c0   : > { %23292 = vst [vmem:[#allocation113_spill] sm:$0xff] %v20771_v54  ;;  %v11955_v62 = vrot.slane %v20778_v57, 7 }
 0x7c1   : > { %12434 = vrot.lane.b32.xlu1 %v11986_v22, %s14678_s17  ;;  %v13538_v7 = vadd.f32 %v20175_v3, %v13466_v17  ;;  %12077 = vrot.lane.b32.xlu0 %v11954_v4, %s14677_s15  ;;  %v13395_v22 = vadd.f32 %v13176_v34, %v12997_v24  ;;  %v13074_v34 = vrot.slane %v20392_v46, 7  ;;  %v20810_v24 = vcombine.high %v20778_v57, %v20778_v57 }
 0x7c3   : > { %v12060_v61 = vpop.permute.xlu1 %12059  ;;  %13995 = vst.msk [vmem:[%s18044_s13 + $0x1a0] sm:$0xff] %vm2906_vm3, %v13538_v7  ;;  %v13178_v6 = vpop.permute.xlu0 %13177  ;;  %v11956_v7 = vsel %vm561_vm2, %v11954_v4, %v11955_v62  ;;  %23299 = vst [vmem:[#allocation86_spill] sm:$0xff] %v20810_v24 }
 0x7c4   : > { %v12277_v27 = vadd.f32 %v12060_v61, %v20786_v21 }
 0x7c5   : > { %13239 = vrot.lane.b32.xlu1 %v13106_v23, %s14677_s15  ;;  %12392 = vrot.lane.b32.xlu0 %v11954_v4, %s14678_s17  ;;  %v23301_v4 = vld [vmem:[#allocation154_spill] sm:$0xff]  ;;  %v20817_v23 = vrot.slane %v10845_v14, %v22874_v26 }
 0x7c6   : > { %v13467_v17 = vadd.f32 %v13395_v22, %v12277_v27  ;;  %v11987_v27 = vrot.slane %v23301_v4, 7 }
 0x7c7   : > { %v20795_v2 = vpop.permute.xlu1 %12374  ;;  %v20799_v54 = vpop.permute.xlu0 %12101  ;;  %23302 = vst [vmem:[#allocation25_spill] sm:$0xff] %v20817_v23  ;;  %v11988_v21 = vrot.slane %v20817_v23, 7 }
 0x7c8   : > { %23296 = vst [vmem:[#allocation106_spill] sm:$0xff] %v20795_v2  ;;  %v13539_v12 = vadd.f32 %v20187_v1, %v13467_v17  ;;  %23297 = vst [vmem:[#allocation37_spill] sm:$0xff] %v20799_v54  ;;  %v13075_v17 = vrot.slane %v20810_v24, 7  ;;  %v13107_v24 = vrot.slane %v20407_v18, 7 }
 0x7c9   : > { %12079 = vrot.lane.b32.xlu1 %v11956_v7, %s14677_s15  ;;  %13197 = vrot.lane.b32.xlu0 %v13074_v34, %s14677_s15  ;;  %v11989_v14 = vsel %vm561_vm2, %v11987_v27, %v11988_v21 }
 0x7ca   : > { %13996 = vst.msk [vmem:[%s18044_s13 + $0x1a8] sm:$0x7] %vm13943_vm5, %v13539_v12  ;;  %v13076_v12 = vsel %vm561_vm2, %v13074_v34, %v13075_v17  ;;  %v23306_v17 = vld [vmem:[#allocation118_spill] sm:$0xff] }
 0x7cb   : > { %v13180_v61 = vpop.permute.xlu1 %13179  ;;  %v20812_v22 = vpop.permute.xlu0 %12416 }
 0x7cc   : > { %23300 = vst [vmem:[#allocation88_spill] sm:$0xff] %v20812_v22 }
 0x7cd   : > { %12394 = vrot.lane.b32.xlu1 %v11956_v7, %s14678_s17  ;;  %12121 = vrot.lane.b32.xlu0 %v11987_v27, %s14677_s15  ;;  %v13348_v7 = vsel %vm561_vm2, 0.0, %v13178_v6 }
 0x7ce   : > { %v13396_v6 = vadd.f32 %v13348_v7, %v20236_v37  ;;  %v12998_v7 = vsel %vm11864_vm4, %v20384_v31, 0.0 }
 0x7cf   : > { %v20821_v62 = vpop.permute.xlu1 %12103  ;;  %v13222_v45 = vpop.permute.xlu0 %13221 }
 0x7d0   : > { %23303 = vst [vmem:[#allocation103_spill] sm:$0xff] %v20821_v62  ;;  %v20834_v62 = vcombine.high %v20817_v23, %v20817_v23  ;;  %v11957_v23 = vrot.slane %v23307_v33, 7 }
 0x7d1   : > { %13199 = vrot.lane.b32.xlu1 %v13076_v12, %s14677_s15  ;;  %12436 = vrot.lane.b32.xlu0 %v11987_v27, %s14678_s17  ;;  %v10612_v12 = vcombine.high %v23306_v17, %v23306_v17  ;;  %v13397_v17 = vadd.f32 %v13180_v61, %v12998_v7 }
 0x7d2   : > { %23305 = vst [vmem:[#allocation114_spill] sm:$0xff] %v20834_v62  ;;  %v13108_v47 = vrot.slane %v20834_v62, 7 }
 0x7d3   : > { %v20828_v54 = vpop.permute.xlu1 %12418  ;;  %v12062_v2 = vpop.permute.xlu0 %12061 }
 0x7d4   : > { %23304 = vst [vmem:[#allocation123_spill] sm:$0xff] %v20828_v54  ;;  %v12229_v34 = vsel %vm561_vm2, 0.0, %v12062_v2  ;;  %v20849_v2 = vrot.slane %v10612_v12, %v22874_v26  ;;  %v13109_v12 = vsel %vm561_vm2, %v13107_v24, %v13108_v47 }
 0x7d5   : > { %12123 = vrot.lane.b32.xlu1 %v11989_v14, %s14677_s15  ;;  %v12278_v54 = vadd.f32 %v12229_v34, %v23241_v43  ;;  %13241 = vrot.lane.b32.xlu0 %v13107_v24, %s14677_s15 }
 0x7d6   : > { %v11958_v31 = vrot.slane %v20849_v2, 7 }
 0x7d7   : > { %v13224_v21 = vpop.permute.xlu1 %13223  ;;  %v13468_v27 = vadd.f32 %v13396_v6, %v12278_v54  ;;  %v20843_v22 = vpop.permute.xlu0 %12376  ;;  %v20857_v54 = vsel %vm11864_vm4, %v20465_v32, 0.0  ;;  %v13359_v32 = vsel %vm561_vm2, 0.0, %v13222_v45 }
 0x7d8   : > { %23308 = vst [vmem:[#allocation138_spill] sm:$0xff] %v20857_v54  ;;  %v13418_v24 = vadd.f32 %v13359_v32, %v20251_v13  ;;  %v23310_v13 = vld [vmem:[#allocation120_spill] sm:$0xff]  ;;  %v20891_v32 = vld [vmem:[#allocation10] sm:$0xff] }
 0x7d9   : > { %12438 = vrot.lane.b32.xlu1 %v11989_v14, %s14678_s17  ;;  %v13540_v37 = vadd.f32 %v20175_v3, %v13468_v27  ;;  %12081 = vrot.lane.b32.xlu0 %v11957_v23, %s14677_s15 }
 0x7db   : > { %v12064_v34 = vpop.permute.xlu1 %12063  ;;  %13999 = vst.msk [vmem:[%s18044_s13 + $0x1c0] sm:$0xff] %vm2906_vm3, %v13540_v37  ;;  %v13182_v6 = vpop.permute.xlu0 %13181  ;;  %v11959_v37 = vsel %vm561_vm2, %v11957_v23, %v11958_v31  ;;  %v20889_v31 = vrot.slane %v23310_v13, %v22874_v26 }
 0x7dc   : > { %v12279_v14 = vadd.f32 %v12064_v34, %v20857_v54  ;;  %v13077_v34 = vrot.slane %v20420_v9, 7 }
 0x7dd   : > { %13243 = vrot.lane.b32.xlu1 %v13109_v12, %s14677_s15  ;;  %12396 = vrot.lane.b32.xlu0 %v11957_v23, %s14678_s17  ;;  %v23309_v12 = vld [vmem:[#allocation78_spill] sm:$0xff] }
 0x7de   : > { %v13469_v3 = vadd.f32 %v13397_v17, %v12279_v14 }
 0x7df   : > { %v20867_v27 = vpop.permute.xlu1 %12378  ;;  %v12106_v7 = vpop.permute.xlu0 %12105 }
 0x7e0   : > { %v13541_v61 = vadd.f32 %v20187_v1, %v13469_v3  ;;  %v12240_v47 = vsel %vm561_vm2, 0.0, %v12106_v7  ;;  %v20881_v1 = vcombine.high %v20849_v2, %v20849_v2  ;;  %v11960_v3 = vrot.slane %v23309_v12, 7 }
 0x7e1   : > { %12083 = vrot.lane.b32.xlu1 %v11959_v37, %s14677_s15  ;;  %v12300_v17 = vadd.f32 %v12240_v47, %v23257_v35  ;;  %13201 = vrot.lane.b32.xlu0 %v13077_v34, %s14677_s15  ;;  %v13009_v47 = vsel %vm11864_vm4, %v20429_v48, 0.0  ;;  %v23312_v35 = vld [vmem:[#allocation126_spill] sm:$0xff] }
 0x7e2   : > { %14000 = vst.msk [vmem:[%s18044_s13 + $0x1c8] sm:$0x7] %vm13943_vm5, %v13541_v61  ;;  %v13078_v7 = vrot.slane %v20881_v1, 7  ;;  %v11990_v43 = vrot.slane %v23312_v35, 7  ;;  %v23313_v48 = vld [vmem:[#allocation122_spill] sm:$0xff] }
 0x7e3   : > { %v13184_v23 = vpop.permute.xlu1 %13183  ;;  %v13490_v45 = vadd.f32 %v13418_v24, %v12300_v17  ;;  %v20883_v14 = vpop.permute.xlu0 %12420  ;;  %v20900_v24 = vsel %vm11864_vm4, %v20517_v8, 0.0  ;;  %v13419_v17 = vadd.f32 %v13224_v21, %v13009_v47  ;;  %v20910_v62 = vrot.slane %v23313_v48, %v22874_v26 }
 0x7e4   : > { %23311 = vst [vmem:[#allocation27_spill] sm:$0xff] %v20900_v24  ;;  %v13079_v54 = vsel %vm561_vm2, %v13077_v34, %v13078_v7  ;;  %v11961_v21 = vrot.slane %v20889_v31, 7  ;;  %v20917_v34 = vld [vmem:[#allocation10 + $0x8] sm:$0x7] }
 0x7e5   : > { %12398 = vrot.lane.b32.xlu1 %v11959_v37, %s14678_s17  ;;  %v13562_v61 = vadd.f32 %v20891_v32, %v13490_v45  ;;  %12085 = vrot.lane.b32.xlu0 %v11960_v3, %s14677_s15 }
 0x7e7   : > { %v12108_v37 = vpop.permute.xlu1 %12107  ;;  %14043 = vst.msk [vmem:[%s18044_s13 + $0x320] sm:$0xff] %vm2906_vm3, %v13562_v61  ;;  %v13226_v45 = vpop.permute.xlu0 %13225  ;;  %v13349_v61 = vsel %vm561_vm2, 0.0, %v13182_v6 }
 0x7e8   : > { %v12301_v13 = vadd.f32 %v12108_v37, %v20900_v24  ;;  %v11962_v37 = vsel %vm561_vm2, %v11960_v3, %v11961_v21 }
 0x7e9   : > { %13203 = vrot.lane.b32.xlu1 %v13079_v54, %s14677_s15  ;;  %12125 = vrot.lane.b32.xlu0 %v11990_v43, %s14677_s15 }
 0x7ea   : > { %v13491_v8 = vadd.f32 %v13419_v17, %v12301_v13  ;;  %v13398_v17 = vadd.f32 %v13349_v61, %v20267_v25  ;;  %v11991_v13 = vrot.slane %v20910_v62, 7  ;;  %v12999_v61 = vsel %vm11864_vm4, %v20505_v29, 0.0 }
 0x7eb   : > { %v20915_v47 = vpop.permute.xlu1 %12422  ;;  %v12066_v54 = vpop.permute.xlu0 %12065 }
 0x7ec   : > { %23314 = vst [vmem:[#allocation23_spill] sm:$0xff] %v20915_v47  ;;  %v13563_v7 = vadd.f32 %v20917_v34, %v13491_v8  ;;  %v12230_v48 = vsel %vm561_vm2, 0.0, %v12066_v54  ;;  %v11992_v21 = vsel %vm561_vm2, %v11990_v43, %v11991_v13  ;;  %v13399_v54 = vadd.f32 %v13184_v23, %v12999_v61 }
 0x7ed   : > { %12087 = vrot.lane.b32.xlu1 %v11962_v37, %s14677_s15  ;;  %v12280_v6 = vadd.f32 %v12230_v48, %v23267_v36  ;;  %12400 = vrot.lane.b32.xlu0 %v11960_v3, %s14678_s17  ;;  %v20941_v3 = vsel %vm11864_vm4, %v20563_v40, 0.0 }
 0x7ee   : > { %14044 = vst.msk [vmem:[%s18044_s13 + $0x328] sm:$0x7] %vm13943_vm5, %v13563_v7  ;;  %23315 = vst [vmem:[#allocation34_spill] sm:$0xff] %v20941_v3 }
 0x7ef   : > { %v20929_v24 = vpop.permute.xlu1 %13227  ;;  %v13470_v8 = vadd.f32 %v13398_v17, %v12280_v6  ;;  %v20932_v47 = vpop.permute.xlu0 %12380  ;;  %v13080_v6 = vrot.slane %v20442_v15, 7 }
 0x7f1   : > { %12127 = vrot.lane.b32.xlu1 %v11992_v21, %s14677_s15  ;;  %v13542_v25 = vadd.f32 %v20891_v32, %v13470_v8  ;;  %12440 = vrot.lane.b32.xlu0 %v11990_v43, %s14678_s17  ;;  %v20949_v43 = vcombine.high %v20889_v31, %v20889_v31 }
 0x7f3   : > { %v12068_v7 = vpop.permute.xlu1 %12067  ;;  %14003 = vst.msk [vmem:[%s18044_s13 + $0x1e0] sm:$0xff] %vm2906_vm3, %v13542_v25  ;;  %v13186_v17 = vpop.permute.xlu0 %13185  ;;  %23316 = vst [vmem:[#allocation94_spill] sm:$0xff] %v20949_v43  ;;  %v23318_v25 = vld [vmem:[#allocation161_spill] sm:$0xff] }
 0x7f4   : > { %v12281_v48 = vadd.f32 %v12068_v7, %v20941_v3  ;;  %v13350_v40 = vsel %vm561_vm2, 0.0, %v13186_v17  ;;  %v13110_v61 = vrot.slane %v23318_v25, 7  ;;  %v13081_v7 = vrot.slane %v20949_v43, 7  ;;  %v23319_v3 = vld [vmem:[#allocation127_spill] sm:$0xff] }
 0x7f5   : > { %12402 = vrot.lane.b32.xlu1 %v11962_v37, %s14678_s17  ;;  %13205 = vrot.lane.b32.xlu0 %v13080_v6, %s14677_s15  ;;  %v10882_v36 = vcombine.high %v23319_v3, %v23319_v3  ;;  %v20970_v17 = vcombine.high %v20910_v62, %v20910_v62 }
 0x7f6   : > { %v13471_v29 = vadd.f32 %v13399_v54, %v12281_v48  ;;  %v13400_v54 = vadd.f32 %v13350_v40, %v20296_v50 }
 0x7f7   : > { %v20954_v23 = vpop.permute.xlu1 %12382  ;;  %v12070_v8 = vpop.permute.xlu0 %12069  ;;  %23320 = vst [vmem:[#allocation74_spill] sm:$0xff] %v20970_v17  ;;  %v20976_v50 = vrot.slane %v10882_v36, %v22874_v26  ;;  %v20989_v36 = vsel %vm11864_vm4, %v20590_v63, 0.0 }
 0x7f8   : > { %23317 = vst [vmem:[#allocation66_spill] sm:$0xff] %v20954_v23  ;;  %v13543_v13 = vadd.f32 %v20917_v34, %v13471_v29  ;;  %v12231_v37 = vsel %vm561_vm2, 0.0, %v12070_v8  ;;  %v13360_v29 = vsel %vm561_vm2, 0.0, %v13226_v45  ;;  %v23321_v23 = vld [vmem:[#allocation136_spill] sm:$0xff]  ;;  %23323 = vst [vmem:[#allocation109_spill] sm:$0xff] %v20989_v36 }
 0x7f9   : > { %12442 = vrot.lane.b32.xlu1 %v11992_v21, %s14678_s17  ;;  %v12282_v48 = vadd.f32 %v12231_v37, %v23269_v20  ;;  %13245 = vrot.lane.b32.xlu0 %v13110_v61, %s14677_s15  ;;  %v13082_v21 = vsel %vm561_vm2, %v13080_v6, %v13081_v7  ;;  %23322 = vst [vmem:[#allocation32_spill] sm:$0xff] %v20976_v50  ;;  %v13111_v6 = vrot.slane %v20970_v17, 7  ;;  %v13000_v7 = vsel %vm11864_vm4, %v20584_v39, 0.0 }
 0x7fa   : > { %14004 = vst.msk [vmem:[%s18044_s13 + $0x1e8] sm:$0x7] %vm13943_vm5, %v13543_v13  ;;  %v11993_v13 = vrot.slane %v23321_v23, 7  ;;  %v13420_v37 = vadd.f32 %v13360_v29, %v20282_v59  ;;  %v11994_v39 = vrot.slane %v20976_v50, 7 }
 0x7fb   : > { %v13188_v43 = vpop.permute.xlu1 %13187  ;;  %v13472_v3 = vadd.f32 %v13400_v54, %v12282_v48  ;;  %v12110_v8 = vpop.permute.xlu0 %12109 }
 0x7fc   : > { %v12241_v40 = vsel %vm561_vm2, 0.0, %v12110_v8  ;;  %v13401_v59 = vadd.f32 %v13188_v43, %v13000_v7  ;;  %v21005_v43 = vsel %vm11864_vm4, %v20601_v10, 0.0  ;;  %v23326_v10 = vld [vmem:[#allocation73_spill] sm:$0xff] }
 0x7fd   : > { %13207 = vrot.lane.b32.xlu1 %v13082_v21, %s14677_s15  ;;  %v13544_v20 = vadd.f32 %v20891_v32, %v13472_v3  ;;  %v12302_v45 = vadd.f32 %v12241_v40, %v23271_v51  ;;  %12129 = vrot.lane.b32.xlu0 %v11993_v13, %s14677_s15  ;;  %v13112_v3 = vsel %vm561_vm2, %v13110_v61, %v13111_v6 }
 0x7fe   : > { %23324 = vst [vmem:[#allocation29_spill] sm:$0xff] %v21005_v43  ;;  %v11995_v40 = vsel %vm561_vm2, %v11993_v13, %v11994_v39  ;;  %v23329_v39 = vld [vmem:[#allocation24_spill] sm:$0xff] }
 0x7ff   : > { %v12072_v54 = vpop.permute.xlu1 %12071  ;;  %14007 = vst.msk [vmem:[%s18044_s13 + $0x200] sm:$0xff] %vm2906_vm3, %v13544_v20  ;;  %v13492_v48 = vadd.f32 %v13420_v37, %v12302_v45  ;;  %v20995_v21 = vpop.permute.xlu0 %12384  ;;  %v13010_v20 = vsel %vm11864_vm4, %v20548_v16, 0.0 }
 0x800   : > { %v12283_v29 = vadd.f32 %v12072_v54, %v20989_v36  ;;  %v13421_v37 = vadd.f32 %v20929_v24, %v13010_v20  ;;  %v23325_v54 = vld [vmem:[#allocation42_spill] sm:$0xff]  ;;  %v21024_v24 = vcombine.high %v20976_v50, %v20976_v50 }
 0x801   : > { %13247 = vrot.lane.b32.xlu1 %v13112_v3, %s14677_s15  ;;  %v13564_v63 = vadd.f32 %v20891_v32, %v13492_v48  ;;  %12444 = vrot.lane.b32.xlu0 %v11993_v13, %s14678_s17  ;;  %v13113_v16 = vrot.slane %v23325_v54, 7 }
 0x802   : > { %v13473_v8 = vadd.f32 %v13401_v59, %v12283_v29  ;;  %v10665_v59 = vcombine.high %v23326_v10, %v23326_v10  ;;  %23327 = vst [vmem:[#allocation143_spill] sm:$0xff] %v21024_v24  ;;  %v13114_v20 = vrot.slane %v21024_v24, 7  ;;  %v23336_v24 = vld [vmem:[#allocation60_spill] sm:$0xff] }
 0x803   : > { %v12112_v61 = vpop.permute.xlu1 %12111  ;;  %14047 = vst.msk [vmem:[%s18044_s13 + $0x340] sm:$0xff] %vm2906_vm3, %v13564_v63  ;;  %v21013_v7 = vpop.permute.xlu0 %12424  ;;  %v11963_v63 = vrot.slane %v23329_v39, 7 }
 0x804   : > { %v13545_v45 = vadd.f32 %v20917_v34, %v13473_v8  ;;  %v12303_v6 = vadd.f32 %v12112_v61, %v21005_v43  ;;  %v21032_v8 = vrot.slane %v10665_v59, %v22874_v26 }
 0x805   : > { %12131 = vrot.lane.b32.xlu1 %v11995_v40, %s14677_s15  ;;  %13249 = vrot.lane.b32.xlu0 %v13113_v16, %s14677_s15 }
 0x806   : > { %14008 = vst.msk [vmem:[%s18044_s13 + $0x208] sm:$0x7] %vm13943_vm5, %v13545_v45  ;;  %v13493_v13 = vadd.f32 %v13421_v37, %v12303_v6  ;;  %23330 = vst [vmem:[#allocation61_spill] sm:$0xff] %v21032_v8  ;;  %v13115_v37 = vsel %vm561_vm2, %v13113_v16, %v13114_v20  ;;  %v21051_v43 = vcombine.high %v21032_v8, %v21032_v8 }
 0x807   : > { %v21026_v48 = vpop.permute.xlu1 %12386  ;;  %v13190_v3 = vpop.permute.xlu0 %13189 }
 0x808   : > { %23328 = vst [vmem:[#allocation145_spill] sm:$0xff] %v21026_v48  ;;  %v13565_v29 = vadd.f32 %v20917_v34, %v13493_v13  ;;  %23332 = vst [vmem:[#allocation96_spill] sm:$0xff] %v21051_v43  ;;  %v13084_v50 = vrot.slane %v21051_v43, 7 }
 0x809   : > { %12446 = vrot.lane.b32.xlu1 %v11995_v40, %s14678_s17  ;;  %12089 = vrot.lane.b32.xlu0 %v11963_v63, %s14677_s15  ;;  %v11964_v40 = vrot.slane %v21032_v8, 7  ;;  %v11996_v8 = vrot.slane %v23336_v24, 7 }
 0x80a   : > { %14048 = vst.msk [vmem:[%s18044_s13 + $0x348] sm:$0x7] %vm13943_vm5, %v13565_v29  ;;  %v13083_v29 = vrot.slane %v20479_v58, 7 }
 0x80b   : > { %v21038_v61 = vpop.permute.xlu1 %12426  ;;  %v13230_v45 = vpop.permute.xlu0 %13229  ;;  %v11965_v59 = vsel %vm561_vm2, %v11963_v63, %v11964_v40 }
 0x80c   : > { %23331 = vst [vmem:[#allocation59_spill] sm:$0xff] %v21038_v61  ;;  %v13361_v6 = vsel %vm561_vm2, 0.0, %v13230_v45  ;;  %v23343_v61 = vld [vmem:[#allocation36_spill] sm:$0xff] }
 0x80d   : > { %13251 = vrot.lane.b32.xlu1 %v13115_v37, %s14677_s15  ;;  %12404 = vrot.lane.b32.xlu0 %v11963_v63, %s14678_s17  ;;  %v13422_v20 = vadd.f32 %v13361_v6, %v20331_v11  ;;  %v23333_v63 = vld [vmem:[#allocation140_spill] sm:$0xff] }
 0x80e   : > { %v21062_v40 = vrot.slane %v23333_v63, %v22874_v26 }
 0x80f   : > { %v21045_v10 = vpop.permute.xlu1 %13191  ;;  %v12114_v13 = vpop.permute.xlu0 %12113 }
 0x810   : > { %v12242_v16 = vsel %vm561_vm2, 0.0, %v12114_v13  ;;  %23334 = vst [vmem:[#allocation105_spill] sm:$0xff] %v21062_v40  ;;  %v13085_v13 = vsel %vm561_vm2, %v13083_v29, %v13084_v50 }
 0x811   : > { %12091 = vrot.lane.b32.xlu1 %v11965_v59, %s14677_s15  ;;  %v12304_v37 = vadd.f32 %v12242_v16, %v23279_v28  ;;  %13209 = vrot.lane.b32.xlu0 %v13083_v29, %s14677_s15  ;;  %v23338_v28 = vld [vmem:[#allocation102_spill] sm:$0xff]  ;;  %v23340_v29 = vld [vmem:[#allocation112_spill] sm:$0xff] }
 0x812   : > { %v13116_v43 = vrot.slane %v23338_v28, 7  ;;  %v23342_v28 = vld [vmem:[#allocation125_spill] sm:$0xff] }
 0x813   : > { %v21058_v45 = vpop.permute.xlu1 %13231  ;;  %v13494_v36 = vadd.f32 %v13422_v20, %v12304_v37  ;;  %v21064_v51 = vpop.permute.xlu0 %12428  ;;  %v11997_v20 = vrot.slane %v21062_v40, 7  ;;  %v13351_v37 = vsel %vm561_vm2, 0.0, %v13190_v3 }
 0x814   : > { %23335 = vst [vmem:[#allocation67_spill] sm:$0xff] %v21064_v51 }
 0x815   : > { %12406 = vrot.lane.b32.xlu1 %v11965_v59, %s14678_s17  ;;  %v13566_v11 = vadd.f32 %v20891_v32, %v13494_v36  ;;  %12133 = vrot.lane.b32.xlu0 %v11996_v8, %s14677_s15  ;;  %v11998_v36 = vsel %vm561_vm2, %v11996_v8, %v11997_v20 }
 0x817   : > { %v21071_v6 = vpop.permute.xlu1 %12115  ;;  %14051 = vst.msk [vmem:[%s18044_s13 + $0x360] sm:$0xff] %vm2906_vm3, %v13566_v11  ;;  %v13234_v16 = vpop.permute.xlu0 %13233  ;;  %v21086_v11 = vcombine.high %v21062_v40, %v21062_v40 }
 0x819   : > { %13211 = vrot.lane.b32.xlu1 %v13085_v13, %s14677_s15  ;;  %12448 = vrot.lane.b32.xlu0 %v11996_v8, %s14678_s17  ;;  %23339 = vst [vmem:[#allocation116_spill] sm:$0xff] %v21086_v11  ;;  %v13402_v13 = vadd.f32 %v13351_v37, %v23340_v29  ;;  %v13117_v40 = vrot.slane %v21086_v11, 7  ;;  %v23344_v37 = vld [vmem:[#allocation80_spill] sm:$0xff] }
 0x81a   : > { %v21104_v29 = vrot.slane %v23344_v37, %v22874_v26  ;;  %v23346_v11 = vld [vmem:[#allocation76_spill] sm:$0xff]  ;;  %v13362_v37 = vsel %vm561_vm2, 0.0, %v13234_v16 }
 0x81b   : > { %v21080_v59 = vpop.permute.xlu1 %12430  ;;  %v12074_v63 = vpop.permute.xlu0 %12073 }
 0x81c   : > { %23337 = vst [vmem:[#allocation39_spill] sm:$0xff] %v21080_v59  ;;  %v12232_v50 = vsel %vm561_vm2, 0.0, %v12074_v63  ;;  %v11966_v59 = vrot.slane %v23342_v28, 7  ;;  %v10702_v63 = vcombine.high %v23343_v61, %v23343_v61  ;;  %23345 = vst [vmem:[#allocation128_spill] sm:$0xff] %v21104_v29 }
 0x81d   : > { %12135 = vrot.lane.b32.xlu1 %v11998_v36, %s14677_s15  ;;  %v12284_v3 = vadd.f32 %v12232_v50, %v23283_v38  ;;  %13253 = vrot.lane.b32.xlu0 %v13116_v43, %s14677_s15 }
 0x81e   : > { %v21116_v61 = vrot.slane %v10702_v63, %v22874_v26 }
 0x81f   : > { %v21093_v17 = vpop.permute.xlu1 %13235  ;;  %v13474_v8 = vadd.f32 %v13402_v13, %v12284_v3  ;;  %v21095_v20 = vpop.permute.xlu0 %12388  ;;  %v13118_v3 = vsel %vm561_vm2, %v13116_v43, %v13117_v40 }
 0x820   : > { %23341 = vst [vmem:[#allocation33_spill] sm:$0xff] %v21095_v20  ;;  %23347 = vst [vmem:[#allocation92_spill] sm:$0xff] %v21116_v61 }
 0x821   : > { %12450 = vrot.lane.b32.xlu1 %v11998_v36, %s14678_s17  ;;  %v13546_v50 = vadd.f32 %v20891_v32, %v13474_v8  ;;  %12093 = vrot.lane.b32.xlu0 %v11966_v59, %s14677_s15  ;;  %v11969_v36 = vrot.slane %v23346_v11, 7  ;;  %v11967_v8 = vrot.slane %v21104_v29, 7  ;;  %v11970_v11 = vrot.slane %v21116_v61, 7 }
 0x823   : > { %v21108_v13 = vpop.permute.xlu1 %12075  ;;  %14011 = vst.msk [vmem:[%s18044_s13 + $0x220] sm:$0xff] %vm2906_vm3, %v13546_v50  ;;  %v13194_v38 = vpop.permute.xlu0 %13193  ;;  %v11968_v50 = vsel %vm561_vm2, %v11966_v59, %v11967_v8 }
 0x825   : > { %13255 = vrot.lane.b32.xlu1 %v13118_v3, %s14677_s15  ;;  %12097 = vrot.lane.b32.xlu0 %v11969_v36, %s14677_s15  ;;  %v13424_v3 = vadd.f32 %v13362_v37, %v20347_v41  ;;  %v23350_v37 = vld [vmem:[#allocation93_spill] sm:$0xff] }
 0x827   : > { %v21121_v20 = vpop.permute.xlu1 %12390  ;;  %v12118_v43 = vpop.permute.xlu0 %12117 }
 0x828   : > { %23348 = vst [vmem:[#allocation55_spill] sm:$0xff] %v21121_v20  ;;  %v12243_v40 = vsel %vm561_vm2, 0.0, %v12118_v43  ;;  %v11971_v20 = vsel %vm561_vm2, %v11969_v36, %v11970_v11  ;;  %v13086_v43 = vrot.slane %v23350_v37, 7  ;;  %v21146_v11 = vcombine.high %v21104_v29, %v21104_v29 }
 0x829   : > { %12095 = vrot.lane.b32.xlu1 %v11968_v50, %s14677_s15  ;;  %v12306_v63 = vadd.f32 %v12243_v40, %v23288_v5  ;;  %12408 = vrot.lane.b32.xlu0 %v11966_v59, %s14678_s17  ;;  %v13352_v40 = vsel %vm561_vm2, 0.0, %v13194_v38  ;;  %v23354_v5 = vld [vmem:[#allocation129_spill] sm:$0xff] }
 0x82a   : > { %23351 = vst [vmem:[#allocation41_spill] sm:$0xff] %v21146_v11  ;;  %v13404_v37 = vadd.f32 %v13352_v40, %v20359_v30  ;;  %v13087_v38 = vrot.slane %v21146_v11, 7  ;;  %v23359_v11 = vld [vmem:[#allocation158_spill] sm:$0xff] }
 0x82b   : > { %v21130_v48 = vpop.permute.xlu1 %13195  ;;  %v13496_v16 = vadd.f32 %v13424_v3, %v12306_v63  ;;  %v21133_v8 = vpop.permute.xlu0 %12432  ;;  %v23353_v63 = vld [vmem:[#allocation160_spill] sm:$0xff] }
 0x82c   : > { %23349 = vst [vmem:[#allocation54_spill] sm:$0xff] %v21133_v8 }
 0x82d   : > { %12099 = vrot.lane.b32.xlu1 %v11971_v20, %s14677_s15  ;;  %v13568_v51 = vadd.f32 %v20891_v32, %v13496_v16  ;;  %12412 = vrot.lane.b32.xlu0 %v11969_v36, %s14678_s17  ;;  %v13089_v16 = vrot.slane %v23353_v63, 7 }
 0x82f   : > { %v21138_v41 = vpop.permute.xlu1 %12119  ;;  %14055 = vst.msk [vmem:[%s18044_s13 + $0x380] sm:$0xff] %vm2906_vm3, %v13568_v51  ;;  %v13238_v59 = vpop.permute.xlu0 %13237  ;;  %v10935_v51 = vcombine.high %v23354_v5, %v23354_v5 }
 0x831   : > { %12410 = vrot.lane.b32.xlu1 %v11968_v50, %s14678_s17  ;;  %13213 = vrot.lane.b32.xlu0 %v13086_v43, %s14677_s15  ;;  %v21173_v40 = vrot.slane %v10935_v51, %v22874_v26  ;;  %v13363_v51 = vsel %vm561_vm2, 0.0, %v13238_v59 }
 0x833   : > { %v21150_v3 = vpop.permute.xlu1 %12434  ;;  %v12078_v36 = vpop.permute.xlu0 %12077  ;;  %23357 = vst [vmem:[#allocation150_spill] sm:$0xff] %v21173_v40 }
 0x834   : > { %23352 = vst [vmem:[#allocation31_spill] sm:$0xff] %v21150_v3  ;;  %v12233_v50 = vsel %vm561_vm2, 0.0, %v12078_v36  ;;  %v21163_v3 = vcombine.high %v21116_v61, %v21116_v61  ;;  %v23356_v36 = vld [vmem:[#allocation64_spill] sm:$0xff] }
 0x835   : > { %12414 = vrot.lane.b32.xlu1 %v11971_v20, %s14678_s17  ;;  %v12286_v29 = vadd.f32 %v12233_v50, %v23293_v53  ;;  %13217 = vrot.lane.b32.xlu0 %v13089_v16, %s14677_s15  ;;  %v13088_v20 = vsel %vm561_vm2, %v13086_v43, %v13087_v38  ;;  %v11999_v30 = vrot.slane %v23356_v36, 7  ;;  %v12000_v43 = vrot.slane %v21173_v40, 7  ;;  %v23363_v36 = vld [vmem:[#allocation69_spill] sm:$0xff] }
 0x836   : > { %23355 = vst [vmem:[#allocation72_spill] sm:$0xff] %v21163_v3  ;;  %v13090_v53 = vrot.slane %v21163_v3, 7  ;;  %v13119_v3 = vrot.slane %v23359_v11, 7 }
 0x837   : > { %v21165_v63 = vpop.permute.xlu1 %13239  ;;  %v13476_v5 = vadd.f32 %v13404_v37, %v12286_v29  ;;  %v21168_v8 = vpop.permute.xlu0 %12392 }
 0x838   : > { %v13091_v29 = vsel %vm561_vm2, %v13089_v16, %v13090_v53  ;;  %v13426_v16 = vadd.f32 %v13363_v51, %v20371_v55 }
 0x839   : > { %13215 = vrot.lane.b32.xlu1 %v13088_v20, %s14677_s15  ;;  %v13548_v50 = vadd.f32 %v20891_v32, %v13476_v5  ;;  %12137 = vrot.lane.b32.xlu0 %v11999_v30, %s14677_s15  ;;  %v12001_v5 = vsel %vm561_vm2, %v11999_v30, %v12000_v43 }
 0x83b   : > { %v21178_v61 = vpop.permute.xlu1 %12079  ;;  %14015 = vst.msk [vmem:[%s18044_s13 + $0x240] sm:$0xff] %vm2906_vm3, %v13548_v50  ;;  %v13198_v37 = vpop.permute.xlu0 %13197  ;;  %v21193_v50 = vcombine.high %v21173_v40, %v21173_v40  ;;  %v23361_v40 = vld [vmem:[#allocation135_spill] sm:$0xff] }
 0x83d   : > { %13219 = vrot.lane.b32.xlu1 %v13091_v29, %s14677_s15  ;;  %12452 = vrot.lane.b32.xlu0 %v11999_v30, %s14678_s17  ;;  %23360 = vst [vmem:[#allocation57_spill] sm:$0xff] %v21193_v50  ;;  %v13120_v11 = vrot.slane %v21193_v50, 7  ;;  %v23365_v50 = vld [vmem:[#allocation91_spill] sm:$0xff] }
 0x83f   : > { %v21187_v38 = vpop.permute.xlu1 %12394  ;;  %v12122_v20 = vpop.permute.xlu0 %12121 }
 0x840   : > { %23358 = vst [vmem:[#allocation75_spill] sm:$0xff] %v21187_v38  ;;  %v12244_v53 = vsel %vm561_vm2, 0.0, %v12122_v20  ;;  %v12496_v38 = vsel %vm561_vm2, 0.0, %v23361_v40  ;;  %v23362_v20 = vld [vmem:[#allocation130_spill] sm:$0xff]  ;;  %v12002_v40 = vrot.slane %v23365_v50, 7 }
 0x841   : > { %12139 = vrot.lane.b32.xlu1 %v12001_v5, %s14677_s15  ;;  %v12308_v59 = vadd.f32 %v12244_v53, %v23301_v4  ;;  %13257 = vrot.lane.b32.xlu0 %v13119_v3, %s14677_s15  ;;  %v23364_v55 = vcombine.high %v23362_v20, %v23363_v36  ;;  %v13353_v36 = vsel %vm561_vm2, 0.0, %v13198_v37 }
 0x843   : > { %v21200_v29 = vpop.permute.xlu1 %13199  ;;  %v13498_v30 = vadd.f32 %v13426_v16, %v12308_v59  ;;  %v21202_v43 = vpop.permute.xlu0 %12436  ;;  %v10952_v51 = vrot.slane %v23364_v55, %v22874_v26  ;;  %v13121_v16 = vsel %vm561_vm2, %v13119_v3, %v13120_v11  ;;  %v21232_v11 = vsel %vm11864_vm4, %v20653_v52, 0.0  ;;  %v23368_v55 = vld [vmem:[#allocation83_spill] sm:$0xff] }
 0x844   : > { %23367 = vst [vmem:[#allocation50_spill] sm:$0xff] %v21232_v11  ;;  %v12305_v37 = vadd.f32 %v21071_v6, %v21232_v11  ;;  %v21277_v11 = vsel %vm11864_vm4, %v20695_v44, 0.0 }
 0x845   : > { %12454 = vrot.lane.b32.xlu1 %v12001_v5, %s14678_s17  ;;  %v13570_v53 = vadd.f32 %v20891_v32, %v13498_v30  ;;  %12569 = vrot.lane.b32.xlu0 %v12496_v38, %s14676_s23  ;;  %v21222_v5 = vrot.slane %v10952_v51, %v22874_v26  ;;  %v13011_v38 = vsel %vm11864_vm4, %v20645_v49, 0.0  ;;  %v13406_v51 = vadd.f32 %v13353_v36, %v20392_v46 }
 0x846   : > { %v13423_v3 = vadd.f32 %v21058_v45, %v13011_v38 }
 0x847   : > { %v21214_v4 = vpop.permute.xlu1 %12123  ;;  %14059 = vst.msk [vmem:[%s18044_s13 + $0x3a0] sm:$0xff] %vm2906_vm3, %v13570_v53  ;;  %v13242_v59 = vpop.permute.xlu0 %13241  ;;  %23366 = vst [vmem:[#allocation46_spill] sm:$0xff] %v21222_v5  ;;  %v12003_v52 = vrot.slane %v21222_v5, 7  ;;  %v21254_v36 = vcombine.high %v21222_v5, %v21222_v5  ;;  %v12285_v5 = vadd.f32 %v21108_v13, %v21277_v11  ;;  %v23374_v13 = vld [vmem:[#allocation17_spill] sm:$0xff] }
 0x848   : > { %v13495_v45 = vadd.f32 %v13423_v3, %v12305_v37  ;;  %v23370_v37 = vld [vmem:[#allocation97_spill] sm:$0xff]  ;;  %v13364_v44 = vsel %vm561_vm2, 0.0, %v13242_v59 }
 0x849   : > { %13259 = vrot.lane.b32.xlu1 %v13121_v16, %s14677_s15  ;;  %12141 = vrot.lane.b32.xlu0 %v12002_v40, %s14677_s15  ;;  %v12004_v38 = vsel %vm561_vm2, %v12002_v40, %v12003_v52 }
 0x84a   : > { %v13567_v46 = vadd.f32 %v20917_v34, %v13495_v45 }
 0x84b   : > { %v21226_v30 = vpop.permute.xlu1 %12438  ;;  %v12082_v20 = vpop.permute.xlu0 %12081 }
 0x84c   : > { %v12234_v26 = vsel %vm561_vm2, 0.0, %v12082_v20  ;;  %14052 = vst.msk [vmem:[%s18044_s13 + $0x368] sm:$0x7] %vm13943_vm5, %v13567_v46 }
 0x84d   : > { %12571 = vrot.lane.b32.xlu1 %v23368_v55, %s14676_s23  ;;  %v12288_v49 = vadd.f32 %v12234_v26, %v23307_v33  ;;  %12456 = vrot.lane.b32.xlu0 %v12002_v40, %s14678_s17  ;;  %v23369_v55 = vld [vmem:[#allocation81_spill] sm:$0xff] }
 0x84e   : > { %v13122_v6 = vrot.slane %v23369_v55, 7 }
 0x84f   : > { %v21244_v53 = vpop.permute.xlu1 %13243  ;;  %v13478_v16 = vadd.f32 %v13406_v51, %v12288_v49  ;;  %v21247_v20 = vpop.permute.xlu0 %12396  ;;  %v12497_v51 = vsel %vm561_vm2, 0.0, %v23370_v37  ;;  %v13123_v49 = vrot.slane %v21254_v36, 7  ;;  %v23372_v37 = vld [vmem:[#allocation137_spill] sm:$0xff] }
 0x851   : > { %12143 = vrot.lane.b32.xlu1 %v12004_v38, %s14677_s15  ;;  %v13550_v26 = vadd.f32 %v20891_v32, %v13478_v16  ;;  %13261 = vrot.lane.b32.xlu0 %v13122_v6, %s14677_s15  ;;  %v23371_v16 = vld [vmem:[#allocation35_spill] sm:$0xff]  ;;  %v13124_v46 = vsel %vm561_vm2, %v13122_v6, %v13123_v49 }
 0x852   : > { %v13001_v33 = vsel %vm11864_vm4, %v23371_v16, 0.0 }
 0x853   : > { %v21258_v3 = vpop.permute.xlu1 %12083  ;;  %14019 = vst.msk [vmem:[%s18044_s13 + $0x260] sm:$0xff] %vm2906_vm3, %v13550_v26  ;;  %v13202_v40 = vpop.permute.xlu0 %13201 }
 0x854   : > { %v13354_v52 = vsel %vm561_vm2, 0.0, %v13202_v40 }
 0x855   : > { %12458 = vrot.lane.b32.xlu1 %v12004_v38, %s14678_s17  ;;  %12573 = vrot.lane.b32.xlu0 %v12497_v51, %s14676_s23  ;;  %v12498_v38 = vsel %vm561_vm2, 0.0, %v23372_v37  ;;  %v13403_v51 = vadd.f32 %v21045_v10, %v13001_v33  ;;  %v13408_v16 = vadd.f32 %v13354_v52, %v20420_v9  ;;  %v23373_v37 = vld [vmem:[#allocation44_spill] sm:$0xff] }
 0x857   : > { %v21270_v45 = vpop.permute.xlu1 %12398  ;;  %v12086_v26 = vpop.permute.xlu0 %12085  ;;  %v13475_v33 = vadd.f32 %v13403_v51, %v12285_v5 }
 0x858   : > { %v12235_v40 = vsel %vm561_vm2, 0.0, %v12086_v26  ;;  %v12499_v26 = vsel %vm561_vm2, 0.0, %v23373_v37 }
 0x859   : > { %13263 = vrot.lane.b32.xlu1 %v13124_v46, %s14677_s15  ;;  %v12290_v6 = vadd.f32 %v12235_v40, %v23309_v12  ;;  %12577 = vrot.lane.b32.xlu0 %v12498_v38, %s14676_s23  ;;  %v13547_v52 = vadd.f32 %v20917_v34, %v13475_v33  ;;  %v13428_v38 = vadd.f32 %v13364_v44, %v20407_v18  ;;  %v23376_v18 = vld [vmem:[#allocation132_spill] sm:$0xff] }
 0x85b   : > { %v21290_v49 = vpop.permute.xlu1 %13203  ;;  %v13480_v10 = vadd.f32 %v13408_v16, %v12290_v6  ;;  %v12126_v46 = vpop.permute.xlu0 %12125  ;;  %14012 = vst.msk [vmem:[%s18044_s13 + $0x228] sm:$0x7] %vm13943_vm5, %v13547_v52  ;;  %v23375_v6 = vld [vmem:[#allocation156_spill] sm:$0xff] }
 0x85c   : > { %v12245_v9 = vsel %vm561_vm2, 0.0, %v12126_v46  ;;  %v12500_v33 = vsel %vm561_vm2, 0.0, %v23375_v6  ;;  %v13012_v46 = vsel %vm11864_vm4, %v20688_v56, 0.0  ;;  %v23379_v6 = vld [vmem:[#allocation152_spill] sm:$0xff] }
 0x85d   : > { %12575 = vrot.lane.b32.xlu1 %v23374_v13, %s14676_s23  ;;  %v13552_v59 = vadd.f32 %v20891_v32, %v13480_v10  ;;  %v12310_v40 = vadd.f32 %v12245_v9, %v23312_v35  ;;  %12581 = vrot.lane.b32.xlu0 %v12499_v26, %s14676_s23  ;;  %v21326_v26 = vsel %vm11864_vm4, %v20732_v19, 0.0  ;;  %v23377_v13 = vld [vmem:[#allocation134_spill] sm:$0xff]  ;;  %v13425_v52 = vadd.f32 %v21093_v17, %v13012_v46 }
 0x85e   : > { %v12501_v9 = vsel %vm561_vm2, 0.0, %v23377_v13  ;;  %v12307_v56 = vadd.f32 %v21138_v41, %v21326_v26  ;;  %v12502_v19 = vsel %vm561_vm2, 0.0, %v23379_v6  ;;  %v23382_v13 = vld [vmem:[#allocation157_spill] sm:$0xff]  ;;  %v23383_v6 = vld [vmem:[#allocation111_spill] sm:$0xff] }
 0x85f   : > { %v21302_v5 = vpop.permute.xlu1 %12087  ;;  %14023 = vst.msk [vmem:[%s18044_s13 + $0x280] sm:$0xff] %vm2906_vm3, %v13552_v59  ;;  %v13500_v51 = vadd.f32 %v13428_v38, %v12310_v40  ;;  %v21308_v16 = vpop.permute.xlu0 %12400  ;;  %v23378_v38 = vld [vmem:[#allocation108_spill] sm:$0xff] }
 0x860   : > { %v13497_v40 = vadd.f32 %v13425_v52, %v12307_v56 }
 0x861   : > { %12579 = vrot.lane.b32.xlu1 %v23376_v18, %s14676_s23  ;;  %v13572_v44 = vadd.f32 %v20891_v32, %v13500_v51  ;;  %12585 = vrot.lane.b32.xlu0 %v12500_v33, %s14676_s23  ;;  %v23380_v33 = vld [vmem:[#allocation133_spill] sm:$0xff] }
 0x862   : > { %v13569_v17 = vadd.f32 %v20917_v34, %v13497_v40  ;;  %v21360_v40 = vsel %vm11864_vm4, %v20778_v57, 0.0 }
 0x863   : > { %v21316_v10 = vpop.permute.xlu1 %12127  ;;  %14063 = vst.msk [vmem:[%s18044_s13 + $0x3c0] sm:$0xff] %vm2906_vm3, %v13572_v44  ;;  %v21322_v37 = vpop.permute.xlu0 %12440  ;;  %v23381_v44 = vld [vmem:[#allocation163_spill] sm:$0xff] }
 0x864   : > { %14056 = vst.msk [vmem:[%s18044_s13 + $0x388] sm:$0x7] %vm13943_vm5, %v13569_v17  ;;  %v12503_v46 = vsel %vm561_vm2, 0.0, %v23381_v44  ;;  %v23384_v17 = vld [vmem:[#allocation90_spill] sm:$0xff] }
 0x865   : > { %12583 = vrot.lane.b32.xlu1 %v23378_v38, %s14676_s23  ;;  %12589 = vrot.lane.b32.xlu0 %v12501_v9, %s14676_s23  ;;  %v13002_v38 = vsel %vm11864_vm4, %v20721_v0, 0.0  ;;  %v12287_v0 = vadd.f32 %v21178_v61, %v21360_v40 }
 0x867   : > { %v21336_v59 = vpop.permute.xlu1 %12402  ;;  %v13206_v51 = vpop.permute.xlu0 %13205 }
 0x869   : > { %12587 = vrot.lane.b32.xlu1 %v23380_v33, %s14676_s23  ;;  %12593 = vrot.lane.b32.xlu0 %v12502_v19, %s14676_s23  ;;  %v12504_v19 = vsel %vm561_vm2, 0.0, %v23383_v6  ;;  %v13405_v33 = vadd.f32 %v21130_v48, %v13002_v38  ;;  %v12505_v6 = vsel %vm561_vm2, 0.0, %v20648_v60  ;;  %v23386_v60 = vld [vmem:[#allocation167_spill] sm:$0xff] }
 0x86b   : > { %v21344_v18 = vpop.permute.xlu1 %12442  ;;  %v13246_v41 = vpop.permute.xlu0 %13245 }
 0x86c   : > { %v13365_v9 = vsel %vm561_vm2, 0.0, %v13246_v41 }
 0x86d   : > { %12591 = vrot.lane.b32.xlu1 %v23382_v13, %s14676_s23  ;;  %12597 = vrot.lane.b32.xlu0 %v12503_v46, %s14676_s23  ;;  %v13430_v44 = vadd.f32 %v13365_v9, %v23318_v25  ;;  %v13477_v13 = vadd.f32 %v13405_v33, %v12287_v0  ;;  %v12506_v33 = vsel %vm561_vm2, 0.0, %v20690_v42  ;;  %v23387_v0 = vld [vmem:[#allocation168_spill] sm:$0xff] }
 0x86f   : > { %v21354_v52 = vpop.permute.xlu1 %13207  ;;  %v12130_v56 = vpop.permute.xlu0 %12129  ;;  %v13549_v61 = vadd.f32 %v20917_v34, %v13477_v13  ;;  %v23388_v13 = vld [vmem:[#allocation25_spill] sm:$0xff] }
 0x870   : > { %v12246_v41 = vsel %vm561_vm2, 0.0, %v12130_v56  ;;  %v23385_v56 = vld [vmem:[#allocation142_spill] sm:$0xff] }
 0x871   : > { %12595 = vrot.lane.b32.xlu1 %v23384_v17, %s14676_s23  ;;  %v12312_v57 = vadd.f32 %v12246_v41, %v23321_v23  ;;  %12601 = vrot.lane.b32.xlu0 %v12504_v19, %s14676_s23  ;;  %14016 = vst.msk [vmem:[%s18044_s13 + $0x248] sm:$0x7] %vm13943_vm5, %v13549_v61  ;;  %v13355_v17 = vsel %vm561_vm2, 0.0, %v13206_v51  ;;  %v23390_v61 = vld [vmem:[#allocation149_spill] sm:$0xff] }
 0x873   : > { %v21373_v46 = vpop.permute.xlu1 %13247  ;;  %v13502_v48 = vadd.f32 %v13430_v44, %v12312_v57  ;;  %v21375_v38 = vpop.permute.xlu0 %12444  ;;  %v13013_v44 = vsel %vm11864_vm4, %v23387_v0, 0.0 }
 0x875   : > { %12599 = vrot.lane.b32.xlu1 %v23385_v56, %s14676_s23  ;;  %v13574_v25 = vadd.f32 %v20891_v32, %v13502_v48  ;;  %12605 = vrot.lane.b32.xlu0 %v12505_v6, %s14676_s23  ;;  %v21402_v48 = vsel %vm11864_vm4, %v23388_v13, 0.0  ;;  %v23389_v6 = vld [vmem:[#allocation164_spill] sm:$0xff]  ;;  %v13427_v56 = vadd.f32 %v21165_v63, %v13013_v44 }
 0x876   : > { %v12507_v42 = vsel %vm561_vm2, 0.0, %v23389_v6  ;;  %v23391_v6 = vld [vmem:[#allocation113_spill] sm:$0xff] }
 0x877   : > { %v21384_v9 = vpop.permute.xlu1 %12131  ;;  %14067 = vst.msk [vmem:[%s18044_s13 + $0x3e0] sm:$0xff] %vm2906_vm3, %v13574_v25  ;;  %v13250_v19 = vpop.permute.xlu0 %13249  ;;  %v12309_v25 = vadd.f32 %v21214_v4, %v21402_v48 }
 0x879   : > { %12603 = vrot.lane.b32.xlu1 %v23386_v60, %s14676_s23  ;;  %12609 = vrot.lane.b32.xlu0 %v12506_v33, %s14676_s23  ;;  %v13410_v33 = vadd.f32 %v13355_v17, %v20442_v15  ;;  %v13499_v13 = vadd.f32 %v13427_v56, %v12309_v25  ;;  %v23393_v56 = vld [vmem:[#allocation88_spill] sm:$0xff]  ;;  %v23394_v25 = vld [vmem:[#allocation101_spill] sm:$0xff] }
 0x87b   : > { %v21396_v41 = vpop.permute.xlu1 %12446  ;;  %v12090_v57 = vpop.permute.xlu0 %12089  ;;  %v13571_v4 = vadd.f32 %v20917_v34, %v13499_v13  ;;  %v23395_v13 = vld [vmem:[#allocation86_spill] sm:$0xff] }
 0x87c   : > { %v12236_v51 = vsel %vm561_vm2, 0.0, %v12090_v57  ;;  %v23392_v57 = vld [vmem:[#allocation22_spill] sm:$0xff] }
 0x87d   : > { %12607 = vrot.lane.b32.xlu1 %v23390_v61, %s14676_s23  ;;  %v12292_v60 = vadd.f32 %v12236_v51, %v23329_v39  ;;  %12613 = vrot.lane.b32.xlu0 %v12507_v42, %s14676_s23  ;;  %v12508_v61 = vsel %vm561_vm2, 0.0, %v23391_v6  ;;  %14060 = vst.msk [vmem:[%s18044_s13 + $0x3a8] sm:$0x7] %vm13943_vm5, %v13571_v4  ;;  %v12519_v51 = vsel %vm561_vm2, 0.0, %v23393_v56 }
 0x87f   : > { %v21415_v0 = vpop.permute.xlu1 %13251  ;;  %v13482_v63 = vadd.f32 %v13410_v33, %v12292_v60  ;;  %v21417_v44 = vpop.permute.xlu0 %12404  ;;  %v13366_v33 = vsel %vm561_vm2, 0.0, %v13250_v19 }
 0x881   : > { %12611 = vrot.lane.b32.xlu1 %v23392_v57, %s14676_s23  ;;  %v13554_v15 = vadd.f32 %v20891_v32, %v13482_v63  ;;  %12617 = vrot.lane.b32.xlu0 %v12508_v61, %s14676_s23  ;;  %v13003_v63 = vsel %vm11864_vm4, %v23395_v13, 0.0  ;;  %v21444_v61 = vsel %vm11864_vm4, %v20849_v2, 0.0  ;;  %v12509_v57 = vsel %vm561_vm2, 0.0, %v20843_v22 }
 0x882   : > { %v13407_v4 = vadd.f32 %v21200_v29, %v13003_v63  ;;  %v12289_v56 = vadd.f32 %v21258_v3, %v21444_v61  ;;  %v12520_v63 = vsel %vm561_vm2, 0.0, %v20883_v14  ;;  %v12510_v14 = vsel %vm561_vm2, 0.0, %v20932_v47 }
 0x883   : > { %v21426_v17 = vpop.permute.xlu1 %12091  ;;  %14027 = vst.msk [vmem:[%s18044_s13 + $0x2a0] sm:$0xff] %vm2906_vm3, %v13554_v15  ;;  %v13210_v42 = vpop.permute.xlu0 %13209  ;;  %v23396_v15 = vld [vmem:[#allocation106_spill] sm:$0xff]  ;;  %v12511_v47 = vsel %vm561_vm2, 0.0, %v20995_v21 }
 0x884   : > { %v13479_v22 = vadd.f32 %v13407_v4, %v12289_v56  ;;  %v13356_v4 = vsel %vm561_vm2, 0.0, %v13210_v42 }
 0x885   : > { %12615 = vrot.lane.b32.xlu1 %v23394_v25, %s14676_s23  ;;  %12661 = vrot.lane.b32.xlu0 %v12519_v51, %s14676_s23  ;;  %v13432_v51 = vadd.f32 %v13366_v33, %v23325_v54 }
 0x886   : > { %v13551_v3 = vadd.f32 %v20917_v34, %v13479_v22 }
 0x887   : > { %v21438_v60 = vpop.permute.xlu1 %12406  ;;  %v12134_v6 = vpop.permute.xlu0 %12133 }
 0x888   : > { %v12247_v19 = vsel %vm561_vm2, 0.0, %v12134_v6  ;;  %v23397_v6 = vld [vmem:[#allocation123_spill] sm:$0xff]  ;;  %14020 = vst.msk [vmem:[%s18044_s13 + $0x268] sm:$0x7] %vm13943_vm5, %v13551_v3 }
 0x889   : > { %12619 = vrot.lane.b32.xlu1 %v23396_v15, %s14676_s23  ;;  %v12314_v2 = vadd.f32 %v12247_v19, %v23336_v24  ;;  %12621 = vrot.lane.b32.xlu0 %v12509_v57, %s14676_s23  ;;  %v13004_v19 = vsel %vm11864_vm4, %v20881_v1, 0.0  ;;  %v13412_v1 = vadd.f32 %v13356_v4, %v20479_v58  ;;  %v12521_v58 = vsel %vm561_vm2, 0.0, %v21013_v7 }
 0x88b   : > { %v21457_v25 = vpop.permute.xlu1 %13211  ;;  %v13504_v29 = vadd.f32 %v13432_v51, %v12314_v2  ;;  %v21459_v13 = vpop.permute.xlu0 %12448  ;;  %v21488_v51 = vsel %vm11864_vm4, %v20889_v31, 0.0  ;;  %v13409_v2 = vadd.f32 %v21290_v49, %v13004_v19  ;;  %v23399_v49 = vld [vmem:[#allocation114_spill] sm:$0xff] }
 0x88c   : > { %v12291_v22 = vadd.f32 %v21302_v5, %v21488_v51 }
 0x88d   : > { %12663 = vrot.lane.b32.xlu1 %v23397_v6, %s14676_s23  ;;  %v13576_v54 = vadd.f32 %v20891_v32, %v13504_v29  ;;  %12665 = vrot.lane.b32.xlu0 %v12520_v63, %s14676_s23  ;;  %v13014_v63 = vsel %vm11864_vm4, %v23399_v49, 0.0 }
 0x88e   : > { %v13481_v21 = vadd.f32 %v13409_v2, %v12291_v22  ;;  %v13429_v5 = vadd.f32 %v21244_v53, %v13014_v63 }
 0x88f   : > { %v21468_v33 = vpop.permute.xlu1 %12135  ;;  %14071 = vst.msk [vmem:[%s18044_s13 + $0x400] sm:$0xff] %vm2906_vm3, %v13576_v54  ;;  %v21474_v57 = vpop.permute.xlu0 %13253  ;;  %v21507_v54 = vsel %vm11864_vm4, %v20910_v62, 0.0 }
 0x890   : > { %v13553_v4 = vadd.f32 %v20917_v34, %v13481_v21  ;;  %v12311_v19 = vadd.f32 %v21316_v10, %v21507_v54  ;;  %v23404_v21 = vld [vmem:[#allocation59_spill] sm:$0xff] }
 0x891   : > { %12623 = vrot.lane.b32.xlu1 %v20867_v27, %s14676_s23  ;;  %12625 = vrot.lane.b32.xlu0 %v12510_v14, %s14676_s23  ;;  %v23398_v27 = vld [vmem:[#allocation23_spill] sm:$0xff]  ;;  %v23400_v14 = vld [vmem:[#allocation66_spill] sm:$0xff] }
 0x892   : > { %14024 = vst.msk [vmem:[%s18044_s13 + $0x288] sm:$0x7] %vm13943_vm5, %v13553_v4  ;;  %v13501_v7 = vadd.f32 %v13429_v5, %v12311_v19  ;;  %v23407_v19 = vld [vmem:[#allocation76_spill] sm:$0xff] }
 0x893   : > { %v21482_v15 = vpop.permute.xlu1 %12450  ;;  %v12094_v56 = vpop.permute.xlu0 %12093 }
 0x894   : > { %v12237_v42 = vsel %vm561_vm2, 0.0, %v12094_v56  ;;  %v13573_v10 = vadd.f32 %v20917_v34, %v13501_v7  ;;  %v23408_v7 = vld [vmem:[#allocation93_spill] sm:$0xff] }
 0x895   : > { %12667 = vrot.lane.b32.xlu1 %v23398_v27, %s14676_s23  ;;  %v12294_v29 = vadd.f32 %v12237_v42, %v23342_v28  ;;  %12629 = vrot.lane.b32.xlu0 %v12511_v47, %s14676_s23  ;;  %v23401_v47 = vld [vmem:[#allocation67_spill] sm:$0xff]  ;;  %v23402_v27 = vld [vmem:[#allocation145_spill] sm:$0xff] }
 0x896   : > { %v12522_v2 = vsel %vm561_vm2, 0.0, %v23401_v47  ;;  %14064 = vst.msk [vmem:[%s18044_s13 + $0x3c8] sm:$0x7] %vm13943_vm5, %v13573_v10 }
 0x897   : > { %v21501_v31 = vpop.permute.xlu1 %13255  ;;  %v13484_v6 = vadd.f32 %v13412_v1, %v12294_v29  ;;  %v12098_v3 = vpop.permute.xlu0 %12097  ;;  %v23403_v1 = vld [vmem:[#allocation33_spill] sm:$0xff] }
 0x898   : > { %v12512_v29 = vsel %vm561_vm2, 0.0, %v23403_v1  ;;  %v12238_v49 = vsel %vm561_vm2, 0.0, %v12098_v3 }
 0x899   : > { %12627 = vrot.lane.b32.xlu1 %v23400_v14, %s14676_s23  ;;  %v13556_v56 = vadd.f32 %v20891_v32, %v13484_v6  ;;  %12669 = vrot.lane.b32.xlu0 %v12521_v58, %s14676_s23  ;;  %v23405_v58 = vld [vmem:[#allocation54_spill] sm:$0xff]  ;;  %v23406_v14 = vld [vmem:[#allocation39_spill] sm:$0xff] }
 0x89a   : > { %v12523_v5 = vsel %vm561_vm2, 0.0, %v23405_v58 }
 0x89b   : > { %v21519_v62 = vpop.permute.xlu1 %12095  ;;  %14031 = vst.msk [vmem:[%s18044_s13 + $0x2c0] sm:$0xff] %vm2906_vm3, %v13556_v56  ;;  %v21525_v53 = vpop.permute.xlu0 %12408  ;;  %v12296_v56 = vadd.f32 %v12238_v49, %v23407_v19  ;;  %v23418_v19 = vld [vmem:[#allocation43_spill] sm:$0xff] }
 0x89d   : > { %12631 = vrot.lane.b32.xlu1 %v23402_v27, %s14676_s23  ;;  %12673 = vrot.lane.b32.xlu0 %v12522_v2, %s14676_s23  ;;  %v23409_v2 = vld [vmem:[#allocation37_spill] sm:$0xff] }
 0x89e   : > { %v12239_v3 = vsel %vm561_vm2, 0.0, %v23409_v2 }
 0x89f   : > { %v21533_v42 = vpop.permute.xlu1 %12099  ;;  %v21537_v22 = vpop.permute.xlu0 %12412 }
 0x8a1   : > { %12671 = vrot.lane.b32.xlu1 %v23404_v21, %s14676_s23  ;;  %12633 = vrot.lane.b32.xlu0 %v12512_v29, %s14676_s23  ;;  %v12513_v29 = vsel %vm561_vm2, 0.0, %v21168_v8  ;;  %v23410_v21 = vld [vmem:[#allocation55_spill] sm:$0xff] }
 0x8a3   : > { %v21545_v63 = vpop.permute.xlu1 %12410  ;;  %v13214_v6 = vpop.permute.xlu0 %13213 }
 0x8a4   : > { %v13357_v4 = vsel %vm561_vm2, 0.0, %v13214_v6  ;;  %v23411_v6 = vld [vmem:[#allocation141_spill] sm:$0xff] }
 0x8a5   : > { %12675 = vrot.lane.b32.xlu1 %v23406_v14, %s14676_s23  ;;  %v13414_v47 = vadd.f32 %v13357_v4, %v23408_v7  ;;  %12677 = vrot.lane.b32.xlu0 %v12523_v5, %s14676_s23  ;;  %v12298_v58 = vadd.f32 %v12239_v3, %v23411_v6  ;;  %v23412_v5 = vld [vmem:[#allocation160_spill] sm:$0xff] }
 0x8a7   : > { %v21557_v27 = vpop.permute.xlu1 %12414  ;;  %v13486_v10 = vadd.f32 %v13414_v47, %v12296_v56  ;;  %v13218_v1 = vpop.permute.xlu0 %13217  ;;  %v13367_v56 = vsel %vm561_vm2, 0.0, %v21474_v57  ;;  %v23413_v47 = vld [vmem:[#allocation74_spill] sm:$0xff]  ;;  %v23415_v57 = vld [vmem:[#allocation31_spill] sm:$0xff] }
 0x8a8   : > { %v13358_v49 = vsel %vm561_vm2, 0.0, %v13218_v1  ;;  %v13015_v8 = vsel %vm11864_vm4, %v23413_v47, 0.0  ;;  %v23417_v47 = vld [vmem:[#allocation64_spill] sm:$0xff] }
 0x8a9   : > { %12635 = vrot.lane.b32.xlu1 %v23410_v21, %s14676_s23  ;;  %v13558_v14 = vadd.f32 %v20891_v32, %v13486_v10  ;;  %v13416_v4 = vadd.f32 %v13358_v49, %v23412_v5  ;;  %12637 = vrot.lane.b32.xlu0 %v12513_v29, %s14676_s23  ;;  %v23414_v21 = vld [vmem:[#allocation32_spill] sm:$0xff]  ;;  %v12524_v10 = vsel %vm561_vm2, 0.0, %v21202_v43  ;;  %v13431_v29 = vadd.f32 %v21373_v46, %v13015_v8 }
 0x8aa   : > { %v21578_v3 = vsel %vm11864_vm4, %v23414_v21, 0.0  ;;  %v21594_v43 = vsel %vm11864_vm4, %v23418_v19, 0.0  ;;  %v23419_v46 = vld [vmem:[#allocation72_spill] sm:$0xff]  ;;  %v12514_v19 = vsel %vm561_vm2, 0.0, %v21247_v20 }
 0x8ab   : > { %v21570_v7 = vpop.permute.xlu1 %13215  ;;  %14035 = vst.msk [vmem:[%s18044_s13 + $0x2e0] sm:$0xff] %vm2906_vm3, %v13558_v14  ;;  %v13488_v2 = vadd.f32 %v13416_v4, %v12298_v58  ;;  %v12138_v1 = vpop.permute.xlu0 %12137  ;;  %v12313_v14 = vadd.f32 %v21384_v9, %v21578_v3  ;;  %v23416_v58 = vld [vmem:[#allocation102_spill] sm:$0xff]  ;;  %v13008_v8 = vsel %vm11864_vm4, %v23419_v46, 0.0  ;;  %v23420_v9 = vld [vmem:[#allocation103_spill] sm:$0xff] }
 0x8ac   : > { %v12248_v49 = vsel %vm561_vm2, 0.0, %v12138_v1  ;;  %v13434_v5 = vadd.f32 %v13367_v56, %v23416_v58  ;;  %v12299_v56 = vadd.f32 %v23420_v9, %v21594_v43  ;;  %v21609_v46 = vld [vmem:[#allocation10] sm:$0xff] }
 0x8ad   : > { %12679 = vrot.lane.b32.xlu1 %v23415_v57, %s14676_s23  ;;  %v13560_v4 = vadd.f32 %v20891_v32, %v13488_v2  ;;  %v12316_v21 = vadd.f32 %v12248_v49, %v23417_v47  ;;  %12681 = vrot.lane.b32.xlu0 %v12524_v10, %s14676_s23  ;;  %v13503_v57 = vadd.f32 %v13431_v29, %v12313_v14  ;;  %v23421_v10 = vld [vmem:[#allocation75_spill] sm:$0xff] }
 0x8af   : > { %v13220_v1 = vpop.permute.xlu1 %13219  ;;  %14039 = vst.msk [vmem:[%s18044_s13 + $0x300] sm:$0xff] %vm2906_vm3, %v13560_v4  ;;  %v13506_v32 = vadd.f32 %v13434_v5, %v12316_v21  ;;  %v21602_v49 = vpop.permute.xlu0 %12452  ;;  %v13575_v58 = vadd.f32 %v20917_v34, %v13503_v57  ;;  %v21619_v4 = vld [vmem:[#allocation10 + $0x8] sm:$0x7]  ;;  %v12515_v34 = vsel %vm561_vm2, 0.0, %v21308_v16  ;;  %v12525_v16 = vsel %vm561_vm2, 0.0, %v21322_v37 }
 0x8b0   : > { %v13417_v2 = vadd.f32 %v13220_v1, %v13008_v8  ;;  %v23422_v1 = vld [vmem:[#allocation94_spill] sm:$0xff]  ;;  %v12526_v37 = vsel %vm561_vm2, 0.0, %v21375_v38 }
 0x8b1   : > { %12639 = vrot.lane.b32.xlu1 %v23421_v10, %s14676_s23  ;;  %v13578_v29 = vadd.f32 %v21609_v46, %v13506_v32  ;;  %12641 = vrot.lane.b32.xlu0 %v12514_v19, %s14676_s23  ;;  %14068 = vst.msk [vmem:[%s18044_s13 + $0x3e8] sm:$0x7] %vm13943_vm5, %v13575_v58  ;;  %v13005_v57 = vsel %vm11864_vm4, %v23422_v1, 0.0  ;;  %v23426_v1 = vld [vmem:[#allocation105_spill] sm:$0xff] }
 0x8b2   : > { %v13489_v14 = vadd.f32 %v13417_v2, %v12299_v56  ;;  %v23423_v56 = vld [vmem:[#allocation61_spill] sm:$0xff] }
 0x8b3   : > { %v21613_v5 = vpop.permute.xlu1 %12139  ;;  %14075 = vst.msk [vmem:[%s18044_s13 + $0x420] sm:$0xff] %vm2906_vm3, %v13578_v29  ;;  %v13258_v21 = vpop.permute.xlu0 %13257  ;;  %v21637_v32 = vsel %vm11864_vm4, %v23423_v56, 0.0 }
 0x8b4   : > { %v13561_v20 = vadd.f32 %v21619_v4, %v13489_v14  ;;  %v12293_v2 = vadd.f32 %v21426_v17, %v21637_v32  ;;  %v13368_v19 = vsel %vm561_vm2, 0.0, %v13258_v21  ;;  %v23424_v17 = vld [vmem:[#allocation143_spill] sm:$0xff] }
 0x8b5   : > { %12683 = vrot.lane.b32.xlu1 %v21226_v30, %s14676_s23  ;;  %12645 = vrot.lane.b32.xlu0 %v12515_v34, %s14676_s23  ;;  %v13411_v30 = vadd.f32 %v21354_v52, %v13005_v57  ;;  %v13016_v14 = vsel %vm11864_vm4, %v23424_v17, 0.0  ;;  %v21663_v57 = vsel %vm11864_vm4, %v23426_v1, 0.0  ;;  %v23429_v17 = vld [vmem:[#allocation41_spill] sm:$0xff] }
 0x8b6   : > { %14040 = vst.msk [vmem:[%s18044_s13 + $0x308] sm:$0x7] %vm13943_vm5, %v13561_v20  ;;  %v23425_v20 = vld [vmem:[#allocation158_spill] sm:$0xff]  ;;  %v13433_v38 = vadd.f32 %v21415_v0, %v13016_v14  ;;  %v12315_v56 = vadd.f32 %v21468_v33, %v21663_v57  ;;  %v13007_v14 = vsel %vm11864_vm4, %v23429_v17, 0.0  ;;  %v12518_v17 = vsel %vm561_vm2, 0.0, %v21537_v22 }
 0x8b7   : > { %v21629_v8 = vpop.permute.xlu1 %12454  ;;  %v21633_v9 = vpop.permute.xlu0 %12569  ;;  %v13483_v58 = vadd.f32 %v13411_v30, %v12293_v2  ;;  %v13436_v34 = vadd.f32 %v13368_v19, %v23425_v20  ;;  %v12516_v2 = vsel %vm561_vm2, 0.0, %v21417_v44 }
 0x8b8   : > { %v13505_v19 = vadd.f32 %v13433_v38, %v12315_v56  ;;  %v23430_v38 = vld [vmem:[#allocation92_spill] sm:$0xff] }
 0x8b9   : > { %12643 = vrot.lane.b32.xlu1 %v21270_v45, %s14676_s23  ;;  %12685 = vrot.lane.b32.xlu0 %v12525_v16, %s14676_s23  ;;  %v13555_v52 = vadd.f32 %v21619_v4, %v13483_v58  ;;  %v23427_v58 = vld [vmem:[#allocation96_spill] sm:$0xff]  ;;  %v21706_v56 = vsel %vm11864_vm4, %v23430_v38, 0.0  ;;  %v12528_v38 = vsel %vm561_vm2, 0.0, %v21602_v49  ;;  %v23436_v49 = vld [vmem:[#allocation18_spill] sm:$0xff] }
 0x8ba   : > { %v13006_v0 = vsel %vm11864_vm4, %v23427_v58, 0.0  ;;  %v13577_v44 = vadd.f32 %v21619_v4, %v13505_v19  ;;  %v12517_v19 = vsel %vm561_vm2, 0.0, %v21525_v53  ;;  %v23431_v58 = vld [vmem:[#allocation116_spill] sm:$0xff] }
 0x8bb   : > { %v21648_v10 = vpop.permute.xlu1 %13259  ;;  %v12142_v29 = vpop.permute.xlu0 %12141  ;;  %14028 = vst.msk [vmem:[%s18044_s13 + $0x2a8] sm:$0x7] %vm13943_vm5, %v13555_v52 }
 0x8bc   : > { %v12249_v45 = vsel %vm561_vm2, 0.0, %v12142_v29  ;;  %14072 = vst.msk [vmem:[%s18044_s13 + $0x408] sm:$0x7] %vm13943_vm5, %v13577_v44 }
 0x8bd   : > { %12647 = vrot.lane.b32.xlu1 %v21336_v59, %s14676_s23  ;;  %v12318_v21 = vadd.f32 %v12249_v45, %v23365_v50  ;;  %12689 = vrot.lane.b32.xlu0 %v12526_v37, %s14676_s23  ;;  %v23428_v37 = vld [vmem:[#allocation128_spill] sm:$0xff]  ;;  %v13413_v45 = vadd.f32 %v21457_v25, %v13006_v0  ;;  %v13017_v0 = vsel %vm11864_vm4, %v23431_v58, 0.0 }
 0x8be   : > { %v21684_v33 = vsel %vm11864_vm4, %v23428_v37, 0.0  ;;  %v13435_v53 = vadd.f32 %v21501_v31, %v13017_v0  ;;  %v23434_v31 = vld [vmem:[#allocation46_spill] sm:$0xff]  ;;  %v23437_v58 = vld [vmem:[#allocation28_spill] sm:$0xff] }
 0x8bf   : > { %v21666_v59 = vpop.permute.xlu1 %12571  ;;  %v13508_v16 = vadd.f32 %v13436_v34, %v12318_v21  ;;  %v21672_v30 = vpop.permute.xlu0 %12456  ;;  %v12527_v34 = vsel %vm561_vm2, 0.0, %v21459_v13  ;;  %v13415_v21 = vadd.f32 %v21570_v7, %v13007_v14  ;;  %v23433_v14 = vld [vmem:[#allocation57_spill] sm:$0xff] }
 0x8c1   : > { %12687 = vrot.lane.b32.xlu1 %v21344_v18, %s14676_s23  ;;  %v13580_v29 = vadd.f32 %v21609_v46, %v13508_v16  ;;  %12649 = vrot.lane.b32.xlu0 %v12516_v2, %s14676_s23  ;;  %v12295_v18 = vadd.f32 %v21519_v62, %v21684_v33 }
 0x8c3   : > { %v12144_v52 = vpop.permute.xlu1 %12143  ;;  %14079 = vst.msk [vmem:[%s18044_s13 + $0x440] sm:$0xff] %vm2906_vm3, %v13580_v29  ;;  %v13262_v20 = vpop.permute.xlu0 %13261  ;;  %v13485_v62 = vadd.f32 %v13413_v45, %v12295_v18 }
 0x8c4   : > { %v13369_v25 = vsel %vm561_vm2, 0.0, %v13262_v20  ;;  %v13018_v20 = vsel %vm11864_vm4, %v23433_v14, 0.0  ;;  %v23442_v14 = vld [vmem:[#allocation62_spill] sm:$0xff] }
 0x8c5   : > { %12691 = vrot.lane.b32.xlu1 %v21396_v41, %s14676_s23  ;;  %v13438_v1 = vadd.f32 %v13369_v25, %v23369_v55  ;;  %12693 = vrot.lane.b32.xlu0 %v12527_v34, %s14676_s23  ;;  %v13557_v7 = vadd.f32 %v21619_v4, %v13485_v62  ;;  %v12297_v41 = vadd.f32 %v21533_v42, %v21706_v56  ;;  %v23432_v42 = vld [vmem:[#allocation150_spill] sm:$0xff]  ;;  %v21743_v34 = vsel %vm11864_vm4, %v23434_v31, 0.0 }
 0x8c6   : > { %v12319_v22 = vadd.f32 %v12144_v52, %v21743_v34 }
 0x8c7   : > { %v12459_v13 = vpop.permute.xlu1 %12458  ;;  %v13582_v16 = vadd.f32 %v21609_v46, %v13438_v1  ;;  %v12574_v2 = vpop.permute.xlu0 %12573  ;;  %14032 = vst.msk [vmem:[%s18044_s13 + $0x2c8] sm:$0x7] %vm13943_vm5, %v13557_v7  ;;  %v13487_v55 = vadd.f32 %v13415_v21, %v12297_v41  ;;  %v21725_v46 = vsel %vm11864_vm4, %v23432_v42, 0.0  ;;  %v23435_v7 = vld [vmem:[#allocation26_spill] sm:$0xff] }
 0x8c8   : > { %v12317_v45 = vadd.f32 %v21613_v5, %v21725_v46  ;;  %v13437_v5 = vadd.f32 %v21648_v10, %v13018_v20  ;;  %v12777_v41 = vadd.f32 %v21633_v9, %v23435_v7  ;;  %v23438_v9 = vld [vmem:[#allocation146_spill] sm:$0xff]  ;;  %v23446_v7 = vld [vmem:[#allocation79_spill] sm:$0xff] }
 0x8c9   : > { %12651 = vrot.lane.b32.xlu1 %v21438_v60, %s14676_s23  ;;  %14083 = vst.msk [vmem:[%s18044_s13 + $0x460] sm:$0xff] %vm2906_vm3, %v13582_v16  ;;  %12653 = vrot.lane.b32.xlu0 %v12517_v19, %s14676_s23  ;;  %v13019_v60 = vsel %vm11864_vm4, %v21254_v36, 0.0  ;;  %v13559_v37 = vadd.f32 %v21619_v4, %v13487_v55  ;;  %v12529_v19 = vsel %vm561_vm2, 0.0, %v21672_v30  ;;  %v12778_v42 = vadd.f32 %v21666_v59, %v23438_v9  ;;  %v23448_v9 = vld [vmem:[#allocation71_spill] sm:$0xff] }
 0x8ca   : > { %v13507_v36 = vadd.f32 %v13435_v53, %v12317_v45  ;;  %v13509_v1 = vadd.f32 %v13437_v5, %v12319_v22  ;;  %v13594_v55 = vadd.f32 %v23436_v49, %v12777_v41  ;;  %v23441_v45 = vld [vmem:[#allocation47_spill] sm:$0xff] }
 0x8cb   : > { %v13264_v29 = vpop.permute.xlu1 %13263  ;;  %v12578_v18 = vpop.permute.xlu0 %12577  ;;  %14036 = vst.msk [vmem:[%s18044_s13 + $0x2e8] sm:$0x7] %vm13943_vm5, %v13559_v37 }
 0x8cc   : > { %v13439_v44 = vadd.f32 %v13264_v29, %v13019_v60  ;;  %v13579_v62 = vadd.f32 %v21619_v4, %v13507_v36  ;;  %v13581_v10 = vadd.f32 %v21619_v4, %v13509_v1  ;;  %v23443_v36 = vld [vmem:[#allocation131_spill] sm:$0xff] }
 0x8cd   : > { %12695 = vrot.lane.b32.xlu1 %v21482_v15, %s14676_s23  ;;  %12657 = vrot.lane.b32.xlu0 %v12518_v17, %s14676_s23 }
 0x8ce   : > { %v13583_v21 = vadd.f32 %v21619_v4, %v13439_v44  ;;  %14076 = vst.msk [vmem:[%s18044_s13 + $0x428] sm:$0x7] %vm13943_vm5, %v13579_v62  ;;  %14080 = vst.msk [vmem:[%s18044_s13 + $0x448] sm:$0x7] %vm13943_vm5, %v13581_v10  ;;  %v12779_v4 = vadd.f32 %v12574_v2, %v23437_v58  ;;  %v23440_v2 = vld [vmem:[#allocation19_spill] sm:$0xff] }
 0x8cf   : > { %v12576_v25 = vpop.permute.xlu1 %12575  ;;  %v12582_v15 = vpop.permute.xlu0 %12581  ;;  %v13595_v37 = vadd.f32 %v23440_v2, %v12778_v42 }
 0x8d0   : > { %14084 = vst.msk [vmem:[%s18044_s13 + $0x468] sm:$0x7] %vm13943_vm5, %v13583_v21  ;;  %v13596_v53 = vadd.f32 %v23436_v49, %v12779_v4  ;;  %v12780_v44 = vadd.f32 %v12576_v25, %v23441_v45  ;;  %v12783_v20 = vadd.f32 %v12582_v15, %v23442_v14  ;;  %v23444_v21 = vld [vmem:[#allocation52_spill] sm:$0xff]  ;;  %v23445_v15 = vld [vmem:[#allocation85_spill] sm:$0xff]  ;;  %v23450_v45 = vld [vmem:[#allocation98_spill] sm:$0xff] }
 0x8d1   : > { %12655 = vrot.lane.b32.xlu1 %v21545_v63, %s14676_s23  ;;  %12697 = vrot.lane.b32.xlu0 %v12528_v38, %s14676_s23 }
 0x8d2   : > { %v13600_v5 = vadd.f32 %v23436_v49, %v12783_v20 }
 0x8d3   : > { %v12580_v52 = vpop.permute.xlu1 %12579  ;;  %v12586_v16 = vpop.permute.xlu0 %12585 }
 0x8d4   : > { %v12785_v22 = vadd.f32 %v12586_v16, %v23444_v21 }
 0x8d5   : > { %12659 = vrot.lane.b32.xlu1 %v21557_v27, %s14676_s23  ;;  %12701 = vrot.lane.b32.xlu0 %v12529_v19, %s14676_s23  ;;  %v23439_v27 = vld [vmem:[#allocation70_spill] sm:$0xff]  ;;  %v23447_v19 = vld [vmem:[#allocation155_spill] sm:$0xff] }
 0x8d6   : > { %v12781_v60 = vadd.f32 %v12578_v18, %v23439_v27  ;;  %v13597_v18 = vadd.f32 %v23440_v2, %v12780_v44  ;;  %v13602_v10 = vadd.f32 %v23436_v49, %v12785_v22 }
 0x8d7   : > { %v12584_v63 = vpop.permute.xlu1 %12583  ;;  %v12590_v0 = vpop.permute.xlu0 %12589 }
 0x8d8   : > { %v13598_v17 = vadd.f32 %v23436_v49, %v12781_v60  ;;  %v12784_v1 = vadd.f32 %v12584_v63, %v23445_v15  ;;  %v12787_v41 = vadd.f32 %v12590_v0, %v23446_v7  ;;  %v23454_v15 = vld [vmem:[#allocation38_spill] sm:$0xff] }
 0x8d9   : > { %12699 = vrot.lane.b32.xlu1 %v21629_v8, %s14676_s23  ;;  %13736 = vrot.lane.b32.xlu0 %v13594_v55, %s14676_s23 }
 0x8da   : > { %v13601_v16 = vadd.f32 %v23440_v2, %v12784_v1  ;;  %v13604_v4 = vadd.f32 %v23436_v49, %v12787_v41 }
 0x8db   : > { %v12588_v30 = vpop.permute.xlu1 %12587  ;;  %v12594_v29 = vpop.permute.xlu0 %12593 }
 0x8dc   : > { %v12786_v55 = vadd.f32 %v12588_v30, %v23447_v19  ;;  %v12789_v42 = vadd.f32 %v12594_v29, %v23448_v9  ;;  %v23456_v19 = vld [vmem:[#allocation56_spill] sm:$0xff] }
 0x8dd   : > { %12703 = vrot.lane.b32.xlu1 %v12459_v13, %s14676_s23  ;;  %13740 = vrot.lane.b32.xlu0 %v13596_v53, %s14676_s23  ;;  %v12782_v13 = vadd.f32 %v12580_v52, %v23443_v36  ;;  %v23449_v53 = vld [vmem:[#allocation159_spill] sm:$0xff] }
 0x8de   : > { %v13603_v0 = vadd.f32 %v23440_v2, %v12786_v55  ;;  %v23452_v36 = vld [vmem:[#allocation87_spill] sm:$0xff] }
 0x8df   : > { %v12592_v8 = vpop.permute.xlu1 %12591  ;;  %v12598_v59 = vpop.permute.xlu0 %12597  ;;  %v13599_v62 = vadd.f32 %v23440_v2, %v12782_v13 }
 0x8e0   : > { %v12788_v27 = vadd.f32 %v12592_v8, %v23449_v53  ;;  %v12791_v44 = vadd.f32 %v12598_v59, %v23450_v45  ;;  %v23458_v53 = vld [vmem:[#allocation104_spill] sm:$0xff] }
 0x8e1   : > { %13738 = vrot.lane.b32.xlu1 %v13595_v37, %s14676_s23  ;;  %13744 = vrot.lane.b32.xlu0 %v13598_v17, %s14676_s23  ;;  %v13606_v37 = vadd.f32 %v23436_v49, %v12789_v42  ;;  %v23451_v17 = vld [vmem:[#allocation100_spill] sm:$0xff] }
 0x8e2   : > { %v13605_v29 = vadd.f32 %v23440_v2, %v12788_v27 }
 0x8e3   : > { %v12596_v31 = vpop.permute.xlu1 %12595  ;;  %v12602_v25 = vpop.permute.xlu0 %12601 }
 0x8e4   : > { %v12790_v14 = vadd.f32 %v12596_v31, %v23451_v17  ;;  %v12793_v13 = vadd.f32 %v12602_v25, %v23452_v36  ;;  %v23460_v17 = vld [vmem:[#allocation99_spill] sm:$0xff] }
 0x8e5   : > { %13742 = vrot.lane.b32.xlu1 %v13597_v18, %s14676_s23  ;;  %13748 = vrot.lane.b32.xlu0 %v13600_v5, %s14676_s23  ;;  %v13608_v18 = vadd.f32 %v23436_v49, %v12791_v44  ;;  %v23453_v5 = vld [vmem:[#allocation165_spill] sm:$0xff] }
 0x8e6   : > { %v13607_v59 = vadd.f32 %v23440_v2, %v12790_v14 }
 0x8e7   : > { %v12600_v38 = vpop.permute.xlu1 %12599  ;;  %v12606_v52 = vpop.permute.xlu0 %12605 }
 0x8e8   : > { %v12792_v21 = vadd.f32 %v12600_v38, %v23453_v5  ;;  %v12795_v1 = vadd.f32 %v12606_v52, %v23454_v15 }
 0x8e9   : > { %13746 = vrot.lane.b32.xlu1 %v13599_v62, %s14676_s23  ;;  %13752 = vrot.lane.b32.xlu0 %v13602_v10, %s14676_s23  ;;  %v13610_v62 = vadd.f32 %v23436_v49, %v12793_v13  ;;  %v23455_v10 = vld [vmem:[#allocation169_spill] sm:$0xff] }
 0x8ea   : > { %v13609_v25 = vadd.f32 %v23440_v2, %v12792_v21  ;;  %v23462_v21 = vld [vmem:[#allocation16_spill] sm:$0xff] }
 0x8eb   : > { %v12604_v58 = vpop.permute.xlu1 %12603  ;;  %v12610_v63 = vpop.permute.xlu0 %12609 }
 0x8ec   : > { %v12794_v7 = vadd.f32 %v12604_v58, %v23455_v10  ;;  %v12797_v55 = vadd.f32 %v12610_v63, %v23456_v19  ;;  %v23464_v19 = vld [vmem:[#allocation48_spill] sm:$0xff] }
 0x8ed   : > { %13750 = vrot.lane.b32.xlu1 %v13601_v16, %s14676_s23  ;;  %13756 = vrot.lane.b32.xlu0 %v13604_v4, %s14676_s23  ;;  %v13612_v16 = vadd.f32 %v23436_v49, %v12795_v1  ;;  %v23457_v4 = vld [vmem:[#allocation148_spill] sm:$0xff] }
 0x8ee   : > { %v13611_v52 = vadd.f32 %v23440_v2, %v12794_v7 }
 0x8ef   : > { %v12608_v60 = vpop.permute.xlu1 %12607  ;;  %v12614_v30 = vpop.permute.xlu0 %12613 }
 0x8f0   : > { %v12796_v9 = vadd.f32 %v12608_v60, %v23457_v4  ;;  %v12799_v27 = vadd.f32 %v12614_v30, %v23458_v53  ;;  %v23466_v53 = vld [vmem:[#allocation110_spill] sm:$0xff] }
 0x8f1   : > { %13754 = vrot.lane.b32.xlu1 %v13603_v0, %s14676_s23  ;;  %13760 = vrot.lane.b32.xlu0 %v13606_v37, %s14676_s23  ;;  %v13614_v0 = vadd.f32 %v23436_v49, %v12797_v55  ;;  %v23459_v37 = vld [vmem:[#allocation162_spill] sm:$0xff] }
 0x8f2   : > { %v13613_v63 = vadd.f32 %v23440_v2, %v12796_v9 }
 0x8f3   : > { %v12612_v20 = vpop.permute.xlu1 %12611  ;;  %v12618_v8 = vpop.permute.xlu0 %12617 }
 0x8f4   : > { %v12798_v45 = vadd.f32 %v12612_v20, %v23459_v37  ;;  %v12801_v14 = vadd.f32 %v12618_v8, %v23460_v17 }
 0x8f5   : > { %13758 = vrot.lane.b32.xlu1 %v13605_v29, %s14676_s23  ;;  %13764 = vrot.lane.b32.xlu0 %v13608_v18, %s14676_s23  ;;  %v13616_v29 = vadd.f32 %v23436_v49, %v12799_v27  ;;  %v23461_v18 = vld [vmem:[#allocation166_spill] sm:$0xff] }
 0x8f6   : > { %v13615_v30 = vadd.f32 %v23440_v2, %v12798_v45 }
 0x8f7   : > { %v12616_v22 = vpop.permute.xlu1 %12615  ;;  %v12662_v31 = vpop.permute.xlu0 %12661 }
 0x8f8   : > { %v12800_v36 = vadd.f32 %v12616_v22, %v23461_v18  ;;  %v12823_v5 = vadd.f32 %v12662_v31, %v23411_v6 }
 0x8f9   : > { %13762 = vrot.lane.b32.xlu1 %v13607_v59, %s14676_s23  ;;  %13768 = vrot.lane.b32.xlu0 %v13610_v62, %s14676_s23  ;;  %v13618_v59 = vadd.f32 %v23436_v49, %v12801_v14 }
 0x8fa   : > { %v13617_v8 = vadd.f32 %v23440_v2, %v12800_v36  ;;  %v13640_v1 = vadd.f32 %v23436_v49, %v12823_v5 }
 0x8fb   : > { %v12620_v41 = vpop.permute.xlu1 %12619  ;;  %v12622_v38 = vpop.permute.xlu0 %12621 }
 0x8fc   : > { %v12802_v62 = vadd.f32 %v12620_v41, %v23462_v21 }
 0x8fd   : > { %13766 = vrot.lane.b32.xlu1 %v13609_v25, %s14676_s23  ;;  %13772 = vrot.lane.b32.xlu0 %v13612_v16, %s14676_s23  ;;  %v23463_v25 = vld [vmem:[#allocation45_spill] sm:$0xff] }
 0x8fe   : > { %v12803_v10 = vadd.f32 %v12622_v38, %v23463_v25  ;;  %v13619_v6 = vadd.f32 %v23440_v2, %v12802_v62  ;;  %v23472_v25 = vld [vmem:[#allocation124_spill] sm:$0xff] }
 0x8ff   : > { %v12664_v42 = vpop.permute.xlu1 %12663  ;;  %v12666_v58 = vpop.permute.xlu0 %12665 }
 0x900   : > { %v12824_v31 = vadd.f32 %v12664_v42, %v21594_v43  ;;  %v13620_v16 = vadd.f32 %v23436_v49, %v12803_v10  ;;  %v12825_v55 = vadd.f32 %v12666_v58, %v23464_v19  ;;  %v23467_v58 = vld [vmem:[#allocation27_spill] sm:$0xff] }
 0x901   : > { %13770 = vrot.lane.b32.xlu1 %v13611_v52, %s14676_s23  ;;  %13776 = vrot.lane.b32.xlu0 %v13614_v0, %s14676_s23  ;;  %v23465_v52 = vld [vmem:[#allocation138_spill] sm:$0xff] }
 0x902   : > { %v13641_v38 = vadd.f32 %v23440_v2, %v12824_v31  ;;  %v13642_v0 = vadd.f32 %v23436_v49, %v12825_v55  ;;  %v23474_v55 = vld [vmem:[#allocation30_spill] sm:$0xff] }
 0x903   : > { %v12624_v44 = vpop.permute.xlu1 %12623  ;;  %v12626_v60 = vpop.permute.xlu0 %12625 }
 0x904   : > { %v12804_v4 = vadd.f32 %v12624_v44, %v23465_v52  ;;  %v12805_v27 = vadd.f32 %v12626_v60, %v23466_v53  ;;  %v23469_v60 = vld [vmem:[#allocation34_spill] sm:$0xff] }
 0x905   : > { %13774 = vrot.lane.b32.xlu1 %v13613_v63, %s14676_s23  ;;  %13780 = vrot.lane.b32.xlu0 %v13616_v29, %s14676_s23  ;;  %v23468_v29 = vld [vmem:[#allocation107_spill] sm:$0xff]  ;;  %v23475_v52 = vld [vmem:[#allocation50_spill] sm:$0xff] }
 0x906   : > { %v13621_v42 = vadd.f32 %v23440_v2, %v12804_v4  ;;  %v13622_v45 = vadd.f32 %v23436_v49, %v12805_v27  ;;  %v23476_v27 = vld [vmem:[#allocation40_spill] sm:$0xff] }
 0x907   : > { %v12668_v13 = vpop.permute.xlu1 %12667  ;;  %v12630_v20 = vpop.permute.xlu0 %12629 }
 0x908   : > { %v12826_v63 = vadd.f32 %v12668_v13, %v23467_v58  ;;  %v12807_v17 = vadd.f32 %v12630_v20, %v23468_v29  ;;  %v23477_v29 = vld [vmem:[#allocation117_spill] sm:$0xff] }
 0x909   : > { %13778 = vrot.lane.b32.xlu1 %v13615_v30, %s14676_s23  ;;  %13784 = vrot.lane.b32.xlu0 %v13618_v59, %s14676_s23  ;;  %v23470_v59 = vld [vmem:[#allocation147_spill] sm:$0xff] }
 0x90a   : > { %v13643_v14 = vadd.f32 %v23440_v2, %v12826_v63  ;;  %v13624_v36 = vadd.f32 %v23436_v49, %v12807_v17 }
 0x90b   : > { %v12628_v15 = vpop.permute.xlu1 %12627  ;;  %v12670_v22 = vpop.permute.xlu0 %12669 }
 0x90c   : > { %v12806_v30 = vadd.f32 %v12628_v15, %v23469_v60  ;;  %v12827_v5 = vadd.f32 %v12670_v22, %v23470_v59 }
 0x90d   : > { %13782 = vrot.lane.b32.xlu1 %v13617_v8, %s14676_s23  ;;  %13828 = vrot.lane.b32.xlu0 %v13640_v1, %s14676_s23  ;;  %v23471_v8 = vld [vmem:[#allocation109_spill] sm:$0xff] }
 0x90e   : > { %v13623_v20 = vadd.f32 %v23440_v2, %v12806_v30  ;;  %v13644_v1 = vadd.f32 %v23436_v49, %v12827_v5 }
 0x90f   : > { %v12632_v7 = vpop.permute.xlu1 %12631  ;;  %v12674_v41 = vpop.permute.xlu0 %12673 }
 0x910   : > { %v12808_v21 = vadd.f32 %v12632_v7, %v23471_v8  ;;  %v12829_v10 = vadd.f32 %v12674_v41, %v23472_v25  ;;  %v23479_v8 = vld [vmem:[#allocation153_spill] sm:$0xff] }
 0x911   : > { %13786 = vrot.lane.b32.xlu1 %v13619_v6, %s14676_s23  ;;  %13788 = vrot.lane.b32.xlu0 %v13620_v16, %s14676_s23  ;;  %v23473_v6 = vld [vmem:[#allocation29_spill] sm:$0xff] }
 0x912   : > { %v13625_v22 = vadd.f32 %v23440_v2, %v12808_v21  ;;  %v13646_v19 = vadd.f32 %v23436_v49, %v12829_v10 }
 0x913   : > { %v12672_v9 = vpop.permute.xlu1 %12671  ;;  %v12634_v43 = vpop.permute.xlu0 %12633 }
 0x914   : > { %v12828_v31 = vadd.f32 %v12672_v9, %v23473_v6 }
 0x915   : > { %13830 = vrot.lane.b32.xlu1 %v13641_v38, %s14676_s23  ;;  %13832 = vrot.lane.b32.xlu0 %v13642_v0, %s14676_s23  ;;  %v12809_v38 = vadd.f32 %v12634_v43, %v23474_v55 }
 0x916   : > { %v13645_v41 = vadd.f32 %v23440_v2, %v12828_v31 }
 0x917   : > { %v12676_v37 = vpop.permute.xlu1 %12675  ;;  %v12678_v44 = vpop.permute.xlu0 %12677  ;;  %v13626_v53 = vadd.f32 %v23436_v49, %v12809_v38 }
 0x918   : > { %v12830_v4 = vadd.f32 %v12676_v37, %v23475_v52 }
 0x919   : > { %13790 = vrot.lane.b32.xlu1 %v13621_v42, %s14676_s23  ;;  %13792 = vrot.lane.b32.xlu0 %v13622_v45, %s14676_s23  ;;  %v12831_v42 = vadd.f32 %v12678_v44, %v23476_v27 }
 0x91a   : > { %v13647_v43 = vadd.f32 %v23440_v2, %v12830_v4 }
 0x91b   : > { %v12636_v18 = vpop.permute.xlu1 %12635  ;;  %v12638_v13 = vpop.permute.xlu0 %12637  ;;  %v13648_v45 = vadd.f32 %v23436_v49, %v12831_v42 }
 0x91c   : > { %v12810_v58 = vadd.f32 %v12636_v18, %v21277_v11  ;;  %v12811_v17 = vadd.f32 %v12638_v13, %v23477_v29 }
 0x91d   : > { %13834 = vrot.lane.b32.xlu1 %v13643_v14, %s14676_s23  ;;  %13796 = vrot.lane.b32.xlu0 %v13624_v36, %s14676_s23  ;;  %v23478_v36 = vld [vmem:[#allocation154_spill] sm:$0xff] }
 0x91e   : > { %v13627_v44 = vadd.f32 %v23440_v2, %v12810_v58  ;;  %v13628_v30 = vadd.f32 %v23436_v49, %v12811_v17 }
 0x91f   : > { %v12680_v62 = vpop.permute.xlu1 %12679  ;;  %v12682_v15 = vpop.permute.xlu0 %12681 }
 0x920   : > { %v12832_v14 = vadd.f32 %v12680_v62, %v21326_v26  ;;  %v12833_v59 = vadd.f32 %v12682_v15, %v23478_v36 }
 0x921   : > { %13794 = vrot.lane.b32.xlu1 %v13623_v20, %s14676_s23  ;;  %13836 = vrot.lane.b32.xlu0 %v13644_v1, %s14676_s23 }
 0x922   : > { %v13649_v18 = vadd.f32 %v23440_v2, %v12832_v14  ;;  %v13650_v20 = vadd.f32 %v23436_v49, %v12833_v59 }
 0x923   : > { %v12640_v16 = vpop.permute.xlu1 %12639  ;;  %v12642_v7 = vpop.permute.xlu0 %12641 }
 0x924   : > { %v12812_v5 = vadd.f32 %v12640_v16, %v21360_v40  ;;  %v12813_v21 = vadd.f32 %v12642_v7, %v23479_v8 }
 0x925   : > { %13798 = vrot.lane.b32.xlu1 %v13625_v22, %s14676_s23  ;;  %13840 = vrot.lane.b32.xlu0 %v13646_v19, %s14676_s23 }
 0x926   : > { %v13629_v62 = vadd.f32 %v23440_v2, %v12812_v5  ;;  %v13630_v10 = vadd.f32 %v23436_v49, %v12813_v21 }
 0x927   : > { %v12684_v0 = vpop.permute.xlu1 %12683  ;;  %v12646_v9 = vpop.permute.xlu0 %12645 }
 0x928   : > { %v12834_v1 = vadd.f32 %v12684_v0, %v21402_v48  ;;  %v12815_v15 = vadd.f32 %v12646_v9, %v23309_v12 }
 0x929   : > { %13838 = vrot.lane.b32.xlu1 %v13645_v41, %s14676_s23  ;;  %13800 = vrot.lane.b32.xlu0 %v13626_v53, %s14676_s23 }
 0x92a   : > { %v13651_v22 = vadd.f32 %v23440_v2, %v12834_v1  ;;  %v13632_v16 = vadd.f32 %v23436_v49, %v12815_v15 }
 0x92b   : > { %v12644_v63 = vpop.permute.xlu1 %12643  ;;  %v12686_v37 = vpop.permute.xlu0 %12685 }
 0x92c   : > { %v12814_v6 = vadd.f32 %v12644_v63, %v21444_v61  ;;  %v12835_v19 = vadd.f32 %v12686_v37, %v23312_v35 }
 0x92d   : > { %13842 = vrot.lane.b32.xlu1 %v13647_v43, %s14676_s23  ;;  %13844 = vrot.lane.b32.xlu0 %v13648_v45, %s14676_s23 }
 0x92e   : > { %v13631_v12 = vadd.f32 %v23440_v2, %v12814_v6  ;;  %v13652_v7 = vadd.f32 %v23436_v49, %v12835_v19 }
 0x92f   : > { %v12648_v60 = vpop.permute.xlu1 %12647  ;;  %v12690_v11 = vpop.permute.xlu0 %12689 }
 0x930   : > { %v12816_v55 = vadd.f32 %v12648_v60, %v21488_v51  ;;  %v12837_v41 = vadd.f32 %v12690_v11, %v23321_v23 }
 0x931   : > { %13802 = vrot.lane.b32.xlu1 %v13627_v44, %s14676_s23  ;;  %13804 = vrot.lane.b32.xlu0 %v13628_v30, %s14676_s23  ;;  %v23480_v44 = vld [vmem:[#allocation76_spill] sm:$0xff] }
 0x932   : > { %v13633_v35 = vadd.f32 %v23440_v2, %v12816_v55  ;;  %v13654_v0 = vadd.f32 %v23436_v49, %v12837_v41 }
 0x933   : > { %v12688_v13 = vpop.permute.xlu1 %12687  ;;  %v12650_v26 = vpop.permute.xlu0 %12649 }
 0x934   : > { %v12836_v52 = vadd.f32 %v12688_v13, %v21507_v54  ;;  %v12817_v53 = vadd.f32 %v12650_v26, %v23329_v39 }
 0x935   : > { %13846 = vrot.lane.b32.xlu1 %v13649_v18, %s14676_s23  ;;  %13848 = vrot.lane.b32.xlu0 %v13650_v20, %s14676_s23 }
 0x936   : > { %v13653_v23 = vadd.f32 %v23440_v2, %v12836_v52  ;;  %v13634_v9 = vadd.f32 %v23436_v49, %v12817_v53 }
 0x937   : > { %v12692_v25 = vpop.permute.xlu1 %12691  ;;  %v12694_v40 = vpop.permute.xlu0 %12693 }
 0x938   : > { %v12838_v27 = vadd.f32 %v12692_v25, %v21578_v3  ;;  %v12839_v54 = vadd.f32 %v12694_v40, %v23336_v24 }
 0x939   : > { %13806 = vrot.lane.b32.xlu1 %v13629_v62, %s14676_s23  ;;  %13808 = vrot.lane.b32.xlu0 %v13630_v10, %s14676_s23 }
 0x93a   : > { %v13655_v39 = vadd.f32 %v23440_v2, %v12838_v27  ;;  %v13656_v45 = vadd.f32 %v23436_v49, %v12839_v54 }
 0x93b   : > { %v12652_v31 = vpop.permute.xlu1 %12651  ;;  %v12654_v48 = vpop.permute.xlu0 %12653 }
 0x93c   : > { %v12818_v58 = vadd.f32 %v12652_v31, %v21637_v32  ;;  %v12819_v3 = vadd.f32 %v12654_v48, %v23342_v28 }
 0x93d   : > { %13850 = vrot.lane.b32.xlu1 %v13651_v22, %s14676_s23  ;;  %13812 = vrot.lane.b32.xlu0 %v13632_v16, %s14676_s23 }
 0x93e   : > { %v13635_v24 = vadd.f32 %v23440_v2, %v12818_v58  ;;  %v13636_v32 = vadd.f32 %v23436_v49, %v12819_v3 }
 0x93f   : > { %v12696_v38 = vpop.permute.xlu1 %12695  ;;  %v12658_v61 = vpop.permute.xlu0 %12657 }
 0x940   : > { %v12840_v17 = vadd.f32 %v12696_v38, %v21663_v57  ;;  %v12821_v14 = vadd.f32 %v12658_v61, %v23480_v44 }
 0x941   : > { %13810 = vrot.lane.b32.xlu1 %v13631_v12, %s14676_s23  ;;  %13852 = vrot.lane.b32.xlu0 %v13652_v7, %s14676_s23 }
 0x942   : > { %v13657_v28 = vadd.f32 %v23440_v2, %v12840_v17  ;;  %v13638_v57 = vadd.f32 %v23436_v49, %v12821_v14 }
 0x943   : > { %v12656_v4 = vpop.permute.xlu1 %12655  ;;  %v12698_v51 = vpop.permute.xlu0 %12697 }
 0x944   : > { %v12820_v30 = vadd.f32 %v12656_v4, %v21684_v33  ;;  %v12841_v59 = vadd.f32 %v12698_v51, %v23417_v47 }
 0x945   : > { %13814 = vrot.lane.b32.xlu1 %v13633_v35, %s14676_s23  ;;  %13856 = vrot.lane.b32.xlu0 %v13654_v0, %s14676_s23 }
 0x946   : > { %v13637_v18 = vadd.f32 %v23440_v2, %v12820_v30  ;;  %v13658_v13 = vadd.f32 %v23436_v49, %v12841_v59 }
 0x947   : > { %v12660_v42 = vpop.permute.xlu1 %12659  ;;  %v12702_v43 = vpop.permute.xlu0 %12701 }
 0x948   : > { %v12822_v33 = vadd.f32 %v12660_v42, %v21706_v56  ;;  %v12843_v47 = vadd.f32 %v12702_v43, %v23365_v50 }
 0x949   : > { %13854 = vrot.lane.b32.xlu1 %v13653_v23, %s14676_s23  ;;  %13816 = vrot.lane.b32.xlu0 %v13634_v9, %s14676_s23 }
 0x94a   : > { %v13639_v8 = vadd.f32 %v23440_v2, %v12822_v33  ;;  %v13660_v26 = vadd.f32 %v23436_v49, %v12843_v47 }
 0x94b   : > { %v12700_v63 = vpop.permute.xlu1 %12699  ;;  %v13737_v29 = vpop.permute.xlu0 %13736 }
 0x94c   : > { %13949 = vst.msk [vmem:[%s18044_s13 + $0x30] sm:$0xff] %vm2906_vm3, %v13737_v29  ;;  %v12842_v56 = vadd.f32 %v12700_v63, %v21725_v46 }
 0x94d   : > { %13858 = vrot.lane.b32.xlu1 %v13655_v39, %s14676_s23  ;;  %13860 = vrot.lane.b32.xlu0 %v13656_v45, %s14676_s23 }
 0x94e   : > { %v13659_v62 = vadd.f32 %v23440_v2, %v12842_v56 }
 0x94f   : > { %v12704_v37 = vpop.permute.xlu1 %12703  ;;  %v13741_v60 = vpop.permute.xlu0 %13740 }
 0x950   : > { %13953 = vst.msk [vmem:[%s18044_s13 + $0x50] sm:$0xff] %vm2906_vm3, %v13741_v60  ;;  %v12844_v46 = vadd.f32 %v12704_v37, %v21743_v34 }
 0x951   : > { %13818 = vrot.lane.b32.xlu1 %v13635_v24, %s14676_s23  ;;  %13820 = vrot.lane.b32.xlu0 %v13636_v32, %s14676_s23 }
 0x952   : > { %v13661_v25 = vadd.f32 %v23440_v2, %v12844_v46 }
 0x953   : > { %v13739_v36 = vpop.permute.xlu1 %13738  ;;  %v13745_v11 = vpop.permute.xlu0 %13744 }
 0x954   : > { %13950 = vst.msk [vmem:[%s18044_s13 + $0x38] sm:$0x7] %vm13943_vm5, %v13739_v36 }
 0x955   : > { %13862 = vrot.lane.b32.xlu1 %v13657_v28, %s14676_s23  ;;  %13957 = vst.msk [vmem:[%s18044_s13 + $0x70] sm:$0xff] %vm2906_vm3, %v13745_v11  ;;  %13824 = vrot.lane.b32.xlu0 %v13638_v57, %s14676_s23 }
 0x957   : > { %v13743_v5 = vpop.permute.xlu1 %13742  ;;  %v13749_v20 = vpop.permute.xlu0 %13748 }
 0x958   : > { %13954 = vst.msk [vmem:[%s18044_s13 + $0x58] sm:$0x7] %vm13943_vm5, %v13743_v5 }
 0x959   : > { %13822 = vrot.lane.b32.xlu1 %v13637_v18, %s14676_s23  ;;  %13961 = vst.msk [vmem:[%s18044_s13 + $0x90] sm:$0xff] %vm2906_vm3, %v13749_v20  ;;  %13864 = vrot.lane.b32.xlu0 %v13658_v13, %s14676_s23 }
 0x95b   : > { %v13747_v21 = vpop.permute.xlu1 %13746  ;;  %v13753_v50 = vpop.permute.xlu0 %13752 }
 0x95c   : > { %13958 = vst.msk [vmem:[%s18044_s13 + $0x78] sm:$0x7] %vm13943_vm5, %v13747_v21 }
 0x95d   : > { %13826 = vrot.lane.b32.xlu1 %v13639_v8, %s14676_s23  ;;  %13965 = vst.msk [vmem:[%s18044_s13 + $0xb0] sm:$0xff] %vm2906_vm3, %v13753_v50  ;;  %13868 = vrot.lane.b32.xlu0 %v13660_v26, %s14676_s23 }
 0x95f   : > { %v13751_v1 = vpop.permute.xlu1 %13750  ;;  %v13757_v49 = vpop.permute.xlu0 %13756 }
 0x960   : > { %13962 = vst.msk [vmem:[%s18044_s13 + $0x98] sm:$0x7] %vm13943_vm5, %v13751_v1 }
 0x961   : > { %13866 = vrot.lane.b32.xlu1 %v13659_v62, %s14676_s23  ;;  %13969 = vst.msk [vmem:[%s18044_s13 + $0xd0] sm:$0xff] %vm2906_vm3, %v13757_v49 }
 0x963   : > { %v13755_v10 = vpop.permute.xlu1 %13754  ;;  %v13761_v15 = vpop.permute.xlu0 %13760 }
 0x964   : > { %13966 = vst.msk [vmem:[%s18044_s13 + $0xb8] sm:$0x7] %vm13943_vm5, %v13755_v10 }
 0x965   : > { %13870 = vrot.lane.b32.xlu1 %v13661_v25, %s14676_s23  ;;  %13973 = vst.msk [vmem:[%s18044_s13 + $0xf0] sm:$0xff] %vm2906_vm3, %v13761_v15 }
 0x967   : > { %v13759_v34 = vpop.permute.xlu1 %13758  ;;  %v13765_v40 = vpop.permute.xlu0 %13764 }
 0x968   : > { %13970 = vst.msk [vmem:[%s18044_s13 + $0xd8] sm:$0x7] %vm13943_vm5, %v13759_v34 }
 0x969   : > { %13977 = vst.msk [vmem:[%s18044_s13 + $0x110] sm:$0xff] %vm2906_vm3, %v13765_v40 }
 0x96b   : > { %v13763_v2 = vpop.permute.xlu1 %13762  ;;  %v13769_v22 = vpop.permute.xlu0 %13768 }
 0x96c   : > { %13974 = vst.msk [vmem:[%s18044_s13 + $0xf8] sm:$0x7] %vm13943_vm5, %v13763_v2 }
 0x96d   : > { %13981 = vst.msk [vmem:[%s18044_s13 + $0x130] sm:$0xff] %vm2906_vm3, %v13769_v22 }
 0x96f   : > { %v13767_v6 = vpop.permute.xlu1 %13766  ;;  %v13773_v31 = vpop.permute.xlu0 %13772 }
 0x970   : > { %13978 = vst.msk [vmem:[%s18044_s13 + $0x118] sm:$0x7] %vm13943_vm5, %v13767_v6 }
 0x971   : > { %13985 = vst.msk [vmem:[%s18044_s13 + $0x150] sm:$0xff] %vm2906_vm3, %v13773_v31 }
 0x973   : > { %v13771_v16 = vpop.permute.xlu1 %13770  ;;  %v13777_v19 = vpop.permute.xlu0 %13776 }
 0x974   : > { %13982 = vst.msk [vmem:[%s18044_s13 + $0x138] sm:$0x7] %vm13943_vm5, %v13771_v16 }
 0x975   : > { %13989 = vst.msk [vmem:[%s18044_s13 + $0x170] sm:$0xff] %vm2906_vm3, %v13777_v19 }
 0x977   : > { %v13775_v48 = vpop.permute.xlu1 %13774  ;;  %v13781_v12 = vpop.permute.xlu0 %13780 }
 0x978   : > { %13986 = vst.msk [vmem:[%s18044_s13 + $0x158] sm:$0x7] %vm13943_vm5, %v13775_v48 }
 0x979   : > { %13993 = vst.msk [vmem:[%s18044_s13 + $0x190] sm:$0xff] %vm2906_vm3, %v13781_v12 }
 0x97b   : > { %v13779_v55 = vpop.permute.xlu1 %13778  ;;  %v13785_v38 = vpop.permute.xlu0 %13784 }
 0x97c   : > { %13990 = vst.msk [vmem:[%s18044_s13 + $0x178] sm:$0x7] %vm13943_vm5, %v13779_v55 }
 0x97d   : > { %13997 = vst.msk [vmem:[%s18044_s13 + $0x1b0] sm:$0xff] %vm2906_vm3, %v13785_v38 }
 0x97f   : > { %v13783_v7 = vpop.permute.xlu1 %13782  ;;  %v13829_v41 = vpop.permute.xlu0 %13828 }
 0x980   : > { %13994 = vst.msk [vmem:[%s18044_s13 + $0x198] sm:$0x7] %vm13943_vm5, %v13783_v7 }
 0x981   : > { %14041 = vst.msk [vmem:[%s18044_s13 + $0x310] sm:$0xff] %vm2906_vm3, %v13829_v41 }
 0x983   : > { %v13787_v61 = vpop.permute.xlu1 %13786  ;;  %v13789_v35 = vpop.permute.xlu0 %13788 }
 0x984   : > { %13998 = vst.msk [vmem:[%s18044_s13 + $0x1b8] sm:$0x7] %vm13943_vm5, %v13787_v61 }
 0x985   : > { %14001 = vst.msk [vmem:[%s18044_s13 + $0x1d0] sm:$0xff] %vm2906_vm3, %v13789_v35 }
 0x987   : > { %v13831_v52 = vpop.permute.xlu1 %13830  ;;  %v13833_v4 = vpop.permute.xlu0 %13832 }
 0x988   : > { %14042 = vst.msk [vmem:[%s18044_s13 + $0x318] sm:$0x7] %vm13943_vm5, %v13831_v52 }
 0x989   : > { %14045 = vst.msk [vmem:[%s18044_s13 + $0x330] sm:$0xff] %vm2906_vm3, %v13833_v4 }
 0x98b   : > { %v13791_v0 = vpop.permute.xlu1 %13790  ;;  %v13793_v53 = vpop.permute.xlu0 %13792 }
 0x98c   : > { %14002 = vst.msk [vmem:[%s18044_s13 + $0x1d8] sm:$0x7] %vm13943_vm5, %v13791_v0 }
 0x98d   : > { %14005 = vst.msk [vmem:[%s18044_s13 + $0x1f0] sm:$0xff] %vm2906_vm3, %v13793_v53 }
 0x98f   : > { %v13835_v51 = vpop.permute.xlu1 %13834  ;;  %v13797_v23 = vpop.permute.xlu0 %13796 }
 0x990   : > { %14046 = vst.msk [vmem:[%s18044_s13 + $0x338] sm:$0x7] %vm13943_vm5, %v13835_v51 }
 0x991   : > { %14009 = vst.msk [vmem:[%s18044_s13 + $0x210] sm:$0xff] %vm2906_vm3, %v13797_v23 }
 0x993   : > { %v13795_v27 = vpop.permute.xlu1 %13794  ;;  %v13837_v42 = vpop.permute.xlu0 %13836 }
 0x994   : > { %14006 = vst.msk [vmem:[%s18044_s13 + $0x1f8] sm:$0x7] %vm13943_vm5, %v13795_v27 }
 0x995   : > { %14049 = vst.msk [vmem:[%s18044_s13 + $0x350] sm:$0xff] %vm2906_vm3, %v13837_v42 }
 0x997   : > { %v13799_v9 = vpop.permute.xlu1 %13798  ;;  %v13841_v54 = vpop.permute.xlu0 %13840 }
 0x998   : > { %14010 = vst.msk [vmem:[%s18044_s13 + $0x218] sm:$0x7] %vm13943_vm5, %v13799_v9 }
 0x999   : > { %14053 = vst.msk [vmem:[%s18044_s13 + $0x370] sm:$0xff] %vm2906_vm3, %v13841_v54 }
 0x99b   : > { %v13839_v43 = vpop.permute.xlu1 %13838  ;;  %v13801_v39 = vpop.permute.xlu0 %13800 }
 0x99c   : > { %14050 = vst.msk [vmem:[%s18044_s13 + $0x358] sm:$0x7] %vm13943_vm5, %v13839_v43 }
 0x99d   : > { %14013 = vst.msk [vmem:[%s18044_s13 + $0x230] sm:$0xff] %vm2906_vm3, %v13801_v39 }
 0x99f   : > { %v13843_v58 = vpop.permute.xlu1 %13842  ;;  %v13845_v63 = vpop.permute.xlu0 %13844 }
 0x9a0   : > { %14054 = vst.msk [vmem:[%s18044_s13 + $0x378] sm:$0x7] %vm13943_vm5, %v13843_v58 }
 0x9a1   : > { %14057 = vst.msk [vmem:[%s18044_s13 + $0x390] sm:$0xff] %vm2906_vm3, %v13845_v63 }
 0x9a3   : > { %v13803_v45 = vpop.permute.xlu1 %13802  ;;  %v13805_v3 = vpop.permute.xlu0 %13804 }
 0x9a4   : > { %14014 = vst.msk [vmem:[%s18044_s13 + $0x238] sm:$0x7] %vm13943_vm5, %v13803_v45 }
 0x9a5   : > { %14017 = vst.msk [vmem:[%s18044_s13 + $0x250] sm:$0xff] %vm2906_vm3, %v13805_v3 }
 0x9a7   : > { %v13847_v29 = vpop.permute.xlu1 %13846  ;;  %v13849_v24 = vpop.permute.xlu0 %13848 }
 0x9a8   : > { %14058 = vst.msk [vmem:[%s18044_s13 + $0x398] sm:$0x7] %vm13943_vm5, %v13847_v29 }
 0x9a9   : > { %14061 = vst.msk [vmem:[%s18044_s13 + $0x3b0] sm:$0xff] %vm2906_vm3, %v13849_v24 }
 0x9ab   : > { %v13807_v17 = vpop.permute.xlu1 %13806  ;;  %v13809_v37 = vpop.permute.xlu0 %13808 }
 0x9ac   : > { %14018 = vst.msk [vmem:[%s18044_s13 + $0x258] sm:$0x7] %vm13943_vm5, %v13807_v17 }
 0x9ad   : > { %14021 = vst.msk [vmem:[%s18044_s13 + $0x270] sm:$0xff] %vm2906_vm3, %v13809_v37 }
 0x9af   : > { %v13851_v32 = vpop.permute.xlu1 %13850  ;;  %v13813_v44 = vpop.permute.xlu0 %13812 }
 0x9b0   : > { %14062 = vst.msk [vmem:[%s18044_s13 + $0x3b8] sm:$0x7] %vm13943_vm5, %v13851_v32 }
 0x9b1   : > { %14025 = vst.msk [vmem:[%s18044_s13 + $0x290] sm:$0xff] %vm2906_vm3, %v13813_v44 }
 0x9b3   : > { %v13811_v14 = vpop.permute.xlu1 %13810  ;;  %v13853_v60 = vpop.permute.xlu0 %13852 }
 0x9b4   : > { %14022 = vst.msk [vmem:[%s18044_s13 + $0x278] sm:$0x7] %vm13943_vm5, %v13811_v14 }
 0x9b5   : > { %14065 = vst.msk [vmem:[%s18044_s13 + $0x3d0] sm:$0xff] %vm2906_vm3, %v13853_v60 }
 0x9b7   : > { %v13815_v28 = vpop.permute.xlu1 %13814  ;;  %v13857_v30 = vpop.permute.xlu0 %13856 }
 0x9b8   : > { %14026 = vst.msk [vmem:[%s18044_s13 + $0x298] sm:$0x7] %vm13943_vm5, %v13815_v28 }
 0x9b9   : > { %14069 = vst.msk [vmem:[%s18044_s13 + $0x3f0] sm:$0xff] %vm2906_vm3, %v13857_v30 }
 0x9bb   : > { %v13855_v36 = vpop.permute.xlu1 %13854  ;;  %v13817_v57 = vpop.permute.xlu0 %13816 }
 0x9bc   : > { %14066 = vst.msk [vmem:[%s18044_s13 + $0x3d8] sm:$0x7] %vm13943_vm5, %v13855_v36 }
 0x9bd   : > { %14029 = vst.msk [vmem:[%s18044_s13 + $0x2b0] sm:$0xff] %vm2906_vm3, %v13817_v57 }
 0x9bf   : > { %v13859_v59 = vpop.permute.xlu1 %13858  ;;  %v13861_v11 = vpop.permute.xlu0 %13860 }
 0x9c0   : > { %14070 = vst.msk [vmem:[%s18044_s13 + $0x3f8] sm:$0x7] %vm13943_vm5, %v13859_v59 }
 0x9c1   : > { %14073 = vst.msk [vmem:[%s18044_s13 + $0x410] sm:$0xff] %vm2906_vm3, %v13861_v11 }
 0x9c3   : > { %v13819_v18 = vpop.permute.xlu1 %13818  ;;  %v13821_v33 = vpop.permute.xlu0 %13820 }
 0x9c4   : > { %14030 = vst.msk [vmem:[%s18044_s13 + $0x2b8] sm:$0x7] %vm13943_vm5, %v13819_v18 }
 0x9c5   : > { %14033 = vst.msk [vmem:[%s18044_s13 + $0x2d0] sm:$0xff] %vm2906_vm3, %v13821_v33 }
 0x9c7   : > { %v13863_v5 = vpop.permute.xlu1 %13862  ;;  %v13825_v13 = vpop.permute.xlu0 %13824 }
 0x9c8   : > { %14074 = vst.msk [vmem:[%s18044_s13 + $0x418] sm:$0x7] %vm13943_vm5, %v13863_v5 }
 0x9c9   : > { %14037 = vst.msk [vmem:[%s18044_s13 + $0x2f0] sm:$0xff] %vm2906_vm3, %v13825_v13 }
 0x9cb   : > { %v13823_v47 = vpop.permute.xlu1 %13822  ;;  %v13865_v20 = vpop.permute.xlu0 %13864 }
 0x9cc   : > { %14034 = vst.msk [vmem:[%s18044_s13 + $0x2d8] sm:$0x7] %vm13943_vm5, %v13823_v47 }
 0x9cd   : > { %14077 = vst.msk [vmem:[%s18044_s13 + $0x430] sm:$0xff] %vm2906_vm3, %v13865_v20 }
 0x9cf   : > { %v13827_v8 = vpop.permute.xlu1 %13826  ;;  %v13869_v56 = vpop.permute.xlu0 %13868 }
 0x9d0   : > { %14038 = vst.msk [vmem:[%s18044_s13 + $0x2f8] sm:$0x7] %vm13943_vm5, %v13827_v8 }
 0x9d1   : > { %14081 = vst.msk [vmem:[%s18044_s13 + $0x450] sm:$0xff] %vm2906_vm3, %v13869_v56 }
 0x9d3   : > { %v13867_v21 = vpop.permute.xlu1 %13866 }
 0x9d4   : > { %14078 = vst.msk [vmem:[%s18044_s13 + $0x438] sm:$0x7] %vm13943_vm5, %v13867_v21 }
 0x9d7   : > { %v13871_v26 = vpop.permute.xlu1 %13870 }
 0x9d8   : > { %14082 = vst.msk [vmem:[%s18044_s13 + $0x458] sm:$0x7] %vm13943_vm5, %v13871_v26 }
 0x9d9 PF: > { %s21_s24 = sadd.s32 1, %s14663_s24  }
 0x9da   : > { %p18_p9 = scmp.ge.s32.totalorder %s21_s24, 4  }
 0x9dc   :  { %20 = sbr.rel (!%p18_p9) target bundleno = 4 (0x4), region = 103 }
 0x9e3   :  { %14106 = vsyncpa [#allocation3], 1 }
 0x9e4   :  { %14108 = vsyncpa [#allocation3 + $0x1], 1 }
 0x9e5   :  { %14109 = vsyncpa [#allocation5], 1 }
 0x9e6   :  { %14110 = vsyncpa [#allocation8], 1 }
 0x9e7   :  { %14111 = vsyncpa [#allocation11], 1 }

</bundles_post_ra>
